<compile_context>
chip_gen: v7x
topology: tpu7x:2x2x1
jax: 0.10.0
libtpu: 0.0.40
codegen_flags: <defaults>
</compile_context>

<pallas_src>
import functools

import jax
import jax.numpy as jnp
from jax.experimental import pallas as pl
from jax.experimental.pallas import tpu as pltpu


# ----------------------------------------------------------------------------
# Pallas kernels
# ----------------------------------------------------------------------------
def _mm_kernel(x_ref, w_ref, b_ref, o_ref, acc_ref, *, relu):
    """K-split bf16 matmul, f32 VMEM accumulator, bias (+ReLU) epilogue."""
    @pl.when(pl.program_id(2) == 0)
    def _():
        acc_ref[...] = jnp.zeros_like(acc_ref)

    acc_ref[...] += jnp.dot(x_ref[...], w_ref[...],
                            preferred_element_type=jnp.float32)

    @pl.when(pl.program_id(2) == pl.num_programs(2) - 1)
    def _():
        y = acc_ref[...] + b_ref[...]
        if relu:
            y = jnp.maximum(y, 0.0)
        o_ref[...] = y.astype(o_ref.dtype)


def _mm_res_kernel(x_ref, w_ref, b_ref, r_ref, o_ref, acc_ref, *, relu):
    """Same as _mm_kernel with the residual add fused into the epilogue."""
    @pl.when(pl.program_id(2) == 0)
    def _():
        acc_ref[...] = jnp.zeros_like(acc_ref)

    acc_ref[...] += jnp.dot(x_ref[...], w_ref[...],
                            preferred_element_type=jnp.float32)

    @pl.when(pl.program_id(2) == pl.num_programs(2) - 1)
    def _():
        y = acc_ref[...] + b_ref[...] + r_ref[...].astype(jnp.float32)
        if relu:
            y = jnp.maximum(y, 0.0)
        o_ref[...] = y.astype(o_ref.dtype)


def _head_kernel(x_ref, w_ref, b_ref, o_ref):
    """Fused global average pool + final FC: x:[N,HW,C] -> logits:[N,2]."""
    pooled = jnp.mean(x_ref[...].astype(jnp.float32), axis=1)          # [N, C]
    o_ref[...] = (jnp.dot(pooled, w_ref[...],
                          preferred_element_type=jnp.float32) + b_ref[...])


# ----------------------------------------------------------------------------
# Pallas wrappers
# ----------------------------------------------------------------------------
def _round_up(x, m):
    return (x + m - 1) // m * m


def _pick_tile(dim, candidates):
    """Largest candidate that divides `dim`; else one full-extent block."""
    for t in candidates:
        if dim % t == 0:
            return t
    return dim          # ragged / tiny dim: full-extent block (Pallas-legal)


def fused_matmul_bias(x, w, bias, residual=None, relu=False,
                      out_dtype=jnp.bfloat16):
    """maybe_relu(x @ w + bias [+ residual]) with a K reduction grid axis.

    x: [M, K] bf16, w: [Kp, Nc] bf16 (BN folded, channel-padded),
    bias: [1, Nc] f32, residual: optional [M, Nc].
    """
    M, K = x.shape
    Kw, Nc = w.shape
    if K != Kw:                               # only the stem (147 -> 256)
        x = jnp.pad(x, ((0, 0), (0, Kw - K)))
        K = Kw

    tm = _pick_tile(M, (256, 128, 64, 32, 16, 8))
    tn = _pick_tile(Nc, (256, 128))
    tk = _pick_tile(K, (768, 512, 384, 256, 128))

    x = x.astype(jnp.bfloat16)
    operands = [x, w, bias]
    in_specs = [
        pl.BlockSpec((tm, tk), lambda i, j, k: (i, k)),
        pl.BlockSpec((tk, tn), lambda i, j, k: (k, j)),
        pl.BlockSpec((1, tn), lambda i, j, k: (0, j)),
    ]
    if residual is not None:
        operands.append(residual.astype(jnp.bfloat16))
        in_specs.append(pl.BlockSpec((tm, tn), lambda i, j, k: (i, j)))
        kernel = functools.partial(_mm_res_kernel, relu=relu)
    else:
        kernel = functools.partial(_mm_kernel, relu=relu)

    return pl.pallas_call(
        kernel,
        out_shape=jax.ShapeDtypeStruct((M, Nc), out_dtype),
        grid_spec=pltpu.PrefetchScalarGridSpec(
            num_scalar_prefetch=0,
            grid=(M // tm, Nc // tn, K // tk),
            in_specs=in_specs,
            out_specs=pl.BlockSpec((tm, tn), lambda i, j, k: (i, j)),
            scratch_shapes=[pltpu.VMEM((tm, tn), jnp.float32)],
        ),
        compiler_params=pltpu.CompilerParams(
            dimension_semantics=("parallel", "parallel", "arbitrary"),
            vmem_limit_bytes=24 << 20,
        ),
    )(*operands)


def conv_apply(x, layer, residual=None, relu=True):
    """Conv with folded BN + channel padding; optional fused residual / ReLU.

    x: [N, H, W, Cp] bf16, where Cp is the layer's (padded) input channels.
    """
    N, H, W, Cp = x.shape
    kh, kw = layer["kh"], layer["kw"]
    s, p = layer["stride"], layer["pad"]
    coutp = layer["cout"]
    Ho = (H + 2 * p - kh) // s + 1
    Wo = (W + 2 * p - kw) // s + 1
    M = N * Ho * Wo

    xp = jnp.pad(x, ((0, 0), (p, p), (p, p), (0, 0))) if p else x

    if kh == 1 and kw == 1:
        X = xp[:, ::s, ::s, :][:, :Ho, :Wo, :].reshape(M, Cp)
    else:
        # TODO(synk): read the kh*kw taps from the NHWC map inside the kernel
        # instead of materializing this im2col concat in HBM.
        patches = [xp[:, di:di + Ho * s:s, dj:dj + Wo * s:s, :]
                   for di in range(kh) for dj in range(kw)]
        X = jnp.concatenate(patches, axis=-1).reshape(M, kh * kw * Cp)

    res = residual.reshape(M, coutp) if residual is not None else None
    y = fused_matmul_bias(X, layer["wm"], layer["bias"],
                          residual=res, relu=relu)
    return y.reshape(N, Ho, Wo, coutp)


def maxpool_3x3_s2(x):
    """MaxPool2d(kernel=3, stride=2, padding=1) on NHWC as a max tree."""
    N, H, W, C = x.shape
    Ho, Wo = (H + 2 - 3) // 2 + 1, (W + 2 - 3) // 2 + 1
    xp = jnp.pad(x, ((0, 0), (1, 1), (1, 1), (0, 0)),
                 constant_values=-jnp.inf)
    out = None
    for di in range(3):
        for dj in range(3):
            v = xp[:, di:di + 2 * Ho:2, dj:dj + 2 * Wo:2, :]
            out = v if out is None else jnp.maximum(out, v)
    return out


def head_pool_fc(x, fc_w, fc_b):
    """Fused global average pool + 512->2 FC in one tiny Pallas kernel."""
    N, H, W, C = x.shape
    x3 = x.reshape(N, H * W, C)
    return pl.pallas_call(
        _head_kernel,
        out_shape=jax.ShapeDtypeStruct((N, fc_w.shape[1]), jnp.float32),
    )(x3, fc_w, fc_b)


# ----------------------------------------------------------------------------
# Parameters: raw (PyTorch-layout) init + one-time inference prep
# ----------------------------------------------------------------------------
def init_params(key):
    keys = iter(jax.random.split(key, 64))

    def conv_w(cout, cin, k):
        fan_in = cin * k * k
        return (jax.random.normal(next(keys), (cout, cin, k, k), jnp.float32)
                * jnp.sqrt(2.0 / fan_in))

    def bn(c):
        return dict(gamma=jnp.ones((c,), jnp.float32),
                    beta=jnp.zeros((c,), jnp.float32),
                    mean=jnp.zeros((c,), jnp.float32),
                    var=jnp.ones((c,), jnp.float32))

    params = dict(conv1=conv_w(64, 3, 7), bn1=bn(64))
    layers = []
    in_c = 64
    for planes, stride in [(64, 1), (128, 2), (256, 2), (512, 2)]:
        blocks = []
        for b in range(2):
            s = stride if b == 0 else 1
            blk = dict(conv1=conv_w(planes, in_c, 3), bn1=bn(planes),
                       conv2=conv_w(planes, planes, 3), bn2=bn(planes),
                       stride=s)
            if s != 1 or in_c != planes:
                blk["down_conv"] = conv_w(planes, in_c, 1)
                blk["down_bn"] = bn(planes)
            blocks.append(blk)
            in_c = planes
        layers.append(blocks)
    params["layers"] = layers
    params["fc_w"] = (jax.random.normal(next(keys), (2, 512), jnp.float32)
                      * jnp.sqrt(1.0 / 512))
    params["fc_b"] = jnp.zeros((2,), jnp.float32)
    return params


def _fold_conv_bn(w, bn, stride, pad, cin_p, cout_p, eps=1e-5):
    """Fold eval-mode BN into conv; pad cin/cout; pre-transpose to [Kp, Coutp].

    Padded input-channel rows and output-channel columns are zero, so the
    channel-padded activations stay exactly zero through the whole network.
    """
    cout, cin, kh, kw = w.shape
    inv = 1.0 / jnp.sqrt(bn["var"] + eps)
    scale = bn["gamma"] * inv
    bias = bn["beta"] - bn["mean"] * scale
    w = w * scale[:, None, None, None]                       # fold BN in f32
    w = jnp.pad(w, ((0, cout_p - cout), (0, cin_p - cin), (0, 0), (0, 0)))
    bias = jnp.pad(bias, (0, cout_p - cout))
    wm = jnp.transpose(w, (2, 3, 1, 0)).reshape(kh * kw * cin_p, cout_p)
    K = kh * kw * cin_p
    Kp = _round_up(K, 128)
    if Kp != K:                                # only the stem (147 -> 256)
        wm = jnp.pad(wm, ((0, Kp - K), (0, 0)))
    return dict(wm=wm.astype(jnp.bfloat16),
                bias=bias.reshape(1, -1).astype(jnp.float32),
                kh=kh, kw=kw, stride=stride, pad=pad, cout=cout_p)


def prepare_inference_params(params):
    pad_c = lambda c: max(c, 128)          # lane-dense outputs / aligned K
    p = dict(stem=_fold_conv_bn(params["conv1"], params["bn1"], stride=2,
                                pad=3, cin_p=3, cout_p=pad_c(64)))
    layers = []
    for stage in params["layers"]:
        blocks = []
        for blk in stage:
            planes, cin = blk["conv1"].shape[0], blk["conv1"].shape[1]
            b = dict(
                c1=_fold_conv_bn(blk["conv1"], blk["bn1"],
                                 stride=blk["stride"], pad=1,
                                 cin_p=pad_c(cin), cout_p=pad_c(planes)),
                c2=_fold_conv_bn(blk["conv2"], blk["bn2"], stride=1, pad=1,
                                 cin_p=pad_c(planes), cout_p=pad_c(planes)))
            if "down_conv" in blk:
                b["down"] = _fold_conv_bn(blk["down_conv"], blk["down_bn"],
                                          stride=blk["stride"], pad=0,
                                          cin_p=pad_c(cin),
                                          cout_p=pad_c(planes))
            blocks.append(b)
        layers.append(blocks)
    p["layers"] = layers
    p["fc_w"] = params["fc_w"].T.astype(jnp.float32)               # [512, 2]
    p["fc_b"] = params["fc_b"].reshape(1, -1).astype(jnp.float32)  # [1, 2]
    return p


# ----------------------------------------------------------------------------
# Forward
# ----------------------------------------------------------------------------
def gender_classifier_resnet18_forward(prepped, x_nchw):
    # x_nchw: [N, C, H, W] (PyTorch layout); NHWC + bf16 internally.
    x = jnp.transpose(x_nchw, (0, 2, 3, 1)).astype(jnp.bfloat16)

    # stem: 7x7/s2 conv (+BN+ReLU fused), then 3x3/s2 maxpool
    x = conv_apply(x, prepped["stem"], relu=True)
    x = maxpool_3x3_s2(x)

    # residual stages (BasicBlock x 2 each); residual add + ReLU are fused
    # into the epilogue of each block's second conv matmul.
    for stage in prepped["layers"]:
        for blk in stage:
            identity = x
            out = conv_apply(x, blk["c1"], relu=True)
            if "down" in blk:
                identity = conv_apply(x, blk["down"], relu=False)
            x = conv_apply(out, blk["c2"], residual=identity, relu=True)

    # head: fused global average pool + 512->2 FC (stage-4 channels are
    # exactly 512, so no padded channels reach the classifier).
    return head_pool_fc(x, prepped["fc_w"], prepped["fc_b"])


# ----------------------------------------------------------------------------
if __name__ == "__main__":
    key = jax.random.PRNGKey(0)
    kp, kx = jax.random.split(key)

    params = init_params(kp)
    prepped = prepare_inference_params(params)   # one-time BN fold / weight prep

    # Small input consistent with the module: 3-channel image, 32x32 spatial
    # (minimum that survives the 32x total downsampling of ResNet-18).
    x = jax.random.normal(kx, (2, 3, 32, 32), jnp.float32)

    fwd = jax.jit(functools.partial(gender_classifier_resnet18_forward, prepped))
    logits = jax.block_until_ready(fwd(x))

    assert logits.shape == (2, 2), logits.shape
    assert bool(jnp.all(jnp.isfinite(logits)))
    print("KERNEL_OK")
</pallas_src>

<mosaic_0001>
module attributes {stable_mosaic.version = 11 : i64} {
  func.func @_mm_kernel(%arg0: i32, %arg1: i32, %arg2: i32, %arg3: memref<256x256xbf16, #tpu.memory_space<vmem>>, %arg4: memref<256x128xbf16, #tpu.memory_space<vmem>>, %arg5: memref<1x128xf32, #tpu.memory_space<vmem>>, %arg6: memref<256x128xbf16, #tpu.memory_space<vmem>>, %arg7: memref<256x128xf32, #tpu.memory_space<vmem>>) attributes {dimension_semantics = [#tpu.dimension_semantics<parallel>, #tpu.dimension_semantics<parallel>, #tpu.dimension_semantics<arbitrary>], iteration_bounds = array<i64: 2, 1, 1>, scalar_prefetch = 0 : i64, scratch_operands = 1 : i64, tpu.core_type = #tpu.core_type<tc>, window_params = [{transform_indices = @transform_0, window_bounds = array<i64: 256, 256>}, {transform_indices = @transform_1, window_bounds = array<i64: 256, 128>}, {transform_indices = @transform_2, window_bounds = array<i64: 1, 128>}, {transform_indices = @transform_3, window_bounds = array<i64: 256, 128>}]} {
    %c0_i32 = arith.constant 0 : i32
    %0 = arith.cmpi eq, %arg2, %c0_i32 : i32
    %1 = arith.extui %0 : i1 to i32
    %c0_i32_0 = arith.constant 0 : i32
    %2 = arith.cmpi ne, %1, %c0_i32_0 : i32
    scf.if %2 {
      %cst_10 = arith.constant 0.000000e+00 : f32
      %12 = vector.broadcast %cst_10 : f32 to vector<256x128xf32>
      %c0_11 = arith.constant 0 : index
      %c0_12 = arith.constant 0 : index
      %13 = vector.load %arg7[%c0_11, %c0_12] : memref<256x128xf32, #tpu.memory_space<vmem>>, vector<256x128xf32>
      tpu.vector_store %arg7[%c0_11, %c0_12], %12 {strides = array<i32>} : memref<256x128xf32, #tpu.memory_space<vmem>>, vector<256x128xf32>,
    } else {
    }
    %c0 = arith.constant 0 : index
    %c0_1 = arith.constant 0 : index
    %3 = vector.load %arg7[%c0, %c0_1] : memref<256x128xf32, #tpu.memory_space<vmem>>, vector<256x128xf32>
    %c0_2 = arith.constant 0 : index
    %c0_3 = arith.constant 0 : index
    %4 = vector.load %arg3[%c0_2, %c0_3] : memref<256x256xbf16, #tpu.memory_space<vmem>>, vector<256x256xbf16>
    %c0_4 = arith.constant 0 : index
    %c0_5 = arith.constant 0 : index
    %5 = vector.load %arg4[%c0_4, %c0_5] : memref<256x128xbf16, #tpu.memory_space<vmem>>, vector<256x128xbf16>
    %cst = arith.constant dense<0.000000e+00> : vector<256x128xf32>
    %6 = tpu.matmul %4, %5, %cst {dimension_numbers = #tpu.dot_dimension_numbers<[1], [0], [0], [1], [0, 0, 1, 1], [], []>} : vector<256x256xbf16>, vector<256x128xbf16>, vector<256x128xf32> -> vector<256x128xf32>
    %7 = arith.addf %3, %6 : vector<256x128xf32>
    %c0_6 = arith.constant 0 : index
    %c0_7 = arith.constant 0 : index
    %8 = vector.load %arg7[%c0_6, %c0_7] : memref<256x128xf32, #tpu.memory_space<vmem>>, vector<256x128xf32>
    tpu.vector_store %arg7[%c0_6, %c0_7], %7 {strides = array<i32>} : memref<256x128xf32, #tpu.memory_space<vmem>>, vector<256x128xf32>,
    %c0_i32_8 = arith.constant 0 : i32
    %9 = arith.cmpi eq, %arg2, %c0_i32_8 : i32
    %10 = arith.extui %9 : i1 to i32
    %c0_i32_9 = arith.constant 0 : i32
    %11 = arith.cmpi ne, %10, %c0_i32_9 : i32
    scf.if %11 {
      %c0_10 = arith.constant 0 : index
      %c0_11 = arith.constant 0 : index
      %12 = vector.load %arg7[%c0_10, %c0_11] : memref<256x128xf32, #tpu.memory_space<vmem>>, vector<256x128xf32>
      %c0_12 = arith.constant 0 : index
      %c0_13 = arith.constant 0 : index
      %13 = vector.load %arg5[%c0_12, %c0_13] : memref<1x128xf32, #tpu.memory_space<vmem>>, vector<1x128xf32>
      %14 = vector.broadcast %13 : vector<1x128xf32> to vector<256x128xf32>
      %15 = arith.addf %12, %14 : vector<256x128xf32>
      %cst_14 = arith.constant 0.000000e+00 : f32
      %16 = vector.broadcast %cst_14 : f32 to vector<256x128xf32>
      %17 = arith.maximumf %15, %16 : vector<256x128xf32>
      %18 = arith.truncf %17 : vector<256x128xf32> to vector<256x128xbf16>
      %c0_15 = arith.constant 0 : index
      %c0_16 = arith.constant 0 : index
      %19 = vector.load %arg6[%c0_15, %c0_16] : memref<256x128xbf16, #tpu.memory_space<vmem>>, vector<256x128xbf16>
      tpu.vector_store %arg6[%c0_15, %c0_16], %18 {strides = array<i32>} : memref<256x128xbf16, #tpu.memory_space<vmem>>, vector<256x128xbf16>,
    } else {
    }
    return
  }
  func.func @transform_0(%arg0: i32, %arg1: i32, %arg2: i32) -> (i32, i32) {
    %c0_i32 = arith.constant 0 : i32
    return %arg0, %arg2 : i32, i32
  }
  func.func @transform_1(%arg0: i32, %arg1: i32, %arg2: i32) -> (i32, i32) {
    %c0_i32 = arith.constant 0 : i32
    return %arg2, %arg1 : i32, i32
  }
  func.func @transform_2(%arg0: i32, %arg1: i32, %arg2: i32) -> (i32, i32) {
    %c0_i32 = arith.constant 0 : i32
    %c0_i32_0 = arith.constant 0 : i32
    return %c0_i32, %arg1 : i32, i32
  }
  func.func @transform_3(%arg0: i32, %arg1: i32, %arg2: i32) -> (i32, i32) {
    %c0_i32 = arith.constant 0 : i32
    return %arg0, %arg1 : i32, i32
  }
}

module attributes {stable_mosaic.version = 11 : i64} {
  func.func @_mm_kernel(%arg0: i32, %arg1: i32, %arg2: i32, %arg3: memref<128x384xbf16, #tpu.memory_space<vmem>>, %arg4: memref<384x128xbf16, #tpu.memory_space<vmem>>, %arg5: memref<1x128xf32, #tpu.memory_space<vmem>>, %arg6: memref<128x128xbf16, #tpu.memory_space<vmem>>, %arg7: memref<128x128xf32, #tpu.memory_space<vmem>>) attributes {dimension_semantics = [#tpu.dimension_semantics<parallel>, #tpu.dimension_semantics<parallel>, #tpu.dimension_semantics<arbitrary>], iteration_bounds = array<i64: 1, 1, 3>, scalar_prefetch = 0 : i64, scratch_operands = 1 : i64, tpu.core_type = #tpu.core_type<tc>, window_params = [{transform_indices = @transform_0, window_bounds = array<i64: 128, 384>}, {transform_indices = @transform_1, window_bounds = array<i64: 384, 128>}, {transform_indices = @transform_2, window_bounds = array<i64: 1, 128>}, {transform_indices = @transform_3, window_bounds = array<i64: 128, 128>}]} {
    %c0_i32 = arith.constant 0 : i32
    %0 = arith.cmpi eq, %arg2, %c0_i32 : i32
    %1 = arith.extui %0 : i1 to i32
    %c0_i32_0 = arith.constant 0 : i32
    %2 = arith.cmpi ne, %1, %c0_i32_0 : i32
    scf.if %2 {
      %cst_9 = arith.constant 0.000000e+00 : f32
      %12 = vector.broadcast %cst_9 : f32 to vector<128x128xf32>
      %c0_10 = arith.constant 0 : index
      %c0_11 = arith.constant 0 : index
      %13 = vector.load %arg7[%c0_10, %c0_11] : memref<128x128xf32, #tpu.memory_space<vmem>>, vector<128x128xf32>
      tpu.vector_store %arg7[%c0_10, %c0_11], %12 {strides = array<i32>} : memref<128x128xf32, #tpu.memory_space<vmem>>, vector<128x128xf32>,
    } else {
    }
    %c0 = arith.constant 0 : index
    %c0_1 = arith.constant 0 : index
    %3 = vector.load %arg7[%c0, %c0_1] : memref<128x128xf32, #tpu.memory_space<vmem>>, vector<128x128xf32>
    %c0_2 = arith.constant 0 : index
    %c0_3 = arith.constant 0 : index
    %4 = vector.load %arg3[%c0_2, %c0_3] : memref<128x384xbf16, #tpu.memory_space<vmem>>, vector<128x384xbf16>
    %c0_4 = arith.constant 0 : index
    %c0_5 = arith.constant 0 : index
    %5 = vector.load %arg4[%c0_4, %c0_5] : memref<384x128xbf16, #tpu.memory_space<vmem>>, vector<384x128xbf16>
    %cst = arith.constant dense<0.000000e+00> : vector<128x128xf32>
    %6 = tpu.matmul %4, %5, %cst {dimension_numbers = #tpu.dot_dimension_numbers<[1], [0], [0], [1], [0, 0, 1, 1], [], []>} : vector<128x384xbf16>, vector<384x128xbf16>, vector<128x128xf32> -> vector<128x128xf32>
    %7 = arith.addf %3, %6 : vector<128x128xf32>
    %c0_6 = arith.constant 0 : index
    %c0_7 = arith.constant 0 : index
    %8 = vector.load %arg7[%c0_6, %c0_7] : memref<128x128xf32, #tpu.memory_space<vmem>>, vector<128x128xf32>
    tpu.vector_store %arg7[%c0_6, %c0_7], %7 {strides = array<i32>} : memref<128x128xf32, #tpu.memory_space<vmem>>, vector<128x128xf32>,
    %c2_i32 = arith.constant 2 : i32
    %9 = arith.cmpi eq, %arg2, %c2_i32 : i32
    %10 = arith.extui %9 : i1 to i32
    %c0_i32_8 = arith.constant 0 : i32
    %11 = arith.cmpi ne, %10, %c0_i32_8 : i32
    scf.if %11 {
      %c0_9 = arith.constant 0 : index
      %c0_10 = arith.constant 0 : index
      %12 = vector.load %arg7[%c0_9, %c0_10] : memref<128x128xf32, #tpu.memory_space<vmem>>, vector<128x128xf32>
      %c0_11 = arith.constant 0 : index
      %c0_12 = arith.constant 0 : index
      %13 = vector.load %arg5[%c0_11, %c0_12] : memref<1x128xf32, #tpu.memory_space<vmem>>, vector<1x128xf32>
      %14 = vector.broadcast %13 : vector<1x128xf32> to vector<128x128xf32>
      %15 = arith.addf %12, %14 : vector<128x128xf32>
      %cst_13 = arith.constant 0.000000e+00 : f32
      %16 = vector.broadcast %cst_13 : f32 to vector<128x128xf32>
      %17 = arith.maximumf %15, %16 : vector<128x128xf32>
      %18 = arith.truncf %17 : vector<128x128xf32> to vector<128x128xbf16>
      %c0_14 = arith.constant 0 : index
      %c0_15 = arith.constant 0 : index
      %19 = vector.load %arg6[%c0_14, %c0_15] : memref<128x128xbf16, #tpu.memory_space<vmem>>, vector<128x128xbf16>
      tpu.vector_store %arg6[%c0_14, %c0_15], %18 {strides = array<i32>} : memref<128x128xbf16, #tpu.memory_space<vmem>>, vector<128x128xbf16>,
    } else {
    }
    return
  }
  func.func @transform_0(%arg0: i32, %arg1: i32, %arg2: i32) -> (i32, i32) {
    %c0_i32 = arith.constant 0 : i32
    return %arg0, %arg2 : i32, i32
  }
  func.func @transform_1(%arg0: i32, %arg1: i32, %arg2: i32) -> (i32, i32) {
    %c0_i32 = arith.constant 0 : i32
    return %arg2, %arg1 : i32, i32
  }
  func.func @transform_2(%arg0: i32, %arg1: i32, %arg2: i32) -> (i32, i32) {
    %c0_i32 = arith.constant 0 : i32
    %c0_i32_0 = arith.constant 0 : i32
    return %c0_i32, %arg1 : i32, i32
  }
  func.func @transform_3(%arg0: i32, %arg1: i32, %arg2: i32) -> (i32, i32) {
    %c0_i32 = arith.constant 0 : i32
    return %arg0, %arg1 : i32, i32
  }
}

module attributes {stable_mosaic.version = 11 : i64} {
  func.func @_mm_res_kernel(%arg0: i32, %arg1: i32, %arg2: i32, %arg3: memref<128x384xbf16, #tpu.memory_space<vmem>>, %arg4: memref<384x128xbf16, #tpu.memory_space<vmem>>, %arg5: memref<1x128xf32, #tpu.memory_space<vmem>>, %arg6: memref<128x128xbf16, #tpu.memory_space<vmem>>, %arg7: memref<128x128xbf16, #tpu.memory_space<vmem>>, %arg8: memref<128x128xf32, #tpu.memory_space<vmem>>) attributes {dimension_semantics = [#tpu.dimension_semantics<parallel>, #tpu.dimension_semantics<parallel>, #tpu.dimension_semantics<arbitrary>], iteration_bounds = array<i64: 1, 1, 3>, scalar_prefetch = 0 : i64, scratch_operands = 1 : i64, tpu.core_type = #tpu.core_type<tc>, window_params = [{transform_indices = @transform_0, window_bounds = array<i64: 128, 384>}, {transform_indices = @transform_1, window_bounds = array<i64: 384, 128>}, {transform_indices = @transform_2, window_bounds = array<i64: 1, 128>}, {transform_indices = @transform_3, window_bounds = array<i64: 128, 128>}, {transform_indices = @transform_4, window_bounds = array<i64: 128, 128>}]} {
    %c0_i32 = arith.constant 0 : i32
    %0 = arith.cmpi eq, %arg2, %c0_i32 : i32
    %1 = arith.extui %0 : i1 to i32
    %c0_i32_0 = arith.constant 0 : i32
    %2 = arith.cmpi ne, %1, %c0_i32_0 : i32
    scf.if %2 {
      %cst_9 = arith.constant 0.000000e+00 : f32
      %12 = vector.broadcast %cst_9 : f32 to vector<128x128xf32>
      %c0_10 = arith.constant 0 : index
      %c0_11 = arith.constant 0 : index
      %13 = vector.load %arg8[%c0_10, %c0_11] : memref<128x128xf32, #tpu.memory_space<vmem>>, vector<128x128xf32>
      tpu.vector_store %arg8[%c0_10, %c0_11], %12 {strides = array<i32>} : memref<128x128xf32, #tpu.memory_space<vmem>>, vector<128x128xf32>,
    } else {
    }
    %c0 = arith.constant 0 : index
    %c0_1 = arith.constant 0 : index
    %3 = vector.load %arg8[%c0, %c0_1] : memref<128x128xf32, #tpu.memory_space<vmem>>, vector<128x128xf32>
    %c0_2 = arith.constant 0 : index
    %c0_3 = arith.constant 0 : index
    %4 = vector.load %arg3[%c0_2, %c0_3] : memref<128x384xbf16, #tpu.memory_space<vmem>>, vector<128x384xbf16>
    %c0_4 = arith.constant 0 : index
    %c0_5 = arith.constant 0 : index
    %5 = vector.load %arg4[%c0_4, %c0_5] : memref<384x128xbf16, #tpu.memory_space<vmem>>, vector<384x128xbf16>
    %cst = arith.constant dense<0.000000e+00> : vector<128x128xf32>
    %6 = tpu.matmul %4, %5, %cst {dimension_numbers = #tpu.dot_dimension_numbers<[1], [0], [0], [1], [0, 0, 1, 1], [], []>} : vector<128x384xbf16>, vector<384x128xbf16>, vector<128x128xf32> -> vector<128x128xf32>
    %7 = arith.addf %3, %6 : vector<128x128xf32>
    %c0_6 = arith.constant 0 : index
    %c0_7 = arith.constant 0 : index
    %8 = vector.load %arg8[%c0_6, %c0_7] : memref<128x128xf32, #tpu.memory_space<vmem>>, vector<128x128xf32>
    tpu.vector_store %arg8[%c0_6, %c0_7], %7 {strides = array<i32>} : memref<128x128xf32, #tpu.memory_space<vmem>>, vector<128x128xf32>,
    %c2_i32 = arith.constant 2 : i32
    %9 = arith.cmpi eq, %arg2, %c2_i32 : i32
    %10 = arith.extui %9 : i1 to i32
    %c0_i32_8 = arith.constant 0 : i32
    %11 = arith.cmpi ne, %10, %c0_i32_8 : i32
    scf.if %11 {
      %c0_9 = arith.constant 0 : index
      %c0_10 = arith.constant 0 : index
      %12 = vector.load %arg8[%c0_9, %c0_10] : memref<128x128xf32, #tpu.memory_space<vmem>>, vector<128x128xf32>
      %c0_11 = arith.constant 0 : index
      %c0_12 = arith.constant 0 : index
      %13 = vector.load %arg5[%c0_11, %c0_12] : memref<1x128xf32, #tpu.memory_space<vmem>>, vector<1x128xf32>
      %14 = vector.broadcast %13 : vector<1x128xf32> to vector<128x128xf32>
      %15 = arith.addf %12, %14 : vector<128x128xf32>
      %c0_13 = arith.constant 0 : index
      %c0_14 = arith.constant 0 : index
      %16 = vector.load %arg6[%c0_13, %c0_14] : memref<128x128xbf16, #tpu.memory_space<vmem>>, vector<128x128xbf16>
      %17 = arith.extf %16 : vector<128x128xbf16> to vector<128x128xf32>
      %18 = arith.addf %15, %17 : vector<128x128xf32>
      %cst_15 = arith.constant 0.000000e+00 : f32
      %19 = vector.broadcast %cst_15 : f32 to vector<128x128xf32>
      %20 = arith.maximumf %18, %19 : vector<128x128xf32>
      %21 = arith.truncf %20 : vector<128x128xf32> to vector<128x128xbf16>
      %c0_16 = arith.constant 0 : index
      %c0_17 = arith.constant 0 : index
      %22 = vector.load %arg7[%c0_16, %c0_17] : memref<128x128xbf16, #tpu.memory_space<vmem>>, vector<128x128xbf16>
      tpu.vector_store %arg7[%c0_16, %c0_17], %21 {strides = array<i32>} : memref<128x128xbf16, #tpu.memory_space<vmem>>, vector<128x128xbf16>,
    } else {
    }
    return
  }
  func.func @transform_0(%arg0: i32, %arg1: i32, %arg2: i32) -> (i32, i32) {
    %c0_i32 = arith.constant 0 : i32
    return %arg0, %arg2 : i32, i32
  }
  func.func @transform_1(%arg0: i32, %arg1: i32, %arg2: i32) -> (i32, i32) {
    %c0_i32 = arith.constant 0 : i32
    return %arg2, %arg1 : i32, i32
  }
  func.func @transform_2(%arg0: i32, %arg1: i32, %arg2: i32) -> (i32, i32) {
    %c0_i32 = arith.constant 0 : i32
    %c0_i32_0 = arith.constant 0 : i32
    return %c0_i32, %arg1 : i32, i32
  }
  func.func @transform_3(%arg0: i32, %arg1: i32, %arg2: i32) -> (i32, i32) {
    %c0_i32 = arith.constant 0 : i32
    return %arg0, %arg1 : i32, i32
  }
  func.func @transform_4(%arg0: i32, %arg1: i32, %arg2: i32) -> (i32, i32) {
    %c0_i32 = arith.constant 0 : i32
    return %arg0, %arg1 : i32, i32
  }
}

module attributes {stable_mosaic.version = 11 : i64} {
  func.func @_mm_kernel(%arg0: i32, %arg1: i32, %arg2: i32, %arg3: memref<32x384xbf16, #tpu.memory_space<vmem>>, %arg4: memref<384x128xbf16, #tpu.memory_space<vmem>>, %arg5: memref<1x128xf32, #tpu.memory_space<vmem>>, %arg6: memref<32x128xbf16, #tpu.memory_space<vmem>>, %arg7: memref<32x128xf32, #tpu.memory_space<vmem>>) attributes {dimension_semantics = [#tpu.dimension_semantics<parallel>, #tpu.dimension_semantics<parallel>, #tpu.dimension_semantics<arbitrary>], iteration_bounds = array<i64: 1, 1, 3>, scalar_prefetch = 0 : i64, scratch_operands = 1 : i64, tpu.core_type = #tpu.core_type<tc>, window_params = [{transform_indices = @transform_0, window_bounds = array<i64: 32, 384>}, {transform_indices = @transform_1, window_bounds = array<i64: 384, 128>}, {transform_indices = @transform_2, window_bounds = array<i64: 1, 128>}, {transform_indices = @transform_3, window_bounds = array<i64: 32, 128>}]} {
    %c0_i32 = arith.constant 0 : i32
    %0 = arith.cmpi eq, %arg2, %c0_i32 : i32
    %1 = arith.extui %0 : i1 to i32
    %c0_i32_0 = arith.constant 0 : i32
    %2 = arith.cmpi ne, %1, %c0_i32_0 : i32
    scf.if %2 {
      %cst_9 = arith.constant 0.000000e+00 : f32
      %12 = vector.broadcast %cst_9 : f32 to vector<32x128xf32>
      %c0_10 = arith.constant 0 : index
      %c0_11 = arith.constant 0 : index
      %13 = vector.load %arg7[%c0_10, %c0_11] : memref<32x128xf32, #tpu.memory_space<vmem>>, vector<32x128xf32>
      tpu.vector_store %arg7[%c0_10, %c0_11], %12 {strides = array<i32>} : memref<32x128xf32, #tpu.memory_space<vmem>>, vector<32x128xf32>,
    } else {
    }
    %c0 = arith.constant 0 : index
    %c0_1 = arith.constant 0 : index
    %3 = vector.load %arg7[%c0, %c0_1] : memref<32x128xf32, #tpu.memory_space<vmem>>, vector<32x128xf32>
    %c0_2 = arith.constant 0 : index
    %c0_3 = arith.constant 0 : index
    %4 = vector.load %arg3[%c0_2, %c0_3] : memref<32x384xbf16, #tpu.memory_space<vmem>>, vector<32x384xbf16>
    %c0_4 = arith.constant 0 : index
    %c0_5 = arith.constant 0 : index
    %5 = vector.load %arg4[%c0_4, %c0_5] : memref<384x128xbf16, #tpu.memory_space<vmem>>, vector<384x128xbf16>
    %cst = arith.constant dense<0.000000e+00> : vector<32x128xf32>
    %6 = tpu.matmul %4, %5, %cst {dimension_numbers = #tpu.dot_dimension_numbers<[1], [0], [0], [1], [0, 0, 1, 1], [], []>} : vector<32x384xbf16>, vector<384x128xbf16>, vector<32x128xf32> -> vector<32x128xf32>
    %7 = arith.addf %3, %6 : vector<32x128xf32>
    %c0_6 = arith.constant 0 : index
    %c0_7 = arith.constant 0 : index
    %8 = vector.load %arg7[%c0_6, %c0_7] : memref<32x128xf32, #tpu.memory_space<vmem>>, vector<32x128xf32>
    tpu.vector_store %arg7[%c0_6, %c0_7], %7 {strides = array<i32>} : memref<32x128xf32, #tpu.memory_space<vmem>>, vector<32x128xf32>,
    %c2_i32 = arith.constant 2 : i32
    %9 = arith.cmpi eq, %arg2, %c2_i32 : i32
    %10 = arith.extui %9 : i1 to i32
    %c0_i32_8 = arith.constant 0 : i32
    %11 = arith.cmpi ne, %10, %c0_i32_8 : i32
    scf.if %11 {
      %c0_9 = arith.constant 0 : index
      %c0_10 = arith.constant 0 : index
      %12 = vector.load %arg7[%c0_9, %c0_10] : memref<32x128xf32, #tpu.memory_space<vmem>>, vector<32x128xf32>
      %c0_11 = arith.constant 0 : index
      %c0_12 = arith.constant 0 : index
      %13 = vector.load %arg5[%c0_11, %c0_12] : memref<1x128xf32, #tpu.memory_space<vmem>>, vector<1x128xf32>
      %14 = vector.broadcast %13 : vector<1x128xf32> to vector<32x128xf32>
      %15 = arith.addf %12, %14 : vector<32x128xf32>
      %cst_13 = arith.constant 0.000000e+00 : f32
      %16 = vector.broadcast %cst_13 : f32 to vector<32x128xf32>
      %17 = arith.maximumf %15, %16 : vector<32x128xf32>
      %18 = arith.truncf %17 : vector<32x128xf32> to vector<32x128xbf16>
      %c0_14 = arith.constant 0 : index
      %c0_15 = arith.constant 0 : index
      %19 = vector.load %arg6[%c0_14, %c0_15] : memref<32x128xbf16, #tpu.memory_space<vmem>>, vector<32x128xbf16>
      tpu.vector_store %arg6[%c0_14, %c0_15], %18 {strides = array<i32>} : memref<32x128xbf16, #tpu.memory_space<vmem>>, vector<32x128xbf16>,
    } else {
    }
    return
  }
  func.func @transform_0(%arg0: i32, %arg1: i32, %arg2: i32) -> (i32, i32) {
    %c0_i32 = arith.constant 0 : i32
    return %arg0, %arg2 : i32, i32
  }
  func.func @transform_1(%arg0: i32, %arg1: i32, %arg2: i32) -> (i32, i32) {
    %c0_i32 = arith.constant 0 : i32
    return %arg2, %arg1 : i32, i32
  }
  func.func @transform_2(%arg0: i32, %arg1: i32, %arg2: i32) -> (i32, i32) {
    %c0_i32 = arith.constant 0 : i32
    %c0_i32_0 = arith.constant 0 : i32
    return %c0_i32, %arg1 : i32, i32
  }
  func.func @transform_3(%arg0: i32, %arg1: i32, %arg2: i32) -> (i32, i32) {
    %c0_i32 = arith.constant 0 : i32
    return %arg0, %arg1 : i32, i32
  }
}

module attributes {stable_mosaic.version = 11 : i64} {
  func.func @_mm_res_kernel(%arg0: i32, %arg1: i32, %arg2: i32, %arg3: memref<32x384xbf16, #tpu.memory_space<vmem>>, %arg4: memref<384x128xbf16, #tpu.memory_space<vmem>>, %arg5: memref<1x128xf32, #tpu.memory_space<vmem>>, %arg6: memref<32x128xbf16, #tpu.memory_space<vmem>>, %arg7: memref<32x128xbf16, #tpu.memory_space<vmem>>, %arg8: memref<32x128xf32, #tpu.memory_space<vmem>>) attributes {dimension_semantics = [#tpu.dimension_semantics<parallel>, #tpu.dimension_semantics<parallel>, #tpu.dimension_semantics<arbitrary>], iteration_bounds = array<i64: 1, 1, 3>, scalar_prefetch = 0 : i64, scratch_operands = 1 : i64, tpu.core_type = #tpu.core_type<tc>, window_params = [{transform_indices = @transform_0, window_bounds = array<i64: 32, 384>}, {transform_indices = @transform_1, window_bounds = array<i64: 384, 128>}, {transform_indices = @transform_2, window_bounds = array<i64: 1, 128>}, {transform_indices = @transform_3, window_bounds = array<i64: 32, 128>}, {transform_indices = @transform_4, window_bounds = array<i64: 32, 128>}]} {
    %c0_i32 = arith.constant 0 : i32
    %0 = arith.cmpi eq, %arg2, %c0_i32 : i32
    %1 = arith.extui %0 : i1 to i32
    %c0_i32_0 = arith.constant 0 : i32
    %2 = arith.cmpi ne, %1, %c0_i32_0 : i32
    scf.if %2 {
      %cst_9 = arith.constant 0.000000e+00 : f32
      %12 = vector.broadcast %cst_9 : f32 to vector<32x128xf32>
      %c0_10 = arith.constant 0 : index
      %c0_11 = arith.constant 0 : index
      %13 = vector.load %arg8[%c0_10, %c0_11] : memref<32x128xf32, #tpu.memory_space<vmem>>, vector<32x128xf32>
      tpu.vector_store %arg8[%c0_10, %c0_11], %12 {strides = array<i32>} : memref<32x128xf32, #tpu.memory_space<vmem>>, vector<32x128xf32>,
    } else {
    }
    %c0 = arith.constant 0 : index
    %c0_1 = arith.constant 0 : index
    %3 = vector.load %arg8[%c0, %c0_1] : memref<32x128xf32, #tpu.memory_space<vmem>>, vector<32x128xf32>
    %c0_2 = arith.constant 0 : index
    %c0_3 = arith.constant 0 : index
    %4 = vector.load %arg3[%c0_2, %c0_3] : memref<32x384xbf16, #tpu.memory_space<vmem>>, vector<32x384xbf16>
    %c0_4 = arith.constant 0 : index
    %c0_5 = arith.constant 0 : index
    %5 = vector.load %arg4[%c0_4, %c0_5] : memref<384x128xbf16, #tpu.memory_space<vmem>>, vector<384x128xbf16>
    %cst = arith.constant dense<0.000000e+00> : vector<32x128xf32>
    %6 = tpu.matmul %4, %5, %cst {dimension_numbers = #tpu.dot_dimension_numbers<[1], [0], [0], [1], [0, 0, 1, 1], [], []>} : vector<32x384xbf16>, vector<384x128xbf16>, vector<32x128xf32> -> vector<32x128xf32>
    %7 = arith.addf %3, %6 : vector<32x128xf32>
    %c0_6 = arith.constant 0 : index
    %c0_7 = arith.constant 0 : index
    %8 = vector.load %arg8[%c0_6, %c0_7] : memref<32x128xf32, #tpu.memory_space<vmem>>, vector<32x128xf32>
    tpu.vector_store %arg8[%c0_6, %c0_7], %7 {strides = array<i32>} : memref<32x128xf32, #tpu.memory_space<vmem>>, vector<32x128xf32>,
    %c2_i32 = arith.constant 2 : i32
    %9 = arith.cmpi eq, %arg2, %c2_i32 : i32
    %10 = arith.extui %9 : i1 to i32
    %c0_i32_8 = arith.constant 0 : i32
    %11 = arith.cmpi ne, %10, %c0_i32_8 : i32
    scf.if %11 {
      %c0_9 = arith.constant 0 : index
      %c0_10 = arith.constant 0 : index
      %12 = vector.load %arg8[%c0_9, %c0_10] : memref<32x128xf32, #tpu.memory_space<vmem>>, vector<32x128xf32>
      %c0_11 = arith.constant 0 : index
      %c0_12 = arith.constant 0 : index
      %13 = vector.load %arg5[%c0_11, %c0_12] : memref<1x128xf32, #tpu.memory_space<vmem>>, vector<1x128xf32>
      %14 = vector.broadcast %13 : vector<1x128xf32> to vector<32x128xf32>
      %15 = arith.addf %12, %14 : vector<32x128xf32>
      %c0_13 = arith.constant 0 : index
      %c0_14 = arith.constant 0 : index
      %16 = vector.load %arg6[%c0_13, %c0_14] : memref<32x128xbf16, #tpu.memory_space<vmem>>, vector<32x128xbf16>
      %17 = arith.extf %16 : vector<32x128xbf16> to vector<32x128xf32>
      %18 = arith.addf %15, %17 : vector<32x128xf32>
      %cst_15 = arith.constant 0.000000e+00 : f32
      %19 = vector.broadcast %cst_15 : f32 to vector<32x128xf32>
      %20 = arith.maximumf %18, %19 : vector<32x128xf32>
      %21 = arith.truncf %20 : vector<32x128xf32> to vector<32x128xbf16>
      %c0_16 = arith.constant 0 : index
      %c0_17 = arith.constant 0 : index
      %22 = vector.load %arg7[%c0_16, %c0_17] : memref<32x128xbf16, #tpu.memory_space<vmem>>, vector<32x128xbf16>
      tpu.vector_store %arg7[%c0_16, %c0_17], %21 {strides = array<i32>} : memref<32x128xbf16, #tpu.memory_space<vmem>>, vector<32x128xbf16>,
    } else {
    }
    return
  }
  func.func @transform_0(%arg0: i32, %arg1: i32, %arg2: i32) -> (i32, i32) {
    %c0_i32 = arith.constant 0 : i32
    return %arg0, %arg2 : i32, i32
  }
  func.func @transform_1(%arg0: i32, %arg1: i32, %arg2: i32) -> (i32, i32) {
    %c0_i32 = arith.constant 0 : i32
    return %arg2, %arg1 : i32, i32
  }
  func.func @transform_2(%arg0: i32, %arg1: i32, %arg2: i32) -> (i32, i32) {
    %c0_i32 = arith.constant 0 : i32
    %c0_i32_0 = arith.constant 0 : i32
    return %c0_i32, %arg1 : i32, i32
  }
  func.func @transform_3(%arg0: i32, %arg1: i32, %arg2: i32) -> (i32, i32) {
    %c0_i32 = arith.constant 0 : i32
    return %arg0, %arg1 : i32, i32
  }
  func.func @transform_4(%arg0: i32, %arg1: i32, %arg2: i32) -> (i32, i32) {
    %c0_i32 = arith.constant 0 : i32
    return %arg0, %arg1 : i32, i32
  }
}

module attributes {stable_mosaic.version = 11 : i64} {
  func.func @_mm_kernel(%arg0: i32, %arg1: i32, %arg2: i32, %arg3: memref<32x128xbf16, #tpu.memory_space<vmem>>, %arg4: memref<128x128xbf16, #tpu.memory_space<vmem>>, %arg5: memref<1x128xf32, #tpu.memory_space<vmem>>, %arg6: memref<32x128xbf16, #tpu.memory_space<vmem>>, %arg7: memref<32x128xf32, #tpu.memory_space<vmem>>) attributes {dimension_semantics = [#tpu.dimension_semantics<parallel>, #tpu.dimension_semantics<parallel>, #tpu.dimension_semantics<arbitrary>], iteration_bounds = array<i64: 1, 1, 1>, scalar_prefetch = 0 : i64, scratch_operands = 1 : i64, tpu.core_type = #tpu.core_type<tc>, window_params = [{transform_indices = @transform_0, window_bounds = array<i64: 32, 128>}, {transform_indices = @transform_1, window_bounds = array<i64: 128, 128>}, {transform_indices = @transform_2, window_bounds = array<i64: 1, 128>}, {transform_indices = @transform_3, window_bounds = array<i64: 32, 128>}]} {
    %c0_i32 = arith.constant 0 : i32
    %0 = arith.cmpi eq, %arg2, %c0_i32 : i32
    %1 = arith.extui %0 : i1 to i32
    %c0_i32_0 = arith.constant 0 : i32
    %2 = arith.cmpi ne, %1, %c0_i32_0 : i32
    scf.if %2 {
      %cst_10 = arith.constant 0.000000e+00 : f32
      %12 = vector.broadcast %cst_10 : f32 to vector<32x128xf32>
      %c0_11 = arith.constant 0 : index
      %c0_12 = arith.constant 0 : index
      %13 = vector.load %arg7[%c0_11, %c0_12] : memref<32x128xf32, #tpu.memory_space<vmem>>, vector<32x128xf32>
      tpu.vector_store %arg7[%c0_11, %c0_12], %12 {strides = array<i32>} : memref<32x128xf32, #tpu.memory_space<vmem>>, vector<32x128xf32>,
    } else {
    }
    %c0 = arith.constant 0 : index
    %c0_1 = arith.constant 0 : index
    %3 = vector.load %arg7[%c0, %c0_1] : memref<32x128xf32, #tpu.memory_space<vmem>>, vector<32x128xf32>
    %c0_2 = arith.constant 0 : index
    %c0_3 = arith.constant 0 : index
    %4 = vector.load %arg3[%c0_2, %c0_3] : memref<32x128xbf16, #tpu.memory_space<vmem>>, vector<32x128xbf16>
    %c0_4 = arith.constant 0 : index
    %c0_5 = arith.constant 0 : index
    %5 = vector.load %arg4[%c0_4, %c0_5] : memref<128x128xbf16, #tpu.memory_space<vmem>>, vector<128x128xbf16>
    %cst = arith.constant dense<0.000000e+00> : vector<32x128xf32>
    %6 = tpu.matmul %4, %5, %cst {dimension_numbers = #tpu.dot_dimension_numbers<[1], [0], [0], [1], [0, 0, 1, 1], [], []>} : vector<32x128xbf16>, vector<128x128xbf16>, vector<32x128xf32> -> vector<32x128xf32>
    %7 = arith.addf %3, %6 : vector<32x128xf32>
    %c0_6 = arith.constant 0 : index
    %c0_7 = arith.constant 0 : index
    %8 = vector.load %arg7[%c0_6, %c0_7] : memref<32x128xf32, #tpu.memory_space<vmem>>, vector<32x128xf32>
    tpu.vector_store %arg7[%c0_6, %c0_7], %7 {strides = array<i32>} : memref<32x128xf32, #tpu.memory_space<vmem>>, vector<32x128xf32>,
    %c0_i32_8 = arith.constant 0 : i32
    %9 = arith.cmpi eq, %arg2, %c0_i32_8 : i32
    %10 = arith.extui %9 : i1 to i32
    %c0_i32_9 = arith.constant 0 : i32
    %11 = arith.cmpi ne, %10, %c0_i32_9 : i32
    scf.if %11 {
      %c0_10 = arith.constant 0 : index
      %c0_11 = arith.constant 0 : index
      %12 = vector.load %arg7[%c0_10, %c0_11] : memref<32x128xf32, #tpu.memory_space<vmem>>, vector<32x128xf32>
      %c0_12 = arith.constant 0 : index
      %c0_13 = arith.constant 0 : index
      %13 = vector.load %arg5[%c0_12, %c0_13] : memref<1x128xf32, #tpu.memory_space<vmem>>, vector<1x128xf32>
      %14 = vector.broadcast %13 : vector<1x128xf32> to vector<32x128xf32>
      %15 = arith.addf %12, %14 : vector<32x128xf32>
      %16 = arith.truncf %15 : vector<32x128xf32> to vector<32x128xbf16>
      %c0_14 = arith.constant 0 : index
      %c0_15 = arith.constant 0 : index
      %17 = vector.load %arg6[%c0_14, %c0_15] : memref<32x128xbf16, #tpu.memory_space<vmem>>, vector<32x128xbf16>
      tpu.vector_store %arg6[%c0_14, %c0_15], %16 {strides = array<i32>} : memref<32x128xbf16, #tpu.memory_space<vmem>>, vector<32x128xbf16>,
    } else {
    }
    return
  }
  func.func @transform_0(%arg0: i32, %arg1: i32, %arg2: i32) -> (i32, i32) {
    %c0_i32 = arith.constant 0 : i32
    return %arg0, %arg2 : i32, i32
  }
  func.func @transform_1(%arg0: i32, %arg1: i32, %arg2: i32) -> (i32, i32) {
    %c0_i32 = arith.constant 0 : i32
    return %arg2, %arg1 : i32, i32
  }
  func.func @transform_2(%arg0: i32, %arg1: i32, %arg2: i32) -> (i32, i32) {
    %c0_i32 = arith.constant 0 : i32
    %c0_i32_0 = arith.constant 0 : i32
    return %c0_i32, %arg1 : i32, i32
  }
  func.func @transform_3(%arg0: i32, %arg1: i32, %arg2: i32) -> (i32, i32) {
    %c0_i32 = arith.constant 0 : i32
    return %arg0, %arg1 : i32, i32
  }
}

module attributes {stable_mosaic.version = 11 : i64} {
  func.func @_mm_kernel(%arg0: i32, %arg1: i32, %arg2: i32, %arg3: memref<8x384xbf16, #tpu.memory_space<vmem>>, %arg4: memref<384x256xbf16, #tpu.memory_space<vmem>>, %arg5: memref<1x256xf32, #tpu.memory_space<vmem>>, %arg6: memref<8x256xbf16, #tpu.memory_space<vmem>>, %arg7: memref<8x256xf32, #tpu.memory_space<vmem>>) attributes {dimension_semantics = [#tpu.dimension_semantics<parallel>, #tpu.dimension_semantics<parallel>, #tpu.dimension_semantics<arbitrary>], iteration_bounds = array<i64: 1, 1, 3>, scalar_prefetch = 0 : i64, scratch_operands = 1 : i64, tpu.core_type = #tpu.core_type<tc>, window_params = [{transform_indices = @transform_0, window_bounds = array<i64: 8, 384>}, {transform_indices = @transform_1, window_bounds = array<i64: 384, 256>}, {transform_indices = @transform_2, window_bounds = array<i64: 1, 256>}, {transform_indices = @transform_3, window_bounds = array<i64: 8, 256>}]} {
    %c0_i32 = arith.constant 0 : i32
    %0 = arith.cmpi eq, %arg2, %c0_i32 : i32
    %1 = arith.extui %0 : i1 to i32
    %c0_i32_0 = arith.constant 0 : i32
    %2 = arith.cmpi ne, %1, %c0_i32_0 : i32
    scf.if %2 {
      %cst_9 = arith.constant 0.000000e+00 : f32
      %12 = vector.broadcast %cst_9 : f32 to vector<8x256xf32>
      %c0_10 = arith.constant 0 : index
      %c0_11 = arith.constant 0 : index
      %13 = vector.load %arg7[%c0_10, %c0_11] : memref<8x256xf32, #tpu.memory_space<vmem>>, vector<8x256xf32>
      tpu.vector_store %arg7[%c0_10, %c0_11], %12 {strides = array<i32>} : memref<8x256xf32, #tpu.memory_space<vmem>>, vector<8x256xf32>,
    } else {
    }
    %c0 = arith.constant 0 : index
    %c0_1 = arith.constant 0 : index
    %3 = vector.load %arg7[%c0, %c0_1] : memref<8x256xf32, #tpu.memory_space<vmem>>, vector<8x256xf32>
    %c0_2 = arith.constant 0 : index
    %c0_3 = arith.constant 0 : index
    %4 = vector.load %arg3[%c0_2, %c0_3] : memref<8x384xbf16, #tpu.memory_space<vmem>>, vector<8x384xbf16>
    %c0_4 = arith.constant 0 : index
    %c0_5 = arith.constant 0 : index
    %5 = vector.load %arg4[%c0_4, %c0_5] : memref<384x256xbf16, #tpu.memory_space<vmem>>, vector<384x256xbf16>
    %cst = arith.constant dense<0.000000e+00> : vector<8x256xf32>
    %6 = tpu.matmul %4, %5, %cst {dimension_numbers = #tpu.dot_dimension_numbers<[1], [0], [0], [1], [0, 0, 1, 1], [], []>} : vector<8x384xbf16>, vector<384x256xbf16>, vector<8x256xf32> -> vector<8x256xf32>
    %7 = arith.addf %3, %6 : vector<8x256xf32>
    %c0_6 = arith.constant 0 : index
    %c0_7 = arith.constant 0 : index
    %8 = vector.load %arg7[%c0_6, %c0_7] : memref<8x256xf32, #tpu.memory_space<vmem>>, vector<8x256xf32>
    tpu.vector_store %arg7[%c0_6, %c0_7], %7 {strides = array<i32>} : memref<8x256xf32, #tpu.memory_space<vmem>>, vector<8x256xf32>,
    %c2_i32 = arith.constant 2 : i32
    %9 = arith.cmpi eq, %arg2, %c2_i32 : i32
    %10 = arith.extui %9 : i1 to i32
    %c0_i32_8 = arith.constant 0 : i32
    %11 = arith.cmpi ne, %10, %c0_i32_8 : i32
    scf.if %11 {
      %c0_9 = arith.constant 0 : index
      %c0_10 = arith.constant 0 : index
      %12 = vector.load %arg7[%c0_9, %c0_10] : memref<8x256xf32, #tpu.memory_space<vmem>>, vector<8x256xf32>
      %c0_11 = arith.constant 0 : index
      %c0_12 = arith.constant 0 : index
      %13 = vector.load %arg5[%c0_11, %c0_12] : memref<1x256xf32, #tpu.memory_space<vmem>>, vector<1x256xf32>
      %14 = vector.broadcast %13 : vector<1x256xf32> to vector<8x256xf32>
      %15 = arith.addf %12, %14 : vector<8x256xf32>
      %cst_13 = arith.constant 0.000000e+00 : f32
      %16 = vector.broadcast %cst_13 : f32 to vector<8x256xf32>
      %17 = arith.maximumf %15, %16 : vector<8x256xf32>
      %18 = arith.truncf %17 : vector<8x256xf32> to vector<8x256xbf16>
      %c0_14 = arith.constant 0 : index
      %c0_15 = arith.constant 0 : index
      %19 = vector.load %arg6[%c0_14, %c0_15] : memref<8x256xbf16, #tpu.memory_space<vmem>>, vector<8x256xbf16>
      tpu.vector_store %arg6[%c0_14, %c0_15], %18 {strides = array<i32>} : memref<8x256xbf16, #tpu.memory_space<vmem>>, vector<8x256xbf16>,
    } else {
    }
    return
  }
  func.func @transform_0(%arg0: i32, %arg1: i32, %arg2: i32) -> (i32, i32) {
    %c0_i32 = arith.constant 0 : i32
    return %arg0, %arg2 : i32, i32
  }
  func.func @transform_1(%arg0: i32, %arg1: i32, %arg2: i32) -> (i32, i32) {
    %c0_i32 = arith.constant 0 : i32
    return %arg2, %arg1 : i32, i32
  }
  func.func @transform_2(%arg0: i32, %arg1: i32, %arg2: i32) -> (i32, i32) {
    %c0_i32 = arith.constant 0 : i32
    %c0_i32_0 = arith.constant 0 : i32
    return %c0_i32, %arg1 : i32, i32
  }
  func.func @transform_3(%arg0: i32, %arg1: i32, %arg2: i32) -> (i32, i32) {
    %c0_i32 = arith.constant 0 : i32
    return %arg0, %arg1 : i32, i32
  }
}

module attributes {stable_mosaic.version = 11 : i64} {
  func.func @_mm_kernel(%arg0: i32, %arg1: i32, %arg2: i32, %arg3: memref<8x128xbf16, #tpu.memory_space<vmem>>, %arg4: memref<128x256xbf16, #tpu.memory_space<vmem>>, %arg5: memref<1x256xf32, #tpu.memory_space<vmem>>, %arg6: memref<8x256xbf16, #tpu.memory_space<vmem>>, %arg7: memref<8x256xf32, #tpu.memory_space<vmem>>) attributes {dimension_semantics = [#tpu.dimension_semantics<parallel>, #tpu.dimension_semantics<parallel>, #tpu.dimension_semantics<arbitrary>], iteration_bounds = array<i64: 1, 1, 1>, scalar_prefetch = 0 : i64, scratch_operands = 1 : i64, tpu.core_type = #tpu.core_type<tc>, window_params = [{transform_indices = @transform_0, window_bounds = array<i64: 8, 128>}, {transform_indices = @transform_1, window_bounds = array<i64: 128, 256>}, {transform_indices = @transform_2, window_bounds = array<i64: 1, 256>}, {transform_indices = @transform_3, window_bounds = array<i64: 8, 256>}]} {
    %c0_i32 = arith.constant 0 : i32
    %0 = arith.cmpi eq, %arg2, %c0_i32 : i32
    %1 = arith.extui %0 : i1 to i32
    %c0_i32_0 = arith.constant 0 : i32
    %2 = arith.cmpi ne, %1, %c0_i32_0 : i32
    scf.if %2 {
      %cst_10 = arith.constant 0.000000e+00 : f32
      %12 = vector.broadcast %cst_10 : f32 to vector<8x256xf32>
      %c0_11 = arith.constant 0 : index
      %c0_12 = arith.constant 0 : index
      %13 = vector.load %arg7[%c0_11, %c0_12] : memref<8x256xf32, #tpu.memory_space<vmem>>, vector<8x256xf32>
      tpu.vector_store %arg7[%c0_11, %c0_12], %12 {strides = array<i32>} : memref<8x256xf32, #tpu.memory_space<vmem>>, vector<8x256xf32>,
    } else {
    }
    %c0 = arith.constant 0 : index
    %c0_1 = arith.constant 0 : index
    %3 = vector.load %arg7[%c0, %c0_1] : memref<8x256xf32, #tpu.memory_space<vmem>>, vector<8x256xf32>
    %c0_2 = arith.constant 0 : index
    %c0_3 = arith.constant 0 : index
    %4 = vector.load %arg3[%c0_2, %c0_3] : memref<8x128xbf16, #tpu.memory_space<vmem>>, vector<8x128xbf16>
    %c0_4 = arith.constant 0 : index
    %c0_5 = arith.constant 0 : index
    %5 = vector.load %arg4[%c0_4, %c0_5] : memref<128x256xbf16, #tpu.memory_space<vmem>>, vector<128x256xbf16>
    %cst = arith.constant dense<0.000000e+00> : vector<8x256xf32>
    %6 = tpu.matmul %4, %5, %cst {dimension_numbers = #tpu.dot_dimension_numbers<[1], [0], [0], [1], [0, 0, 1, 1], [], []>} : vector<8x128xbf16>, vector<128x256xbf16>, vector<8x256xf32> -> vector<8x256xf32>
    %7 = arith.addf %3, %6 : vector<8x256xf32>
    %c0_6 = arith.constant 0 : index
    %c0_7 = arith.constant 0 : index
    %8 = vector.load %arg7[%c0_6, %c0_7] : memref<8x256xf32, #tpu.memory_space<vmem>>, vector<8x256xf32>
    tpu.vector_store %arg7[%c0_6, %c0_7], %7 {strides = array<i32>} : memref<8x256xf32, #tpu.memory_space<vmem>>, vector<8x256xf32>,
    %c0_i32_8 = arith.constant 0 : i32
    %9 = arith.cmpi eq, %arg2, %c0_i32_8 : i32
    %10 = arith.extui %9 : i1 to i32
    %c0_i32_9 = arith.constant 0 : i32
    %11 = arith.cmpi ne, %10, %c0_i32_9 : i32
    scf.if %11 {
      %c0_10 = arith.constant 0 : index
      %c0_11 = arith.constant 0 : index
      %12 = vector.load %arg7[%c0_10, %c0_11] : memref<8x256xf32, #tpu.memory_space<vmem>>, vector<8x256xf32>
      %c0_12 = arith.constant 0 : index
      %c0_13 = arith.constant 0 : index
      %13 = vector.load %arg5[%c0_12, %c0_13] : memref<1x256xf32, #tpu.memory_space<vmem>>, vector<1x256xf32>
      %14 = vector.broadcast %13 : vector<1x256xf32> to vector<8x256xf32>
      %15 = arith.addf %12, %14 : vector<8x256xf32>
      %16 = arith.truncf %15 : vector<8x256xf32> to vector<8x256xbf16>
      %c0_14 = arith.constant 0 : index
      %c0_15 = arith.constant 0 : index
      %17 = vector.load %arg6[%c0_14, %c0_15] : memref<8x256xbf16, #tpu.memory_space<vmem>>, vector<8x256xbf16>
      tpu.vector_store %arg6[%c0_14, %c0_15], %16 {strides = array<i32>} : memref<8x256xbf16, #tpu.memory_space<vmem>>, vector<8x256xbf16>,
    } else {
    }
    return
  }
  func.func @transform_0(%arg0: i32, %arg1: i32, %arg2: i32) -> (i32, i32) {
    %c0_i32 = arith.constant 0 : i32
    return %arg0, %arg2 : i32, i32
  }
  func.func @transform_1(%arg0: i32, %arg1: i32, %arg2: i32) -> (i32, i32) {
    %c0_i32 = arith.constant 0 : i32
    return %arg2, %arg1 : i32, i32
  }
  func.func @transform_2(%arg0: i32, %arg1: i32, %arg2: i32) -> (i32, i32) {
    %c0_i32 = arith.constant 0 : i32
    %c0_i32_0 = arith.constant 0 : i32
    return %c0_i32, %arg1 : i32, i32
  }
  func.func @transform_3(%arg0: i32, %arg1: i32, %arg2: i32) -> (i32, i32) {
    %c0_i32 = arith.constant 0 : i32
    return %arg0, %arg1 : i32, i32
  }
}

module attributes {stable_mosaic.version = 11 : i64} {
  func.func @_mm_res_kernel(%arg0: i32, %arg1: i32, %arg2: i32, %arg3: memref<8x768xbf16, #tpu.memory_space<vmem>>, %arg4: memref<768x256xbf16, #tpu.memory_space<vmem>>, %arg5: memref<1x256xf32, #tpu.memory_space<vmem>>, %arg6: memref<8x256xbf16, #tpu.memory_space<vmem>>, %arg7: memref<8x256xbf16, #tpu.memory_space<vmem>>, %arg8: memref<8x256xf32, #tpu.memory_space<vmem>>) attributes {dimension_semantics = [#tpu.dimension_semantics<parallel>, #tpu.dimension_semantics<parallel>, #tpu.dimension_semantics<arbitrary>], iteration_bounds = array<i64: 1, 1, 3>, scalar_prefetch = 0 : i64, scratch_operands = 1 : i64, tpu.core_type = #tpu.core_type<tc>, window_params = [{transform_indices = @transform_0, window_bounds = array<i64: 8, 768>}, {transform_indices = @transform_1, window_bounds = array<i64: 768, 256>}, {transform_indices = @transform_2, window_bounds = array<i64: 1, 256>}, {transform_indices = @transform_3, window_bounds = array<i64: 8, 256>}, {transform_indices = @transform_4, window_bounds = array<i64: 8, 256>}]} {
    %c0_i32 = arith.constant 0 : i32
    %0 = arith.cmpi eq, %arg2, %c0_i32 : i32
    %1 = arith.extui %0 : i1 to i32
    %c0_i32_0 = arith.constant 0 : i32
    %2 = arith.cmpi ne, %1, %c0_i32_0 : i32
    scf.if %2 {
      %cst_9 = arith.constant 0.000000e+00 : f32
      %12 = vector.broadcast %cst_9 : f32 to vector<8x256xf32>
      %c0_10 = arith.constant 0 : index
      %c0_11 = arith.constant 0 : index
      %13 = vector.load %arg8[%c0_10, %c0_11] : memref<8x256xf32, #tpu.memory_space<vmem>>, vector<8x256xf32>
      tpu.vector_store %arg8[%c0_10, %c0_11], %12 {strides = array<i32>} : memref<8x256xf32, #tpu.memory_space<vmem>>, vector<8x256xf32>,
    } else {
    }
    %c0 = arith.constant 0 : index
    %c0_1 = arith.constant 0 : index
    %3 = vector.load %arg8[%c0, %c0_1] : memref<8x256xf32, #tpu.memory_space<vmem>>, vector<8x256xf32>
    %c0_2 = arith.constant 0 : index
    %c0_3 = arith.constant 0 : index
    %4 = vector.load %arg3[%c0_2, %c0_3] : memref<8x768xbf16, #tpu.memory_space<vmem>>, vector<8x768xbf16>
    %c0_4 = arith.constant 0 : index
    %c0_5 = arith.constant 0 : index
    %5 = vector.load %arg4[%c0_4, %c0_5] : memref<768x256xbf16, #tpu.memory_space<vmem>>, vector<768x256xbf16>
    %cst = arith.constant dense<0.000000e+00> : vector<8x256xf32>
    %6 = tpu.matmul %4, %5, %cst {dimension_numbers = #tpu.dot_dimension_numbers<[1], [0], [0], [1], [0, 0, 1, 1], [], []>} : vector<8x768xbf16>, vector<768x256xbf16>, vector<8x256xf32> -> vector<8x256xf32>
    %7 = arith.addf %3, %6 : vector<8x256xf32>
    %c0_6 = arith.constant 0 : index
    %c0_7 = arith.constant 0 : index
    %8 = vector.load %arg8[%c0_6, %c0_7] : memref<8x256xf32, #tpu.memory_space<vmem>>, vector<8x256xf32>
    tpu.vector_store %arg8[%c0_6, %c0_7], %7 {strides = array<i32>} : memref<8x256xf32, #tpu.memory_space<vmem>>, vector<8x256xf32>,
    %c2_i32 = arith.constant 2 : i32
    %9 = arith.cmpi eq, %arg2, %c2_i32 : i32
    %10 = arith.extui %9 : i1 to i32
    %c0_i32_8 = arith.constant 0 : i32
    %11 = arith.cmpi ne, %10, %c0_i32_8 : i32
    scf.if %11 {
      %c0_9 = arith.constant 0 : index
      %c0_10 = arith.constant 0 : index
      %12 = vector.load %arg8[%c0_9, %c0_10] : memref<8x256xf32, #tpu.memory_space<vmem>>, vector<8x256xf32>
      %c0_11 = arith.constant 0 : index
      %c0_12 = arith.constant 0 : index
      %13 = vector.load %arg5[%c0_11, %c0_12] : memref<1x256xf32, #tpu.memory_space<vmem>>, vector<1x256xf32>
      %14 = vector.broadcast %13 : vector<1x256xf32> to vector<8x256xf32>
      %15 = arith.addf %12, %14 : vector<8x256xf32>
      %c0_13 = arith.constant 0 : index
      %c0_14 = arith.constant 0 : index
      %16 = vector.load %arg6[%c0_13, %c0_14] : memref<8x256xbf16, #tpu.memory_space<vmem>>, vector<8x256xbf16>
      %17 = arith.extf %16 : vector<8x256xbf16> to vector<8x256xf32>
      %18 = arith.addf %15, %17 : vector<8x256xf32>
      %cst_15 = arith.constant 0.000000e+00 : f32
      %19 = vector.broadcast %cst_15 : f32 to vector<8x256xf32>
      %20 = arith.maximumf %18, %19 : vector<8x256xf32>
      %21 = arith.truncf %20 : vector<8x256xf32> to vector<8x256xbf16>
      %c0_16 = arith.constant 0 : index
      %c0_17 = arith.constant 0 : index
      %22 = vector.load %arg7[%c0_16, %c0_17] : memref<8x256xbf16, #tpu.memory_space<vmem>>, vector<8x256xbf16>
      tpu.vector_store %arg7[%c0_16, %c0_17], %21 {strides = array<i32>} : memref<8x256xbf16, #tpu.memory_space<vmem>>, vector<8x256xbf16>,
    } else {
    }
    return
  }
  func.func @transform_0(%arg0: i32, %arg1: i32, %arg2: i32) -> (i32, i32) {
    %c0_i32 = arith.constant 0 : i32
    return %arg0, %arg2 : i32, i32
  }
  func.func @transform_1(%arg0: i32, %arg1: i32, %arg2: i32) -> (i32, i32) {
    %c0_i32 = arith.constant 0 : i32
    return %arg2, %arg1 : i32, i32
  }
  func.func @transform_2(%arg0: i32, %arg1: i32, %arg2: i32) -> (i32, i32) {
    %c0_i32 = arith.constant 0 : i32
    %c0_i32_0 = arith.constant 0 : i32
    return %c0_i32, %arg1 : i32, i32
  }
  func.func @transform_3(%arg0: i32, %arg1: i32, %arg2: i32) -> (i32, i32) {
    %c0_i32 = arith.constant 0 : i32
    return %arg0, %arg1 : i32, i32
  }
  func.func @transform_4(%arg0: i32, %arg1: i32, %arg2: i32) -> (i32, i32) {
    %c0_i32 = arith.constant 0 : i32
    return %arg0, %arg1 : i32, i32
  }
}

module attributes {stable_mosaic.version = 11 : i64} {
  func.func @_mm_kernel(%arg0: i32, %arg1: i32, %arg2: i32, %arg3: memref<8x768xbf16, #tpu.memory_space<vmem>>, %arg4: memref<768x256xbf16, #tpu.memory_space<vmem>>, %arg5: memref<1x256xf32, #tpu.memory_space<vmem>>, %arg6: memref<8x256xbf16, #tpu.memory_space<vmem>>, %arg7: memref<8x256xf32, #tpu.memory_space<vmem>>) attributes {dimension_semantics = [#tpu.dimension_semantics<parallel>, #tpu.dimension_semantics<parallel>, #tpu.dimension_semantics<arbitrary>], iteration_bounds = array<i64: 1, 1, 3>, scalar_prefetch = 0 : i64, scratch_operands = 1 : i64, tpu.core_type = #tpu.core_type<tc>, window_params = [{transform_indices = @transform_0, window_bounds = array<i64: 8, 768>}, {transform_indices = @transform_1, window_bounds = array<i64: 768, 256>}, {transform_indices = @transform_2, window_bounds = array<i64: 1, 256>}, {transform_indices = @transform_3, window_bounds = array<i64: 8, 256>}]} {
    %c0_i32 = arith.constant 0 : i32
    %0 = arith.cmpi eq, %arg2, %c0_i32 : i32
    %1 = arith.extui %0 : i1 to i32
    %c0_i32_0 = arith.constant 0 : i32
    %2 = arith.cmpi ne, %1, %c0_i32_0 : i32
    scf.if %2 {
      %cst_9 = arith.constant 0.000000e+00 : f32
      %12 = vector.broadcast %cst_9 : f32 to vector<8x256xf32>
      %c0_10 = arith.constant 0 : index
      %c0_11 = arith.constant 0 : index
      %13 = vector.load %arg7[%c0_10, %c0_11] : memref<8x256xf32, #tpu.memory_space<vmem>>, vector<8x256xf32>
      tpu.vector_store %arg7[%c0_10, %c0_11], %12 {strides = array<i32>} : memref<8x256xf32, #tpu.memory_space<vmem>>, vector<8x256xf32>,
    } else {
    }
    %c0 = arith.constant 0 : index
    %c0_1 = arith.constant 0 : index
    %3 = vector.load %arg7[%c0, %c0_1] : memref<8x256xf32, #tpu.memory_space<vmem>>, vector<8x256xf32>
    %c0_2 = arith.constant 0 : index
    %c0_3 = arith.constant 0 : index
    %4 = vector.load %arg3[%c0_2, %c0_3] : memref<8x768xbf16, #tpu.memory_space<vmem>>, vector<8x768xbf16>
    %c0_4 = arith.constant 0 : index
    %c0_5 = arith.constant 0 : index
    %5 = vector.load %arg4[%c0_4, %c0_5] : memref<768x256xbf16, #tpu.memory_space<vmem>>, vector<768x256xbf16>
    %cst = arith.constant dense<0.000000e+00> : vector<8x256xf32>
    %6 = tpu.matmul %4, %5, %cst {dimension_numbers = #tpu.dot_dimension_numbers<[1], [0], [0], [1], [0, 0, 1, 1], [], []>} : vector<8x768xbf16>, vector<768x256xbf16>, vector<8x256xf32> -> vector<8x256xf32>
    %7 = arith.addf %3, %6 : vector<8x256xf32>
    %c0_6 = arith.constant 0 : index
    %c0_7 = arith.constant 0 : index
    %8 = vector.load %arg7[%c0_6, %c0_7] : memref<8x256xf32, #tpu.memory_space<vmem>>, vector<8x256xf32>
    tpu.vector_store %arg7[%c0_6, %c0_7], %7 {strides = array<i32>} : memref<8x256xf32, #tpu.memory_space<vmem>>, vector<8x256xf32>,
    %c2_i32 = arith.constant 2 : i32
    %9 = arith.cmpi eq, %arg2, %c2_i32 : i32
    %10 = arith.extui %9 : i1 to i32
    %c0_i32_8 = arith.constant 0 : i32
    %11 = arith.cmpi ne, %10, %c0_i32_8 : i32
    scf.if %11 {
      %c0_9 = arith.constant 0 : index
      %c0_10 = arith.constant 0 : index
      %12 = vector.load %arg7[%c0_9, %c0_10] : memref<8x256xf32, #tpu.memory_space<vmem>>, vector<8x256xf32>
      %c0_11 = arith.constant 0 : index
      %c0_12 = arith.constant 0 : index
      %13 = vector.load %arg5[%c0_11, %c0_12] : memref<1x256xf32, #tpu.memory_space<vmem>>, vector<1x256xf32>
      %14 = vector.broadcast %13 : vector<1x256xf32> to vector<8x256xf32>
      %15 = arith.addf %12, %14 : vector<8x256xf32>
      %cst_13 = arith.constant 0.000000e+00 : f32
      %16 = vector.broadcast %cst_13 : f32 to vector<8x256xf32>
      %17 = arith.maximumf %15, %16 : vector<8x256xf32>
      %18 = arith.truncf %17 : vector<8x256xf32> to vector<8x256xbf16>
      %c0_14 = arith.constant 0 : index
      %c0_15 = arith.constant 0 : index
      %19 = vector.load %arg6[%c0_14, %c0_15] : memref<8x256xbf16, #tpu.memory_space<vmem>>, vector<8x256xbf16>
      tpu.vector_store %arg6[%c0_14, %c0_15], %18 {strides = array<i32>} : memref<8x256xbf16, #tpu.memory_space<vmem>>, vector<8x256xbf16>,
    } else {
    }
    return
  }
  func.func @transform_0(%arg0: i32, %arg1: i32, %arg2: i32) -> (i32, i32) {
    %c0_i32 = arith.constant 0 : i32
    return %arg0, %arg2 : i32, i32
  }
  func.func @transform_1(%arg0: i32, %arg1: i32, %arg2: i32) -> (i32, i32) {
    %c0_i32 = arith.constant 0 : i32
    return %arg2, %arg1 : i32, i32
  }
  func.func @transform_2(%arg0: i32, %arg1: i32, %arg2: i32) -> (i32, i32) {
    %c0_i32 = arith.constant 0 : i32
    %c0_i32_0 = arith.constant 0 : i32
    return %c0_i32, %arg1 : i32, i32
  }
  func.func @transform_3(%arg0: i32, %arg1: i32, %arg2: i32) -> (i32, i32) {
    %c0_i32 = arith.constant 0 : i32
    return %arg0, %arg1 : i32, i32
  }
}

module attributes {stable_mosaic.version = 11 : i64} {
  func.func @_mm_kernel(%arg0: i32, %arg1: i32, %arg2: i32, %arg3: memref<2x768xbf16, #tpu.memory_space<vmem>>, %arg4: memref<768x256xbf16, #tpu.memory_space<vmem>>, %arg5: memref<1x256xf32, #tpu.memory_space<vmem>>, %arg6: memref<2x256xbf16, #tpu.memory_space<vmem>>, %arg7: memref<2x256xf32, #tpu.memory_space<vmem>>) attributes {dimension_semantics = [#tpu.dimension_semantics<parallel>, #tpu.dimension_semantics<parallel>, #tpu.dimension_semantics<arbitrary>], iteration_bounds = array<i64: 1, 2, 3>, scalar_prefetch = 0 : i64, scratch_operands = 1 : i64, tpu.core_type = #tpu.core_type<tc>, window_params = [{transform_indices = @transform_0, window_bounds = array<i64: 2, 768>}, {transform_indices = @transform_1, window_bounds = array<i64: 768, 256>}, {transform_indices = @transform_2, window_bounds = array<i64: 1, 256>}, {transform_indices = @transform_3, window_bounds = array<i64: 2, 256>}]} {
    %c0_i32 = arith.constant 0 : i32
    %0 = arith.cmpi eq, %arg2, %c0_i32 : i32
    %1 = arith.extui %0 : i1 to i32
    %c0_i32_0 = arith.constant 0 : i32
    %2 = arith.cmpi ne, %1, %c0_i32_0 : i32
    scf.if %2 {
      %cst_9 = arith.constant 0.000000e+00 : f32
      %12 = vector.broadcast %cst_9 : f32 to vector<2x256xf32>
      %c0_10 = arith.constant 0 : index
      %c0_11 = arith.constant 0 : index
      %13 = vector.load %arg7[%c0_10, %c0_11] : memref<2x256xf32, #tpu.memory_space<vmem>>, vector<2x256xf32>
      tpu.vector_store %arg7[%c0_10, %c0_11], %12 {strides = array<i32>} : memref<2x256xf32, #tpu.memory_space<vmem>>, vector<2x256xf32>,
    } else {
    }
    %c0 = arith.constant 0 : index
    %c0_1 = arith.constant 0 : index
    %3 = vector.load %arg7[%c0, %c0_1] : memref<2x256xf32, #tpu.memory_space<vmem>>, vector<2x256xf32>
    %c0_2 = arith.constant 0 : index
    %c0_3 = arith.constant 0 : index
    %4 = vector.load %arg3[%c0_2, %c0_3] : memref<2x768xbf16, #tpu.memory_space<vmem>>, vector<2x768xbf16>
    %c0_4 = arith.constant 0 : index
    %c0_5 = arith.constant 0 : index
    %5 = vector.load %arg4[%c0_4, %c0_5] : memref<768x256xbf16, #tpu.memory_space<vmem>>, vector<768x256xbf16>
    %cst = arith.constant dense<0.000000e+00> : vector<2x256xf32>
    %6 = tpu.matmul %4, %5, %cst {dimension_numbers = #tpu.dot_dimension_numbers<[1], [0], [0], [1], [0, 0, 1, 1], [], []>} : vector<2x768xbf16>, vector<768x256xbf16>, vector<2x256xf32> -> vector<2x256xf32>
    %7 = arith.addf %3, %6 : vector<2x256xf32>
    %c0_6 = arith.constant 0 : index
    %c0_7 = arith.constant 0 : index
    %8 = vector.load %arg7[%c0_6, %c0_7] : memref<2x256xf32, #tpu.memory_space<vmem>>, vector<2x256xf32>
    tpu.vector_store %arg7[%c0_6, %c0_7], %7 {strides = array<i32>} : memref<2x256xf32, #tpu.memory_space<vmem>>, vector<2x256xf32>,
    %c2_i32 = arith.constant 2 : i32
    %9 = arith.cmpi eq, %arg2, %c2_i32 : i32
    %10 = arith.extui %9 : i1 to i32
    %c0_i32_8 = arith.constant 0 : i32
    %11 = arith.cmpi ne, %10, %c0_i32_8 : i32
    scf.if %11 {
      %c0_9 = arith.constant 0 : index
      %c0_10 = arith.constant 0 : index
      %12 = vector.load %arg7[%c0_9, %c0_10] : memref<2x256xf32, #tpu.memory_space<vmem>>, vector<2x256xf32>
      %c0_11 = arith.constant 0 : index
      %c0_12 = arith.constant 0 : index
      %13 = vector.load %arg5[%c0_11, %c0_12] : memref<1x256xf32, #tpu.memory_space<vmem>>, vector<1x256xf32>
      %14 = vector.broadcast %13 : vector<1x256xf32> to vector<2x256xf32>
      %15 = arith.addf %12, %14 : vector<2x256xf32>
      %cst_13 = arith.constant 0.000000e+00 : f32
      %16 = vector.broadcast %cst_13 : f32 to vector<2x256xf32>
      %17 = arith.maximumf %15, %16 : vector<2x256xf32>
      %18 = arith.truncf %17 : vector<2x256xf32> to vector<2x256xbf16>
      %c0_14 = arith.constant 0 : index
      %c0_15 = arith.constant 0 : index
      %19 = vector.load %arg6[%c0_14, %c0_15] : memref<2x256xbf16, #tpu.memory_space<vmem>>, vector<2x256xbf16>
      tpu.vector_store %arg6[%c0_14, %c0_15], %18 {strides = array<i32>} : memref<2x256xbf16, #tpu.memory_space<vmem>>, vector<2x256xbf16>,
    } else {
    }
    return
  }
  func.func @transform_0(%arg0: i32, %arg1: i32, %arg2: i32) -> (i32, i32) {
    %c0_i32 = arith.constant 0 : i32
    return %arg0, %arg2 : i32, i32
  }
  func.func @transform_1(%arg0: i32, %arg1: i32, %arg2: i32) -> (i32, i32) {
    %c0_i32 = arith.constant 0 : i32
    return %arg2, %arg1 : i32, i32
  }
  func.func @transform_2(%arg0: i32, %arg1: i32, %arg2: i32) -> (i32, i32) {
    %c0_i32 = arith.constant 0 : i32
    %c0_i32_0 = arith.constant 0 : i32
    return %c0_i32, %arg1 : i32, i32
  }
  func.func @transform_3(%arg0: i32, %arg1: i32, %arg2: i32) -> (i32, i32) {
    %c0_i32 = arith.constant 0 : i32
    return %arg0, %arg1 : i32, i32
  }
}

module attributes {stable_mosaic.version = 11 : i64} {
  func.func @_mm_kernel(%arg0: i32, %arg1: i32, %arg2: i32, %arg3: memref<2x256xbf16, #tpu.memory_space<vmem>>, %arg4: memref<256x256xbf16, #tpu.memory_space<vmem>>, %arg5: memref<1x256xf32, #tpu.memory_space<vmem>>, %arg6: memref<2x256xbf16, #tpu.memory_space<vmem>>, %arg7: memref<2x256xf32, #tpu.memory_space<vmem>>) attributes {dimension_semantics = [#tpu.dimension_semantics<parallel>, #tpu.dimension_semantics<parallel>, #tpu.dimension_semantics<arbitrary>], iteration_bounds = array<i64: 1, 2, 1>, scalar_prefetch = 0 : i64, scratch_operands = 1 : i64, tpu.core_type = #tpu.core_type<tc>, window_params = [{transform_indices = @transform_0, window_bounds = array<i64: 2, 256>}, {transform_indices = @transform_1, window_bounds = array<i64: 256, 256>}, {transform_indices = @transform_2, window_bounds = array<i64: 1, 256>}, {transform_indices = @transform_3, window_bounds = array<i64: 2, 256>}]} {
    %c0_i32 = arith.constant 0 : i32
    %0 = arith.cmpi eq, %arg2, %c0_i32 : i32
    %1 = arith.extui %0 : i1 to i32
    %c0_i32_0 = arith.constant 0 : i32
    %2 = arith.cmpi ne, %1, %c0_i32_0 : i32
    scf.if %2 {
      %cst_10 = arith.constant 0.000000e+00 : f32
      %12 = vector.broadcast %cst_10 : f32 to vector<2x256xf32>
      %c0_11 = arith.constant 0 : index
      %c0_12 = arith.constant 0 : index
      %13 = vector.load %arg7[%c0_11, %c0_12] : memref<2x256xf32, #tpu.memory_space<vmem>>, vector<2x256xf32>
      tpu.vector_store %arg7[%c0_11, %c0_12], %12 {strides = array<i32>} : memref<2x256xf32, #tpu.memory_space<vmem>>, vector<2x256xf32>,
    } else {
    }
    %c0 = arith.constant 0 : index
    %c0_1 = arith.constant 0 : index
    %3 = vector.load %arg7[%c0, %c0_1] : memref<2x256xf32, #tpu.memory_space<vmem>>, vector<2x256xf32>
    %c0_2 = arith.constant 0 : index
    %c0_3 = arith.constant 0 : index
    %4 = vector.load %arg3[%c0_2, %c0_3] : memref<2x256xbf16, #tpu.memory_space<vmem>>, vector<2x256xbf16>
    %c0_4 = arith.constant 0 : index
    %c0_5 = arith.constant 0 : index
    %5 = vector.load %arg4[%c0_4, %c0_5] : memref<256x256xbf16, #tpu.memory_space<vmem>>, vector<256x256xbf16>
    %cst = arith.constant dense<0.000000e+00> : vector<2x256xf32>
    %6 = tpu.matmul %4, %5, %cst {dimension_numbers = #tpu.dot_dimension_numbers<[1], [0], [0], [1], [0, 0, 1, 1], [], []>} : vector<2x256xbf16>, vector<256x256xbf16>, vector<2x256xf32> -> vector<2x256xf32>
    %7 = arith.addf %3, %6 : vector<2x256xf32>
    %c0_6 = arith.constant 0 : index
    %c0_7 = arith.constant 0 : index
    %8 = vector.load %arg7[%c0_6, %c0_7] : memref<2x256xf32, #tpu.memory_space<vmem>>, vector<2x256xf32>
    tpu.vector_store %arg7[%c0_6, %c0_7], %7 {strides = array<i32>} : memref<2x256xf32, #tpu.memory_space<vmem>>, vector<2x256xf32>,
    %c0_i32_8 = arith.constant 0 : i32
    %9 = arith.cmpi eq, %arg2, %c0_i32_8 : i32
    %10 = arith.extui %9 : i1 to i32
    %c0_i32_9 = arith.constant 0 : i32
    %11 = arith.cmpi ne, %10, %c0_i32_9 : i32
    scf.if %11 {
      %c0_10 = arith.constant 0 : index
      %c0_11 = arith.constant 0 : index
      %12 = vector.load %arg7[%c0_10, %c0_11] : memref<2x256xf32, #tpu.memory_space<vmem>>, vector<2x256xf32>
      %c0_12 = arith.constant 0 : index
      %c0_13 = arith.constant 0 : index
      %13 = vector.load %arg5[%c0_12, %c0_13] : memref<1x256xf32, #tpu.memory_space<vmem>>, vector<1x256xf32>
      %14 = vector.broadcast %13 : vector<1x256xf32> to vector<2x256xf32>
      %15 = arith.addf %12, %14 : vector<2x256xf32>
      %16 = arith.truncf %15 : vector<2x256xf32> to vector<2x256xbf16>
      %c0_14 = arith.constant 0 : index
      %c0_15 = arith.constant 0 : index
      %17 = vector.load %arg6[%c0_14, %c0_15] : memref<2x256xbf16, #tpu.memory_space<vmem>>, vector<2x256xbf16>
      tpu.vector_store %arg6[%c0_14, %c0_15], %16 {strides = array<i32>} : memref<2x256xbf16, #tpu.memory_space<vmem>>, vector<2x256xbf16>,
    } else {
    }
    return
  }
  func.func @transform_0(%arg0: i32, %arg1: i32, %arg2: i32) -> (i32, i32) {
    %c0_i32 = arith.constant 0 : i32
    return %arg0, %arg2 : i32, i32
  }
  func.func @transform_1(%arg0: i32, %arg1: i32, %arg2: i32) -> (i32, i32) {
    %c0_i32 = arith.constant 0 : i32
    return %arg2, %arg1 : i32, i32
  }
  func.func @transform_2(%arg0: i32, %arg1: i32, %arg2: i32) -> (i32, i32) {
    %c0_i32 = arith.constant 0 : i32
    %c0_i32_0 = arith.constant 0 : i32
    return %c0_i32, %arg1 : i32, i32
  }
  func.func @transform_3(%arg0: i32, %arg1: i32, %arg2: i32) -> (i32, i32) {
    %c0_i32 = arith.constant 0 : i32
    return %arg0, %arg1 : i32, i32
  }
}

module attributes {stable_mosaic.version = 11 : i64} {
  func.func @_mm_res_kernel(%arg0: i32, %arg1: i32, %arg2: i32, %arg3: memref<2x768xbf16, #tpu.memory_space<vmem>>, %arg4: memref<768x256xbf16, #tpu.memory_space<vmem>>, %arg5: memref<1x256xf32, #tpu.memory_space<vmem>>, %arg6: memref<2x256xbf16, #tpu.memory_space<vmem>>, %arg7: memref<2x256xbf16, #tpu.memory_space<vmem>>, %arg8: memref<2x256xf32, #tpu.memory_space<vmem>>) attributes {dimension_semantics = [#tpu.dimension_semantics<parallel>, #tpu.dimension_semantics<parallel>, #tpu.dimension_semantics<arbitrary>], iteration_bounds = array<i64: 1, 2, 6>, scalar_prefetch = 0 : i64, scratch_operands = 1 : i64, tpu.core_type = #tpu.core_type<tc>, window_params = [{transform_indices = @transform_0, window_bounds = array<i64: 2, 768>}, {transform_indices = @transform_1, window_bounds = array<i64: 768, 256>}, {transform_indices = @transform_2, window_bounds = array<i64: 1, 256>}, {transform_indices = @transform_3, window_bounds = array<i64: 2, 256>}, {transform_indices = @transform_4, window_bounds = array<i64: 2, 256>}]} {
    %c0_i32 = arith.constant 0 : i32
    %0 = arith.cmpi eq, %arg2, %c0_i32 : i32
    %1 = arith.extui %0 : i1 to i32
    %c0_i32_0 = arith.constant 0 : i32
    %2 = arith.cmpi ne, %1, %c0_i32_0 : i32
    scf.if %2 {
      %cst_9 = arith.constant 0.000000e+00 : f32
      %12 = vector.broadcast %cst_9 : f32 to vector<2x256xf32>
      %c0_10 = arith.constant 0 : index
      %c0_11 = arith.constant 0 : index
      %13 = vector.load %arg8[%c0_10, %c0_11] : memref<2x256xf32, #tpu.memory_space<vmem>>, vector<2x256xf32>
      tpu.vector_store %arg8[%c0_10, %c0_11], %12 {strides = array<i32>} : memref<2x256xf32, #tpu.memory_space<vmem>>, vector<2x256xf32>,
    } else {
    }
    %c0 = arith.constant 0 : index
    %c0_1 = arith.constant 0 : index
    %3 = vector.load %arg8[%c0, %c0_1] : memref<2x256xf32, #tpu.memory_space<vmem>>, vector<2x256xf32>
    %c0_2 = arith.constant 0 : index
    %c0_3 = arith.constant 0 : index
    %4 = vector.load %arg3[%c0_2, %c0_3] : memref<2x768xbf16, #tpu.memory_space<vmem>>, vector<2x768xbf16>
    %c0_4 = arith.constant 0 : index
    %c0_5 = arith.constant 0 : index
    %5 = vector.load %arg4[%c0_4, %c0_5] : memref<768x256xbf16, #tpu.memory_space<vmem>>, vector<768x256xbf16>
    %cst = arith.constant dense<0.000000e+00> : vector<2x256xf32>
    %6 = tpu.matmul %4, %5, %cst {dimension_numbers = #tpu.dot_dimension_numbers<[1], [0], [0], [1], [0, 0, 1, 1], [], []>} : vector<2x768xbf16>, vector<768x256xbf16>, vector<2x256xf32> -> vector<2x256xf32>
    %7 = arith.addf %3, %6 : vector<2x256xf32>
    %c0_6 = arith.constant 0 : index
    %c0_7 = arith.constant 0 : index
    %8 = vector.load %arg8[%c0_6, %c0_7] : memref<2x256xf32, #tpu.memory_space<vmem>>, vector<2x256xf32>
    tpu.vector_store %arg8[%c0_6, %c0_7], %7 {strides = array<i32>} : memref<2x256xf32, #tpu.memory_space<vmem>>, vector<2x256xf32>,
    %c5_i32 = arith.constant 5 : i32
    %9 = arith.cmpi eq, %arg2, %c5_i32 : i32
    %10 = arith.extui %9 : i1 to i32
    %c0_i32_8 = arith.constant 0 : i32
    %11 = arith.cmpi ne, %10, %c0_i32_8 : i32
    scf.if %11 {
      %c0_9 = arith.constant 0 : index
      %c0_10 = arith.constant 0 : index
      %12 = vector.load %arg8[%c0_9, %c0_10] : memref<2x256xf32, #tpu.memory_space<vmem>>, vector<2x256xf32>
      %c0_11 = arith.constant 0 : index
      %c0_12 = arith.constant 0 : index
      %13 = vector.load %arg5[%c0_11, %c0_12] : memref<1x256xf32, #tpu.memory_space<vmem>>, vector<1x256xf32>
      %14 = vector.broadcast %13 : vector<1x256xf32> to vector<2x256xf32>
      %15 = arith.addf %12, %14 : vector<2x256xf32>
      %c0_13 = arith.constant 0 : index
      %c0_14 = arith.constant 0 : index
      %16 = vector.load %arg6[%c0_13, %c0_14] : memref<2x256xbf16, #tpu.memory_space<vmem>>, vector<2x256xbf16>
      %17 = arith.extf %16 : vector<2x256xbf16> to vector<2x256xf32>
      %18 = arith.addf %15, %17 : vector<2x256xf32>
      %cst_15 = arith.constant 0.000000e+00 : f32
      %19 = vector.broadcast %cst_15 : f32 to vector<2x256xf32>
      %20 = arith.maximumf %18, %19 : vector<2x256xf32>
      %21 = arith.truncf %20 : vector<2x256xf32> to vector<2x256xbf16>
      %c0_16 = arith.constant 0 : index
      %c0_17 = arith.constant 0 : index
      %22 = vector.load %arg7[%c0_16, %c0_17] : memref<2x256xbf16, #tpu.memory_space<vmem>>, vector<2x256xbf16>
      tpu.vector_store %arg7[%c0_16, %c0_17], %21 {strides = array<i32>} : memref<2x256xbf16, #tpu.memory_space<vmem>>, vector<2x256xbf16>,
    } else {
    }
    return
  }
  func.func @transform_0(%arg0: i32, %arg1: i32, %arg2: i32) -> (i32, i32) {
    %c0_i32 = arith.constant 0 : i32
    return %arg0, %arg2 : i32, i32
  }
  func.func @transform_1(%arg0: i32, %arg1: i32, %arg2: i32) -> (i32, i32) {
    %c0_i32 = arith.constant 0 : i32
    return %arg2, %arg1 : i32, i32
  }
  func.func @transform_2(%arg0: i32, %arg1: i32, %arg2: i32) -> (i32, i32) {
    %c0_i32 = arith.constant 0 : i32
    %c0_i32_0 = arith.constant 0 : i32
    return %c0_i32, %arg1 : i32, i32
  }
  func.func @transform_3(%arg0: i32, %arg1: i32, %arg2: i32) -> (i32, i32) {
    %c0_i32 = arith.constant 0 : i32
    return %arg0, %arg1 : i32, i32
  }
  func.func @transform_4(%arg0: i32, %arg1: i32, %arg2: i32) -> (i32, i32) {
    %c0_i32 = arith.constant 0 : i32
    return %arg0, %arg1 : i32, i32
  }
}

module attributes {stable_mosaic.version = 11 : i64} {
  func.func @_mm_kernel(%arg0: i32, %arg1: i32, %arg2: i32, %arg3: memref<2x768xbf16, #tpu.memory_space<vmem>>, %arg4: memref<768x256xbf16, #tpu.memory_space<vmem>>, %arg5: memref<1x256xf32, #tpu.memory_space<vmem>>, %arg6: memref<2x256xbf16, #tpu.memory_space<vmem>>, %arg7: memref<2x256xf32, #tpu.memory_space<vmem>>) attributes {dimension_semantics = [#tpu.dimension_semantics<parallel>, #tpu.dimension_semantics<parallel>, #tpu.dimension_semantics<arbitrary>], iteration_bounds = array<i64: 1, 2, 6>, scalar_prefetch = 0 : i64, scratch_operands = 1 : i64, tpu.core_type = #tpu.core_type<tc>, window_params = [{transform_indices = @transform_0, window_bounds = array<i64: 2, 768>}, {transform_indices = @transform_1, window_bounds = array<i64: 768, 256>}, {transform_indices = @transform_2, window_bounds = array<i64: 1, 256>}, {transform_indices = @transform_3, window_bounds = array<i64: 2, 256>}]} {
    %c0_i32 = arith.constant 0 : i32
    %0 = arith.cmpi eq, %arg2, %c0_i32 : i32
    %1 = arith.extui %0 : i1 to i32
    %c0_i32_0 = arith.constant 0 : i32
    %2 = arith.cmpi ne, %1, %c0_i32_0 : i32
    scf.if %2 {
      %cst_9 = arith.constant 0.000000e+00 : f32
      %12 = vector.broadcast %cst_9 : f32 to vector<2x256xf32>
      %c0_10 = arith.constant 0 : index
      %c0_11 = arith.constant 0 : index
      %13 = vector.load %arg7[%c0_10, %c0_11] : memref<2x256xf32, #tpu.memory_space<vmem>>, vector<2x256xf32>
      tpu.vector_store %arg7[%c0_10, %c0_11], %12 {strides = array<i32>} : memref<2x256xf32, #tpu.memory_space<vmem>>, vector<2x256xf32>,
    } else {
    }
    %c0 = arith.constant 0 : index
    %c0_1 = arith.constant 0 : index
    %3 = vector.load %arg7[%c0, %c0_1] : memref<2x256xf32, #tpu.memory_space<vmem>>, vector<2x256xf32>
    %c0_2 = arith.constant 0 : index
    %c0_3 = arith.constant 0 : index
    %4 = vector.load %arg3[%c0_2, %c0_3] : memref<2x768xbf16, #tpu.memory_space<vmem>>, vector<2x768xbf16>
    %c0_4 = arith.constant 0 : index
    %c0_5 = arith.constant 0 : index
    %5 = vector.load %arg4[%c0_4, %c0_5] : memref<768x256xbf16, #tpu.memory_space<vmem>>, vector<768x256xbf16>
    %cst = arith.constant dense<0.000000e+00> : vector<2x256xf32>
    %6 = tpu.matmul %4, %5, %cst {dimension_numbers = #tpu.dot_dimension_numbers<[1], [0], [0], [1], [0, 0, 1, 1], [], []>} : vector<2x768xbf16>, vector<768x256xbf16>, vector<2x256xf32> -> vector<2x256xf32>
    %7 = arith.addf %3, %6 : vector<2x256xf32>
    %c0_6 = arith.constant 0 : index
    %c0_7 = arith.constant 0 : index
    %8 = vector.load %arg7[%c0_6, %c0_7] : memref<2x256xf32, #tpu.memory_space<vmem>>, vector<2x256xf32>
    tpu.vector_store %arg7[%c0_6, %c0_7], %7 {strides = array<i32>} : memref<2x256xf32, #tpu.memory_space<vmem>>, vector<2x256xf32>,
    %c5_i32 = arith.constant 5 : i32
    %9 = arith.cmpi eq, %arg2, %c5_i32 : i32
    %10 = arith.extui %9 : i1 to i32
    %c0_i32_8 = arith.constant 0 : i32
    %11 = arith.cmpi ne, %10, %c0_i32_8 : i32
    scf.if %11 {
      %c0_9 = arith.constant 0 : index
      %c0_10 = arith.constant 0 : index
      %12 = vector.load %arg7[%c0_9, %c0_10] : memref<2x256xf32, #tpu.memory_space<vmem>>, vector<2x256xf32>
      %c0_11 = arith.constant 0 : index
      %c0_12 = arith.constant 0 : index
      %13 = vector.load %arg5[%c0_11, %c0_12] : memref<1x256xf32, #tpu.memory_space<vmem>>, vector<1x256xf32>
      %14 = vector.broadcast %13 : vector<1x256xf32> to vector<2x256xf32>
      %15 = arith.addf %12, %14 : vector<2x256xf32>
      %cst_13 = arith.constant 0.000000e+00 : f32
      %16 = vector.broadcast %cst_13 : f32 to vector<2x256xf32>
      %17 = arith.maximumf %15, %16 : vector<2x256xf32>
      %18 = arith.truncf %17 : vector<2x256xf32> to vector<2x256xbf16>
      %c0_14 = arith.constant 0 : index
      %c0_15 = arith.constant 0 : index
      %19 = vector.load %arg6[%c0_14, %c0_15] : memref<2x256xbf16, #tpu.memory_space<vmem>>, vector<2x256xbf16>
      tpu.vector_store %arg6[%c0_14, %c0_15], %18 {strides = array<i32>} : memref<2x256xbf16, #tpu.memory_space<vmem>>, vector<2x256xbf16>,
    } else {
    }
    return
  }
  func.func @transform_0(%arg0: i32, %arg1: i32, %arg2: i32) -> (i32, i32) {
    %c0_i32 = arith.constant 0 : i32
    return %arg0, %arg2 : i32, i32
  }
  func.func @transform_1(%arg0: i32, %arg1: i32, %arg2: i32) -> (i32, i32) {
    %c0_i32 = arith.constant 0 : i32
    return %arg2, %arg1 : i32, i32
  }
  func.func @transform_2(%arg0: i32, %arg1: i32, %arg2: i32) -> (i32, i32) {
    %c0_i32 = arith.constant 0 : i32
    %c0_i32_0 = arith.constant 0 : i32
    return %c0_i32, %arg1 : i32, i32
  }
  func.func @transform_3(%arg0: i32, %arg1: i32, %arg2: i32) -> (i32, i32) {
    %c0_i32 = arith.constant 0 : i32
    return %arg0, %arg1 : i32, i32
  }
}

module attributes {stable_mosaic.version = 11 : i64} {
  func.func @_head_kernel(%arg0: memref<2x1x512xbf16, #tpu.memory_space<vmem>>, %arg1: memref<512x2xf32, #tpu.memory_space<vmem>>, %arg2: memref<1x2xf32, #tpu.memory_space<vmem>>, %arg3: memref<2x2xf32, #tpu.memory_space<vmem>>) attributes {dimension_semantics = [], scalar_prefetch = 0 : i64, scratch_operands = 0 : i64, tpu.core_type = #tpu.core_type<tc>} {
    %c0 = arith.constant 0 : index
    %c0_0 = arith.constant 0 : index
    %c0_1 = arith.constant 0 : index
    %0 = vector.load %arg0[%c0, %c0_0, %c0_1] : memref<2x1x512xbf16, #tpu.memory_space<vmem>>, vector<2x1x512xbf16>
    %1 = arith.extf %0 : vector<2x1x512xbf16> to vector<2x1x512xf32>
    %cst = arith.constant dense<0.000000e+00> : vector<2x512xf32>
    %2 = vector.multi_reduction <add>, %1, %cst [1] : vector<2x1x512xf32> to vector<2x512xf32>
    %cst_2 = arith.constant 1.000000e+00 : f32
    %3 = vector.broadcast %cst_2 : f32 to vector<2x512xf32>
    %4 = arith.divf %2, %3 : vector<2x512xf32>
    %c0_3 = arith.constant 0 : index
    %c0_4 = arith.constant 0 : index
    %5 = vector.load %arg1[%c0_3, %c0_4] : memref<512x2xf32, #tpu.memory_space<vmem>>, vector<512x2xf32>
    %cst_5 = arith.constant dense<0.000000e+00> : vector<2x2xf32>
    %6 = tpu.matmul %4, %5, %cst_5 {dimension_numbers = #tpu.dot_dimension_numbers<[1], [0], [0], [1], [0, 0, 1, 1], [], []>} : vector<2x512xf32>, vector<512x2xf32>, vector<2x2xf32> -> vector<2x2xf32>
    %c0_6 = arith.constant 0 : index
    %c0_7 = arith.constant 0 : index
    %7 = vector.load %arg2[%c0_6, %c0_7] : memref<1x2xf32, #tpu.memory_space<vmem>>, vector<1x2xf32>
    %8 = vector.broadcast %7 : vector<1x2xf32> to vector<2x2xf32>
    %9 = arith.addf %6, %8 : vector<2x2xf32>
    %c0_8 = arith.constant 0 : index
    %c0_9 = arith.constant 0 : index
    %10 = vector.load %arg3[%c0_8, %c0_9] : memref<2x2xf32, #tpu.memory_space<vmem>>, vector<2x2xf32>
    tpu.vector_store %arg3[%c0_8, %c0_9], %9 {strides = array<i32>} : memref<2x2xf32, #tpu.memory_space<vmem>>, vector<2x2xf32>,
    return
  }
}

</mosaic_0001>

<bundles_post_ra>
// kernel: gender_classifier_resnet18_forward.21
= control target key start
LH: loop header
LB: loop body
LE: loop exit
PB: predicated region body
PF: predicated region fallthrough
CT: control target
= control target key end

     0   :  { %s1744_s12 = smov 0   ;;  %s1746_s13 = smov 0   ;;  %s1918_s0 = inlined_call_operand.vmem [shape: bf16[512,256], index: 0, kind: input, shape index: {}]   ;;  %s1919_s1 = inlined_call_operand.vmem [shape: bf16[256,128], index: 1, kind: input, shape index: {}]   ;;  %s1920_s2 = inlined_call_operand.vmem [shape: f32[1,128], index: 2, kind: input, shape index: {}]   ;;  %s1921_s3 = inlined_call_operand.vmem [shape: bf16[512,128], index: 3, kind: output, shape index: {}]  }
   0x1   :  { %s1748_s14 = smov 0  }
   0x2 LB: > { %s32_s15 = sadd.s32 1, %s1718_s13  ;;  %p1267_p0 = scmp.ge.s32.totalorder %s1722_s14, 1  ;;  %s1722_s14 = sphi %s1748_s14, %s13_s14   ;;  %s1718_s13 = sphi %s1746_s13, %s1923_s13   ;;  %s1714_s12 = sphi %s1744_s12, %s1922_s12  }
   0x3   : > { %p34_p1 = scmp.ge.s32.totalorder %s32_s15, 2  ;;  %p191_p2 = scmp.lt.s32.totalorder %s1722_s14, 3 }
   0x5   : > { %s1925_s15 = smov (%p34_p1, %s32_s15), 0  ;;  %p192_p3 = pnand %p1267_p0, %p191_p2 }
   0x6   : > { %v1636_v0 = vld [vmem:[%s1919_s1 + $0x40] sm:$0xff] (!%p192_p3)   ;;  %s1268_s18 = sshll.u32 (!%p192_p3), %s1714_s12, 5  ;;  %v1638_v2 = vld [vmem:[%s1919_s1 + $0x48] sm:$0xff] (!%p192_p3)   ;;  %v1640_v4 = vld [vmem:[%s1919_s1 + $0x50] sm:$0xff] (!%p192_p3)  }
   0x7   : > { %195 = sbr.rel (%p192_p3) target bundleno = 320 (0x140), region = 32  ;;  %v1637_v1 = vld [vmem:[%s1919_s1] sm:$0xff] (!%p192_p3)   ;;  %1484 = vmatprep.subr.bf16.mxu0 (!%p192_p3), %v1636_v0  ;;  %1596 = vmatprep.subr.bf16.mxu1 (!%p192_p3), %v1636_v0  ;;  %v1639_v3 = vld [vmem:[%s1919_s1 + $0x8] sm:$0xff] (!%p192_p3)   ;;  %p236_p4 = scmp.lt.s32.totalorder (!%p192_p3), %s1268_s18, 63  ;;  %v1641_v5 = vld [vmem:[%s1919_s1 + $0x10] sm:$0xff] (!%p192_p3)  }
   0x8   : > { %1485 = vmatpush3.bf16.msra.mxu0 (!%p192_p3), %v1637_v1  ;;  %1604 = vmatpush3.bf16.msra.mxu1 (!%p192_p3), %v1637_v1  ;;  %v1642_v6 = vld [vmem:[%s1919_s1 + $0x58] sm:$0xff] (!%p192_p3)   ;;  %v1644_v8 = vld [vmem:[%s1919_s1 + $0x60] sm:$0xff] (!%p192_p3)   ;;  %v1646_v10 = vld [vmem:[%s1919_s1 + $0x68] sm:$0xff] (!%p192_p3)  }
   0x9   : > { %1486 = vmatprep.subr.bf16.mxu0 (!%p192_p3), %v1638_v2  ;;  %1597 = vmatprep.subr.bf16.mxu1 (!%p192_p3), %v1638_v2  ;;  %v1643_v7 = vld [vmem:[%s1919_s1 + $0x18] sm:$0xff] (!%p192_p3)   ;;  %v1645_v9 = vld [vmem:[%s1919_s1 + $0x20] sm:$0xff] (!%p192_p3)   ;;  %v1647_v13 = vld [vmem:[%s1919_s1 + $0x28] sm:$0xff] (!%p192_p3)  }
   0xa   : > { %v1648_v14 = vld [vmem:[%s1919_s1 + $0x70] sm:$0xff] (!%p192_p3)   ;;  %v1650_v16 = vld [vmem:[%s1919_s1 + $0x78] sm:$0xff] (!%p192_p3)   ;;  %v1853_v51 = vld [vmem:[%s1920_s2] ss:$0 sm:$0xff] (!%p192_p3) }
   0xb   : > { %v1649_v15 = vld [vmem:[%s1919_s1 + $0x30] sm:$0xff] (!%p192_p3)   ;;  %v1651_v17 = vld [vmem:[%s1919_s1 + $0x38] sm:$0xff] (!%p192_p3)  }
   0xc   : > { %1487 = vmatpush3.bf16.msra.mxu0 (!%p192_p3), %v1639_v3  ;;  %1605 = vmatpush3.bf16.msra.mxu1 (!%p192_p3), %v1639_v3 }
   0xd   : > { %1488 = vmatprep.subr.bf16.mxu0 (!%p192_p3), %v1640_v4  ;;  %1598 = vmatprep.subr.bf16.mxu1 (!%p192_p3), %v1640_v4 }
   0xe   : > { %s1927_s18 = smov (!%p236_p4, %s1268_s18), 63 }
   0xf   : > { %s1356_s6 = sshll.u32 %s1927_s18, 3  ;;  %s1272_s5 = sshll.u32 %s1927_s18, 2 }
  0x10   : > { %1489 = vmatpush3.bf16.msra.mxu0 %v1641_v5  ;;  %1606 = vmatpush3.bf16.msra.mxu1 %v1641_v5  ;;  %s1795_s11 = scalar_lea.vmem %s1918_s0, %s1356_s6  ;;  %s1863_s8 = scalar_lea.vmem %s1921_s3, %s1272_s5 }
  0x11   : > { %1490 = vmatprep.subr.bf16.mxu0 %v1642_v6  ;;  %1599 = vmatprep.subr.bf16.mxu1 %v1642_v6  ;;  %v1654_v11 = vld [vmem:[%s1795_s11 + $0x4] ss:$8 sps:$4 sm:$0xff]   ;;  %v1652_v18 = vld [vmem:[%s1795_s11] ss:$8 sps:$4 sm:$0xff]   ;;  %v1658_v20 = vld [vmem:[%s1795_s11 + $0x14] ss:$8 sps:$4 sm:$0xff]  }
  0x12   : > { %v1657_v12 = vld [vmem:[%s1795_s11 + $0x84] ss:$8 sps:$4 sm:$0xff]   ;;  %688 = vmatprep.mubr.bf16.mxu0 %v1654_v11  ;;  %v1655_v19 = vld [vmem:[%s1795_s11 + $0x80] ss:$8 sps:$4 sm:$0xff]   ;;  %v1660_v21 = vld [vmem:[%s1795_s11 + $0x94] ss:$8 sps:$4 sm:$0xff]  }
  0x13   : > { %752 = vmatprep.mubr.bf16.mxu1 %v1657_v12  ;;  %v1662_v22 = vld [vmem:[%s1795_s11 + $0x10] ss:$8 sps:$4 sm:$0xff]   ;;  %v1664_v24 = vld [vmem:[%s1795_s11 + $0x24] ss:$8 sps:$4 sm:$0xff]   ;;  %v1668_v26 = vld [vmem:[%s1795_s11 + $0x20] ss:$8 sps:$4 sm:$0xff]  }
  0x14   : > { %1491 = vmatpush3.bf16.msra.mxu0 %v1643_v7  ;;  %1607 = vmatpush3.bf16.msra.mxu1 %v1643_v7  ;;  %v1663_v23 = vld [vmem:[%s1795_s11 + $0x90] ss:$8 sps:$4 sm:$0xff]   ;;  %v1666_v25 = vld [vmem:[%s1795_s11 + $0xa4] ss:$8 sps:$4 sm:$0xff]   ;;  %v1669_v27 = vld [vmem:[%s1795_s11 + $0xa0] ss:$8 sps:$4 sm:$0xff]  }
  0x15   : > { %1492 = vmatprep.subr.bf16.mxu0 %v1644_v8  ;;  %1600 = vmatprep.subr.bf16.mxu1 %v1644_v8  ;;  %v1670_v28 = vld [vmem:[%s1795_s11 + $0x34] ss:$8 sps:$4 sm:$0xff]   ;;  %v1674_v30 = vld [vmem:[%s1795_s11 + $0x30] ss:$8 sps:$4 sm:$0xff]   ;;  %v1676_v32 = vld [vmem:[%s1795_s11 + $0x44] ss:$8 sps:$4 sm:$0xff]  }
  0x16   : > { %v1672_v29 = vld [vmem:[%s1795_s11 + $0xb4] ss:$8 sps:$4 sm:$0xff]   ;;  %v1675_v31 = vld [vmem:[%s1795_s11 + $0xb0] ss:$8 sps:$4 sm:$0xff]   ;;  %v1678_v33 = vld [vmem:[%s1795_s11 + $0xc4] ss:$8 sps:$4 sm:$0xff]  }
  0x17   : > { %v1680_v34 = vld [vmem:[%s1795_s11 + $0x40] ss:$8 sps:$4 sm:$0xff]   ;;  %v1682_v36 = vld [vmem:[%s1795_s11 + $0x54] ss:$8 sps:$4 sm:$0xff]   ;;  %v1686_v38 = vld [vmem:[%s1795_s11 + $0x50] ss:$8 sps:$4 sm:$0xff]  }
  0x18   : > { %1493 = vmatpush3.bf16.msra.mxu0 %v1645_v9  ;;  %1608 = vmatpush3.bf16.msra.mxu1 %v1645_v9  ;;  %v1681_v35 = vld [vmem:[%s1795_s11 + $0xc0] ss:$8 sps:$4 sm:$0xff]   ;;  %v1684_v37 = vld [vmem:[%s1795_s11 + $0xd4] ss:$8 sps:$4 sm:$0xff]   ;;  %v1687_v39 = vld [vmem:[%s1795_s11 + $0xd0] ss:$8 sps:$4 sm:$0xff]  }
  0x19   : > { %1494 = vmatprep.subr.bf16.mxu0 %v1646_v10  ;;  %1601 = vmatprep.subr.bf16.mxu1 %v1646_v10  ;;  %v1688_v40 = vld [vmem:[%s1795_s11 + $0x64] ss:$8 sps:$4 sm:$0xff]   ;;  %v1692_v42 = vld [vmem:[%s1795_s11 + $0x60] ss:$8 sps:$4 sm:$0xff]   ;;  %v1694_v44 = vld [vmem:[%s1795_s11 + $0x74] ss:$8 sps:$4 sm:$0xff]  }
  0x1a   : > { %v1690_v41 = vld [vmem:[%s1795_s11 + $0xe4] ss:$8 sps:$4 sm:$0xff]   ;;  %v1693_v43 = vld [vmem:[%s1795_s11 + $0xe0] ss:$8 sps:$4 sm:$0xff]   ;;  %v1696_v45 = vld [vmem:[%s1795_s11 + $0xf4] ss:$8 sps:$4 sm:$0xff]  }
  0x1b   : > { %v1698_v46 = vld [vmem:[%s1795_s11 + $0x70] ss:$8 sps:$4 sm:$0xff]  }
  0x1c   : > { %1495 = vmatpush3.bf16.msra.mxu0 %v1647_v13  ;;  %1609 = vmatpush3.bf16.msra.mxu1 %v1647_v13  ;;  %v1699_v47 = vld [vmem:[%s1795_s11 + $0xf0] ss:$8 sps:$4 sm:$0xff]  }
  0x1d   : > { %1496 = vmatprep.subr.bf16.mxu0 %v1648_v14  ;;  %1602 = vmatprep.subr.bf16.mxu1 %v1648_v14 }
  0x20   : > { %1497 = vmatpush3.bf16.msra.mxu0 %v1649_v15  ;;  %1610 = vmatpush3.bf16.msra.mxu1 %v1649_v15 }
  0x21   : > { %1498 = vmatprep.subr.bf16.mxu0 %v1650_v16  ;;  %1603 = vmatprep.subr.bf16.mxu1 %v1650_v16 }
  0x24   : > { %1499 = vmatpush3.bf16.msra.mxu0 %v1651_v17  ;;  %1611 = vmatpush3.bf16.msra.mxu1 %v1651_v17 }
  0x27   : > { %689 = vmatmul.mubr.bf16.vlgmr.msra.gmra.mrb[0].mxu0 %v1652_v18  ;;  %753 = vmatmul.mubr.bf16.vlgmr.msra.gmra.mrb[0].mxu1 %v1655_v19 }
  0x28   : > { %696 = vmatprep.mubr.bf16.mxu0 %v1658_v20  ;;  %760 = vmatprep.mubr.bf16.mxu1 %v1660_v21 }
  0x2f   : > { %697 = vmatmul.mubr.bf16.gmra.mrb[4].mxu0 %v1662_v22  ;;  %761 = vmatmul.mubr.bf16.gmra.mrb[4].mxu1 %v1663_v23 }
  0x30   : > { %704 = vmatprep.mubr.bf16.mxu0 %v1664_v24  ;;  %768 = vmatprep.mubr.bf16.mxu1 %v1666_v25 }
  0x37   : > { %705 = vmatmul.mubr.bf16.gmra.mrb[8].mxu0 %v1668_v26  ;;  %769 = vmatmul.mubr.bf16.gmra.mrb[8].mxu1 %v1669_v27 }
  0x38   : > { %712 = vmatprep.mubr.bf16.mxu0 %v1670_v28  ;;  %776 = vmatprep.mubr.bf16.mxu1 %v1672_v29 }
  0x3f   : > { %713 = vmatmul.mubr.bf16.gmra.mrb[12].mxu0 %v1674_v30  ;;  %777 = vmatmul.mubr.bf16.gmra.mrb[12].mxu1 %v1675_v31 }
  0x40   : > { %720 = vmatprep.mubr.bf16.mxu0 %v1676_v32  ;;  %784 = vmatprep.mubr.bf16.mxu1 %v1678_v33 }
  0x47   : > { %721 = vmatmul.mubr.bf16.gmra.mrb[16].mxu0 %v1680_v34  ;;  %785 = vmatmul.mubr.bf16.gmra.mrb[16].mxu1 %v1681_v35 }
  0x48   : > { %728 = vmatprep.mubr.bf16.mxu0 %v1682_v36  ;;  %792 = vmatprep.mubr.bf16.mxu1 %v1684_v37 }
  0x4f   : > { %729 = vmatmul.mubr.bf16.gmra.mrb[20].mxu0 %v1686_v38  ;;  %793 = vmatmul.mubr.bf16.gmra.mrb[20].mxu1 %v1687_v39 }
  0x50   : > { %736 = vmatprep.mubr.bf16.mxu0 %v1688_v40  ;;  %800 = vmatprep.mubr.bf16.mxu1 %v1690_v41 }
  0x57   : > { %737 = vmatmul.mubr.bf16.gmra.mrb[24].mxu0 %v1692_v42  ;;  %801 = vmatmul.mubr.bf16.gmra.mrb[24].mxu1 %v1693_v43 }
  0x58   : > { %744 = vmatprep.mubr.bf16.mxu0 %v1694_v44  ;;  %808 = vmatprep.mubr.bf16.mxu1 %v1696_v45 }
  0x5f   : > { %745 = vmatmul.mubr.bf16.gmra.mrb[28].mxu0 %v1698_v46  ;;  %809 = vmatmul.mubr.bf16.gmra.mrb[28].mxu1 %v1699_v47 }
  0xfa   : > { %v1500_v48 = vpop.f32.mrb[0].mxu0  ;;  %v1548_v49 = vpop.f32.mrb[0].mxu1 }
  0xfb   : > { %v1501_v50 = vpop.f32.mrb[1].mxu0  ;;  %v1549_v52 = vpop.f32.mrb[1].mxu1 }
  0xfc   : > { %v1502_v53 = vadd.f32 %v1501_v50, %v1500_v48  ;;  %v1550_v54 = vadd.f32 %v1549_v52, %v1548_v49  ;;  %v1503_v55 = vpop.f32.mrb[2].mxu0  ;;  %v1551_v56 = vpop.f32.mrb[2].mxu1 }
  0xfd   : > { %v1504_v57 = vpop.f32.mrb[3].mxu0  ;;  %v1552_v58 = vpop.f32.mrb[3].mxu1 }
  0xfe   : > { %v923_v59 = vadd.f32 %v1502_v53, %v1853_v51  ;;  %v939_v60 = vadd.f32 %v1550_v54, %v1853_v51  ;;  %v1505_v61 = vadd.f32 %v1504_v57, %v1503_v55  ;;  %v1553_v62 = vadd.f32 %v1552_v58, %v1551_v56 }
 0x100   : > { %v924_v63 = vadd.f32 %v1505_v61, %v1853_v51  ;;  %v940_v0 = vadd.f32 %v1553_v62, %v1853_v51  ;;  %v955_v1 = vmax.f32 %v923_v59, 0.0  ;;  %v971_v2 = vmax.f32 %v939_v60, 0.0 }
 0x102   : > { %v956_v3 = vmax.f32 %v924_v63, 0.0  ;;  %v972_v4 = vmax.f32 %v940_v0, 0.0  ;;  %v1506_v5 = vpop.f32.mrb[4].mxu0  ;;  %v1554_v6 = vpop.f32.mrb[4].mxu1 }
 0x103   : > { %v1507_v7 = vpop.f32.mrb[5].mxu0  ;;  %v1555_v8 = vpop.f32.mrb[5].mxu1 }
 0x104   : > { %v1392_v9 = vpack.c.bf16 %v956_v3, %v955_v1  ;;  %v1432_v10 = vpack.c.bf16 %v972_v4, %v971_v2  ;;  %v1508_v11 = vadd.f32 %v1507_v7, %v1506_v5  ;;  %v1556_v12 = vadd.f32 %v1555_v8, %v1554_v6  ;;  %v1509_v13 = vpop.f32.mrb[6].mxu0  ;;  %v1557_v14 = vpop.f32.mrb[6].mxu1 }
 0x105   : > { %v1510_v15 = vpop.f32.mrb[7].mxu0  ;;  %v1558_v16 = vpop.f32.mrb[7].mxu1 }
 0x106   : > { %1393 = vst [vmem:[%s1863_s8] sm:$0xff] %v1392_v9   ;;  %1476 = vst [vmem:[%s1863_s8 + $0x40] sm:$0xff] %v1432_v10   ;;  %v925_v17 = vadd.f32 %v1508_v11, %v1853_v51  ;;  %v941_v18 = vadd.f32 %v1556_v12, %v1853_v51  ;;  %v1511_v19 = vadd.f32 %v1510_v15, %v1509_v13 }
 0x107   : > { %v1559_v20 = vadd.f32 %v1558_v16, %v1557_v14 }
 0x108   : > { %v926_v21 = vadd.f32 %v1511_v19, %v1853_v51  ;;  %v957_v23 = vmax.f32 %v925_v17, 0.0  ;;  %v973_v24 = vmax.f32 %v941_v18, 0.0 }
 0x109   : > { %v942_v22 = vadd.f32 %v1559_v20, %v1853_v51 }
 0x10a   : > { %v958_v25 = vmax.f32 %v926_v21, 0.0  ;;  %v1512_v27 = vpop.f32.mrb[8].mxu0  ;;  %v1560_v28 = vpop.f32.mrb[8].mxu1 }
 0x10b   : > { %v974_v26 = vmax.f32 %v942_v22, 0.0  ;;  %v1513_v29 = vpop.f32.mrb[9].mxu0  ;;  %v1561_v30 = vpop.f32.mrb[9].mxu1 }
 0x10c   : > { %v1397_v31 = vpack.c.bf16 %v958_v25, %v957_v23  ;;  %v1514_v33 = vadd.f32 %v1513_v29, %v1512_v27  ;;  %v1562_v34 = vadd.f32 %v1561_v30, %v1560_v28  ;;  %v1515_v35 = vpop.f32.mrb[10].mxu0  ;;  %v1563_v36 = vpop.f32.mrb[10].mxu1 }
 0x10d   : > { %v1437_v32 = vpack.c.bf16 %v974_v26, %v973_v24  ;;  %v1516_v37 = vpop.f32.mrb[11].mxu0  ;;  %v1564_v38 = vpop.f32.mrb[11].mxu1 }
 0x10e   : > { %1469 = vst [vmem:[%s1863_s8 + $0x8] sm:$0xff] %v1397_v31   ;;  %v927_v39 = vadd.f32 %v1514_v33, %v1853_v51  ;;  %v943_v40 = vadd.f32 %v1562_v34, %v1853_v51  ;;  %v1517_v41 = vadd.f32 %v1516_v37, %v1515_v35  ;;  %v1565_v42 = vadd.f32 %v1564_v38, %v1563_v36 }
 0x10f   : > { %1477 = vst [vmem:[%s1863_s8 + $0x48] sm:$0xff] %v1437_v32  }
 0x110   : > { %v928_v43 = vadd.f32 %v1517_v41, %v1853_v51  ;;  %v944_v44 = vadd.f32 %v1565_v42, %v1853_v51  ;;  %v959_v45 = vmax.f32 %v927_v39, 0.0  ;;  %v975_v46 = vmax.f32 %v943_v40, 0.0 }
 0x112   : > { %v960_v47 = vmax.f32 %v928_v43, 0.0  ;;  %v976_v48 = vmax.f32 %v944_v44, 0.0  ;;  %v1518_v49 = vpop.f32.mrb[12].mxu0  ;;  %v1566_v50 = vpop.f32.mrb[12].mxu1 }
 0x113   : > { %v1519_v52 = vpop.f32.mrb[13].mxu0  ;;  %v1567_v53 = vpop.f32.mrb[13].mxu1 }
 0x114   : > { %v1402_v54 = vpack.c.bf16 %v960_v47, %v959_v45  ;;  %v1442_v55 = vpack.c.bf16 %v976_v48, %v975_v46  ;;  %v1520_v56 = vadd.f32 %v1519_v52, %v1518_v49  ;;  %v1568_v57 = vadd.f32 %v1567_v53, %v1566_v50  ;;  %v1521_v58 = vpop.f32.mrb[14].mxu0  ;;  %v1569_v59 = vpop.f32.mrb[14].mxu1 }
 0x115   : > { %v1522_v60 = vpop.f32.mrb[15].mxu0  ;;  %v1570_v61 = vpop.f32.mrb[15].mxu1 }
 0x116   : > { %1470 = vst [vmem:[%s1863_s8 + $0x10] sm:$0xff] %v1402_v54   ;;  %1478 = vst [vmem:[%s1863_s8 + $0x50] sm:$0xff] %v1442_v55   ;;  %v929_v62 = vadd.f32 %v1520_v56, %v1853_v51  ;;  %v945_v63 = vadd.f32 %v1568_v57, %v1853_v51  ;;  %v1523_v0 = vadd.f32 %v1522_v60, %v1521_v58 }
 0x117   : > { %v1571_v1 = vadd.f32 %v1570_v61, %v1569_v59 }
 0x118   : > { %v930_v2 = vadd.f32 %v1523_v0, %v1853_v51  ;;  %v961_v4 = vmax.f32 %v929_v62, 0.0  ;;  %v977_v5 = vmax.f32 %v945_v63, 0.0 }
 0x119   : > { %v946_v3 = vadd.f32 %v1571_v1, %v1853_v51 }
 0x11a   : > { %v962_v6 = vmax.f32 %v930_v2, 0.0  ;;  %v1524_v8 = vpop.f32.mrb[16].mxu0  ;;  %v1572_v9 = vpop.f32.mrb[16].mxu1 }
 0x11b   : > { %v978_v7 = vmax.f32 %v946_v3, 0.0  ;;  %v1525_v10 = vpop.f32.mrb[17].mxu0  ;;  %v1573_v11 = vpop.f32.mrb[17].mxu1 }
 0x11c   : > { %v1407_v12 = vpack.c.bf16 %v962_v6, %v961_v4  ;;  %v1526_v14 = vadd.f32 %v1525_v10, %v1524_v8  ;;  %v1574_v15 = vadd.f32 %v1573_v11, %v1572_v9  ;;  %v1527_v16 = vpop.f32.mrb[18].mxu0  ;;  %v1575_v17 = vpop.f32.mrb[18].mxu1 }
 0x11d   : > { %v1447_v13 = vpack.c.bf16 %v978_v7, %v977_v5  ;;  %v1528_v18 = vpop.f32.mrb[19].mxu0  ;;  %v1576_v19 = vpop.f32.mrb[19].mxu1 }
 0x11e   : > { %1471 = vst [vmem:[%s1863_s8 + $0x18] sm:$0xff] %v1407_v12   ;;  %v931_v20 = vadd.f32 %v1526_v14, %v1853_v51  ;;  %v947_v21 = vadd.f32 %v1574_v15, %v1853_v51  ;;  %v1529_v22 = vadd.f32 %v1528_v18, %v1527_v16  ;;  %v1577_v23 = vadd.f32 %v1576_v19, %v1575_v17 }
 0x11f   : > { %1479 = vst [vmem:[%s1863_s8 + $0x58] sm:$0xff] %v1447_v13  }
 0x120   : > { %v932_v24 = vadd.f32 %v1529_v22, %v1853_v51  ;;  %v948_v25 = vadd.f32 %v1577_v23, %v1853_v51  ;;  %v963_v26 = vmax.f32 %v931_v20, 0.0  ;;  %v979_v27 = vmax.f32 %v947_v21, 0.0 }
 0x122   : > { %v964_v28 = vmax.f32 %v932_v24, 0.0  ;;  %v980_v29 = vmax.f32 %v948_v25, 0.0  ;;  %v1530_v30 = vpop.f32.mrb[20].mxu0  ;;  %v1578_v31 = vpop.f32.mrb[20].mxu1 }
 0x123   : > { %v1531_v32 = vpop.f32.mrb[21].mxu0  ;;  %v1579_v33 = vpop.f32.mrb[21].mxu1 }
 0x124   : > { %v1412_v34 = vpack.c.bf16 %v964_v28, %v963_v26  ;;  %v1452_v35 = vpack.c.bf16 %v980_v29, %v979_v27  ;;  %v1532_v36 = vadd.f32 %v1531_v32, %v1530_v30  ;;  %v1580_v37 = vadd.f32 %v1579_v33, %v1578_v31  ;;  %v1533_v38 = vpop.f32.mrb[22].mxu0  ;;  %v1581_v39 = vpop.f32.mrb[22].mxu1 }
 0x125   : > { %v1534_v40 = vpop.f32.mrb[23].mxu0  ;;  %v1582_v41 = vpop.f32.mrb[23].mxu1 }
 0x126   : > { %1472 = vst [vmem:[%s1863_s8 + $0x20] sm:$0xff] %v1412_v34   ;;  %1480 = vst [vmem:[%s1863_s8 + $0x60] sm:$0xff] %v1452_v35   ;;  %v933_v42 = vadd.f32 %v1532_v36, %v1853_v51  ;;  %v949_v43 = vadd.f32 %v1580_v37, %v1853_v51  ;;  %v1535_v44 = vadd.f32 %v1534_v40, %v1533_v38 }
 0x127   : > { %v1583_v45 = vadd.f32 %v1582_v41, %v1581_v39 }
 0x128   : > { %v934_v46 = vadd.f32 %v1535_v44, %v1853_v51  ;;  %v965_v48 = vmax.f32 %v933_v42, 0.0  ;;  %v981_v49 = vmax.f32 %v949_v43, 0.0 }
 0x129   : > { %v950_v47 = vadd.f32 %v1583_v45, %v1853_v51 }
 0x12a   : > { %v966_v50 = vmax.f32 %v934_v46, 0.0  ;;  %v1536_v53 = vpop.f32.mrb[24].mxu0  ;;  %v1584_v54 = vpop.f32.mrb[24].mxu1 }
 0x12b   : > { %v982_v52 = vmax.f32 %v950_v47, 0.0  ;;  %v1537_v55 = vpop.f32.mrb[25].mxu0  ;;  %v1585_v56 = vpop.f32.mrb[25].mxu1 }
 0x12c   : > { %v1417_v57 = vpack.c.bf16 %v966_v50, %v965_v48  ;;  %v1538_v59 = vadd.f32 %v1537_v55, %v1536_v53  ;;  %v1586_v60 = vadd.f32 %v1585_v56, %v1584_v54  ;;  %v1539_v61 = vpop.f32.mrb[26].mxu0  ;;  %v1587_v62 = vpop.f32.mrb[26].mxu1 }
 0x12d   : > { %v1457_v58 = vpack.c.bf16 %v982_v52, %v981_v49  ;;  %v1540_v63 = vpop.f32.mrb[27].mxu0  ;;  %v1588_v0 = vpop.f32.mrb[27].mxu1 }
 0x12e   : > { %1473 = vst [vmem:[%s1863_s8 + $0x28] sm:$0xff] %v1417_v57   ;;  %v935_v1 = vadd.f32 %v1538_v59, %v1853_v51  ;;  %v951_v2 = vadd.f32 %v1586_v60, %v1853_v51  ;;  %v1541_v3 = vadd.f32 %v1540_v63, %v1539_v61  ;;  %v1589_v4 = vadd.f32 %v1588_v0, %v1587_v62 }
 0x12f   : > { %1481 = vst [vmem:[%s1863_s8 + $0x68] sm:$0xff] %v1457_v58  }
 0x130   : > { %v936_v5 = vadd.f32 %v1541_v3, %v1853_v51  ;;  %v952_v6 = vadd.f32 %v1589_v4, %v1853_v51  ;;  %v967_v7 = vmax.f32 %v935_v1, 0.0  ;;  %v983_v8 = vmax.f32 %v951_v2, 0.0 }
 0x132   : > { %v968_v9 = vmax.f32 %v936_v5, 0.0  ;;  %v984_v10 = vmax.f32 %v952_v6, 0.0  ;;  %v1542_v11 = vpop.f32.mrb[28].mxu0  ;;  %v1590_v12 = vpop.f32.mrb[28].mxu1 }
 0x133   : > { %v1543_v13 = vpop.f32.mrb[29].mxu0  ;;  %v1591_v14 = vpop.f32.mrb[29].mxu1 }
 0x134   : > { %v1422_v15 = vpack.c.bf16 %v968_v9, %v967_v7  ;;  %v1462_v16 = vpack.c.bf16 %v984_v10, %v983_v8  ;;  %v1544_v17 = vadd.f32 %v1543_v13, %v1542_v11  ;;  %v1592_v18 = vadd.f32 %v1591_v14, %v1590_v12  ;;  %v1545_v19 = vpop.f32.mrb[30].mxu0  ;;  %v1593_v20 = vpop.f32.mrb[30].mxu1 }
 0x135   : > { %v1546_v21 = vpop.f32.mrb[31].mxu0  ;;  %v1594_v22 = vpop.f32.mrb[31].mxu1 }
 0x136   : > { %1474 = vst [vmem:[%s1863_s8 + $0x30] sm:$0xff] %v1422_v15   ;;  %1482 = vst [vmem:[%s1863_s8 + $0x70] sm:$0xff] %v1462_v16   ;;  %v937_v23 = vadd.f32 %v1544_v17, %v1853_v51  ;;  %v953_v24 = vadd.f32 %v1592_v18, %v1853_v51  ;;  %v1547_v25 = vadd.f32 %v1546_v21, %v1545_v19 }
 0x137   : > { %v1595_v26 = vadd.f32 %v1594_v22, %v1593_v20 }
 0x138   : > { %v938_v27 = vadd.f32 %v1547_v25, %v1853_v51  ;;  %v969_v29 = vmax.f32 %v937_v23, 0.0  ;;  %v985_v30 = vmax.f32 %v953_v24, 0.0 }
 0x139   : > { %v954_v28 = vadd.f32 %v1595_v26, %v1853_v51 }
 0x13a   : > { %v970_v31 = vmax.f32 %v938_v27, 0.0 }
 0x13b   : > { %v986_v32 = vmax.f32 %v954_v28, 0.0 }
 0x13c   : > { %v1427_v33 = vpack.c.bf16 %v970_v31, %v969_v29 }
 0x13d   : > { %v1467_v34 = vpack.c.bf16 %v986_v32, %v985_v30 }
 0x13e   : > { %1475 = vst [vmem:[%s1863_s8 + $0x38] sm:$0xff] %v1427_v33  }
 0x13f   : > { %1483 = vst [vmem:[%s1863_s8 + $0x78] sm:$0xff] %v1467_v34  }
 0x140 PF: > { %s13_s14 = sadd.s32 1, %s1722_s14   ;;  %s1922_s12 = smov %s1718_s13 }
 0x141   : > { %p10_p5 = scmp.ge.s32.totalorder %s13_s14, 4   ;;  %s1923_s13 = smov %s1925_s15 }
 0x143   :  { %12 = sbr.rel (!%p10_p5) target bundleno = 2 (0x2), region = 76 }

// kernel: gender_classifier_resnet18_forward.22
= control target key start
LH: loop header
LB: loop body
LE: loop exit
PB: predicated region body
PF: predicated region fallthrough
CT: control target
= control target key end

     0   :  { %s1659_s12 = smov 0   ;;  %s1661_s13 = smov 0   ;;  %s1873_s0 = inlined_call_operand.vmem [shape: bf16[128,1152], index: 0, kind: input, shape index: {}]   ;;  %s1874_s1 = inlined_call_operand.vmem [shape: bf16[1152,128], index: 1, kind: input, shape index: {}]   ;;  %s1875_s2 = inlined_call_operand.vmem [shape: f32[1,128], index: 2, kind: input, shape index: {}]   ;;  %s1876_s3 = inlined_call_operand.vmem [shape: bf16[128,128], index: 3, kind: output, shape index: {}]  }
   0x1   :  { %s1663_s14 = smov 0   ;;  %s1665_s15 = smov 0  }
   0x2   :  { %s1667_s16 = smov 0  }
   0x3 LB: > { %s25_s17 = sadd.s32 1, %s1632_s15  ;;  %p48_p1 = scmp.ne.s32.totalorder %s1624_s13, %s1620_s12  ;;  %s1636_s16 = sphi %s1667_s16, %s13_s16   ;;  %s1632_s15 = sphi %s1665_s15, %s1880_s15   ;;  %s1628_s14 = sphi %s1663_s14, %s1879_s14   ;;  %s1624_s13 = sphi %s1661_s13, %s1878_s13   ;;  %s1620_s12 = sphi %s1659_s12, %s1877_s12  }
   0x4   : > { %p26_p0 = scmp.ge.s32.totalorder %s25_s17, 3  ;;  %p49_p2 = scmp.eq.s32.totalorder %s1636_s16, 0 }
   0x5   : > { %s41_s19 = sadd.s32 1, %s1624_s13  ;;  %p1216_p5 = scmp.ge.s32.totalorder %s1636_s16, 3 }
   0x6   : > { %s1882_s17 = smov (%p26_p0, %s25_s17), 0  ;;  %p50_p3 = por %p49_p2, %p48_p1 }
   0x7   : > { %s37_s18 = ssub.s32 %s1632_s15, %s1882_s17  ;;  %162 = sbr.rel (%p1216_p5) target bundleno = 37 (0x25), region = 20 }
   0x8   : > { %p39_p4 = scmp.eq.s32.totalorder %s37_s18, 0 }
   0xa   : > { %s1694_s20 = scalar_select %p39_p4, %s1624_s13, %s41_s19  }
   0xe   : > { %165 = sbr.rel (!%p50_p3) target bundleno = 37 (0x25), region = 24  ;;  %s167_s21 = sand.u32 (%p50_p3), 1, %s1624_s13  }
   0xf   : > { %s1323_s22 = smul.u32 (%p50_p3), 12, %s1632_s15 }
  0x10   : > { %s1499_s23 = smul.u32 (%p50_p3), 192, %s167_s21 }
  0x11   : > { %s1702_s26 = scalar_lea.vmem (%p50_p3), %s1873_s0, %s1323_s22 }
  0x12   : > { %v190_v0 = vld [vmem:[%s1702_s26] sm:$0xff] (%p50_p3)  ;;  %v194_v2 = vld [vmem:[%s1702_s26 + $0x48] sm:$0xff] (%p50_p3)  ;;  %s1707_s27 = scalar_lea.vmem (%p50_p3), [#allocation3], %s1499_s23  ;;  %v198_v4 = vld [vmem:[%s1702_s26 + $0x90] sm:$0xff] (%p50_p3) }
  0x13   : > { %v192_v1 = vld [vmem:[%s1702_s26 + $0x24] sm:$0xff] (%p50_p3)  ;;  %191 = vst [vmem:[%s1707_s27] sm:$0xff] (%p50_p3), %v190_v0  ;;  %195 = vst [vmem:[%s1707_s27 + $0x18] sm:$0xff] (%p50_p3), %v194_v2  ;;  %v196_v3 = vld [vmem:[%s1702_s26 + $0x6c] sm:$0xff] (%p50_p3) }
  0x14   : > { %193 = vst [vmem:[%s1707_s27 + $0xc] sm:$0xff] (%p50_p3), %v192_v1  ;;  %v200_v5 = vld [vmem:[%s1702_s26 + $0xb4] sm:$0xff] (%p50_p3)  ;;  %197 = vst [vmem:[%s1707_s27 + $0x24] sm:$0xff] (%p50_p3), %v196_v3  ;;  %v204_v7 = vld [vmem:[%s1702_s26 + $0xfc] sm:$0xff] (%p50_p3) }
  0x15   : > { %199 = vst [vmem:[%s1707_s27 + $0x30] sm:$0xff] %v198_v4  ;;  %201 = vst [vmem:[%s1707_s27 + $0x3c] sm:$0xff] %v200_v5  ;;  %v202_v6 = vld [vmem:[%s1702_s26 + $0xd8] sm:$0xff]  ;;  %v206_v8 = vld [vmem:[%s1702_s26 + $0x120] sm:$0xff] }
  0x16   : > { %203 = vst [vmem:[%s1707_s27 + $0x48] sm:$0xff] %v202_v6  ;;  %205 = vst [vmem:[%s1707_s27 + $0x54] sm:$0xff] %v204_v7  ;;  %v208_v9 = vld [vmem:[%s1702_s26 + $0x144] sm:$0xff]  ;;  %v212_v11 = vld [vmem:[%s1702_s26 + $0x18c] sm:$0xff] }
  0x17   : > { %207 = vst [vmem:[%s1707_s27 + $0x60] sm:$0xff] %v206_v8  ;;  %v210_v10 = vld [vmem:[%s1702_s26 + $0x168] sm:$0xff]  ;;  %209 = vst [vmem:[%s1707_s27 + $0x6c] sm:$0xff] %v208_v9  ;;  %v214_v12 = vld [vmem:[%s1702_s26 + $0x1b0] sm:$0xff] }
  0x18   : > { %211 = vst [vmem:[%s1707_s27 + $0x78] sm:$0xff] %v210_v10  ;;  %213 = vst [vmem:[%s1707_s27 + $0x84] sm:$0xff] %v212_v11  ;;  %v216_v13 = vld [vmem:[%s1702_s26 + $0x1d4] sm:$0xff]  ;;  %v220_v15 = vld [vmem:[%s1702_s26 + $0x21c] sm:$0xff] }
  0x19   : > { %v218_v14 = vld [vmem:[%s1702_s26 + $0x1f8] sm:$0xff]  ;;  %215 = vst [vmem:[%s1707_s27 + $0x90] sm:$0xff] %v214_v12  ;;  %217 = vst [vmem:[%s1707_s27 + $0x9c] sm:$0xff] %v216_v13  ;;  %v1218_v16 = vld [vmem:[%s1702_s26 + $0x8] sm:$0xf] }
  0x1a   : > { %219 = vst [vmem:[%s1707_s27 + $0xa8] sm:$0xff] %v218_v14  ;;  %v1220_v17 = vld [vmem:[%s1702_s26 + $0x2c] sm:$0xf]  ;;  %221 = vst [vmem:[%s1707_s27 + $0xb4] sm:$0xff] %v220_v15  ;;  %v1222_v18 = vld [vmem:[%s1702_s26 + $0x50] sm:$0xf] }
  0x1b   : > { %1219 = vst [vmem:[%s1707_s27 + $0x8] sm:$0xf] %v1218_v16  ;;  %1221 = vst [vmem:[%s1707_s27 + $0x14] sm:$0xf] %v1220_v17  ;;  %v1224_v19 = vld [vmem:[%s1702_s26 + $0x74] sm:$0xf] }
  0x1c   : > { %v1226_v20 = vld [vmem:[%s1702_s26 + $0x98] sm:$0xf]  ;;  %1223 = vst [vmem:[%s1707_s27 + $0x20] sm:$0xf] %v1222_v18  ;;  %1225 = vst [vmem:[%s1707_s27 + $0x2c] sm:$0xf] %v1224_v19 }
  0x1d   : > { %1227 = vst [vmem:[%s1707_s27 + $0x38] sm:$0xf] %v1226_v20  ;;  %v1228_v21 = vld [vmem:[%s1702_s26 + $0xbc] sm:$0xf]  ;;  %v1230_v22 = vld [vmem:[%s1702_s26 + $0xe0] sm:$0xf] }
  0x1e   : > { %v1232_v23 = vld [vmem:[%s1702_s26 + $0x104] sm:$0xf]  ;;  %1229 = vst [vmem:[%s1707_s27 + $0x44] sm:$0xf] %v1228_v21  ;;  %1231 = vst [vmem:[%s1707_s27 + $0x50] sm:$0xf] %v1230_v22 }
  0x1f   : > { %1233 = vst [vmem:[%s1707_s27 + $0x5c] sm:$0xf] %v1232_v23  ;;  %v1234_v24 = vld [vmem:[%s1702_s26 + $0x128] sm:$0xf]  ;;  %v1236_v25 = vld [vmem:[%s1702_s26 + $0x14c] sm:$0xf] }
  0x20   : > { %v1238_v26 = vld [vmem:[%s1702_s26 + $0x170] sm:$0xf]  ;;  %1235 = vst [vmem:[%s1707_s27 + $0x68] sm:$0xf] %v1234_v24  ;;  %1237 = vst [vmem:[%s1707_s27 + $0x74] sm:$0xf] %v1236_v25 }
  0x21   : > { %1239 = vst [vmem:[%s1707_s27 + $0x80] sm:$0xf] %v1238_v26  ;;  %v1240_v27 = vld [vmem:[%s1702_s26 + $0x194] sm:$0xf]  ;;  %v1242_v28 = vld [vmem:[%s1702_s26 + $0x1b8] sm:$0xf] }
  0x22   : > { %v1244_v29 = vld [vmem:[%s1702_s26 + $0x1dc] sm:$0xf]  ;;  %1241 = vst [vmem:[%s1707_s27 + $0x8c] sm:$0xf] %v1240_v27  ;;  %1243 = vst [vmem:[%s1707_s27 + $0x98] sm:$0xf] %v1242_v28 }
  0x23   : > { %1245 = vst [vmem:[%s1707_s27 + $0xa4] sm:$0xf] %v1244_v29  ;;  %v1246_v30 = vld [vmem:[%s1702_s26 + $0x200] sm:$0xf]  ;;  %v1248_v31 = vld [vmem:[%s1702_s26 + $0x224] sm:$0xf] }
  0x24   : > { %1247 = vst [vmem:[%s1707_s27 + $0xb0] sm:$0xf] %v1246_v30  ;;  %1249 = vst [vmem:[%s1707_s27 + $0xbc] sm:$0xf] %v1248_v31 }
  0x25 PF: > { %p1250_p6 = scmp.ge.s32.totalorder %s1636_s16, 1  ;;  %p277_p7 = scmp.lt.s32.totalorder %s1636_s16, 4 }
  0x27   : > { %p278_p8 = pnand %p1250_p6, %p277_p7 }
  0x28   : > { %s284_s28 = sand.u32 (!%p278_p8), 1, %s1620_s12   ;;  %s323_s29 = smul.u32 (!%p278_p8), 48, %s1628_s14 }
  0x29   : > { %281 = sbr.rel (%p278_p8) target bundleno = 383 (0x17f), region = 54  ;;  %p1252_p10 = scmp.ne.s32.totalorder (!%p278_p8), %s1628_s14, 0 }
  0x2a   : > { %s1500_s30 = smul.u32 (!%p278_p8), 192, %s284_s28  ;;  %p324_p9 = scmp.lt.s32.totalorder (!%p278_p8), %s323_s29, 143 }
  0x2c   : > { %s1779_s8 = scalar_lea.vmem (!%p278_p8), [#allocation3], %s1500_s30 }
  0x30   : > { %s1884_s29 = smov (!%p324_p9, %s323_s29), 143  ;;  %348 = sbr.rel (%p1252_p10) target bundleno = 58 (0x3a), region = 62 }
  0x31   : > { %s1251_s4 = sshll.u32 %s1884_s29, 2  ;;  %v1638_v32 = vmov (!%p1252_p10), 0.0  }
  0x32   : > { %s1777_s7 = scalar_lea.vmem %s1874_s1, %s1251_s4  ;;  %349 = vst [vmem:[#allocation2] sm:$0xff] (!%p1252_p10), %v1638_v32  ;;  %350 = vst [vmem:[#allocation2 + $0x8] sm:$0xff] (!%p1252_p10), %v1638_v32 }
  0x33   : > { %351 = vst [vmem:[#allocation2 + $0x10] sm:$0xff] (!%p1252_p10), %v1638_v32  ;;  %352 = vst [vmem:[#allocation2 + $0x18] sm:$0xff] (!%p1252_p10), %v1638_v32 }
  0x34   : > { %353 = vst [vmem:[#allocation2 + $0x20] sm:$0xff] (!%p1252_p10), %v1638_v32  ;;  %354 = vst [vmem:[#allocation2 + $0x28] sm:$0xff] (!%p1252_p10), %v1638_v32 }
  0x35   : > { %355 = vst [vmem:[#allocation2 + $0x30] sm:$0xff] (!%p1252_p10), %v1638_v32  ;;  %356 = vst [vmem:[#allocation2 + $0x38] sm:$0xff] (!%p1252_p10), %v1638_v32 }
  0x36   : > { %357 = vst [vmem:[#allocation2 + $0x40] sm:$0xff] (!%p1252_p10), %v1638_v32  ;;  %358 = vst [vmem:[#allocation2 + $0x48] sm:$0xff] (!%p1252_p10), %v1638_v32 }
  0x37   : > { %359 = vst [vmem:[#allocation2 + $0x50] sm:$0xff] %v1638_v32  ;;  %360 = vst [vmem:[#allocation2 + $0x58] sm:$0xff] %v1638_v32 }
  0x38   : > { %361 = vst [vmem:[#allocation2 + $0x60] sm:$0xff] %v1638_v32  ;;  %362 = vst [vmem:[#allocation2 + $0x68] sm:$0xff] %v1638_v32 }
  0x39   : > { %363 = vst [vmem:[#allocation2 + $0x70] sm:$0xff] %v1638_v32  ;;  %364 = vst [vmem:[#allocation2 + $0x78] sm:$0xff] %v1638_v32 }
  0x3a PF: > { %v1542_v33 = vld [vmem:[%s1777_s7 + $0x40] sm:$0xff]   ;;  %v1545_v36 = vld [vmem:[%s1777_s7 + $0x48] sm:$0xff]   ;;  %v1548_v39 = vld [vmem:[%s1777_s7 + $0x50] sm:$0xff]   ;;  %p1301_p11 = scmp.ne.s32.totalorder %s1628_s14, 2 }
  0x3b   : > { %v1543_v34 = vld [vmem:[%s1777_s7] sm:$0xff]   ;;  %1387 = vmatprep.subr.bf16.mxu0 %v1542_v33  ;;  %v1546_v37 = vld [vmem:[%s1777_s7 + $0x8] sm:$0xff]   ;;  %v1549_v40 = vld [vmem:[%s1777_s7 + $0x10] sm:$0xff]  }
  0x3c   : > { %v1544_v35 = vld [vmem:[%s1777_s7 + $0x80] sm:$0xff]   ;;  %1388 = vmatpush3.bf16.msra.mxu0 %v1543_v34  ;;  %v1547_v38 = vld [vmem:[%s1777_s7 + $0x88] sm:$0xff]   ;;  %v1550_v41 = vld [vmem:[%s1777_s7 + $0x90] sm:$0xff]  }
  0x3d   : > { %1467 = vmatprep.subr.bf16.mxu1 %v1544_v35  ;;  %1389 = vmatprep.subr.bf16.mxu0 %v1545_v36  ;;  %v1551_v42 = vld [vmem:[%s1777_s7 + $0x58] sm:$0xff]   ;;  %v1554_v45 = vld [vmem:[%s1777_s7 + $0x60] sm:$0xff]   ;;  %v1557_v48 = vld [vmem:[%s1777_s7 + $0x68] sm:$0xff]  }
  0x3e   : > { %1468 = vmatpush3.bf16.msra.mxu1 %v1544_v35  ;;  %v1552_v43 = vld [vmem:[%s1777_s7 + $0x18] sm:$0xff]   ;;  %v1556_v46 = vld [vmem:[%s1777_s7 + $0xa0] sm:$0xff]   ;;  %v1559_v49 = vld [vmem:[%s1777_s7 + $0xa8] sm:$0xff]  }
  0x3f   : > { %1469 = vmatprep.subr.bf16.mxu1 %v1547_v38  ;;  %v1553_v44 = vld [vmem:[%s1777_s7 + $0x98] sm:$0xff]   ;;  %v1555_v47 = vld [vmem:[%s1777_s7 + $0x20] sm:$0xff]   ;;  %v1558_v50 = vld [vmem:[%s1777_s7 + $0x28] sm:$0xff]  }
  0x40   : > { %1390 = vmatpush3.bf16.msra.mxu0 %v1546_v37  ;;  %v1560_v51 = vld [vmem:[%s1777_s7 + $0x70] sm:$0xff]   ;;  %v1563_v54 = vld [vmem:[%s1777_s7 + $0x78] sm:$0xff]   ;;  %v1566_v59 = vld [vmem:[%s1779_s8] ss:$12 sps:$4 sm:$0xff]  }
  0x41   : > { %1391 = vmatprep.subr.bf16.mxu0 %v1548_v39  ;;  %v1561_v52 = vld [vmem:[%s1777_s7 + $0x30] sm:$0xff]   ;;  %v1565_v55 = vld [vmem:[%s1777_s7 + $0xb8] sm:$0xff]   ;;  %v1570_v61 = vld [vmem:[%s1779_s8 + $0x20] ss:$12 sps:$4 sm:$0xff]  }
  0x42   : > { %1470 = vmatpush3.bf16.msra.mxu1 %v1547_v38  ;;  %v1562_v53 = vld [vmem:[%s1777_s7 + $0xb0] sm:$0xff]   ;;  %v1564_v58 = vld [vmem:[%s1777_s7 + $0x38] sm:$0xff]   ;;  %v1586_v5 = vld [vmem:[%s1779_s8 + $0x80] ss:$12 sps:$4 sm:$0xff]  }
  0x43   : > { %1471 = vmatprep.subr.bf16.mxu1 %v1550_v41  ;;  %v1568_v56 = vld [vmem:[%s1779_s8 + $0x4] ss:$12 sps:$4 sm:$0xff]   ;;  %v1569_v57 = vld [vmem:[%s1779_s8 + $0x8] ss:$12 sps:$4 sm:$0xff]   ;;  %v1579_v4 = vld [vmem:[%s1779_s8 + $0x4c] ss:$12 sps:$4 sm:$0xff]  }
  0x44   : > { %1392 = vmatpush3.bf16.msra.mxu0 %v1549_v40  ;;  %765 = vmatprep.mubr.bf16.mxu0 %v1568_v56  ;;  %v1571_v60 = vld [vmem:[%s1779_s8 + $0x1c] ss:$12 sps:$4 sm:$0xff]   ;;  %v1577_v62 = vld [vmem:[%s1779_s8 + $0x38] ss:$12 sps:$4 sm:$0xff]   ;;  %v1574_v0 = vld [vmem:[%s1779_s8 + $0x34] ss:$12 sps:$4 sm:$0xff]  }
  0x45   : > { %1393 = vmatprep.subr.bf16.mxu0 %v1551_v42  ;;  %1483 = vmatprep.mubr.bf16.mxu1 %v1569_v57  ;;  %v1573_v63 = vld [vmem:[%s1779_s8 + $0x18] ss:$12 sps:$4 sm:$0xff]   ;;  %v1578_v1 = vld [vmem:[%s1779_s8 + $0x50] ss:$12 sps:$4 sm:$0xff]   ;;  %v1585_v2 = vld [vmem:[%s1779_s8 + $0x68] ss:$12 sps:$4 sm:$0xff]  }
  0x46   : > { %1472 = vmatpush3.bf16.msra.mxu1 %v1550_v41  ;;  %v1576_v3 = vld [vmem:[%s1779_s8 + $0x30] ss:$12 sps:$4 sm:$0xff]   ;;  %v1593_v6 = vld [vmem:[%s1779_s8 + $0x98] ss:$12 sps:$4 sm:$0xff]   ;;  %v1581_v7 = vld [vmem:[%s1779_s8 + $0x48] ss:$12 sps:$4 sm:$0xff]  }
  0x47   : > { %1473 = vmatprep.subr.bf16.mxu1 %v1553_v44  ;;  %v1582_v8 = vld [vmem:[%s1779_s8 + $0x64] ss:$12 sps:$4 sm:$0xff]   ;;  %v1584_v10 = vld [vmem:[%s1779_s8 + $0x60] ss:$12 sps:$4 sm:$0xff]   ;;  %v1587_v11 = vld [vmem:[%s1779_s8 + $0x7c] ss:$12 sps:$4 sm:$0xff]  }
  0x48   : > { %1394 = vmatpush3.bf16.msra.mxu0 %v1552_v43  ;;  %v1594_v9 = vld [vmem:[%s1779_s8 + $0xb0] ss:$12 sps:$4 sm:$0xff]   ;;  %v1589_v12 = vld [vmem:[%s1779_s8 + $0x78] ss:$12 sps:$4 sm:$0xff]   ;;  %v1590_v13 = vld [vmem:[%s1779_s8 + $0x94] ss:$12 sps:$4 sm:$0xff]  }
  0x49   : > { %1395 = vmatprep.subr.bf16.mxu0 %v1554_v45  ;;  %v1592_v14 = vld [vmem:[%s1779_s8 + $0x90] ss:$12 sps:$4 sm:$0xff]   ;;  %v1595_v15 = vld [vmem:[%s1779_s8 + $0xac] ss:$12 sps:$4 sm:$0xff]   ;;  %v1597_v16 = vld [vmem:[%s1779_s8 + $0xa8] ss:$12 sps:$4 sm:$0xff]  }
  0x4a   : > { %1474 = vmatpush3.bf16.msra.mxu1 %v1553_v44  ;;  %v365_v23 = vld [vmem:[#allocation2] sm:$0xff]  ;;  %v366_v28 = vld [vmem:[#allocation2 + $0x8] sm:$0xff]  ;;  %v367_v38 = vld [vmem:[#allocation2 + $0x10] sm:$0xff] }
  0x4b   : > { %1475 = vmatprep.subr.bf16.mxu1 %v1556_v46  ;;  %v368_v44 = vld [vmem:[#allocation2 + $0x18] sm:$0xff] }
  0x4c   : > { %1396 = vmatpush3.bf16.msra.mxu0 %v1555_v47 }
  0x4d   : > { %1397 = vmatprep.subr.bf16.mxu0 %v1557_v48 }
  0x4e   : > { %1476 = vmatpush3.bf16.msra.mxu1 %v1556_v46 }
  0x4f   : > { %1477 = vmatprep.subr.bf16.mxu1 %v1559_v49 }
  0x50   : > { %1398 = vmatpush3.bf16.msra.mxu0 %v1558_v50 }
  0x51   : > { %1399 = vmatprep.subr.bf16.mxu0 %v1560_v51 }
  0x52   : > { %1478 = vmatpush3.bf16.msra.mxu1 %v1559_v49 }
  0x53   : > { %1479 = vmatprep.subr.bf16.mxu1 %v1562_v53 }
  0x54   : > { %1400 = vmatpush3.bf16.msra.mxu0 %v1561_v52 }
  0x55   : > { %1401 = vmatprep.subr.bf16.mxu0 %v1563_v54 }
  0x56   : > { %1480 = vmatpush3.bf16.msra.mxu1 %v1562_v53 }
  0x57   : > { %1481 = vmatprep.subr.bf16.mxu1 %v1565_v55 }
  0x58   : > { %1402 = vmatpush3.bf16.msra.mxu0 %v1564_v58 }
  0x5a   : > { %1482 = vmatpush3.bf16.msra.mxu1 %v1565_v55  ;;  %v369_v55 = vld [vmem:[#allocation2 + $0x20] sm:$0xff] }
  0x5b   : > { %766 = vmatmul.mubr.bf16.vlgmr.msra.gmra.mrb[0].mxu0 %v1566_v59 }
  0x5c   : > { %773 = vmatprep.mubr.bf16.mxu0 %v1571_v60  ;;  %v370_v60 = vld [vmem:[#allocation2 + $0x28] sm:$0xff] }
  0x5d   : > { %1484 = vmatmul.mubr.bf16.vlgmr.msra.gmra.mrb[0].mxu1 %v1570_v61 }
  0x5e   : > { %1487 = vmatprep.mubr.bf16.mxu1 %v1577_v62 }
  0x63   : > { %774 = vmatmul.mubr.bf16.gmra.mrb[4].mxu0 %v1573_v63 }
  0x64   : > { %781 = vmatprep.mubr.bf16.mxu0 %v1574_v0 }
  0x65   : > { %1488 = vmatmul.mubr.bf16.gmra.mrb[4].mxu1 %v1578_v1 }
  0x66   : > { %1491 = vmatprep.mubr.bf16.mxu1 %v1585_v2 }
  0x6b   : > { %782 = vmatmul.mubr.bf16.gmra.mrb[8].mxu0 %v1576_v3 }
  0x6c   : > { %789 = vmatprep.mubr.bf16.mxu0 %v1579_v4 }
  0x6d   : > { %1492 = vmatmul.mubr.bf16.gmra.mrb[8].mxu1 %v1586_v5 }
  0x6e   : > { %1495 = vmatprep.mubr.bf16.mxu1 %v1593_v6  ;;  %v371_v6 = vld [vmem:[#allocation2 + $0x30] sm:$0xff] }
  0x73   : > { %790 = vmatmul.mubr.bf16.gmra.mrb[12].mxu0 %v1581_v7 }
  0x74   : > { %797 = vmatprep.mubr.bf16.mxu0 %v1582_v8 }
  0x75   : > { %1496 = vmatmul.mubr.bf16.gmra.mrb[12].mxu1 %v1594_v9 }
  0x7b   : > { %798 = vmatmul.mubr.bf16.gmra.mrb[16].mxu0 %v1584_v10 }
  0x7c   : > { %805 = vmatprep.mubr.bf16.mxu0 %v1587_v11 }
  0x83   : > { %806 = vmatmul.mubr.bf16.gmra.mrb[20].mxu0 %v1589_v12  ;;  %v372_v12 = vld [vmem:[#allocation2 + $0x38] sm:$0xff] }
  0x84   : > { %813 = vmatprep.mubr.bf16.mxu0 %v1590_v13 }
  0x8b   : > { %814 = vmatmul.mubr.bf16.gmra.mrb[24].mxu0 %v1592_v14 }
  0x8c   : > { %821 = vmatprep.mubr.bf16.mxu0 %v1595_v15 }
  0x93   : > { %822 = vmatmul.mubr.bf16.gmra.mrb[28].mxu0 %v1597_v16 }
 0x12e   : > { %v1403_v17 = vpop.f32.mrb[0].mxu0 }
 0x12f   : > { %v1404_v18 = vpop.f32.mrb[1].mxu0 }
 0x130   : > { %v1405_v19 = vadd.f32 %v1404_v18, %v1403_v17  ;;  %v1406_v20 = vpop.f32.mrb[2].mxu0  ;;  %v1485_v21 = vpop.f32.mrb[0].mxu1 }
 0x131   : > { %v1407_v22 = vpop.f32.mrb[3].mxu0  ;;  %v864_v24 = vpop.f32.mrb[1].mxu1 }
 0x132   : > { %v1408_v25 = vadd.f32 %v1407_v22, %v1406_v20  ;;  %v865_v26 = vadd.f32 %v1405_v19, %v864_v24  ;;  %v1486_v27 = vpop.f32.mrb[2].mxu1  ;;  %v373_v22 = vld [vmem:[#allocation2 + $0x40] sm:$0xff] }
 0x133   : > { %v867_v29 = vpop.f32.mrb[3].mxu1 }
 0x134   : > { %v927_v30 = vadd.f32 %v865_v26, %v365_v23  ;;  %v868_v31 = vadd.f32 %v1408_v25, %v867_v29  ;;  %v374_v25 = vld [vmem:[#allocation2 + $0x48] sm:$0xff] }
 0x136   : > { %943 = vst [vmem:[#allocation2] sm:$0xff] %v927_v30  ;;  %v928_v32 = vadd.f32 %v868_v31, %v366_v28  ;;  %v1409_v33 = vpop.f32.mrb[4].mxu0 }
 0x137   : > { %v1410_v34 = vpop.f32.mrb[5].mxu0 }
 0x138   : > { %944 = vst [vmem:[#allocation2 + $0x8] sm:$0xff] %v928_v32  ;;  %v1411_v35 = vadd.f32 %v1410_v34, %v1409_v33  ;;  %v1412_v36 = vpop.f32.mrb[6].mxu0  ;;  %v1489_v37 = vpop.f32.mrb[4].mxu1  ;;  %v375_v33 = vld [vmem:[#allocation2 + $0x50] sm:$0xff] }
 0x139   : > { %v1413_v39 = vpop.f32.mrb[7].mxu0  ;;  %v880_v40 = vpop.f32.mrb[5].mxu1 }
 0x13a   : > { %v873_v41 = vadd.f32 %v1485_v21, %v1411_v35  ;;  %v1414_v42 = vadd.f32 %v1413_v39, %v1412_v36  ;;  %v1490_v43 = vpop.f32.mrb[6].mxu1 }
 0x13b   : > { %v883_v45 = vpop.f32.mrb[7].mxu1 }
 0x13c   : > { %v929_v46 = vadd.f32 %v873_v41, %v367_v38  ;;  %v876_v47 = vadd.f32 %v1486_v27, %v1414_v42 }
 0x13e   : > { %945 = vst [vmem:[#allocation2 + $0x10] sm:$0xff] %v929_v46  ;;  %v930_v48 = vadd.f32 %v876_v47, %v368_v44  ;;  %v1415_v49 = vpop.f32.mrb[8].mxu0  ;;  %v377_v46 = vld [vmem:[#allocation2 + $0x60] sm:$0xff] }
 0x13f   : > { %v1416_v50 = vpop.f32.mrb[9].mxu0 }
 0x140   : > { %946 = vst [vmem:[#allocation2 + $0x18] sm:$0xff] %v930_v48  ;;  %v1417_v51 = vadd.f32 %v1416_v50, %v1415_v49  ;;  %v1418_v52 = vpop.f32.mrb[10].mxu0  ;;  %v1493_v53 = vpop.f32.mrb[8].mxu1  ;;  %v378_v49 = vld [vmem:[#allocation2 + $0x68] sm:$0xff] }
 0x141   : > { %v1419_v54 = vpop.f32.mrb[11].mxu0  ;;  %v896_v56 = vpop.f32.mrb[9].mxu1 }
 0x142   : > { %v1420_v57 = vadd.f32 %v1419_v54, %v1418_v52  ;;  %v881_v58 = vadd.f32 %v1417_v51, %v880_v40  ;;  %v1494_v59 = vpop.f32.mrb[10].mxu1 }
 0x143   : > { %v899_v61 = vpop.f32.mrb[11].mxu1 }
 0x144   : > { %v931_v62 = vadd.f32 %v881_v58, %v369_v55  ;;  %v884_v63 = vadd.f32 %v1420_v57, %v883_v45  ;;  %v379_v57 = vld [vmem:[#allocation2 + $0x70] sm:$0xff] }
 0x146   : > { %947 = vst [vmem:[#allocation2 + $0x20] sm:$0xff] %v931_v62  ;;  %v932_v0 = vadd.f32 %v884_v63, %v370_v60  ;;  %v1421_v1 = vpop.f32.mrb[12].mxu0 }
 0x147   : > { %v1422_v2 = vpop.f32.mrb[13].mxu0 }
 0x148   : > { %948 = vst [vmem:[#allocation2 + $0x28] sm:$0xff] %v932_v0  ;;  %v1423_v3 = vadd.f32 %v1422_v2, %v1421_v1  ;;  %v1424_v4 = vpop.f32.mrb[14].mxu0  ;;  %v1497_v5 = vpop.f32.mrb[12].mxu1  ;;  %v963_v1 = vld [vmem:[#allocation2] sm:$0xff] (!%p1301_p11)  ;;  %v964_v2 = vld [vmem:[#allocation2 + $0x8] sm:$0xff] (!%p1301_p11) }
 0x149   : > { %v1425_v7 = vpop.f32.mrb[15].mxu0  ;;  %v912_v8 = vpop.f32.mrb[13].mxu1 }
 0x14a   : > { %v889_v9 = vadd.f32 %v1489_v37, %v1423_v3  ;;  %v1426_v10 = vadd.f32 %v1425_v7, %v1424_v4  ;;  %v1498_v11 = vpop.f32.mrb[14].mxu1  ;;  %v376_v37 = vld [vmem:[#allocation2 + $0x58] sm:$0xff]  ;;  %v1302_v3 = vld [vmem:[%s1875_s2] ss:$0 sm:$0xff] (!%p1301_p11)  ;;  %v965_v7 = vld [vmem:[#allocation2 + $0x10] sm:$0xff] (!%p1301_p11) }
 0x14b   : > { %v915_v13 = vpop.f32.mrb[15].mxu1  ;;  %v986_v4 = vadd.f32 (!%p1301_p11), %v1302_v3, %v963_v1 }
 0x14c   : > { %v933_v14 = vadd.f32 %v889_v9, %v371_v6  ;;  %v892_v15 = vadd.f32 %v1490_v43, %v1426_v10  ;;  %v987_v6 = vadd.f32 (!%p1301_p11), %v1302_v3, %v964_v2  ;;  %v988_v9 = vadd.f32 (!%p1301_p11), %v1302_v3, %v965_v7 }
 0x14e   : > { %949 = vst [vmem:[#allocation2 + $0x30] sm:$0xff] %v933_v14  ;;  %v934_v16 = vadd.f32 %v892_v15, %v372_v12  ;;  %v1427_v17 = vpop.f32.mrb[16].mxu0  ;;  %v1002_v15 = vmax.f32 (!%p1301_p11), %v986_v4, 0.0 }
 0x14f   : > { %v1428_v18 = vpop.f32.mrb[17].mxu0 }
 0x150   : > { %950 = vst [vmem:[#allocation2 + $0x38] sm:$0xff] %v934_v16  ;;  %v1429_v19 = vadd.f32 %v1428_v18, %v1427_v17  ;;  %v1430_v20 = vpop.f32.mrb[18].mxu0  ;;  %v1003_v16 = vmax.f32 (!%p1301_p11), %v987_v6, 0.0 }
 0x151   : > { %v1431_v21 = vpop.f32.mrb[19].mxu0 }
 0x152   : > { %v1432_v23 = vadd.f32 %v1431_v21, %v1430_v20  ;;  %v897_v24 = vadd.f32 %v1429_v19, %v896_v56 }
 0x154   : > { %v935_v26 = vadd.f32 %v897_v24, %v373_v22  ;;  %v900_v27 = vadd.f32 %v1432_v23, %v899_v61  ;;  %v380_v61 = vld [vmem:[#allocation2 + $0x78] sm:$0xff]  ;;  %v1004_v22 = vmax.f32 (!%p1301_p11), %v988_v9, 0.0 }
 0x156   : > { %951 = vst [vmem:[#allocation2 + $0x40] sm:$0xff] %v935_v26  ;;  %v936_v28 = vadd.f32 %v900_v27, %v374_v25  ;;  %v1433_v29 = vpop.f32.mrb[20].mxu0 }
 0x157   : > { %v1434_v30 = vpop.f32.mrb[21].mxu0  ;;  %v970_v14 = vld [vmem:[#allocation2 + $0x38] sm:$0xff] (!%p1301_p11) }
 0x158   : > { %952 = vst [vmem:[#allocation2 + $0x48] sm:$0xff] %v936_v28  ;;  %v1435_v31 = vadd.f32 %v1434_v30, %v1433_v29  ;;  %v1436_v32 = vpop.f32.mrb[22].mxu0  ;;  %v993_v25 = vadd.f32 (!%p1301_p11), %v1302_v3, %v970_v14  ;;  %v1343_v28 = vpack.c.bf16 (!%p1301_p11), %v1003_v16, %v1002_v15 }
 0x159   : > { %v1437_v34 = vpop.f32.mrb[23].mxu0 }
 0x15a   : > { %v905_v35 = vadd.f32 %v1493_v53, %v1435_v31  ;;  %v1438_v36 = vadd.f32 %v1437_v34, %v1436_v32  ;;  %v1009_v34 = vmax.f32 (!%p1301_p11), %v993_v25, 0.0  ;;  %1344 = vst [vmem:[%s1876_s3] sm:$0xff] (!%p1301_p11), %v1343_v28  }
 0x15c   : > { %v937_v38 = vadd.f32 %v905_v35, %v375_v33  ;;  %v908_v39 = vadd.f32 %v1494_v59, %v1438_v36 }
 0x15d   : > { %v971_v19 = vld [vmem:[#allocation2 + $0x40] sm:$0xff] (!%p1301_p11) }
 0x15e   : > { %953 = vst [vmem:[#allocation2 + $0x50] sm:$0xff] %v937_v38  ;;  %v938_v40 = vadd.f32 %v908_v39, %v376_v37  ;;  %v1439_v41 = vpop.f32.mrb[24].mxu0  ;;  %v994_v31 = vadd.f32 (!%p1301_p11), %v1302_v3, %v971_v19 }
 0x15f   : > { %v1440_v42 = vpop.f32.mrb[25].mxu0  ;;  %v972_v20 = vld [vmem:[#allocation2 + $0x48] sm:$0xff] (!%p1301_p11) }
 0x160   : > { %954 = vst [vmem:[#allocation2 + $0x58] sm:$0xff] %v938_v40  ;;  %v1441_v43 = vadd.f32 %v1440_v42, %v1439_v41  ;;  %v1442_v44 = vpop.f32.mrb[26].mxu0  ;;  %v995_v35 = vadd.f32 (!%p1301_p11), %v1302_v3, %v972_v20  ;;  %v1010_v40 = vmax.f32 (!%p1301_p11), %v994_v31, 0.0 }
 0x161   : > { %v1443_v45 = vpop.f32.mrb[27].mxu0 }
 0x162   : > { %v1444_v47 = vadd.f32 %v1443_v45, %v1442_v44  ;;  %v913_v48 = vadd.f32 %v1441_v43, %v912_v8  ;;  %v967_v8 = vld [vmem:[#allocation2 + $0x20] sm:$0xff] (!%p1301_p11)  ;;  %v1011_v44 = vmax.f32 (!%p1301_p11), %v995_v35, 0.0 }
 0x163   : > { %v990_v12 = vadd.f32 (!%p1301_p11), %v1302_v3, %v967_v8 }
 0x164   : > { %v939_v50 = vadd.f32 %v913_v48, %v377_v46  ;;  %v916_v51 = vadd.f32 %v1444_v47, %v915_v13  ;;  %v969_v13 = vld [vmem:[#allocation2 + $0x30] sm:$0xff] (!%p1301_p11) }
 0x165   : > { %v992_v18 = vadd.f32 (!%p1301_p11), %v1302_v3, %v969_v13  ;;  %v973_v21 = vld [vmem:[#allocation2 + $0x50] sm:$0xff] (!%p1301_p11)  ;;  %v1006_v24 = vmax.f32 (!%p1301_p11), %v990_v12, 0.0 }
 0x166   : > { %955 = vst [vmem:[#allocation2 + $0x60] sm:$0xff] %v939_v50  ;;  %v940_v52 = vadd.f32 %v916_v51, %v378_v49  ;;  %v1445_v53 = vpop.f32.mrb[28].mxu0  ;;  %v996_v36 = vadd.f32 (!%p1301_p11), %v1302_v3, %v973_v21  ;;  %v1363_v51 = vpack.c.bf16 (!%p1301_p11), %v1011_v44, %v1010_v40 }
 0x167   : > { %v1446_v54 = vpop.f32.mrb[29].mxu0  ;;  %v974_v26 = vld [vmem:[#allocation2 + $0x58] sm:$0xff] (!%p1301_p11)  ;;  %v1008_v30 = vmax.f32 (!%p1301_p11), %v992_v18, 0.0 }
 0x168   : > { %956 = vst [vmem:[#allocation2 + $0x68] sm:$0xff] %v940_v52  ;;  %v1447_v55 = vadd.f32 %v1446_v54, %v1445_v53  ;;  %v1448_v56 = vpop.f32.mrb[30].mxu0  ;;  %v997_v41 = vadd.f32 (!%p1301_p11), %v1302_v3, %v974_v26  ;;  %v1012_v45 = vmax.f32 (!%p1301_p11), %v996_v36, 0.0  ;;  %1383 = vst [vmem:[%s1876_s3 + $0x20] sm:$0xff] (!%p1301_p11), %v1363_v51  }
 0x169   : > { %v1449_v58 = vpop.f32.mrb[31].mxu0  ;;  %v1358_v43 = vpack.c.bf16 (!%p1301_p11), %v1009_v34, %v1008_v30 }
 0x16a   : > { %v921_v59 = vadd.f32 %v1497_v5, %v1447_v55  ;;  %v1450_v60 = vadd.f32 %v1449_v58, %v1448_v56  ;;  %962 = sbr.rel (%p1301_p11) target bundleno = 383 (0x17f), region = 66  ;;  %v966_v5 = vld [vmem:[#allocation2 + $0x18] sm:$0xff] (!%p1301_p11)  ;;  %v1013_v47 = vmax.f32 (!%p1301_p11), %v997_v41, 0.0 }
 0x16b   : > { %v989_v10 = vadd.f32 (!%p1301_p11), %v1302_v3, %v966_v5  ;;  %1382 = vst [vmem:[%s1876_s3 + $0x18] sm:$0xff] (!%p1301_p11), %v1358_v43  }
 0x16c   : > { %v941_v62 = vadd.f32 %v921_v59, %v379_v57  ;;  %v924_v63 = vadd.f32 %v1498_v11, %v1450_v60  ;;  %v968_v11 = vld [vmem:[#allocation2 + $0x28] sm:$0xff] (!%p1301_p11)  ;;  %v1368_v53 = vpack.c.bf16 (!%p1301_p11), %v1013_v47, %v1012_v45 }
 0x16d   : > { %v991_v17 = vadd.f32 (!%p1301_p11), %v1302_v3, %v968_v11  ;;  %v1005_v23 = vmax.f32 (!%p1301_p11), %v989_v10, 0.0  ;;  %v975_v27 = vld [vmem:[#allocation2 + $0x60] sm:$0xff] (!%p1301_p11) }
 0x16e   : > { %957 = vst [vmem:[#allocation2 + $0x70] sm:$0xff] %v941_v62  ;;  %v942_v0 = vadd.f32 %v924_v63, %v380_v61  ;;  %v998_v42 = vadd.f32 (!%p1301_p11), %v1302_v3, %v975_v27  ;;  %1384 = vst [vmem:[%s1876_s3 + $0x28] sm:$0xff] (!%p1301_p11), %v1368_v53  }
 0x16f   : > { %v1007_v29 = vmax.f32 (!%p1301_p11), %v991_v17, 0.0  ;;  %v976_v32 = vld [vmem:[#allocation2 + $0x68] sm:$0xff] (!%p1301_p11)  ;;  %v1348_v33 = vpack.c.bf16 (!%p1301_p11), %v1005_v23, %v1004_v22 }
 0x170   : > { %958 = vst [vmem:[#allocation2 + $0x78] sm:$0xff] %v942_v0  ;;  %v999_v46 = vadd.f32 (!%p1301_p11), %v1302_v3, %v976_v32  ;;  %v1014_v48 = vmax.f32 (!%p1301_p11), %v998_v42, 0.0 }
 0x171   : > { %v1353_v39 = vpack.c.bf16 %v1007_v29, %v1006_v24  ;;  %1380 = vst [vmem:[%s1876_s3 + $0x8] sm:$0xff] %v1348_v33  }
 0x172   : > { %v1015_v52 = vmax.f32 %v999_v46, 0.0 }
 0x173   : > { %1381 = vst [vmem:[%s1876_s3 + $0x10] sm:$0xff] %v1353_v39  }
 0x174   : > { %v1373_v56 = vpack.c.bf16 %v1015_v52, %v1014_v48 }
 0x175   : > { %v977_v37 = vld [vmem:[#allocation2 + $0x70] sm:$0xff] }
 0x176   : > { %v1000_v49 = vadd.f32 %v1302_v3, %v977_v37  ;;  %1385 = vst [vmem:[%s1876_s3 + $0x30] sm:$0xff] %v1373_v56  }
 0x177   : > { %v978_v38 = vld [vmem:[#allocation2 + $0x78] sm:$0xff] }
 0x178   : > { %v1001_v50 = vadd.f32 %v1302_v3, %v978_v38  ;;  %v1016_v54 = vmax.f32 %v1000_v49, 0.0 }
 0x17a   : > { %v1017_v55 = vmax.f32 %v1001_v50, 0.0 }
 0x17c   : > { %v1378_v57 = vpack.c.bf16 %v1017_v55, %v1016_v54 }
 0x17e   : > { %1386 = vst [vmem:[%s1876_s3 + $0x38] sm:$0xff] %v1378_v57  }
 0x17f PF: > { %s13_s16 = sadd.s32 1, %s1636_s16   ;;  %s1877_s12 = smov %s1624_s13 }
 0x180   : > { %p10_p12 = scmp.ge.s32.totalorder %s13_s16, 5   ;;  %s1878_s13 = smov %s1694_s20 }
 0x181   : > { %s1879_s14 = smov %s1632_s15  ;;  %s1880_s15 = smov %s1882_s17 }
 0x182   :  { %12 = sbr.rel (!%p10_p12) target bundleno = 3 (0x3), region = 113 }

// kernel: gender_classifier_resnet18_forward.23
= control target key start
LH: loop header
LB: loop body
LE: loop exit
PB: predicated region body
PF: predicated region fallthrough
CT: control target
= control target key end

     0   :  { %s1830_s15 = smov 0   ;;  %s1832_s16 = smov 0   ;;  %s2086_s0 = inlined_call_operand.vmem [shape: bf16[128,1152], index: 0, kind: input, shape index: {}]   ;;  %s2087_s1 = inlined_call_operand.vmem [shape: bf16[1152,128], index: 1, kind: input, shape index: {}]   ;;  %s2088_s2 = inlined_call_operand.vmem [shape: f32[1,128], index: 2, kind: input, shape index: {}]   ;;  %s2089_s3 = inlined_call_operand.vmem [shape: bf16[128,128], index: 3, kind: input, shape index: {}]   ;;  %s2090_s4 = inlined_call_operand.vmem [shape: bf16[128,128], index: 4, kind: output, shape index: {}]  }
   0x1   :  { %s1834_s17 = smov 0   ;;  %s1836_s18 = smov 0  }
   0x2   :  { %s1838_s19 = smov 0  }
   0x3 LB: > { %s26_s20 = sadd.s32 1, %s1798_s18  ;;  %p49_p1 = scmp.ne.s32.totalorder %s1790_s16, %s1786_s15  ;;  %s1802_s19 = sphi %s1838_s19, %s14_s19   ;;  %s1798_s18 = sphi %s1836_s18, %s2094_s18   ;;  %s1794_s17 = sphi %s1834_s17, %s2093_s17   ;;  %s1790_s16 = sphi %s1832_s16, %s2092_s16   ;;  %s1786_s15 = sphi %s1830_s15, %s2091_s15  }
   0x4   : > { %p27_p0 = scmp.ge.s32.totalorder %s26_s20, 3  ;;  %p50_p2 = scmp.eq.s32.totalorder %s1802_s19, 0 }
   0x5   : > { %s42_s22 = sadd.s32 1, %s1790_s16  ;;  %p1343_p5 = scmp.ge.s32.totalorder %s1802_s19, 3 }
   0x6   : > { %s2096_s20 = smov (%p27_p0, %s26_s20), 0  ;;  %p51_p3 = por %p50_p2, %p49_p1 }
   0x7   : > { %s38_s21 = ssub.s32 %s1798_s18, %s2096_s20  ;;  %203 = sbr.rel (%p1343_p5) target bundleno = 37 (0x25), region = 24 }
   0x8   : > { %p40_p4 = scmp.eq.s32.totalorder %s38_s21, 0 }
   0xa   : > { %s1865_s23 = scalar_select %p40_p4, %s1790_s16, %s42_s22  }
   0xe   : > { %206 = sbr.rel (!%p51_p3) target bundleno = 37 (0x25), region = 28  ;;  %s208_s24 = sand.u32 (%p51_p3), 1, %s1790_s16  }
   0xf   : > { %s1450_s25 = smul.u32 (%p51_p3), 12, %s1798_s18 }
  0x10   : > { %s1665_s26 = smul.u32 (%p51_p3), 192, %s208_s24 }
  0x11   : > { %s1873_s29 = scalar_lea.vmem (%p51_p3), %s2086_s0, %s1450_s25 }
  0x12   : > { %v231_v0 = vld [vmem:[%s1873_s29] sm:$0xff] (%p51_p3)  ;;  %v235_v2 = vld [vmem:[%s1873_s29 + $0x48] sm:$0xff] (%p51_p3)  ;;  %s1878_s30 = scalar_lea.vmem (%p51_p3), [#allocation3], %s1665_s26  ;;  %v239_v4 = vld [vmem:[%s1873_s29 + $0x90] sm:$0xff] (%p51_p3) }
  0x13   : > { %v233_v1 = vld [vmem:[%s1873_s29 + $0x24] sm:$0xff] (%p51_p3)  ;;  %232 = vst [vmem:[%s1878_s30] sm:$0xff] (%p51_p3), %v231_v0  ;;  %236 = vst [vmem:[%s1878_s30 + $0x18] sm:$0xff] (%p51_p3), %v235_v2  ;;  %v237_v3 = vld [vmem:[%s1873_s29 + $0x6c] sm:$0xff] (%p51_p3) }
  0x14   : > { %234 = vst [vmem:[%s1878_s30 + $0xc] sm:$0xff] (%p51_p3), %v233_v1  ;;  %v241_v5 = vld [vmem:[%s1873_s29 + $0xb4] sm:$0xff] (%p51_p3)  ;;  %238 = vst [vmem:[%s1878_s30 + $0x24] sm:$0xff] (%p51_p3), %v237_v3  ;;  %v245_v7 = vld [vmem:[%s1873_s29 + $0xfc] sm:$0xff] (%p51_p3) }
  0x15   : > { %240 = vst [vmem:[%s1878_s30 + $0x30] sm:$0xff] %v239_v4  ;;  %242 = vst [vmem:[%s1878_s30 + $0x3c] sm:$0xff] %v241_v5  ;;  %v243_v6 = vld [vmem:[%s1873_s29 + $0xd8] sm:$0xff]  ;;  %v247_v8 = vld [vmem:[%s1873_s29 + $0x120] sm:$0xff] }
  0x16   : > { %244 = vst [vmem:[%s1878_s30 + $0x48] sm:$0xff] %v243_v6  ;;  %246 = vst [vmem:[%s1878_s30 + $0x54] sm:$0xff] %v245_v7  ;;  %v249_v9 = vld [vmem:[%s1873_s29 + $0x144] sm:$0xff]  ;;  %v253_v11 = vld [vmem:[%s1873_s29 + $0x18c] sm:$0xff] }
  0x17   : > { %248 = vst [vmem:[%s1878_s30 + $0x60] sm:$0xff] %v247_v8  ;;  %v251_v10 = vld [vmem:[%s1873_s29 + $0x168] sm:$0xff]  ;;  %250 = vst [vmem:[%s1878_s30 + $0x6c] sm:$0xff] %v249_v9  ;;  %v255_v12 = vld [vmem:[%s1873_s29 + $0x1b0] sm:$0xff] }
  0x18   : > { %252 = vst [vmem:[%s1878_s30 + $0x78] sm:$0xff] %v251_v10  ;;  %254 = vst [vmem:[%s1878_s30 + $0x84] sm:$0xff] %v253_v11  ;;  %v257_v13 = vld [vmem:[%s1873_s29 + $0x1d4] sm:$0xff]  ;;  %v261_v15 = vld [vmem:[%s1873_s29 + $0x21c] sm:$0xff] }
  0x19   : > { %v259_v14 = vld [vmem:[%s1873_s29 + $0x1f8] sm:$0xff]  ;;  %256 = vst [vmem:[%s1878_s30 + $0x90] sm:$0xff] %v255_v12  ;;  %258 = vst [vmem:[%s1878_s30 + $0x9c] sm:$0xff] %v257_v13  ;;  %v1345_v16 = vld [vmem:[%s1873_s29 + $0x8] sm:$0xf] }
  0x1a   : > { %260 = vst [vmem:[%s1878_s30 + $0xa8] sm:$0xff] %v259_v14  ;;  %v1347_v17 = vld [vmem:[%s1873_s29 + $0x2c] sm:$0xf]  ;;  %262 = vst [vmem:[%s1878_s30 + $0xb4] sm:$0xff] %v261_v15  ;;  %v1349_v18 = vld [vmem:[%s1873_s29 + $0x50] sm:$0xf] }
  0x1b   : > { %1346 = vst [vmem:[%s1878_s30 + $0x8] sm:$0xf] %v1345_v16  ;;  %1348 = vst [vmem:[%s1878_s30 + $0x14] sm:$0xf] %v1347_v17  ;;  %v1351_v19 = vld [vmem:[%s1873_s29 + $0x74] sm:$0xf] }
  0x1c   : > { %v1353_v20 = vld [vmem:[%s1873_s29 + $0x98] sm:$0xf]  ;;  %1350 = vst [vmem:[%s1878_s30 + $0x20] sm:$0xf] %v1349_v18  ;;  %1352 = vst [vmem:[%s1878_s30 + $0x2c] sm:$0xf] %v1351_v19 }
  0x1d   : > { %1354 = vst [vmem:[%s1878_s30 + $0x38] sm:$0xf] %v1353_v20  ;;  %v1355_v21 = vld [vmem:[%s1873_s29 + $0xbc] sm:$0xf]  ;;  %v1357_v22 = vld [vmem:[%s1873_s29 + $0xe0] sm:$0xf] }
  0x1e   : > { %v1359_v23 = vld [vmem:[%s1873_s29 + $0x104] sm:$0xf]  ;;  %1356 = vst [vmem:[%s1878_s30 + $0x44] sm:$0xf] %v1355_v21  ;;  %1358 = vst [vmem:[%s1878_s30 + $0x50] sm:$0xf] %v1357_v22 }
  0x1f   : > { %1360 = vst [vmem:[%s1878_s30 + $0x5c] sm:$0xf] %v1359_v23  ;;  %v1361_v24 = vld [vmem:[%s1873_s29 + $0x128] sm:$0xf]  ;;  %v1363_v25 = vld [vmem:[%s1873_s29 + $0x14c] sm:$0xf] }
  0x20   : > { %v1365_v26 = vld [vmem:[%s1873_s29 + $0x170] sm:$0xf]  ;;  %1362 = vst [vmem:[%s1878_s30 + $0x68] sm:$0xf] %v1361_v24  ;;  %1364 = vst [vmem:[%s1878_s30 + $0x74] sm:$0xf] %v1363_v25 }
  0x21   : > { %1366 = vst [vmem:[%s1878_s30 + $0x80] sm:$0xf] %v1365_v26  ;;  %v1367_v27 = vld [vmem:[%s1873_s29 + $0x194] sm:$0xf]  ;;  %v1369_v28 = vld [vmem:[%s1873_s29 + $0x1b8] sm:$0xf] }
  0x22   : > { %v1371_v29 = vld [vmem:[%s1873_s29 + $0x1dc] sm:$0xf]  ;;  %1368 = vst [vmem:[%s1878_s30 + $0x8c] sm:$0xf] %v1367_v27  ;;  %1370 = vst [vmem:[%s1878_s30 + $0x98] sm:$0xf] %v1369_v28 }
  0x23   : > { %1372 = vst [vmem:[%s1878_s30 + $0xa4] sm:$0xf] %v1371_v29  ;;  %v1373_v30 = vld [vmem:[%s1873_s29 + $0x200] sm:$0xf]  ;;  %v1375_v31 = vld [vmem:[%s1873_s29 + $0x224] sm:$0xf] }
  0x24   : > { %1374 = vst [vmem:[%s1878_s30 + $0xb0] sm:$0xf] %v1373_v30  ;;  %1376 = vst [vmem:[%s1878_s30 + $0xbc] sm:$0xf] %v1375_v31 }
  0x25 PF: > { %p1377_p6 = scmp.ge.s32.totalorder %s1802_s19, 1  ;;  %p318_p7 = scmp.lt.s32.totalorder %s1802_s19, 4 }
  0x27   : > { %p319_p8 = pnand %p1377_p6, %p318_p7 }
  0x28   : > { %s325_s5 = sand.u32 (!%p319_p8), 1, %s1786_s15   ;;  %s374_s6 = smul.u32 (!%p319_p8), 48, %s1794_s17 }
  0x29   : > { %322 = sbr.rel (%p319_p8) target bundleno = 385 (0x181), region = 58  ;;  %p1379_p10 = scmp.ne.s32.totalorder (!%p319_p8), %s1794_s17, 0 }
  0x2a   : > { %s1666_s7 = smul.u32 (!%p319_p8), 192, %s325_s5  ;;  %p375_p9 = scmp.lt.s32.totalorder (!%p319_p8), %s374_s6, 143 }
  0x2c   : > { %s1950_s12 = scalar_lea.vmem (!%p319_p8), [#allocation3], %s1666_s7 }
  0x30   : > { %s2098_s6 = smov (!%p375_p9, %s374_s6), 143  ;;  %408 = sbr.rel (%p1379_p10) target bundleno = 58 (0x3a), region = 66 }
  0x31   : > { %s1378_s8 = sshll.u32 %s2098_s6, 2  ;;  %v1804_v32 = vmov (!%p1379_p10), 0.0  }
  0x32   : > { %s1948_s11 = scalar_lea.vmem %s2087_s1, %s1378_s8  ;;  %409 = vst [vmem:[#allocation2] sm:$0xff] (!%p1379_p10), %v1804_v32  ;;  %410 = vst [vmem:[#allocation2 + $0x8] sm:$0xff] (!%p1379_p10), %v1804_v32 }
  0x33   : > { %411 = vst [vmem:[#allocation2 + $0x10] sm:$0xff] (!%p1379_p10), %v1804_v32  ;;  %412 = vst [vmem:[#allocation2 + $0x18] sm:$0xff] (!%p1379_p10), %v1804_v32 }
  0x34   : > { %413 = vst [vmem:[#allocation2 + $0x20] sm:$0xff] (!%p1379_p10), %v1804_v32  ;;  %414 = vst [vmem:[#allocation2 + $0x28] sm:$0xff] (!%p1379_p10), %v1804_v32 }
  0x35   : > { %415 = vst [vmem:[#allocation2 + $0x30] sm:$0xff] (!%p1379_p10), %v1804_v32  ;;  %416 = vst [vmem:[#allocation2 + $0x38] sm:$0xff] (!%p1379_p10), %v1804_v32 }
  0x36   : > { %417 = vst [vmem:[#allocation2 + $0x40] sm:$0xff] (!%p1379_p10), %v1804_v32  ;;  %418 = vst [vmem:[#allocation2 + $0x48] sm:$0xff] (!%p1379_p10), %v1804_v32 }
  0x37   : > { %419 = vst [vmem:[#allocation2 + $0x50] sm:$0xff] %v1804_v32  ;;  %420 = vst [vmem:[#allocation2 + $0x58] sm:$0xff] %v1804_v32 }
  0x38   : > { %421 = vst [vmem:[#allocation2 + $0x60] sm:$0xff] %v1804_v32  ;;  %422 = vst [vmem:[#allocation2 + $0x68] sm:$0xff] %v1804_v32 }
  0x39   : > { %423 = vst [vmem:[#allocation2 + $0x70] sm:$0xff] %v1804_v32  ;;  %424 = vst [vmem:[#allocation2 + $0x78] sm:$0xff] %v1804_v32 }
  0x3a PF: > { %v1708_v33 = vld [vmem:[%s1948_s11 + $0x40] sm:$0xff]   ;;  %v1711_v36 = vld [vmem:[%s1948_s11 + $0x48] sm:$0xff]   ;;  %v1714_v39 = vld [vmem:[%s1948_s11 + $0x50] sm:$0xff]   ;;  %p1428_p11 = scmp.ne.s32.totalorder %s1794_s17, 2 }
  0x3b   : > { %v1709_v34 = vld [vmem:[%s1948_s11] sm:$0xff]   ;;  %1553 = vmatprep.subr.bf16.mxu0 %v1708_v33  ;;  %v1712_v37 = vld [vmem:[%s1948_s11 + $0x8] sm:$0xff]   ;;  %v1715_v40 = vld [vmem:[%s1948_s11 + $0x10] sm:$0xff]  }
  0x3c   : > { %v1710_v35 = vld [vmem:[%s1948_s11 + $0x80] sm:$0xff]   ;;  %1554 = vmatpush3.bf16.msra.mxu0 %v1709_v34  ;;  %v1713_v38 = vld [vmem:[%s1948_s11 + $0x88] sm:$0xff]   ;;  %v1716_v41 = vld [vmem:[%s1948_s11 + $0x90] sm:$0xff]  }
  0x3d   : > { %1633 = vmatprep.subr.bf16.mxu1 %v1710_v35  ;;  %1555 = vmatprep.subr.bf16.mxu0 %v1711_v36  ;;  %v1717_v42 = vld [vmem:[%s1948_s11 + $0x58] sm:$0xff]   ;;  %v1720_v45 = vld [vmem:[%s1948_s11 + $0x60] sm:$0xff]   ;;  %v1723_v48 = vld [vmem:[%s1948_s11 + $0x68] sm:$0xff]  }
  0x3e   : > { %1634 = vmatpush3.bf16.msra.mxu1 %v1710_v35  ;;  %v1718_v43 = vld [vmem:[%s1948_s11 + $0x18] sm:$0xff]   ;;  %v1722_v46 = vld [vmem:[%s1948_s11 + $0xa0] sm:$0xff]   ;;  %v1725_v49 = vld [vmem:[%s1948_s11 + $0xa8] sm:$0xff]  }
  0x3f   : > { %1635 = vmatprep.subr.bf16.mxu1 %v1713_v38  ;;  %v1719_v44 = vld [vmem:[%s1948_s11 + $0x98] sm:$0xff]   ;;  %v1721_v47 = vld [vmem:[%s1948_s11 + $0x20] sm:$0xff]   ;;  %v1724_v50 = vld [vmem:[%s1948_s11 + $0x28] sm:$0xff]  }
  0x40   : > { %1556 = vmatpush3.bf16.msra.mxu0 %v1712_v37  ;;  %v1726_v51 = vld [vmem:[%s1948_s11 + $0x70] sm:$0xff]   ;;  %v1729_v54 = vld [vmem:[%s1948_s11 + $0x78] sm:$0xff]   ;;  %v1732_v59 = vld [vmem:[%s1950_s12] ss:$12 sps:$4 sm:$0xff]  }
  0x41   : > { %1557 = vmatprep.subr.bf16.mxu0 %v1714_v39  ;;  %v1727_v52 = vld [vmem:[%s1948_s11 + $0x30] sm:$0xff]   ;;  %v1731_v55 = vld [vmem:[%s1948_s11 + $0xb8] sm:$0xff]   ;;  %v1736_v61 = vld [vmem:[%s1950_s12 + $0x20] ss:$12 sps:$4 sm:$0xff]  }
  0x42   : > { %1636 = vmatpush3.bf16.msra.mxu1 %v1713_v38  ;;  %v1728_v53 = vld [vmem:[%s1948_s11 + $0xb0] sm:$0xff]   ;;  %v1730_v58 = vld [vmem:[%s1948_s11 + $0x38] sm:$0xff]   ;;  %v1752_v5 = vld [vmem:[%s1950_s12 + $0x80] ss:$12 sps:$4 sm:$0xff]  }
  0x43   : > { %1637 = vmatprep.subr.bf16.mxu1 %v1716_v41  ;;  %v1734_v56 = vld [vmem:[%s1950_s12 + $0x4] ss:$12 sps:$4 sm:$0xff]   ;;  %v1735_v57 = vld [vmem:[%s1950_s12 + $0x8] ss:$12 sps:$4 sm:$0xff]   ;;  %v1745_v4 = vld [vmem:[%s1950_s12 + $0x4c] ss:$12 sps:$4 sm:$0xff]  }
  0x44   : > { %1558 = vmatpush3.bf16.msra.mxu0 %v1715_v40  ;;  %825 = vmatprep.mubr.bf16.mxu0 %v1734_v56  ;;  %v1737_v60 = vld [vmem:[%s1950_s12 + $0x1c] ss:$12 sps:$4 sm:$0xff]   ;;  %v1743_v62 = vld [vmem:[%s1950_s12 + $0x38] ss:$12 sps:$4 sm:$0xff]   ;;  %v1740_v0 = vld [vmem:[%s1950_s12 + $0x34] ss:$12 sps:$4 sm:$0xff]  }
  0x45   : > { %1559 = vmatprep.subr.bf16.mxu0 %v1717_v42  ;;  %1649 = vmatprep.mubr.bf16.mxu1 %v1735_v57  ;;  %v1739_v63 = vld [vmem:[%s1950_s12 + $0x18] ss:$12 sps:$4 sm:$0xff]   ;;  %v1744_v1 = vld [vmem:[%s1950_s12 + $0x50] ss:$12 sps:$4 sm:$0xff]   ;;  %v1751_v2 = vld [vmem:[%s1950_s12 + $0x68] ss:$12 sps:$4 sm:$0xff]  }
  0x46   : > { %1638 = vmatpush3.bf16.msra.mxu1 %v1716_v41  ;;  %v1742_v3 = vld [vmem:[%s1950_s12 + $0x30] ss:$12 sps:$4 sm:$0xff]   ;;  %v1759_v6 = vld [vmem:[%s1950_s12 + $0x98] ss:$12 sps:$4 sm:$0xff]   ;;  %v1747_v7 = vld [vmem:[%s1950_s12 + $0x48] ss:$12 sps:$4 sm:$0xff]  }
  0x47   : > { %1639 = vmatprep.subr.bf16.mxu1 %v1719_v44  ;;  %v1748_v8 = vld [vmem:[%s1950_s12 + $0x64] ss:$12 sps:$4 sm:$0xff]   ;;  %v1750_v10 = vld [vmem:[%s1950_s12 + $0x60] ss:$12 sps:$4 sm:$0xff]   ;;  %v1753_v11 = vld [vmem:[%s1950_s12 + $0x7c] ss:$12 sps:$4 sm:$0xff]  }
  0x48   : > { %1560 = vmatpush3.bf16.msra.mxu0 %v1718_v43  ;;  %v1760_v9 = vld [vmem:[%s1950_s12 + $0xb0] ss:$12 sps:$4 sm:$0xff]   ;;  %v1755_v12 = vld [vmem:[%s1950_s12 + $0x78] ss:$12 sps:$4 sm:$0xff]   ;;  %v1756_v13 = vld [vmem:[%s1950_s12 + $0x94] ss:$12 sps:$4 sm:$0xff]  }
  0x49   : > { %1561 = vmatprep.subr.bf16.mxu0 %v1720_v45  ;;  %v1758_v14 = vld [vmem:[%s1950_s12 + $0x90] ss:$12 sps:$4 sm:$0xff]   ;;  %v1761_v15 = vld [vmem:[%s1950_s12 + $0xac] ss:$12 sps:$4 sm:$0xff]   ;;  %v1763_v16 = vld [vmem:[%s1950_s12 + $0xa8] ss:$12 sps:$4 sm:$0xff]  }
  0x4a   : > { %1640 = vmatpush3.bf16.msra.mxu1 %v1719_v44  ;;  %v425_v23 = vld [vmem:[#allocation2] sm:$0xff]  ;;  %v426_v28 = vld [vmem:[#allocation2 + $0x8] sm:$0xff]  ;;  %v427_v38 = vld [vmem:[#allocation2 + $0x10] sm:$0xff] }
  0x4b   : > { %1641 = vmatprep.subr.bf16.mxu1 %v1722_v46  ;;  %v428_v44 = vld [vmem:[#allocation2 + $0x18] sm:$0xff] }
  0x4c   : > { %1562 = vmatpush3.bf16.msra.mxu0 %v1721_v47 }
  0x4d   : > { %1563 = vmatprep.subr.bf16.mxu0 %v1723_v48 }
  0x4e   : > { %1642 = vmatpush3.bf16.msra.mxu1 %v1722_v46 }
  0x4f   : > { %1643 = vmatprep.subr.bf16.mxu1 %v1725_v49 }
  0x50   : > { %1564 = vmatpush3.bf16.msra.mxu0 %v1724_v50 }
  0x51   : > { %1565 = vmatprep.subr.bf16.mxu0 %v1726_v51 }
  0x52   : > { %1644 = vmatpush3.bf16.msra.mxu1 %v1725_v49 }
  0x53   : > { %1645 = vmatprep.subr.bf16.mxu1 %v1728_v53 }
  0x54   : > { %1566 = vmatpush3.bf16.msra.mxu0 %v1727_v52 }
  0x55   : > { %1567 = vmatprep.subr.bf16.mxu0 %v1729_v54 }
  0x56   : > { %1646 = vmatpush3.bf16.msra.mxu1 %v1728_v53 }
  0x57   : > { %1647 = vmatprep.subr.bf16.mxu1 %v1731_v55 }
  0x58   : > { %1568 = vmatpush3.bf16.msra.mxu0 %v1730_v58 }
  0x5a   : > { %1648 = vmatpush3.bf16.msra.mxu1 %v1731_v55  ;;  %v429_v55 = vld [vmem:[#allocation2 + $0x20] sm:$0xff] }
  0x5b   : > { %826 = vmatmul.mubr.bf16.vlgmr.msra.gmra.mrb[0].mxu0 %v1732_v59 }
  0x5c   : > { %833 = vmatprep.mubr.bf16.mxu0 %v1737_v60  ;;  %v430_v60 = vld [vmem:[#allocation2 + $0x28] sm:$0xff] }
  0x5d   : > { %1650 = vmatmul.mubr.bf16.vlgmr.msra.gmra.mrb[0].mxu1 %v1736_v61 }
  0x5e   : > { %1653 = vmatprep.mubr.bf16.mxu1 %v1743_v62 }
  0x63   : > { %834 = vmatmul.mubr.bf16.gmra.mrb[4].mxu0 %v1739_v63 }
  0x64   : > { %841 = vmatprep.mubr.bf16.mxu0 %v1740_v0 }
  0x65   : > { %1654 = vmatmul.mubr.bf16.gmra.mrb[4].mxu1 %v1744_v1 }
  0x66   : > { %1657 = vmatprep.mubr.bf16.mxu1 %v1751_v2 }
  0x6b   : > { %842 = vmatmul.mubr.bf16.gmra.mrb[8].mxu0 %v1742_v3 }
  0x6c   : > { %849 = vmatprep.mubr.bf16.mxu0 %v1745_v4 }
  0x6d   : > { %1658 = vmatmul.mubr.bf16.gmra.mrb[8].mxu1 %v1752_v5 }
  0x6e   : > { %1661 = vmatprep.mubr.bf16.mxu1 %v1759_v6  ;;  %v431_v6 = vld [vmem:[#allocation2 + $0x30] sm:$0xff] }
  0x73   : > { %850 = vmatmul.mubr.bf16.gmra.mrb[12].mxu0 %v1747_v7 }
  0x74   : > { %857 = vmatprep.mubr.bf16.mxu0 %v1748_v8 }
  0x75   : > { %1662 = vmatmul.mubr.bf16.gmra.mrb[12].mxu1 %v1760_v9 }
  0x7b   : > { %858 = vmatmul.mubr.bf16.gmra.mrb[16].mxu0 %v1750_v10 }
  0x7c   : > { %865 = vmatprep.mubr.bf16.mxu0 %v1753_v11 }
  0x83   : > { %866 = vmatmul.mubr.bf16.gmra.mrb[20].mxu0 %v1755_v12  ;;  %v432_v12 = vld [vmem:[#allocation2 + $0x38] sm:$0xff] }
  0x84   : > { %873 = vmatprep.mubr.bf16.mxu0 %v1756_v13 }
  0x8b   : > { %874 = vmatmul.mubr.bf16.gmra.mrb[24].mxu0 %v1758_v14 }
  0x8c   : > { %881 = vmatprep.mubr.bf16.mxu0 %v1761_v15 }
  0x93   : > { %882 = vmatmul.mubr.bf16.gmra.mrb[28].mxu0 %v1763_v16 }
 0x12e   : > { %v1569_v17 = vpop.f32.mrb[0].mxu0 }
 0x12f   : > { %v1570_v18 = vpop.f32.mrb[1].mxu0 }
 0x130   : > { %v1571_v19 = vadd.f32 %v1570_v18, %v1569_v17  ;;  %v1572_v20 = vpop.f32.mrb[2].mxu0  ;;  %v1651_v21 = vpop.f32.mrb[0].mxu1 }
 0x131   : > { %v1573_v22 = vpop.f32.mrb[3].mxu0  ;;  %v924_v24 = vpop.f32.mrb[1].mxu1 }
 0x132   : > { %v1574_v25 = vadd.f32 %v1573_v22, %v1572_v20  ;;  %v925_v26 = vadd.f32 %v1571_v19, %v924_v24  ;;  %v1652_v27 = vpop.f32.mrb[2].mxu1  ;;  %v433_v22 = vld [vmem:[#allocation2 + $0x40] sm:$0xff] }
 0x133   : > { %v927_v29 = vpop.f32.mrb[3].mxu1 }
 0x134   : > { %v987_v30 = vadd.f32 %v925_v26, %v425_v23  ;;  %v928_v31 = vadd.f32 %v1574_v25, %v927_v29  ;;  %v434_v25 = vld [vmem:[#allocation2 + $0x48] sm:$0xff] }
 0x136   : > { %1003 = vst [vmem:[#allocation2] sm:$0xff] %v987_v30  ;;  %v988_v32 = vadd.f32 %v928_v31, %v426_v28  ;;  %v1575_v33 = vpop.f32.mrb[4].mxu0 }
 0x137   : > { %v1576_v34 = vpop.f32.mrb[5].mxu0 }
 0x138   : > { %1004 = vst [vmem:[#allocation2 + $0x8] sm:$0xff] %v988_v32  ;;  %v1577_v35 = vadd.f32 %v1576_v34, %v1575_v33  ;;  %v1578_v36 = vpop.f32.mrb[6].mxu0  ;;  %v1655_v37 = vpop.f32.mrb[4].mxu1  ;;  %v435_v33 = vld [vmem:[#allocation2 + $0x50] sm:$0xff] }
 0x139   : > { %v1579_v39 = vpop.f32.mrb[7].mxu0  ;;  %v940_v40 = vpop.f32.mrb[5].mxu1 }
 0x13a   : > { %v933_v41 = vadd.f32 %v1651_v21, %v1577_v35  ;;  %v1580_v42 = vadd.f32 %v1579_v39, %v1578_v36  ;;  %v1656_v43 = vpop.f32.mrb[6].mxu1 }
 0x13b   : > { %v943_v45 = vpop.f32.mrb[7].mxu1 }
 0x13c   : > { %v989_v46 = vadd.f32 %v933_v41, %v427_v38  ;;  %v936_v47 = vadd.f32 %v1652_v27, %v1580_v42 }
 0x13e   : > { %1005 = vst [vmem:[#allocation2 + $0x10] sm:$0xff] %v989_v46  ;;  %v990_v48 = vadd.f32 %v936_v47, %v428_v44  ;;  %v1581_v49 = vpop.f32.mrb[8].mxu0  ;;  %v437_v46 = vld [vmem:[#allocation2 + $0x60] sm:$0xff] }
 0x13f   : > { %v1582_v50 = vpop.f32.mrb[9].mxu0 }
 0x140   : > { %1006 = vst [vmem:[#allocation2 + $0x18] sm:$0xff] %v990_v48  ;;  %v1583_v51 = vadd.f32 %v1582_v50, %v1581_v49  ;;  %v1584_v52 = vpop.f32.mrb[10].mxu0  ;;  %v1659_v53 = vpop.f32.mrb[8].mxu1  ;;  %v438_v49 = vld [vmem:[#allocation2 + $0x68] sm:$0xff] }
 0x141   : > { %v1585_v54 = vpop.f32.mrb[11].mxu0  ;;  %v956_v56 = vpop.f32.mrb[9].mxu1 }
 0x142   : > { %v1586_v57 = vadd.f32 %v1585_v54, %v1584_v52  ;;  %v941_v58 = vadd.f32 %v1583_v51, %v940_v40  ;;  %v1660_v59 = vpop.f32.mrb[10].mxu1 }
 0x143   : > { %v959_v61 = vpop.f32.mrb[11].mxu1 }
 0x144   : > { %v991_v62 = vadd.f32 %v941_v58, %v429_v55  ;;  %v944_v63 = vadd.f32 %v1586_v57, %v943_v45  ;;  %v439_v57 = vld [vmem:[#allocation2 + $0x70] sm:$0xff] }
 0x146   : > { %1007 = vst [vmem:[#allocation2 + $0x20] sm:$0xff] %v991_v62  ;;  %v992_v0 = vadd.f32 %v944_v63, %v430_v60  ;;  %v1587_v1 = vpop.f32.mrb[12].mxu0 }
 0x147   : > { %v1588_v2 = vpop.f32.mrb[13].mxu0 }
 0x148   : > { %1008 = vst [vmem:[#allocation2 + $0x28] sm:$0xff] %v992_v0  ;;  %v1589_v3 = vadd.f32 %v1588_v2, %v1587_v1  ;;  %v1590_v4 = vpop.f32.mrb[14].mxu0  ;;  %v1663_v5 = vpop.f32.mrb[12].mxu1  ;;  %v1023_v1 = vld [vmem:[#allocation2] sm:$0xff] (!%p1428_p11)  ;;  %v1024_v2 = vld [vmem:[#allocation2 + $0x8] sm:$0xff] (!%p1428_p11) }
 0x149   : > { %v1591_v7 = vpop.f32.mrb[15].mxu0  ;;  %v972_v8 = vpop.f32.mrb[13].mxu1 }
 0x14a   : > { %v949_v9 = vadd.f32 %v1655_v37, %v1589_v3  ;;  %v1592_v10 = vadd.f32 %v1591_v7, %v1590_v4  ;;  %v1664_v11 = vpop.f32.mrb[14].mxu1  ;;  %v436_v37 = vld [vmem:[#allocation2 + $0x58] sm:$0xff]  ;;  %v2005_v3 = vld [vmem:[%s2088_s2] ss:$0 sm:$0xff] (!%p1428_p11)  ;;  %v1025_v7 = vld [vmem:[#allocation2 + $0x10] sm:$0xff] (!%p1428_p11) }
 0x14b   : > { %v975_v13 = vpop.f32.mrb[15].mxu1  ;;  %v1046_v4 = vadd.f32 (!%p1428_p11), %v2005_v3, %v1023_v1 }
 0x14c   : > { %v993_v14 = vadd.f32 %v949_v9, %v431_v6  ;;  %v952_v15 = vadd.f32 %v1656_v43, %v1592_v10  ;;  %v1468_v6 = vld [vmem:[%s2089_s3] sm:$0xff] (!%p1428_p11)  }
 0x14d   : > { %v1469_v9 = vunpack.c.l.bf16 (!%p1428_p11), %v1468_v6  ;;  %v1470_v10 = vunpack.c.h.bf16 (!%p1428_p11), %v1468_v6 }
 0x14e   : > { %1009 = vst [vmem:[#allocation2 + $0x30] sm:$0xff] %v993_v14  ;;  %v994_v16 = vadd.f32 %v952_v15, %v432_v12  ;;  %v1593_v17 = vpop.f32.mrb[16].mxu0  ;;  %v1027_v14 = vld [vmem:[#allocation2 + $0x20] sm:$0xff] (!%p1428_p11) }
 0x14f   : > { %v1594_v18 = vpop.f32.mrb[17].mxu0  ;;  %v1028_v15 = vld [vmem:[#allocation2 + $0x28] sm:$0xff] (!%p1428_p11) }
 0x150   : > { %1010 = vst [vmem:[#allocation2 + $0x38] sm:$0xff] %v994_v16  ;;  %v1595_v19 = vadd.f32 %v1594_v18, %v1593_v17  ;;  %v1596_v20 = vpop.f32.mrb[18].mxu0  ;;  %v1050_v18 = vadd.f32 (!%p1428_p11), %v2005_v3, %v1027_v14 }
 0x151   : > { %v1597_v21 = vpop.f32.mrb[19].mxu0 }
 0x152   : > { %v1598_v23 = vadd.f32 %v1597_v21, %v1596_v20  ;;  %v957_v24 = vadd.f32 %v1595_v19, %v956_v56  ;;  %v1051_v19 = vadd.f32 (!%p1428_p11), %v2005_v3, %v1028_v15  ;;  %v1540_v20 = vld [vmem:[%s2089_s3 + $0x10] sm:$0xff] (!%p1428_p11)  }
 0x154   : > { %v995_v26 = vadd.f32 %v957_v24, %v433_v22  ;;  %v960_v27 = vadd.f32 %v1598_v23, %v959_v61  ;;  %v440_v61 = vld [vmem:[#allocation2 + $0x78] sm:$0xff]  ;;  %v1094_v23 = vadd.f32 (!%p1428_p11), %v1469_v9, %v1046_v4 }
 0x155   : > { %v1029_v21 = vld [vmem:[#allocation2 + $0x30] sm:$0xff] (!%p1428_p11) }
 0x156   : > { %1011 = vst [vmem:[#allocation2 + $0x40] sm:$0xff] %v995_v26  ;;  %v996_v28 = vadd.f32 %v960_v27, %v434_v25  ;;  %v1599_v29 = vpop.f32.mrb[20].mxu0  ;;  %v1477_v25 = vunpack.c.l.bf16 (!%p1428_p11), %v1540_v20  ;;  %v1478_v26 = vunpack.c.h.bf16 (!%p1428_p11), %v1540_v20  ;;  %v1541_v27 = vld [vmem:[%s2089_s3 + $0x18] sm:$0xff] (!%p1428_p11)  }
 0x157   : > { %v1600_v30 = vpop.f32.mrb[21].mxu0  ;;  %v1030_v22 = vld [vmem:[#allocation2 + $0x38] sm:$0xff] (!%p1428_p11) }
 0x158   : > { %1012 = vst [vmem:[#allocation2 + $0x48] sm:$0xff] %v996_v28  ;;  %v1601_v31 = vadd.f32 %v1600_v30, %v1599_v29  ;;  %v1602_v32 = vpop.f32.mrb[22].mxu0  ;;  %v1052_v30 = vadd.f32 (!%p1428_p11), %v2005_v3, %v1029_v21 }
 0x159   : > { %v1603_v34 = vpop.f32.mrb[23].mxu0 }
 0x15a   : > { %v965_v35 = vadd.f32 %v1659_v53, %v1601_v31  ;;  %v1604_v36 = vadd.f32 %v1603_v34, %v1602_v32  ;;  %v1053_v31 = vadd.f32 (!%p1428_p11), %v2005_v3, %v1030_v22 }
 0x15c   : > { %v997_v38 = vadd.f32 %v965_v35, %v435_v33  ;;  %v968_v39 = vadd.f32 %v1660_v59, %v1604_v36  ;;  %v1110_v33 = vmax.f32 (!%p1428_p11), %v1094_v23, 0.0  ;;  %v1098_v35 = vadd.f32 (!%p1428_p11), %v1477_v25, %v1050_v18 }
 0x15d   : > { %v1031_v32 = vld [vmem:[#allocation2 + $0x40] sm:$0xff] (!%p1428_p11)  ;;  %v1099_v36 = vadd.f32 (!%p1428_p11), %v1478_v26, %v1051_v19 }
 0x15e   : > { %1013 = vst [vmem:[#allocation2 + $0x50] sm:$0xff] %v997_v38  ;;  %v998_v40 = vadd.f32 %v968_v39, %v436_v37  ;;  %v1605_v41 = vpop.f32.mrb[24].mxu0 }
 0x15f   : > { %v1606_v42 = vpop.f32.mrb[25].mxu0  ;;  %v1032_v37 = vld [vmem:[#allocation2 + $0x48] sm:$0xff] (!%p1428_p11) }
 0x160   : > { %1014 = vst [vmem:[#allocation2 + $0x58] sm:$0xff] %v998_v40  ;;  %v1607_v43 = vadd.f32 %v1606_v42, %v1605_v41  ;;  %v1608_v44 = vpop.f32.mrb[26].mxu0  ;;  %v1481_v40 = vunpack.c.l.bf16 (!%p1428_p11), %v1541_v27  ;;  %v1482_v41 = vunpack.c.h.bf16 (!%p1428_p11), %v1541_v27  ;;  %v1542_v42 = vld [vmem:[%s2089_s3 + $0x20] sm:$0xff] (!%p1428_p11)  }
 0x161   : > { %v1609_v45 = vpop.f32.mrb[27].mxu0 }
 0x162   : > { %v1610_v47 = vadd.f32 %v1609_v45, %v1608_v44  ;;  %v973_v48 = vadd.f32 %v1607_v43, %v972_v8  ;;  %v1026_v8 = vld [vmem:[#allocation2 + $0x18] sm:$0xff] (!%p1428_p11)  ;;  %v1114_v45 = vmax.f32 (!%p1428_p11), %v1098_v35, 0.0 }
 0x163   : > { %v1049_v12 = vadd.f32 (!%p1428_p11), %v2005_v3, %v1026_v8 }
 0x164   : > { %v999_v50 = vadd.f32 %v973_v48, %v437_v46  ;;  %v976_v51 = vadd.f32 %v1610_v47, %v975_v13  ;;  %v1539_v13 = vld [vmem:[%s2089_s3 + $0x8] sm:$0xff] (!%p1428_p11)   ;;  %v1115_v46 = vmax.f32 (!%p1428_p11), %v1099_v36, 0.0  ;;  %v1054_v47 = vadd.f32 (!%p1428_p11), %v2005_v3, %v1031_v32 }
 0x165   : > { %v1473_v16 = vunpack.c.l.bf16 (!%p1428_p11), %v1539_v13  ;;  %v1474_v17 = vunpack.c.h.bf16 (!%p1428_p11), %v1539_v13  ;;  %v1033_v43 = vld [vmem:[#allocation2 + $0x50] sm:$0xff] (!%p1428_p11) }
 0x166   : > { %1015 = vst [vmem:[#allocation2 + $0x60] sm:$0xff] %v999_v50  ;;  %v1000_v52 = vadd.f32 %v976_v51, %v438_v49  ;;  %v1611_v53 = vpop.f32.mrb[28].mxu0  ;;  %v1543_v49 = vld [vmem:[%s2089_s3 + $0x28] sm:$0xff] (!%p1428_p11)   ;;  %v1100_v51 = vadd.f32 (!%p1428_p11), %v1481_v40, %v1052_v30 }
 0x167   : > { %v1612_v54 = vpop.f32.mrb[29].mxu0  ;;  %v1097_v29 = vadd.f32 (!%p1428_p11), %v1474_v17, %v1049_v12  ;;  %v1034_v48 = vld [vmem:[#allocation2 + $0x58] sm:$0xff] (!%p1428_p11)  ;;  %v1490_v4 = vunpack.c.h.bf16 (!%p1428_p11), %v1543_v49 }
 0x168   : > { %1016 = vst [vmem:[#allocation2 + $0x68] sm:$0xff] %v1000_v52  ;;  %v1613_v55 = vadd.f32 %v1612_v54, %v1611_v53  ;;  %v1614_v56 = vpop.f32.mrb[30].mxu0  ;;  %v1101_v52 = vadd.f32 (!%p1428_p11), %v1482_v41, %v1053_v31  ;;  %v1055_v53 = vadd.f32 (!%p1428_p11), %v2005_v3, %v1032_v37  ;;  %v1545_v12 = vld [vmem:[%s2089_s3 + $0x38] sm:$0xff] (!%p1428_p11)  }
 0x169   : > { %v1615_v58 = vpop.f32.mrb[31].mxu0  ;;  %v1113_v39 = vmax.f32 (!%p1428_p11), %v1097_v29, 0.0  ;;  %v1498_v26 = vunpack.c.h.bf16 (!%p1428_p11), %v1545_v12 }
 0x16a   : > { %v981_v59 = vadd.f32 %v1663_v5, %v1613_v55  ;;  %v1616_v60 = vadd.f32 %v1615_v58, %v1614_v56  ;;  %1022 = sbr.rel (%p1428_p11) target bundleno = 385 (0x181), region = 70  ;;  %v1047_v5 = vadd.f32 (!%p1428_p11), %v2005_v3, %v1024_v2  ;;  %v1512_v55 = vpack.c.bf16 (!%p1428_p11), %v1115_v46, %v1114_v45 }
 0x16b   : > { %v1485_v56 = vunpack.c.l.bf16 (!%p1428_p11), %v1542_v42  ;;  %v1056_v58 = vadd.f32 (!%p1428_p11), %v2005_v3, %v1033_v43 }
 0x16c   : > { %v1001_v62 = vadd.f32 %v981_v59, %v439_v57  ;;  %v984_v63 = vadd.f32 %v1664_v11, %v1616_v60  ;;  %v1048_v11 = vadd.f32 (!%p1428_p11), %v2005_v3, %v1025_v7  ;;  %v1095_v24 = vadd.f32 (!%p1428_p11), %v1470_v10, %v1047_v5  ;;  %v1544_v60 = vld [vmem:[%s2089_s3 + $0x30] sm:$0xff] (!%p1428_p11)   ;;  %1547 = vst [vmem:[%s2090_s4 + $0x10] sm:$0xff] (!%p1428_p11), %v1512_v55  }
 0x16d   : > { %v1035_v54 = vld [vmem:[#allocation2 + $0x60] sm:$0xff] (!%p1428_p11)  ;;  %v1486_v57 = vunpack.c.h.bf16 (!%p1428_p11), %v1542_v42  ;;  %v1102_v1 = vadd.f32 (!%p1428_p11), %v1485_v56, %v1054_v47 }
 0x16e   : > { %1017 = vst [vmem:[#allocation2 + $0x70] sm:$0xff] %v1001_v62  ;;  %v1002_v0 = vadd.f32 %v984_v63, %v440_v61  ;;  %v1096_v28 = vadd.f32 (!%p1428_p11), %v1473_v16, %v1048_v11  ;;  %v1111_v34 = vmax.f32 (!%p1428_p11), %v1095_v24, 0.0  ;;  %v1116_v61 = vmax.f32 (!%p1428_p11), %v1100_v51, 0.0 }
 0x16f   : > { %v1036_v59 = vld [vmem:[#allocation2 + $0x68] sm:$0xff] (!%p1428_p11)  ;;  %v1117_v62 = vmax.f32 (!%p1428_p11), %v1101_v52, 0.0  ;;  %v1057_v63 = vadd.f32 (!%p1428_p11), %v2005_v3, %v1034_v48  ;;  %v1103_v2 = vadd.f32 (!%p1428_p11), %v1486_v57, %v1055_v53  ;;  %v1058_v5 = vadd.f32 (!%p1428_p11), %v2005_v3, %v1035_v54 }
 0x170   : > { %1018 = vst [vmem:[#allocation2 + $0x78] sm:$0xff] %v1002_v0  ;;  %v1112_v38 = vmax.f32 (!%p1428_p11), %v1096_v28, 0.0  ;;  %v1502_v44 = vpack.c.bf16 (!%p1428_p11), %v1111_v34, %v1110_v33  ;;  %v1489_v0 = vunpack.c.l.bf16 (!%p1428_p11), %v1543_v49  ;;  %v1059_v10 = vadd.f32 (!%p1428_p11), %v2005_v3, %v1036_v59 }
 0x171   : > { %v1517_v8 = vpack.c.bf16 %v1117_v62, %v1116_v61  ;;  %v1493_v11 = vunpack.c.l.bf16 %v1544_v60  ;;  %v1118_v13 = vmax.f32 %v1102_v1, 0.0  ;;  %v1119_v14 = vmax.f32 %v1103_v2, 0.0 }
 0x172   : > { %v1507_v50 = vpack.c.bf16 %v1113_v39, %v1112_v38  ;;  %1503 = vst [vmem:[%s2090_s4] sm:$0xff] %v1502_v44   ;;  %v1104_v9 = vadd.f32 %v1489_v0, %v1056_v58  ;;  %v1105_v15 = vadd.f32 %v1490_v4, %v1057_v63  ;;  %v1494_v16 = vunpack.c.h.bf16 %v1544_v60 }
 0x173   : > { %1548 = vst [vmem:[%s2090_s4 + $0x18] sm:$0xff] %v1517_v8   ;;  %v1106_v18 = vadd.f32 %v1493_v11, %v1058_v5  ;;  %v1522_v21 = vpack.c.bf16 %v1119_v14, %v1118_v13  ;;  %v1497_v24 = vunpack.c.l.bf16 %v1545_v12 }
 0x174   : > { %1546 = vst [vmem:[%s2090_s4 + $0x8] sm:$0xff] %v1507_v50   ;;  %v1120_v17 = vmax.f32 %v1104_v9, 0.0  ;;  %v1121_v22 = vmax.f32 %v1105_v15, 0.0  ;;  %v1107_v23 = vadd.f32 %v1494_v16, %v1059_v10 }
 0x175   : > { %v1037_v6 = vld [vmem:[#allocation2 + $0x70] sm:$0xff]  ;;  %v1122_v25 = vmax.f32 %v1106_v18, 0.0  ;;  %1549 = vst [vmem:[%s2090_s4 + $0x20] sm:$0xff] %v1522_v21  }
 0x176   : > { %v1060_v19 = vadd.f32 %v2005_v3, %v1037_v6  ;;  %v1527_v27 = vpack.c.bf16 %v1121_v22, %v1120_v17  ;;  %v1123_v28 = vmax.f32 %v1107_v23, 0.0 }
 0x177   : > { %v1038_v7 = vld [vmem:[#allocation2 + $0x78] sm:$0xff] }
 0x178   : > { %v1061_v20 = vadd.f32 %v2005_v3, %v1038_v7  ;;  %v1108_v29 = vadd.f32 %v1497_v24, %v1060_v19  ;;  %1550 = vst [vmem:[%s2090_s4 + $0x28] sm:$0xff] %v1527_v27   ;;  %v1532_v31 = vpack.c.bf16 %v1123_v28, %v1122_v25 }
 0x17a   : > { %v1109_v30 = vadd.f32 %v1498_v26, %v1061_v20  ;;  %v1124_v3 = vmax.f32 %v1108_v29, 0.0  ;;  %1551 = vst [vmem:[%s2090_s4 + $0x30] sm:$0xff] %v1532_v31  }
 0x17c   : > { %v1125_v32 = vmax.f32 %v1109_v30, 0.0 }
 0x17e   : > { %v1537_v33 = vpack.c.bf16 %v1125_v32, %v1124_v3 }
 0x180   : > { %1552 = vst [vmem:[%s2090_s4 + $0x38] sm:$0xff] %v1537_v33  }
 0x181 PF: > { %s14_s19 = sadd.s32 1, %s1802_s19   ;;  %s2091_s15 = smov %s1790_s16 }
 0x182   : > { %p11_p12 = scmp.ge.s32.totalorder %s14_s19, 5   ;;  %s2092_s16 = smov %s1865_s23 }
 0x183   : > { %s2093_s17 = smov %s1798_s18  ;;  %s2094_s18 = smov %s2096_s20 }
 0x184   :  { %13 = sbr.rel (!%p11_p12) target bundleno = 3 (0x3), region = 120 }

// kernel: gender_classifier_resnet18_forward.26
= control target key start
LH: loop header
LB: loop body
LE: loop exit
PB: predicated region body
PF: predicated region fallthrough
CT: control target
= control target key end

     0   :  { %s1071_s12 = smov 0   ;;  %s1073_s13 = smov 0   ;;  %s1181_s0 = inlined_call_operand.vmem [shape: bf16[32,1152], index: 0, kind: input, shape index: {}]   ;;  %s1182_s1 = inlined_call_operand.vmem [shape: bf16[1152,128], index: 1, kind: input, shape index: {}]   ;;  %s1183_s2 = inlined_call_operand.vmem [shape: f32[1,128], index: 2, kind: input, shape index: {}]   ;;  %s1184_s3 = inlined_call_operand.vmem [shape: bf16[32,128], index: 3, kind: output, shape index: {}]  }
   0x1   :  { %s1075_s14 = smov 0   ;;  %s1077_s15 = smov 0  }
   0x2   :  { %s1079_s16 = smov 0  }
   0x3 LB: > { %s25_s17 = sadd.s32 1, %s1044_s15  ;;  %p48_p1 = scmp.ne.s32.totalorder %s1036_s13, %s1032_s12  ;;  %s1048_s16 = sphi %s1079_s16, %s13_s16   ;;  %s1044_s15 = sphi %s1077_s15, %s1188_s15   ;;  %s1040_s14 = sphi %s1075_s14, %s1187_s14   ;;  %s1036_s13 = sphi %s1073_s13, %s1186_s13   ;;  %s1032_s12 = sphi %s1071_s12, %s1185_s12  }
   0x4   : > { %p26_p0 = scmp.ge.s32.totalorder %s25_s17, 3  ;;  %p49_p2 = scmp.eq.s32.totalorder %s1048_s16, 0 }
   0x5   : > { %s41_s19 = sadd.s32 1, %s1036_s13  ;;  %p808_p5 = scmp.ge.s32.totalorder %s1048_s16, 3 }
   0x6   : > { %s1190_s17 = smov (%p26_p0, %s25_s17), 0  ;;  %p50_p3 = por %p49_p2, %p48_p1 }
   0x7   : > { %s37_s18 = ssub.s32 %s1044_s15, %s1190_s17  ;;  %162 = sbr.rel (%p808_p5) target bundleno = 23 (0x17), region = 20 }
   0x8   : > { %p39_p4 = scmp.eq.s32.totalorder %s37_s18, 0 }
   0xa   : > { %s1106_s20 = scalar_select %p39_p4, %s1036_s13, %s41_s19  }
   0xe   : > { %165 = sbr.rel (!%p50_p3) target bundleno = 23 (0x17), region = 24  ;;  %s167_s21 = sand.u32 (%p50_p3), 1, %s1036_s13  }
   0xf   : > { %s861_s22 = smul.u32 (%p50_p3), 12, %s1044_s15 }
  0x10   : > { %s935_s23 = smul.u32 (%p50_p3), 48, %s167_s21 }
  0x11   : > { %s175_s26 = scalar_lea.vmem (%p50_p3), %s1181_s0, %s861_s22 }
  0x12   : > { %v190_v0 = vld [vmem:[%s175_s26] sm:$0xff] (%p50_p3)  ;;  %v194_v2 = vld [vmem:[%s175_s26 + $0x48] sm:$0xff] (%p50_p3)  ;;  %s169_s27 = scalar_lea.vmem (%p50_p3), [#allocation3], %s935_s23  ;;  %v814_v6 = vld [vmem:[%s175_s26 + $0x50] sm:$0xf] (%p50_p3) }
  0x13   : > { %v192_v1 = vld [vmem:[%s175_s26 + $0x24] sm:$0xff] (%p50_p3)  ;;  %191 = vst [vmem:[%s169_s27] sm:$0xff] (%p50_p3), %v190_v0  ;;  %195 = vst [vmem:[%s169_s27 + $0x18] sm:$0xff] (%p50_p3), %v194_v2  ;;  %v196_v3 = vld [vmem:[%s175_s26 + $0x6c] sm:$0xff] (%p50_p3) }
  0x14   : > { %193 = vst [vmem:[%s169_s27 + $0xc] sm:$0xff] (%p50_p3), %v192_v1  ;;  %v810_v4 = vld [vmem:[%s175_s26 + $0x8] sm:$0xf] (%p50_p3)  ;;  %v812_v5 = vld [vmem:[%s175_s26 + $0x2c] sm:$0xf] (%p50_p3)  ;;  %197 = vst [vmem:[%s169_s27 + $0x24] sm:$0xff] (%p50_p3), %v196_v3 }
  0x15   : > { %811 = vst [vmem:[%s169_s27 + $0x8] sm:$0xf] %v810_v4  ;;  %813 = vst [vmem:[%s169_s27 + $0x14] sm:$0xf] %v812_v5  ;;  %v816_v7 = vld [vmem:[%s175_s26 + $0x74] sm:$0xf] }
  0x16   : > { %815 = vst [vmem:[%s169_s27 + $0x20] sm:$0xf] %v814_v6  ;;  %817 = vst [vmem:[%s169_s27 + $0x2c] sm:$0xf] %v816_v7 }
  0x17 PF: > { %p818_p6 = scmp.ge.s32.totalorder %s1048_s16, 1  ;;  %p229_p7 = scmp.lt.s32.totalorder %s1048_s16, 4 }
  0x19   : > { %p230_p8 = pnand %p818_p6, %p229_p7 }
  0x1a   : > { %s236_s28 = sand.u32 (!%p230_p8), 1, %s1032_s12   ;;  %s275_s29 = smul.u32 (!%p230_p8), 48, %s1040_s14 }
  0x1b   : > { %233 = sbr.rel (%p230_p8) target bundleno = 318 (0x13e), region = 54  ;;  %p820_p10 = scmp.ne.s32.totalorder (!%p230_p8), %s1040_s14, 0 }
  0x1c   : > { %s936_s30 = smul.u32 (!%p230_p8), 48, %s236_s28  ;;  %p276_p9 = scmp.lt.s32.totalorder (!%p230_p8), %s275_s29, 143 }
  0x1e   : > { %s1123_s8 = scalar_lea.vmem (!%p230_p8), [#allocation3], %s936_s30 }
  0x22   : > { %s1192_s29 = smov (!%p276_p9, %s275_s29), 143  ;;  %300 = sbr.rel (%p820_p10) target bundleno = 41 (0x29), region = 62 }
  0x23   : > { %s819_s4 = sshll.u32 %s1192_s29, 2  ;;  %v1050_v8 = vmov (!%p820_p10), 0.0  }
  0x24   : > { %s1121_s7 = scalar_lea.vmem %s1182_s1, %s819_s4  ;;  %301 = vst [vmem:[#allocation2] sm:$0xff] (!%p820_p10), %v1050_v8  ;;  %302 = vst [vmem:[#allocation2 + $0x8] sm:$0xff] (!%p820_p10), %v1050_v8 }
  0x25   : > { %303 = vst [vmem:[#allocation2 + $0x10] sm:$0xff] (!%p820_p10), %v1050_v8  ;;  %304 = vst [vmem:[#allocation2 + $0x18] sm:$0xff] (!%p820_p10), %v1050_v8 }
  0x29 PF: > { %v978_v9 = vld [vmem:[%s1121_s7 + $0x40] sm:$0xff]   ;;  %v981_v12 = vld [vmem:[%s1121_s7 + $0x48] sm:$0xff]   ;;  %v984_v15 = vld [vmem:[%s1121_s7 + $0x50] sm:$0xff]   ;;  %p851_p11 = scmp.ne.s32.totalorder %s1040_s14, 2 }
  0x2a   : > { %v979_v10 = vld [vmem:[%s1121_s7] sm:$0xff]   ;;  %877 = vmatprep.subr.bf16.mxu0 %v978_v9  ;;  %v982_v13 = vld [vmem:[%s1121_s7 + $0x8] sm:$0xff]   ;;  %v985_v16 = vld [vmem:[%s1121_s7 + $0x10] sm:$0xff]  }
  0x2b   : > { %v980_v11 = vld [vmem:[%s1121_s7 + $0x80] sm:$0xff]   ;;  %878 = vmatpush3.bf16.msra.mxu0 %v979_v10  ;;  %v983_v14 = vld [vmem:[%s1121_s7 + $0x88] sm:$0xff]   ;;  %v986_v17 = vld [vmem:[%s1121_s7 + $0x90] sm:$0xff]  }
  0x2c   : > { %915 = vmatprep.subr.bf16.mxu1 %v980_v11  ;;  %879 = vmatprep.subr.bf16.mxu0 %v981_v12  ;;  %v987_v18 = vld [vmem:[%s1121_s7 + $0x58] sm:$0xff]   ;;  %v990_v21 = vld [vmem:[%s1121_s7 + $0x60] sm:$0xff]   ;;  %v993_v24 = vld [vmem:[%s1121_s7 + $0x68] sm:$0xff]  }
  0x2d   : > { %916 = vmatpush3.bf16.msra.mxu1 %v980_v11  ;;  %v988_v19 = vld [vmem:[%s1121_s7 + $0x18] sm:$0xff]   ;;  %v992_v22 = vld [vmem:[%s1121_s7 + $0xa0] sm:$0xff]   ;;  %v995_v25 = vld [vmem:[%s1121_s7 + $0xa8] sm:$0xff]  }
  0x2e   : > { %917 = vmatprep.subr.bf16.mxu1 %v983_v14  ;;  %v989_v20 = vld [vmem:[%s1121_s7 + $0x98] sm:$0xff]   ;;  %v991_v23 = vld [vmem:[%s1121_s7 + $0x20] sm:$0xff]   ;;  %v994_v26 = vld [vmem:[%s1121_s7 + $0x28] sm:$0xff]  }
  0x2f   : > { %880 = vmatpush3.bf16.msra.mxu0 %v982_v13  ;;  %v996_v27 = vld [vmem:[%s1121_s7 + $0x70] sm:$0xff]   ;;  %v999_v30 = vld [vmem:[%s1121_s7 + $0x78] sm:$0xff]   ;;  %v305_v45 = vld [vmem:[#allocation2] sm:$0xff] }
  0x30   : > { %881 = vmatprep.subr.bf16.mxu0 %v984_v15  ;;  %v997_v28 = vld [vmem:[%s1121_s7 + $0x30] sm:$0xff]   ;;  %v1001_v31 = vld [vmem:[%s1121_s7 + $0xb8] sm:$0xff]   ;;  %v306_v50 = vld [vmem:[#allocation2 + $0x8] sm:$0xff] }
  0x31   : > { %918 = vmatpush3.bf16.msra.mxu1 %v983_v14  ;;  %v998_v29 = vld [vmem:[%s1121_s7 + $0xb0] sm:$0xff]   ;;  %v1000_v34 = vld [vmem:[%s1121_s7 + $0x38] sm:$0xff]   ;;  %v852_v5 = vld [vmem:[%s1183_s2] ss:$0 sm:$0xff] (!%p851_p11) }
  0x32   : > { %919 = vmatprep.subr.bf16.mxu1 %v986_v17  ;;  %v1004_v32 = vld [vmem:[%s1123_s8 + $0x4] ss:$12 sps:$4 sm:$0xff]   ;;  %v1005_v33 = vld [vmem:[%s1123_s8 + $0x8] ss:$12 sps:$4 sm:$0xff]   ;;  %v1002_v35 = vld [vmem:[%s1123_s8] ss:$12 sps:$4 sm:$0xff]  }
  0x33   : > { %882 = vmatpush3.bf16.msra.mxu0 %v985_v16  ;;  %573 = vmatprep.mubr.bf16.mxu0 %v1004_v32  ;;  %v1007_v36 = vld [vmem:[%s1123_s8 + $0x1c] ss:$12 sps:$4 sm:$0xff]   ;;  %v1006_v37 = vld [vmem:[%s1123_s8 + $0x20] ss:$12 sps:$4 sm:$0xff]   ;;  %v1009_v38 = vld [vmem:[%s1123_s8 + $0x18] ss:$12 sps:$4 sm:$0xff]  }
  0x34   : > { %883 = vmatprep.subr.bf16.mxu0 %v987_v18  ;;  %931 = vmatprep.mubr.bf16.mxu1 %v1005_v33  ;;  %v307_v59 = vld [vmem:[#allocation2 + $0x10] sm:$0xff]  ;;  %v308_v63 = vld [vmem:[#allocation2 + $0x18] sm:$0xff] }
  0x35   : > { %920 = vmatpush3.bf16.msra.mxu1 %v986_v17 }
  0x36   : > { %921 = vmatprep.subr.bf16.mxu1 %v989_v20 }
  0x37   : > { %884 = vmatpush3.bf16.msra.mxu0 %v988_v19 }
  0x38   : > { %885 = vmatprep.subr.bf16.mxu0 %v990_v21 }
  0x39   : > { %922 = vmatpush3.bf16.msra.mxu1 %v989_v20 }
  0x3a   : > { %923 = vmatprep.subr.bf16.mxu1 %v992_v22 }
  0x3b   : > { %886 = vmatpush3.bf16.msra.mxu0 %v991_v23 }
  0x3c   : > { %887 = vmatprep.subr.bf16.mxu0 %v993_v24 }
  0x3d   : > { %924 = vmatpush3.bf16.msra.mxu1 %v992_v22 }
  0x3e   : > { %925 = vmatprep.subr.bf16.mxu1 %v995_v25 }
  0x3f   : > { %888 = vmatpush3.bf16.msra.mxu0 %v994_v26 }
  0x40   : > { %889 = vmatprep.subr.bf16.mxu0 %v996_v27 }
  0x41   : > { %926 = vmatpush3.bf16.msra.mxu1 %v995_v25 }
  0x42   : > { %927 = vmatprep.subr.bf16.mxu1 %v998_v29 }
  0x43   : > { %890 = vmatpush3.bf16.msra.mxu0 %v997_v28 }
  0x44   : > { %891 = vmatprep.subr.bf16.mxu0 %v999_v30 }
  0x45   : > { %928 = vmatpush3.bf16.msra.mxu1 %v998_v29 }
  0x46   : > { %929 = vmatprep.subr.bf16.mxu1 %v1001_v31 }
  0x47   : > { %892 = vmatpush3.bf16.msra.mxu0 %v1000_v34 }
  0x49   : > { %930 = vmatpush3.bf16.msra.mxu1 %v1001_v31 }
  0x4a   : > { %574 = vmatmul.mubr.bf16.vlgmr.msra.gmra.mrb[0].mxu0 %v1002_v35 }
  0x4b   : > { %581 = vmatprep.mubr.bf16.mxu0 %v1007_v36 }
  0x4c   : > { %932 = vmatmul.mubr.bf16.vlgmr.msra.gmra.mrb[0].mxu1 %v1006_v37 }
  0x52   : > { %582 = vmatmul.mubr.bf16.gmra.mrb[4].mxu0 %v1009_v38 }
 0x11d   : > { %v893_v39 = vpop.f32.mrb[0].mxu0 }
 0x11e   : > { %v894_v40 = vpop.f32.mrb[1].mxu0 }
 0x11f   : > { %v895_v41 = vadd.f32 %v894_v40, %v893_v39  ;;  %v896_v42 = vpop.f32.mrb[2].mxu0  ;;  %v933_v43 = vpop.f32.mrb[0].mxu1 }
 0x120   : > { %v897_v44 = vpop.f32.mrb[3].mxu0  ;;  %v624_v46 = vpop.f32.mrb[1].mxu1 }
 0x121   : > { %v898_v47 = vadd.f32 %v897_v44, %v896_v42  ;;  %v625_v48 = vadd.f32 %v895_v41, %v624_v46  ;;  %v934_v49 = vpop.f32.mrb[2].mxu1 }
 0x122   : > { %v627_v51 = vpop.f32.mrb[3].mxu1 }
 0x123   : > { %v639_v52 = vadd.f32 %v625_v48, %v305_v45  ;;  %v628_v53 = vadd.f32 %v898_v47, %v627_v51 }
 0x125   : > { %643 = vst [vmem:[#allocation2] sm:$0xff] %v639_v52  ;;  %v640_v54 = vadd.f32 %v628_v53, %v306_v50  ;;  %v899_v55 = vpop.f32.mrb[4].mxu0 }
 0x126   : > { %v900_v56 = vpop.f32.mrb[5].mxu0 }
 0x127   : > { %644 = vst [vmem:[#allocation2 + $0x8] sm:$0xff] %v640_v54  ;;  %v901_v57 = vadd.f32 %v900_v56, %v899_v55  ;;  %v902_v58 = vpop.f32.mrb[6].mxu0 }
 0x128   : > { %v903_v60 = vpop.f32.mrb[7].mxu0 }
 0x129   : > { %v633_v61 = vadd.f32 %v933_v43, %v901_v57  ;;  %v904_v62 = vadd.f32 %v903_v60, %v902_v58  ;;  %650 = sbr.rel (%p851_p11) target bundleno = 318 (0x13e), region = 66 }
 0x12b   : > { %v641_v0 = vadd.f32 %v633_v61, %v307_v59  ;;  %v636_v1 = vadd.f32 %v934_v49, %v904_v62 }
 0x12c   : > { %v651_v3 = vld [vmem:[#allocation2] sm:$0xff] (!%p851_p11) }
 0x12d   : > { %645 = vst [vmem:[#allocation2 + $0x10] sm:$0xff] %v641_v0  ;;  %v642_v2 = vadd.f32 %v636_v1, %v308_v63  ;;  %v662_v6 = vadd.f32 (!%p851_p11), %v852_v5, %v651_v3 }
 0x12e   : > { %v652_v4 = vld [vmem:[#allocation2 + $0x8] sm:$0xff] (!%p851_p11) }
 0x12f   : > { %646 = vst [vmem:[#allocation2 + $0x18] sm:$0xff] %v642_v2  ;;  %v663_v7 = vadd.f32 (!%p851_p11), %v852_v5, %v652_v4  ;;  %v666_v12 = vmax.f32 (!%p851_p11), %v662_v6, 0.0 }
 0x131   : > { %v667_v13 = vmax.f32 %v663_v7, 0.0 }
 0x133   : > { %v869_v16 = vpack.c.bf16 %v667_v13, %v666_v12 }
 0x134   : > { %v653_v8 = vld [vmem:[#allocation2 + $0x10] sm:$0xff] }
 0x135   : > { %v664_v10 = vadd.f32 %v852_v5, %v653_v8  ;;  %870 = vst [vmem:[%s1184_s3] sm:$0xff] %v869_v16  }
 0x136   : > { %v654_v9 = vld [vmem:[#allocation2 + $0x18] sm:$0xff] }
 0x137   : > { %v665_v11 = vadd.f32 %v852_v5, %v654_v9  ;;  %v668_v14 = vmax.f32 %v664_v10, 0.0 }
 0x139   : > { %v669_v15 = vmax.f32 %v665_v11, 0.0 }
 0x13b   : > { %v874_v17 = vpack.c.bf16 %v669_v15, %v668_v14 }
 0x13d   : > { %876 = vst [vmem:[%s1184_s3 + $0x8] sm:$0xff] %v874_v17  }
 0x13e PF: > { %s13_s16 = sadd.s32 1, %s1048_s16   ;;  %s1185_s12 = smov %s1036_s13 }
 0x13f   : > { %p10_p12 = scmp.ge.s32.totalorder %s13_s16, 5   ;;  %s1186_s13 = smov %s1106_s20 }
 0x140   : > { %s1187_s14 = smov %s1044_s15  ;;  %s1188_s15 = smov %s1190_s17 }
 0x141   :  { %12 = sbr.rel (!%p10_p12) target bundleno = 3 (0x3), region = 113 }

// kernel: gender_classifier_resnet18_forward.27
= control target key start
LH: loop header
LB: loop body
LE: loop exit
PB: predicated region body
PF: predicated region fallthrough
CT: control target
= control target key end

     0   :  { %s335_s1 = inlined_call_operand.vmem [shape: bf16[128,128], index: 1, kind: input, shape index: {}]   ;;  %s336_s0 = inlined_call_operand.vmem [shape: bf16[32,128], index: 0, kind: input, shape index: {}]   ;;  %s337_s2 = inlined_call_operand.vmem [shape: f32[1,128], index: 2, kind: input, shape index: {}]   ;;  %s338_s3 = inlined_call_operand.vmem [shape: bf16[32,128], index: 3, kind: output, shape index: {}]  }
   0x1   :  { %v266_v0 = vld [vmem:[%s335_s1] sm:$0xff]   ;;  %v267_v1 = vld [vmem:[%s335_s1 + $0x8] sm:$0xff]   ;;  %v268_v2 = vld [vmem:[%s335_s1 + $0x10] sm:$0xff]  }
   0x2   :  { %246 = vmatprep.subr.bf16.mxu0 %v266_v0  ;;  %v269_v3 = vld [vmem:[%s335_s1 + $0x18] sm:$0xff]   ;;  %v274_v4 = vld [vmem:[%s336_s0] sm:$0xff]   ;;  %v271_v6 = vld [vmem:[%s335_s1 + $0x28] sm:$0xff]  }
   0x3   :  { %247 = vmatpush3.bf16.msra.mxu0 %v266_v0  ;;  %262 = vmatprep.mubr.bf16.mxu0 %v274_v4  ;;  %v270_v5 = vld [vmem:[%s335_s1 + $0x20] sm:$0xff]   ;;  %v272_v7 = vld [vmem:[%s335_s1 + $0x30] sm:$0xff]   ;;  %v273_v8 = vld [vmem:[%s335_s1 + $0x38] sm:$0xff]  }
   0x4   :  { %248 = vmatprep.subr.bf16.mxu0 %v267_v1  ;;  %v275_v9 = vld [vmem:[%s336_s0 + $0x8] sm:$0xff]   ;;  %v216_v11 = vld [vmem:[%s337_s2] ss:$0 sm:$0xff] }
   0x7   :  { %249 = vmatpush3.bf16.msra.mxu0 %v267_v1 }
   0x8   :  { %250 = vmatprep.subr.bf16.mxu0 %v268_v2 }
   0xb   :  { %251 = vmatpush3.bf16.msra.mxu0 %v268_v2 }
   0xc   :  { %252 = vmatprep.subr.bf16.mxu0 %v269_v3 }
   0xf   :  { %253 = vmatpush3.bf16.msra.mxu0 %v269_v3 }
  0x10   :  { %254 = vmatprep.subr.bf16.mxu0 %v270_v5 }
  0x13   :  { %255 = vmatpush3.bf16.msra.mxu0 %v270_v5 }
  0x14   :  { %256 = vmatprep.subr.bf16.mxu0 %v271_v6 }
  0x17   :  { %257 = vmatpush3.bf16.msra.mxu0 %v271_v6 }
  0x18   :  { %258 = vmatprep.subr.bf16.mxu0 %v272_v7 }
  0x1b   :  { %259 = vmatpush3.bf16.msra.mxu0 %v272_v7 }
  0x1c   :  { %260 = vmatprep.subr.bf16.mxu0 %v273_v8 }
  0x1f   :  { %261 = vmatpush3.bf16.msra.mxu0 %v273_v8 }
  0x22   :  { %263 = vmatmul.mubr.bf16.vlgmr.msra.gmra.mrb[0].mxu0 %v275_v9 }
  0xf5   :  { %v264_v10 = vpop.f32.mrb[0].mxu0 }
  0xf6   :  { %v141_v12 = vpop.f32.mrb[1].mxu0  ;;  %v180_v14 = vadd.f32 %v264_v10, %v216_v11 }
  0xf7   :  { %v265_v13 = vpop.f32.mrb[2].mxu0  ;;  %v178_v17 = vadd.f32 %v216_v11, %v141_v12 }
  0xf8   :  { %v181_v15 = vadd.f32 %v265_v13, %v216_v11  ;;  %v144_v16 = vpop.f32.mrb[3].mxu0 }
  0xf9   :  { %v179_v18 = vadd.f32 %v216_v11, %v144_v16 }
  0xfa   :  { %v233_v19 = vpack.c.bf16 %v181_v15, %v180_v14 }
  0xfb   :  { %v228_v20 = vpack.c.bf16 %v179_v18, %v178_v17 }
  0xfc   :  { %235 = vst [vmem:[%s338_s3 + $0x8] sm:$0xff] %v233_v19  }
  0xfd   :  { %229 = vst [vmem:[%s338_s3] sm:$0xff] %v228_v20  }

// kernel: gender_classifier_resnet18_forward.28
= control target key start
LH: loop header
LB: loop body
LE: loop exit
PB: predicated region body
PF: predicated region fallthrough
CT: control target
= control target key end

     0   :  { %s1176_s15 = smov 0   ;;  %s1178_s16 = smov 0   ;;  %s1292_s0 = inlined_call_operand.vmem [shape: bf16[32,1152], index: 0, kind: input, shape index: {}]   ;;  %s1293_s1 = inlined_call_operand.vmem [shape: bf16[1152,128], index: 1, kind: input, shape index: {}]   ;;  %s1294_s2 = inlined_call_operand.vmem [shape: f32[1,128], index: 2, kind: input, shape index: {}]   ;;  %s1295_s3 = inlined_call_operand.vmem [shape: bf16[32,128], index: 3, kind: input, shape index: {}]   ;;  %s1296_s4 = inlined_call_operand.vmem [shape: bf16[32,128], index: 4, kind: output, shape index: {}]  }
   0x1   :  { %s1180_s17 = smov 0   ;;  %s1182_s18 = smov 0  }
   0x2   :  { %s1184_s19 = smov 0  }
   0x3 LB: > { %s26_s20 = sadd.s32 1, %s1144_s18  ;;  %p49_p1 = scmp.ne.s32.totalorder %s1136_s16, %s1132_s15  ;;  %s1148_s19 = sphi %s1184_s19, %s14_s19   ;;  %s1144_s18 = sphi %s1182_s18, %s1300_s18   ;;  %s1140_s17 = sphi %s1180_s17, %s1299_s17   ;;  %s1136_s16 = sphi %s1178_s16, %s1298_s16   ;;  %s1132_s15 = sphi %s1176_s15, %s1297_s15  }
   0x4   : > { %p27_p0 = scmp.ge.s32.totalorder %s26_s20, 3  ;;  %p50_p2 = scmp.eq.s32.totalorder %s1148_s19, 0 }
   0x5   : > { %s42_s22 = sadd.s32 1, %s1136_s16  ;;  %p899_p5 = scmp.ge.s32.totalorder %s1148_s19, 3 }
   0x6   : > { %s1302_s20 = smov (%p27_p0, %s26_s20), 0  ;;  %p51_p3 = por %p50_p2, %p49_p1 }
   0x7   : > { %s38_s21 = ssub.s32 %s1144_s18, %s1302_s20  ;;  %203 = sbr.rel (%p899_p5) target bundleno = 23 (0x17), region = 24 }
   0x8   : > { %p40_p4 = scmp.eq.s32.totalorder %s38_s21, 0 }
   0xa   : > { %s1211_s23 = scalar_select %p40_p4, %s1136_s16, %s42_s22  }
   0xe   : > { %206 = sbr.rel (!%p51_p3) target bundleno = 23 (0x17), region = 28  ;;  %s208_s24 = sand.u32 (%p51_p3), 1, %s1136_s16  }
   0xf   : > { %s952_s25 = smul.u32 (%p51_p3), 12, %s1144_s18 }
  0x10   : > { %s1035_s26 = smul.u32 (%p51_p3), 48, %s208_s24 }
  0x11   : > { %s216_s29 = scalar_lea.vmem (%p51_p3), %s1292_s0, %s952_s25 }
  0x12   : > { %v231_v0 = vld [vmem:[%s216_s29] sm:$0xff] (%p51_p3)  ;;  %v235_v2 = vld [vmem:[%s216_s29 + $0x48] sm:$0xff] (%p51_p3)  ;;  %s210_s30 = scalar_lea.vmem (%p51_p3), [#allocation3], %s1035_s26  ;;  %v905_v6 = vld [vmem:[%s216_s29 + $0x50] sm:$0xf] (%p51_p3) }
  0x13   : > { %v233_v1 = vld [vmem:[%s216_s29 + $0x24] sm:$0xff] (%p51_p3)  ;;  %232 = vst [vmem:[%s210_s30] sm:$0xff] (%p51_p3), %v231_v0  ;;  %236 = vst [vmem:[%s210_s30 + $0x18] sm:$0xff] (%p51_p3), %v235_v2  ;;  %v237_v3 = vld [vmem:[%s216_s29 + $0x6c] sm:$0xff] (%p51_p3) }
  0x14   : > { %234 = vst [vmem:[%s210_s30 + $0xc] sm:$0xff] (%p51_p3), %v233_v1  ;;  %v901_v4 = vld [vmem:[%s216_s29 + $0x8] sm:$0xf] (%p51_p3)  ;;  %v903_v5 = vld [vmem:[%s216_s29 + $0x2c] sm:$0xf] (%p51_p3)  ;;  %238 = vst [vmem:[%s210_s30 + $0x24] sm:$0xff] (%p51_p3), %v237_v3 }
  0x15   : > { %902 = vst [vmem:[%s210_s30 + $0x8] sm:$0xf] %v901_v4  ;;  %904 = vst [vmem:[%s210_s30 + $0x14] sm:$0xf] %v903_v5  ;;  %v907_v7 = vld [vmem:[%s216_s29 + $0x74] sm:$0xf] }
  0x16   : > { %906 = vst [vmem:[%s210_s30 + $0x20] sm:$0xf] %v905_v6  ;;  %908 = vst [vmem:[%s210_s30 + $0x2c] sm:$0xf] %v907_v7 }
  0x17 PF: > { %p909_p6 = scmp.ge.s32.totalorder %s1148_s19, 1  ;;  %p270_p7 = scmp.lt.s32.totalorder %s1148_s19, 4 }
  0x19   : > { %p271_p8 = pnand %p909_p6, %p270_p7 }
  0x1a   : > { %s277_s5 = sand.u32 (!%p271_p8), 1, %s1132_s15   ;;  %s326_s6 = smul.u32 (!%p271_p8), 48, %s1140_s17 }
  0x1b   : > { %274 = sbr.rel (%p271_p8) target bundleno = 320 (0x140), region = 58  ;;  %p911_p10 = scmp.ne.s32.totalorder (!%p271_p8), %s1140_s17, 0 }
  0x1c   : > { %s1036_s7 = smul.u32 (!%p271_p8), 48, %s277_s5  ;;  %p327_p9 = scmp.lt.s32.totalorder (!%p271_p8), %s326_s6, 143 }
  0x1e   : > { %s1228_s12 = scalar_lea.vmem (!%p271_p8), [#allocation3], %s1036_s7 }
  0x22   : > { %s1304_s6 = smov (!%p327_p9, %s326_s6), 143  ;;  %360 = sbr.rel (%p911_p10) target bundleno = 41 (0x29), region = 66 }
  0x23   : > { %s910_s8 = sshll.u32 %s1304_s6, 2  ;;  %v1150_v8 = vmov (!%p911_p10), 0.0  }
  0x24   : > { %s1226_s11 = scalar_lea.vmem %s1293_s1, %s910_s8  ;;  %361 = vst [vmem:[#allocation2] sm:$0xff] (!%p911_p10), %v1150_v8  ;;  %362 = vst [vmem:[#allocation2 + $0x8] sm:$0xff] (!%p911_p10), %v1150_v8 }
  0x25   : > { %363 = vst [vmem:[#allocation2 + $0x10] sm:$0xff] (!%p911_p10), %v1150_v8  ;;  %364 = vst [vmem:[#allocation2 + $0x18] sm:$0xff] (!%p911_p10), %v1150_v8 }
  0x29 PF: > { %v1078_v9 = vld [vmem:[%s1226_s11 + $0x40] sm:$0xff]   ;;  %v1081_v12 = vld [vmem:[%s1226_s11 + $0x48] sm:$0xff]   ;;  %v1084_v15 = vld [vmem:[%s1226_s11 + $0x50] sm:$0xff]   ;;  %p942_p11 = scmp.ne.s32.totalorder %s1140_s17, 2 }
  0x2a   : > { %v1079_v10 = vld [vmem:[%s1226_s11] sm:$0xff]   ;;  %977 = vmatprep.subr.bf16.mxu0 %v1078_v9  ;;  %v1082_v13 = vld [vmem:[%s1226_s11 + $0x8] sm:$0xff]   ;;  %v1085_v16 = vld [vmem:[%s1226_s11 + $0x10] sm:$0xff]  }
  0x2b   : > { %v1080_v11 = vld [vmem:[%s1226_s11 + $0x80] sm:$0xff]   ;;  %978 = vmatpush3.bf16.msra.mxu0 %v1079_v10  ;;  %v1083_v14 = vld [vmem:[%s1226_s11 + $0x88] sm:$0xff]   ;;  %v1086_v17 = vld [vmem:[%s1226_s11 + $0x90] sm:$0xff]  }
  0x2c   : > { %1015 = vmatprep.subr.bf16.mxu1 %v1080_v11  ;;  %979 = vmatprep.subr.bf16.mxu0 %v1081_v12  ;;  %v1087_v18 = vld [vmem:[%s1226_s11 + $0x58] sm:$0xff]   ;;  %v1090_v21 = vld [vmem:[%s1226_s11 + $0x60] sm:$0xff]   ;;  %v1093_v24 = vld [vmem:[%s1226_s11 + $0x68] sm:$0xff]  }
  0x2d   : > { %1016 = vmatpush3.bf16.msra.mxu1 %v1080_v11  ;;  %v1088_v19 = vld [vmem:[%s1226_s11 + $0x18] sm:$0xff]   ;;  %v1092_v22 = vld [vmem:[%s1226_s11 + $0xa0] sm:$0xff]   ;;  %v1095_v25 = vld [vmem:[%s1226_s11 + $0xa8] sm:$0xff]  }
  0x2e   : > { %1017 = vmatprep.subr.bf16.mxu1 %v1083_v14  ;;  %v1089_v20 = vld [vmem:[%s1226_s11 + $0x98] sm:$0xff]   ;;  %v1091_v23 = vld [vmem:[%s1226_s11 + $0x20] sm:$0xff]   ;;  %v1094_v26 = vld [vmem:[%s1226_s11 + $0x28] sm:$0xff]  }
  0x2f   : > { %980 = vmatpush3.bf16.msra.mxu0 %v1082_v13  ;;  %v1096_v27 = vld [vmem:[%s1226_s11 + $0x70] sm:$0xff]   ;;  %v1099_v30 = vld [vmem:[%s1226_s11 + $0x78] sm:$0xff]   ;;  %v365_v45 = vld [vmem:[#allocation2] sm:$0xff] }
  0x30   : > { %981 = vmatprep.subr.bf16.mxu0 %v1084_v15  ;;  %v1097_v28 = vld [vmem:[%s1226_s11 + $0x30] sm:$0xff]   ;;  %v1101_v31 = vld [vmem:[%s1226_s11 + $0xb8] sm:$0xff]   ;;  %v366_v50 = vld [vmem:[#allocation2 + $0x8] sm:$0xff] }
  0x31   : > { %1018 = vmatpush3.bf16.msra.mxu1 %v1083_v14  ;;  %v1098_v29 = vld [vmem:[%s1226_s11 + $0xb0] sm:$0xff]   ;;  %v1100_v34 = vld [vmem:[%s1226_s11 + $0x38] sm:$0xff]   ;;  %v943_v5 = vld [vmem:[%s1294_s2] ss:$0 sm:$0xff] (!%p942_p11) }
  0x32   : > { %1019 = vmatprep.subr.bf16.mxu1 %v1086_v17  ;;  %v1104_v32 = vld [vmem:[%s1228_s12 + $0x4] ss:$12 sps:$4 sm:$0xff]   ;;  %v1105_v33 = vld [vmem:[%s1228_s12 + $0x8] ss:$12 sps:$4 sm:$0xff]   ;;  %v1102_v35 = vld [vmem:[%s1228_s12] ss:$12 sps:$4 sm:$0xff]  }
  0x33   : > { %982 = vmatpush3.bf16.msra.mxu0 %v1085_v16  ;;  %633 = vmatprep.mubr.bf16.mxu0 %v1104_v32  ;;  %v1107_v36 = vld [vmem:[%s1228_s12 + $0x1c] ss:$12 sps:$4 sm:$0xff]   ;;  %v1106_v37 = vld [vmem:[%s1228_s12 + $0x20] ss:$12 sps:$4 sm:$0xff]   ;;  %v1109_v38 = vld [vmem:[%s1228_s12 + $0x18] ss:$12 sps:$4 sm:$0xff]  }
  0x34   : > { %983 = vmatprep.subr.bf16.mxu0 %v1087_v18  ;;  %1031 = vmatprep.mubr.bf16.mxu1 %v1105_v33  ;;  %v367_v59 = vld [vmem:[#allocation2 + $0x10] sm:$0xff]  ;;  %v368_v63 = vld [vmem:[#allocation2 + $0x18] sm:$0xff]  ;;  %v958_v8 = vld [vmem:[%s1295_s3] sm:$0xff] (!%p942_p11)  }
  0x35   : > { %1020 = vmatpush3.bf16.msra.mxu1 %v1086_v17  ;;  %v959_v11 = vunpack.c.l.bf16 (!%p942_p11), %v958_v8  ;;  %v960_v12 = vunpack.c.h.bf16 (!%p942_p11), %v958_v8  ;;  %v975_v15 = vld [vmem:[%s1295_s3 + $0x8] sm:$0xff] (!%p942_p11)  }
  0x36   : > { %1021 = vmatprep.subr.bf16.mxu1 %v1089_v20  ;;  %v963_v16 = vunpack.c.l.bf16 (!%p942_p11), %v975_v15  ;;  %v964_v17 = vunpack.c.h.bf16 (!%p942_p11), %v975_v15 }
  0x37   : > { %984 = vmatpush3.bf16.msra.mxu0 %v1088_v19 }
  0x38   : > { %985 = vmatprep.subr.bf16.mxu0 %v1090_v21 }
  0x39   : > { %1022 = vmatpush3.bf16.msra.mxu1 %v1089_v20 }
  0x3a   : > { %1023 = vmatprep.subr.bf16.mxu1 %v1092_v22 }
  0x3b   : > { %986 = vmatpush3.bf16.msra.mxu0 %v1091_v23 }
  0x3c   : > { %987 = vmatprep.subr.bf16.mxu0 %v1093_v24 }
  0x3d   : > { %1024 = vmatpush3.bf16.msra.mxu1 %v1092_v22 }
  0x3e   : > { %1025 = vmatprep.subr.bf16.mxu1 %v1095_v25 }
  0x3f   : > { %988 = vmatpush3.bf16.msra.mxu0 %v1094_v26 }
  0x40   : > { %989 = vmatprep.subr.bf16.mxu0 %v1096_v27 }
  0x41   : > { %1026 = vmatpush3.bf16.msra.mxu1 %v1095_v25 }
  0x42   : > { %1027 = vmatprep.subr.bf16.mxu1 %v1098_v29 }
  0x43   : > { %990 = vmatpush3.bf16.msra.mxu0 %v1097_v28 }
  0x44   : > { %991 = vmatprep.subr.bf16.mxu0 %v1099_v30 }
  0x45   : > { %1028 = vmatpush3.bf16.msra.mxu1 %v1098_v29 }
  0x46   : > { %1029 = vmatprep.subr.bf16.mxu1 %v1101_v31 }
  0x47   : > { %992 = vmatpush3.bf16.msra.mxu0 %v1100_v34 }
  0x49   : > { %1030 = vmatpush3.bf16.msra.mxu1 %v1101_v31 }
  0x4a   : > { %634 = vmatmul.mubr.bf16.vlgmr.msra.gmra.mrb[0].mxu0 %v1102_v35 }
  0x4b   : > { %641 = vmatprep.mubr.bf16.mxu0 %v1107_v36 }
  0x4c   : > { %1032 = vmatmul.mubr.bf16.vlgmr.msra.gmra.mrb[0].mxu1 %v1106_v37 }
  0x52   : > { %642 = vmatmul.mubr.bf16.gmra.mrb[4].mxu0 %v1109_v38 }
 0x11d   : > { %v993_v39 = vpop.f32.mrb[0].mxu0 }
 0x11e   : > { %v994_v40 = vpop.f32.mrb[1].mxu0 }
 0x11f   : > { %v995_v41 = vadd.f32 %v994_v40, %v993_v39  ;;  %v996_v42 = vpop.f32.mrb[2].mxu0  ;;  %v1033_v43 = vpop.f32.mrb[0].mxu1 }
 0x120   : > { %v997_v44 = vpop.f32.mrb[3].mxu0  ;;  %v684_v46 = vpop.f32.mrb[1].mxu1 }
 0x121   : > { %v998_v47 = vadd.f32 %v997_v44, %v996_v42  ;;  %v685_v48 = vadd.f32 %v995_v41, %v684_v46  ;;  %v1034_v49 = vpop.f32.mrb[2].mxu1 }
 0x122   : > { %v687_v51 = vpop.f32.mrb[3].mxu1 }
 0x123   : > { %v699_v52 = vadd.f32 %v685_v48, %v365_v45  ;;  %v688_v53 = vadd.f32 %v998_v47, %v687_v51 }
 0x125   : > { %703 = vst [vmem:[#allocation2] sm:$0xff] %v699_v52  ;;  %v700_v54 = vadd.f32 %v688_v53, %v366_v50  ;;  %v999_v55 = vpop.f32.mrb[4].mxu0 }
 0x126   : > { %v1000_v56 = vpop.f32.mrb[5].mxu0 }
 0x127   : > { %704 = vst [vmem:[#allocation2 + $0x8] sm:$0xff] %v700_v54  ;;  %v1001_v57 = vadd.f32 %v1000_v56, %v999_v55  ;;  %v1002_v58 = vpop.f32.mrb[6].mxu0 }
 0x128   : > { %v1003_v60 = vpop.f32.mrb[7].mxu0 }
 0x129   : > { %v693_v61 = vadd.f32 %v1033_v43, %v1001_v57  ;;  %v1004_v62 = vadd.f32 %v1003_v60, %v1002_v58  ;;  %710 = sbr.rel (%p942_p11) target bundleno = 320 (0x140), region = 70 }
 0x12b   : > { %v701_v0 = vadd.f32 %v693_v61, %v367_v59  ;;  %v696_v1 = vadd.f32 %v1034_v49, %v1004_v62 }
 0x12c   : > { %v711_v3 = vld [vmem:[#allocation2] sm:$0xff] (!%p942_p11) }
 0x12d   : > { %705 = vst [vmem:[#allocation2 + $0x10] sm:$0xff] %v701_v0  ;;  %v702_v2 = vadd.f32 %v696_v1, %v368_v63  ;;  %v722_v6 = vadd.f32 (!%p942_p11), %v943_v5, %v711_v3 }
 0x12e   : > { %v712_v4 = vld [vmem:[#allocation2 + $0x8] sm:$0xff] (!%p942_p11) }
 0x12f   : > { %706 = vst [vmem:[#allocation2 + $0x18] sm:$0xff] %v702_v2  ;;  %v723_v7 = vadd.f32 (!%p942_p11), %v943_v5, %v712_v4  ;;  %v734_v18 = vadd.f32 (!%p942_p11), %v959_v11, %v722_v6 }
 0x131   : > { %v735_v19 = vadd.f32 %v960_v12, %v723_v7  ;;  %v738_v22 = vmax.f32 %v734_v18, 0.0 }
 0x133   : > { %v739_v23 = vmax.f32 %v735_v19, 0.0 }
 0x134   : > { %v713_v9 = vld [vmem:[#allocation2 + $0x10] sm:$0xff] }
 0x135   : > { %v724_v13 = vadd.f32 %v943_v5, %v713_v9  ;;  %v968_v26 = vpack.c.bf16 %v739_v23, %v738_v22 }
 0x136   : > { %v714_v10 = vld [vmem:[#allocation2 + $0x18] sm:$0xff] }
 0x137   : > { %v725_v14 = vadd.f32 %v943_v5, %v714_v10  ;;  %v736_v20 = vadd.f32 %v963_v16, %v724_v13  ;;  %969 = vst [vmem:[%s1296_s4] sm:$0xff] %v968_v26  }
 0x139   : > { %v737_v21 = vadd.f32 %v964_v17, %v725_v14  ;;  %v740_v24 = vmax.f32 %v736_v20, 0.0 }
 0x13b   : > { %v741_v25 = vmax.f32 %v737_v21, 0.0 }
 0x13d   : > { %v973_v27 = vpack.c.bf16 %v741_v25, %v740_v24 }
 0x13f   : > { %976 = vst [vmem:[%s1296_s4 + $0x8] sm:$0xff] %v973_v27  }
 0x140 PF: > { %s14_s19 = sadd.s32 1, %s1148_s19   ;;  %s1297_s15 = smov %s1136_s16 }
 0x141   : > { %p11_p12 = scmp.ge.s32.totalorder %s14_s19, 5   ;;  %s1298_s16 = smov %s1211_s23 }
 0x142   : > { %s1299_s17 = smov %s1144_s18  ;;  %s1300_s18 = smov %s1302_s20 }
 0x143   :  { %13 = sbr.rel (!%p11_p12) target bundleno = 3 (0x3), region = 120 }

// kernel: gender_classifier_resnet18_forward.31
= control target key start
LH: loop header
LB: loop body
LE: loop exit
PB: predicated region body
PF: predicated region fallthrough
CT: control target
= control target key end

     0   :  { %s1036_s12 = smov 0   ;;  %s1038_s13 = smov 0   ;;  %s1135_s0 = inlined_call_operand.vmem [shape: bf16[8,1152], index: 0, kind: input, shape index: {}]   ;;  %s1136_s1 = inlined_call_operand.vmem [shape: bf16[1152,256], index: 1, kind: input, shape index: {}]   ;;  %s1137_s2 = inlined_call_operand.vmem [shape: f32[1,256], index: 2, kind: input, shape index: {}]   ;;  %s1138_s3 = inlined_call_operand.vmem [shape: bf16[8,256], index: 3, kind: output, shape index: {}]  }
   0x1   :  { %s1040_s14 = smov 0  }
   0x2 LB: > { %s25_s15 = sadd.s32 1, %s1008_s13  ;;  %p825_p0 = scmp.ge.s32.totalorder %s1012_s14, 1  ;;  %s1012_s14 = sphi %s1040_s14, %s13_s14   ;;  %s1008_s13 = sphi %s1038_s13, %s1140_s13   ;;  %s1004_s12 = sphi %s1036_s12, %s1139_s12  }
   0x3   : > { %p26_p1 = scmp.ge.s32.totalorder %s25_s15, 3  ;;  %p194_p2 = scmp.lt.s32.totalorder %s1012_s14, 4 }
   0x5   : > { %s1142_s15 = smov (%p26_p1, %s25_s15), 0  ;;  %p195_p3 = pnand %p825_p0, %p194_p2 }
   0x6   : > { %s240_s16 = smul.u32 (!%p195_p3), 3, %s1004_s12  ;;  %p829_p6 = scmp.ne.s32.totalorder (!%p195_p3), %s1004_s12, 0 }
   0x7   : > { %198 = sbr.rel (%p195_p3) target bundleno = 321 (0x141), region = 32 }
   0x8   : > { %s250_s17 = smul.u32 (!%p195_p3), 48, %s1004_s12  ;;  %p243_p4 = scmp.lt.s32.totalorder (!%p195_p3), %s240_s16, 8 }
   0xa   : > { %p252_p5 = scmp.lt.s32.totalorder (!%p195_p3), %s250_s17, 143 }
   0xe   : > { %s1144_s16 = smov (!%p243_p4, %s240_s16), 8  ;;  %s1146_s17 = smov (!%p252_p5, %s250_s17), 143 }
   0xf   : > { %s826_s18 = sshll.u32 %s1144_s16, 2  ;;  %s887_s22 = sshll.u32 %s1146_s17, 3  ;;  %v1014_v0 = vmov (!%p829_p6), 0.0  }
  0x10   : > { %s1061_s21 = scalar_lea.vmem %s1135_s0, %s826_s18  ;;  %s1066_s25 = scalar_lea.vmem %s1136_s1, %s887_s22  ;;  %282 = vst [vmem:[#allocation2] sm:$0xff] (!%p829_p6), %v1014_v0  ;;  %283 = vst [vmem:[#allocation2 + $0x8] sm:$0xff] (!%p829_p6), %v1014_v0 }
  0x11   : > { %281 = sbr.rel (%p829_p6) target bundleno = 24 (0x18), region = 36 }
  0x18 PF: > { %v915_v1 = vld [vmem:[%s1066_s25 + $0x4] ss:$8 sps:$4 sm:$0xff]   ;;  %v917_v2 = vld [vmem:[%s1066_s25] ss:$8 sps:$4 sm:$0xff]   ;;  %v1015_v3 = vmov 0   ;;  %p881_p7 = scmp.ne.s32.totalorder %s1004_s12, 2 }
  0x19   : > { %660 = vmatprep.mubr.bf16.mxu1 %v1015_v3  ;;  %587 = vmatprep.subr.bf16.mxu0 %v915_v1  ;;  %v918_v4 = vld [vmem:[%s1066_s25 + $0x14] ss:$8 sps:$4 sm:$0xff]   ;;  %v920_v5 = vld [vmem:[%s1066_s25 + $0x10] ss:$8 sps:$4 sm:$0xff]   ;;  %v921_v6 = vld [vmem:[%s1066_s25 + $0x24] ss:$8 sps:$4 sm:$0xff]  }
  0x1a   : > { %588 = vmatpush1.bf16.msra.mxu0 %v917_v2  ;;  %v923_v7 = vld [vmem:[%s1066_s25 + $0x20] ss:$8 sps:$4 sm:$0xff]   ;;  %v924_v8 = vld [vmem:[%s1066_s25 + $0x34] ss:$8 sps:$4 sm:$0xff]   ;;  %v926_v9 = vld [vmem:[%s1066_s25 + $0x30] ss:$8 sps:$4 sm:$0xff]  }
  0x1b   : > { %589 = vmatprep.subr.bf16.mxu0 %v918_v4  ;;  %v939_v10 = vld [vmem:[%s1066_s25 + $0x104] ss:$8 sps:$4 sm:$0xff]   ;;  %v941_v11 = vld [vmem:[%s1066_s25 + $0x100] ss:$8 sps:$4 sm:$0xff]   ;;  %v945_v13 = vld [vmem:[%s1066_s25 + $0x114] ss:$8 sps:$4 sm:$0xff]   ;;  %v681_v4 = vlaneseq (!%p881_p7) }
  0x1c   : > { %v927_v12 = vld [vmem:[%s1066_s25 + $0x44] ss:$8 sps:$4 sm:$0xff]   ;;  %628 = vmatprep.subr.bf16.mxu1 %v939_v10  ;;  %v947_v14 = vld [vmem:[%s1066_s25 + $0x110] ss:$8 sps:$4 sm:$0xff]   ;;  %v929_v15 = vld [vmem:[%s1066_s25 + $0x40] ss:$8 sps:$4 sm:$0xff]  }
  0x1d   : > { %629 = vmatpush1.bf16.msra.mxu1 %v941_v11  ;;  %v930_v16 = vld [vmem:[%s1066_s25 + $0x54] ss:$8 sps:$4 sm:$0xff]   ;;  %v951_v17 = vld [vmem:[%s1066_s25 + $0x124] ss:$8 sps:$4 sm:$0xff]   ;;  %v953_v18 = vld [vmem:[%s1066_s25 + $0x120] ss:$8 sps:$4 sm:$0xff]  }
  0x1e   : > { %590 = vmatpush1.bf16.msra.mxu0 %v920_v5  ;;  %630 = vmatprep.subr.bf16.mxu1 %v945_v13  ;;  %v932_v19 = vld [vmem:[%s1066_s25 + $0x50] ss:$8 sps:$4 sm:$0xff]   ;;  %v957_v20 = vld [vmem:[%s1066_s25 + $0x134] ss:$8 sps:$4 sm:$0xff]   ;;  %v933_v21 = vld [vmem:[%s1066_s25 + $0x64] ss:$8 sps:$4 sm:$0xff]  }
  0x1f   : > { %591 = vmatprep.subr.bf16.mxu0 %v921_v6  ;;  %v959_v22 = vld [vmem:[%s1066_s25 + $0x130] ss:$8 sps:$4 sm:$0xff]   ;;  %v935_v23 = vld [vmem:[%s1066_s25 + $0x60] ss:$8 sps:$4 sm:$0xff]   ;;  %v963_v24 = vld [vmem:[%s1066_s25 + $0x144] ss:$8 sps:$4 sm:$0xff]  }
  0x20   : > { %v936_v25 = vld [vmem:[%s1066_s25 + $0x74] ss:$8 sps:$4 sm:$0xff]   ;;  %v965_v26 = vld [vmem:[%s1066_s25 + $0x140] ss:$8 sps:$4 sm:$0xff]   ;;  %v938_v27 = vld [vmem:[%s1066_s25 + $0x70] ss:$8 sps:$4 sm:$0xff]  }
  0x21   : > { %631 = vmatpush1.bf16.msra.mxu1 %v947_v14  ;;  %v969_v28 = vld [vmem:[%s1066_s25 + $0x154] ss:$8 sps:$4 sm:$0xff]   ;;  %v942_v29 = vld [vmem:[%s1066_s25 + $0x84] ss:$8 sps:$4 sm:$0xff]   ;;  %v971_v30 = vld [vmem:[%s1066_s25 + $0x150] ss:$8 sps:$4 sm:$0xff]  }
  0x22   : > { %592 = vmatpush1.bf16.msra.mxu0 %v923_v7  ;;  %632 = vmatprep.subr.bf16.mxu1 %v951_v17  ;;  %v944_v31 = vld [vmem:[%s1066_s25 + $0x80] ss:$8 sps:$4 sm:$0xff]   ;;  %v975_v32 = vld [vmem:[%s1066_s25 + $0x164] ss:$8 sps:$4 sm:$0xff]   ;;  %v948_v33 = vld [vmem:[%s1066_s25 + $0x94] ss:$8 sps:$4 sm:$0xff]  }
  0x23   : > { %593 = vmatprep.subr.bf16.mxu0 %v924_v8  ;;  %v286_v34 = vld [vmem:[%s1061_s21] sm:$0xff]  ;;  %v950_v37 = vld [vmem:[%s1066_s25 + $0x90] ss:$8 sps:$4 sm:$0xff]   ;;  %v981_v38 = vld [vmem:[%s1066_s25 + $0x174] ss:$8 sps:$4 sm:$0xff]   ;;  %v682_v5 = vshrl.u32 (!%p881_p7), %v681_v4, 7 }
  0x24   : > { %v831_v35 = vcombine.high %v286_v34, %v286_v34  ;;  %v977_v36 = vld [vmem:[%s1066_s25 + $0x160] ss:$8 sps:$4 sm:$0xff]   ;;  %v954_v39 = vld [vmem:[%s1066_s25 + $0xa4] ss:$8 sps:$4 sm:$0xff]   ;;  %v983_v40 = vld [vmem:[%s1066_s25 + $0x170] ss:$8 sps:$4 sm:$0xff]   ;;  %v830_v53 = vcombine.low %v286_v34, %v286_v34 }
  0x25   : > { %633 = vmatpush1.bf16.msra.mxu1 %v953_v18  ;;  %v956_v41 = vld [vmem:[%s1066_s25 + $0xa0] ss:$8 sps:$4 sm:$0xff]   ;;  %v960_v42 = vld [vmem:[%s1066_s25 + $0xb4] ss:$8 sps:$4 sm:$0xff]   ;;  %v962_v44 = vld [vmem:[%s1066_s25 + $0xb0] ss:$8 sps:$4 sm:$0xff]  }
  0x26   : > { %594 = vmatpush1.bf16.msra.mxu0 %v926_v9  ;;  %634 = vmatprep.subr.bf16.mxu1 %v957_v20  ;;  %v987_v43 = vld [vmem:[%s1061_s21 + $0x8] ss:$0 sps:$4 sm:$0xff]   ;;  %v966_v45 = vld [vmem:[%s1066_s25 + $0xc4] ss:$8 sps:$4 sm:$0xff]   ;;  %v972_v47 = vld [vmem:[%s1066_s25 + $0xd4] ss:$8 sps:$4 sm:$0xff]  }
  0x27   : > { %595 = vmatprep.subr.bf16.mxu0 %v927_v12  ;;  %619 = vmatprep.mubr.bf16.mxu0 %v831_v35  ;;  %v968_v46 = vld [vmem:[%s1066_s25 + $0xc0] ss:$8 sps:$4 sm:$0xff]   ;;  %v974_v48 = vld [vmem:[%s1066_s25 + $0xd0] ss:$8 sps:$4 sm:$0xff]   ;;  %v978_v49 = vld [vmem:[%s1066_s25 + $0xe4] ss:$8 sps:$4 sm:$0xff]  }
  0x28   : > { %v980_v50 = vld [vmem:[%s1066_s25 + $0xe0] ss:$8 sps:$4 sm:$0xff]   ;;  %v984_v51 = vld [vmem:[%s1066_s25 + $0xf4] ss:$8 sps:$4 sm:$0xff]   ;;  %v986_v52 = vld [vmem:[%s1066_s25 + $0xf0] ss:$8 sps:$4 sm:$0xff]  }
  0x29   : > { %635 = vmatpush1.bf16.msra.mxu1 %v959_v22  ;;  %v284_v58 = vld [vmem:[#allocation2] sm:$0xff]  ;;  %v285_v61 = vld [vmem:[#allocation2 + $0x8] sm:$0xff]  ;;  %v683_v7 = vsub.s32 (!%p881_p7), 0, %v682_v5  ;;  %v687_v8 = vsub.s32 (!%p881_p7), 1, %v682_v5 }
  0x2a   : > { %596 = vmatpush1.bf16.msra.mxu0 %v929_v15  ;;  %636 = vmatprep.subr.bf16.mxu1 %v963_v24  ;;  %v679_v6 = vld [vmem:[%s1137_s2] sm:$0x3] (!%p881_p7) }
  0x2b   : > { %597 = vmatprep.subr.bf16.mxu0 %v930_v16  ;;  %v684_v11 = vrot.slane (!%p881_p7), %v679_v6, %v683_v7  ;;  %v688_v12 = vrot.slane (!%p881_p7), %v679_v6, %v687_v8 }
  0x2d   : > { %637 = vmatpush1.bf16.msra.mxu1 %v965_v26 }
  0x2e   : > { %598 = vmatpush1.bf16.msra.mxu0 %v932_v19  ;;  %638 = vmatprep.subr.bf16.mxu1 %v969_v28 }
  0x2f   : > { %599 = vmatprep.subr.bf16.mxu0 %v933_v21 }
  0x31   : > { %639 = vmatpush1.bf16.msra.mxu1 %v971_v30 }
  0x32   : > { %600 = vmatpush1.bf16.msra.mxu0 %v935_v23  ;;  %640 = vmatprep.subr.bf16.mxu1 %v975_v32 }
  0x33   : > { %601 = vmatprep.subr.bf16.mxu0 %v936_v25 }
  0x35   : > { %641 = vmatpush1.bf16.msra.mxu1 %v977_v36 }
  0x36   : > { %602 = vmatpush1.bf16.msra.mxu0 %v938_v27  ;;  %642 = vmatprep.subr.bf16.mxu1 %v981_v38 }
  0x37   : > { %603 = vmatprep.subr.bf16.mxu0 %v942_v29 }
  0x39   : > { %643 = vmatpush1.bf16.msra.mxu1 %v983_v40 }
  0x3a   : > { %604 = vmatpush1.bf16.msra.mxu0 %v944_v31 }
  0x3b   : > { %605 = vmatprep.subr.bf16.mxu0 %v948_v33 }
  0x3c   : > { %661 = vmatmul.mubr.bf16.vlgmr.msra.gmra.mrb[0].mxu1 %v987_v43 }
  0x3e   : > { %606 = vmatpush1.bf16.msra.mxu0 %v950_v37 }
  0x3f   : > { %607 = vmatprep.subr.bf16.mxu0 %v954_v39 }
  0x42   : > { %608 = vmatpush1.bf16.msra.mxu0 %v956_v41 }
  0x43   : > { %609 = vmatprep.subr.bf16.mxu0 %v960_v42 }
  0x46   : > { %610 = vmatpush1.bf16.msra.mxu0 %v962_v44 }
  0x47   : > { %611 = vmatprep.subr.bf16.mxu0 %v966_v45 }
  0x4a   : > { %612 = vmatpush1.bf16.msra.mxu0 %v968_v46 }
  0x4b   : > { %613 = vmatprep.subr.bf16.mxu0 %v972_v47 }
  0x4e   : > { %614 = vmatpush1.bf16.msra.mxu0 %v974_v48 }
  0x4f   : > { %615 = vmatprep.subr.bf16.mxu0 %v978_v49 }
  0x52   : > { %616 = vmatpush1.bf16.msra.mxu0 %v980_v50 }
  0x53   : > { %617 = vmatprep.subr.bf16.mxu0 %v984_v51 }
  0x56   : > { %618 = vmatpush1.bf16.msra.mxu0 %v986_v52 }
  0x59   : > { %620 = vmatmul.mubr.bf16.vlgmr.msra.gmra.mrb[0].mxu0 %v830_v53 }
 0x10f   : > { %v662_v54 = vpop.f32.mrb[0].mxu1 }
 0x110   : > { %v664_v55 = vpop.f32.mrb[1].mxu1 }
 0x111   : > { %v666_v56 = vpop.f32.mrb[2].mxu1 }
 0x112   : > { %v667_v57 = vpop.f32.mrb[3].mxu1 }
 0x12c   : > { %v621_v59 = vpop.f32.mrb[0].mxu0  ;;  %676 = sbr.rel (%p881_p7) target bundleno = 321 (0x141), region = 40 }
 0x12d   : > { %v663_v60 = vadd.f32 %v662_v54, %v621_v59  ;;  %v623_v62 = vpop.f32.mrb[1].mxu0 }
 0x12e   : > { %v665_v63 = vadd.f32 %v664_v55, %v623_v62  ;;  %v625_v0 = vpop.f32.mrb[2].mxu0 }
 0x12f   : > { %v669_v1 = vadd.f32 %v663_v60, %v284_v58  ;;  %v626_v2 = vpop.f32.mrb[3].mxu0 }
 0x130   : > { %v670_v3 = vadd.f32 %v665_v63, %v285_v61 }
 0x131   : > { %671 = vst [vmem:[#allocation2] sm:$0xff] %v669_v1 }
 0x132   : > { %672 = vst [vmem:[#allocation2 + $0x8] sm:$0xff] %v670_v3 }
 0x138   : > { %v677_v9 = vld [vmem:[#allocation2] sm:$0xff] }
 0x139   : > { %v678_v10 = vld [vmem:[#allocation2 + $0x8] sm:$0xff]  ;;  %v691_v13 = vadd.f32 %v684_v11, %v677_v9 }
 0x13a   : > { %v692_v14 = vadd.f32 %v688_v12, %v678_v10 }
 0x13b   : > { %v693_v15 = vmax.f32 %v691_v13, 0.0 }
 0x13c   : > { %v694_v16 = vmax.f32 %v692_v14, 0.0 }
 0x13e   : > { %v888_v17 = vpack.c.bf16 %v694_v16, %v693_v15 }
 0x140   : > { %703 = vst [vmem:[%s1138_s3] sm:$0xff] %v888_v17 }
 0x141 PF: > { %s13_s14 = sadd.s32 1, %s1012_s14   ;;  %s1139_s12 = smov %s1008_s13 }
 0x142   : > { %p10_p8 = scmp.ge.s32.totalorder %s13_s14, 5   ;;  %s1140_s13 = smov %s1142_s15 }
 0x144   :  { %12 = sbr.rel (!%p10_p8) target bundleno = 2 (0x2), region = 76 }

// kernel: gender_classifier_resnet18_forward.32
= control target key start
LH: loop header
LB: loop body
LE: loop exit
PB: predicated region body
PF: predicated region fallthrough
CT: control target
= control target key end

     0   :  { %v240_v1 = vmov 0   ;;  %v172_v18 = vlaneseq  ;;  %s318_s1 = inlined_call_operand.vmem [shape: bf16[128,256], index: 1, kind: input, shape index: {}]   ;;  %s319_s0 = inlined_call_operand.vmem [shape: bf16[8,128], index: 0, kind: input, shape index: {}]   ;;  %s320_s2 = inlined_call_operand.vmem [shape: f32[1,256], index: 2, kind: input, shape index: {}]   ;;  %s321_s3 = inlined_call_operand.vmem [shape: bf16[8,256], index: 3, kind: output, shape index: {}]  }
   0x1   :  { %v216_v0 = vld [vmem:[%s318_s1 + $0x4] ss:$8 sps:$4 sm:$0xff]   ;;  %152 = vmatprep.mubr.bf16.mxu0 %v240_v1  ;;  %v218_v2 = vld [vmem:[%s318_s1] ss:$8 sps:$4 sm:$0xff]   ;;  %v219_v3 = vld [vmem:[%s318_s1 + $0x14] ss:$8 sps:$4 sm:$0xff]  }
   0x2   :  { %120 = vmatprep.subr.bf16.mxu0 %v216_v0  ;;  %v221_v4 = vld [vmem:[%s318_s1 + $0x10] ss:$8 sps:$4 sm:$0xff]   ;;  %v222_v5 = vld [vmem:[%s318_s1 + $0x24] ss:$8 sps:$4 sm:$0xff]   ;;  %v224_v6 = vld [vmem:[%s318_s1 + $0x20] ss:$8 sps:$4 sm:$0xff]  }
   0x3   :  { %121 = vmatpush1.bf16.msra.mxu0 %v218_v2  ;;  %v225_v7 = vld [vmem:[%s318_s1 + $0x34] ss:$8 sps:$4 sm:$0xff]   ;;  %v227_v8 = vld [vmem:[%s318_s1 + $0x30] ss:$8 sps:$4 sm:$0xff]   ;;  %v228_v9 = vld [vmem:[%s318_s1 + $0x44] ss:$8 sps:$4 sm:$0xff]  }
   0x4   :  { %122 = vmatprep.subr.bf16.mxu0 %v219_v3  ;;  %v230_v10 = vld [vmem:[%s318_s1 + $0x40] ss:$8 sps:$4 sm:$0xff]   ;;  %v231_v11 = vld [vmem:[%s318_s1 + $0x54] ss:$8 sps:$4 sm:$0xff]   ;;  %v233_v12 = vld [vmem:[%s318_s1 + $0x50] ss:$8 sps:$4 sm:$0xff]  }
   0x5   :  { %v234_v13 = vld [vmem:[%s318_s1 + $0x64] ss:$8 sps:$4 sm:$0xff]   ;;  %v236_v14 = vld [vmem:[%s318_s1 + $0x60] ss:$8 sps:$4 sm:$0xff]   ;;  %v237_v15 = vld [vmem:[%s318_s1 + $0x74] ss:$8 sps:$4 sm:$0xff]  }
   0x6   :  { %v239_v16 = vld [vmem:[%s318_s1 + $0x70] ss:$8 sps:$4 sm:$0xff]   ;;  %v23_v17 = vld [vmem:[%s319_s0] sm:$0xf]  ;;  %v173_v19 = vshrl.u32 %v172_v18, 7 }
   0x7   :  { %123 = vmatpush1.bf16.msra.mxu0 %v221_v4  ;;  %v170_v21 = vld [vmem:[%s320_s2] sm:$0x3] }
   0x8   :  { %124 = vmatprep.subr.bf16.mxu0 %v222_v5  ;;  %v174_v20 = vsub.s32 0, %v173_v19  ;;  %v178_v22 = vsub.s32 1, %v173_v19 }
   0xa   :  { %v175_v23 = vrot.slane %v170_v21, %v174_v20  ;;  %v179_v24 = vrot.slane %v170_v21, %v178_v22 }
   0xb   :  { %125 = vmatpush1.bf16.msra.mxu0 %v224_v6 }
   0xc   :  { %126 = vmatprep.subr.bf16.mxu0 %v225_v7 }
   0xf   :  { %127 = vmatpush1.bf16.msra.mxu0 %v227_v8 }
  0x10   :  { %128 = vmatprep.subr.bf16.mxu0 %v228_v9 }
  0x13   :  { %129 = vmatpush1.bf16.msra.mxu0 %v230_v10 }
  0x14   :  { %130 = vmatprep.subr.bf16.mxu0 %v231_v11 }
  0x17   :  { %131 = vmatpush1.bf16.msra.mxu0 %v233_v12 }
  0x18   :  { %132 = vmatprep.subr.bf16.mxu0 %v234_v13 }
  0x1b   :  { %133 = vmatpush1.bf16.msra.mxu0 %v236_v14 }
  0x1c   :  { %134 = vmatprep.subr.bf16.mxu0 %v237_v15 }
  0x1f   :  { %135 = vmatpush1.bf16.msra.mxu0 %v239_v16 }
  0x22   :  { %153 = vmatmul.mubr.bf16.vlgmr.msra.gmra.mrb[0].mxu0 %v23_v17 }
  0xf5   :  { %v154_v25 = vpop.f32.mrb[0].mxu0 }
  0xf6   :  { %v182_v26 = vadd.f32 %v175_v23, %v154_v25  ;;  %v156_v27 = vpop.f32.mrb[1].mxu0 }
  0xf7   :  { %v183_v28 = vadd.f32 %v179_v24, %v156_v27  ;;  %v158_v29 = vpop.f32.mrb[2].mxu0 }
  0xf8   :  { %v159_v30 = vpop.f32.mrb[3].mxu0 }
  0xf9   :  { %v214_v31 = vpack.c.bf16 %v183_v28, %v182_v26 }
  0xfb   :  { %192 = vst [vmem:[%s321_s3] sm:$0xff] %v214_v31 }

// kernel: gender_classifier_resnet18_forward.33
= control target key start
LH: loop header
LB: loop body
LE: loop exit
PB: predicated region body
PF: predicated region fallthrough
CT: control target
= control target key end

     0   :  { %s1594_s15 = smov 0   ;;  %s1596_s16 = smov 0   ;;  %s1751_s0 = inlined_call_operand.vmem [shape: bf16[8,2304], index: 0, kind: input, shape index: {}]   ;;  %s1752_s1 = inlined_call_operand.vmem [shape: bf16[2304,256], index: 1, kind: input, shape index: {}]   ;;  %s1753_s2 = inlined_call_operand.vmem [shape: f32[1,256], index: 2, kind: input, shape index: {}]   ;;  %s1754_s3 = inlined_call_operand.vmem [shape: bf16[8,256], index: 3, kind: input, shape index: {}]   ;;  %s1755_s4 = inlined_call_operand.vmem [shape: bf16[8,256], index: 4, kind: output, shape index: {}]  }
   0x1   :  { %s1598_s17 = smov 0  }
   0x2 LB: > { %s26_s18 = sadd.s32 1, %s1562_s16  ;;  %p1254_p0 = scmp.ge.s32.totalorder %s1566_s17, 1  ;;  %s1566_s17 = sphi %s1598_s17, %s14_s17   ;;  %s1562_s16 = sphi %s1596_s16, %s1757_s16   ;;  %s1558_s15 = sphi %s1594_s15, %s1756_s15  }
   0x3   : > { %p27_p1 = scmp.ge.s32.totalorder %s26_s18, 3  ;;  %p236_p2 = scmp.lt.s32.totalorder %s1566_s17, 4 }
   0x5   : > { %s1759_s18 = smov (%p27_p1, %s26_s18), 0  ;;  %p237_p3 = pnand %p1254_p0, %p236_p2 }
   0x6   : > { %s293_s19 = smul.u32 (!%p237_p3), 6, %s1558_s15  ;;  %p1258_p6 = scmp.ne.s32.totalorder (!%p237_p3), %s1558_s15, 0 }
   0x7   : > { %240 = sbr.rel (%p237_p3) target bundleno = 387 (0x183), region = 36 }
   0x8   : > { %s303_s20 = smul.u32 (!%p237_p3), 96, %s1558_s15  ;;  %p296_p4 = scmp.lt.s32.totalorder (!%p237_p3), %s293_s19, 17 }
   0xa   : > { %p305_p5 = scmp.lt.s32.totalorder (!%p237_p3), %s303_s20, 287 }
   0xe   : > { %s1761_s19 = smov (!%p296_p4, %s293_s19), 17  ;;  %s1763_s20 = smov (!%p305_p5, %s303_s20), 287 }
   0xf   : > { %s1255_s21 = sshll.u32 %s1761_s19, 2  ;;  %s1367_s25 = sshll.u32 %s1763_s20, 3  ;;  %v1568_v0 = vmov (!%p1258_p6), 0.0  }
  0x10   : > { %s1619_s24 = scalar_lea.vmem %s1751_s0, %s1255_s21  ;;  %s1624_s28 = scalar_lea.vmem %s1752_s1, %s1367_s25  ;;  %344 = vst [vmem:[#allocation2] sm:$0xff] (!%p1258_p6), %v1568_v0  ;;  %345 = vst [vmem:[#allocation2 + $0x8] sm:$0xff] (!%p1258_p6), %v1568_v0 }
  0x11   : > { %343 = sbr.rel (%p1258_p6) target bundleno = 24 (0x18), region = 40 }
  0x18 PF: > { %v1394_v1 = vld [vmem:[%s1624_s28 + $0x4] ss:$8 sps:$4 sm:$0xff]   ;;  %v1398_v3 = vld [vmem:[%s1624_s28] ss:$8 sps:$4 sm:$0xff]   ;;  %v1400_v5 = vld [vmem:[%s1624_s28 + $0x14] ss:$8 sps:$4 sm:$0xff]  }
  0x19   : > { %v1396_v2 = vld [vmem:[%s1624_s28 + $0x104] ss:$8 sps:$4 sm:$0xff]   ;;  %948 = vmatprep.subr.bf16.mxu0 %v1394_v1  ;;  %v1399_v4 = vld [vmem:[%s1624_s28 + $0x100] ss:$8 sps:$4 sm:$0xff]   ;;  %v1402_v6 = vld [vmem:[%s1624_s28 + $0x114] ss:$8 sps:$4 sm:$0xff]  }
  0x1a   : > { %989 = vmatprep.subr.bf16.mxu1 %v1396_v2  ;;  %949 = vmatpush1.bf16.msra.mxu0 %v1398_v3  ;;  %v1404_v7 = vld [vmem:[%s1624_s28 + $0x10] ss:$8 sps:$4 sm:$0xff]   ;;  %v1406_v9 = vld [vmem:[%s1624_s28 + $0x24] ss:$8 sps:$4 sm:$0xff]   ;;  %v1410_v11 = vld [vmem:[%s1624_s28 + $0x20] ss:$8 sps:$4 sm:$0xff]  }
  0x1b   : > { %990 = vmatpush1.bf16.msra.mxu1 %v1399_v4  ;;  %950 = vmatprep.subr.bf16.mxu0 %v1400_v5  ;;  %v1405_v8 = vld [vmem:[%s1624_s28 + $0x110] ss:$8 sps:$4 sm:$0xff]   ;;  %v1408_v10 = vld [vmem:[%s1624_s28 + $0x124] ss:$8 sps:$4 sm:$0xff]   ;;  %v1411_v12 = vld [vmem:[%s1624_s28 + $0x120] ss:$8 sps:$4 sm:$0xff]  }
  0x1c   : > { %991 = vmatprep.subr.bf16.mxu1 %v1402_v6  ;;  %v1412_v13 = vld [vmem:[%s1624_s28 + $0x34] ss:$8 sps:$4 sm:$0xff]   ;;  %v1416_v15 = vld [vmem:[%s1624_s28 + $0x30] ss:$8 sps:$4 sm:$0xff]   ;;  %v1418_v17 = vld [vmem:[%s1624_s28 + $0x44] ss:$8 sps:$4 sm:$0xff]  }
  0x1d   : > { %v1414_v14 = vld [vmem:[%s1624_s28 + $0x134] ss:$8 sps:$4 sm:$0xff]   ;;  %v1417_v16 = vld [vmem:[%s1624_s28 + $0x130] ss:$8 sps:$4 sm:$0xff]   ;;  %v1420_v18 = vld [vmem:[%s1624_s28 + $0x144] ss:$8 sps:$4 sm:$0xff]  }
  0x1e   : > { %951 = vmatpush1.bf16.msra.mxu0 %v1404_v7  ;;  %v1422_v19 = vld [vmem:[%s1624_s28 + $0x40] ss:$8 sps:$4 sm:$0xff]   ;;  %v1424_v21 = vld [vmem:[%s1624_s28 + $0x54] ss:$8 sps:$4 sm:$0xff]   ;;  %v1428_v23 = vld [vmem:[%s1624_s28 + $0x50] ss:$8 sps:$4 sm:$0xff]  }
  0x1f   : > { %992 = vmatpush1.bf16.msra.mxu1 %v1405_v8  ;;  %952 = vmatprep.subr.bf16.mxu0 %v1406_v9  ;;  %v1423_v20 = vld [vmem:[%s1624_s28 + $0x140] ss:$8 sps:$4 sm:$0xff]   ;;  %v1426_v22 = vld [vmem:[%s1624_s28 + $0x154] ss:$8 sps:$4 sm:$0xff]   ;;  %v1429_v24 = vld [vmem:[%s1624_s28 + $0x150] ss:$8 sps:$4 sm:$0xff]  }
  0x20   : > { %993 = vmatprep.subr.bf16.mxu1 %v1408_v10  ;;  %v1430_v25 = vld [vmem:[%s1624_s28 + $0x64] ss:$8 sps:$4 sm:$0xff]   ;;  %v1434_v27 = vld [vmem:[%s1624_s28 + $0x60] ss:$8 sps:$4 sm:$0xff]   ;;  %v1436_v29 = vld [vmem:[%s1624_s28 + $0x74] ss:$8 sps:$4 sm:$0xff]  }
  0x21   : > { %v1432_v26 = vld [vmem:[%s1624_s28 + $0x164] ss:$8 sps:$4 sm:$0xff]   ;;  %v1435_v28 = vld [vmem:[%s1624_s28 + $0x160] ss:$8 sps:$4 sm:$0xff]   ;;  %v1438_v30 = vld [vmem:[%s1624_s28 + $0x174] ss:$8 sps:$4 sm:$0xff]  }
  0x22   : > { %953 = vmatpush1.bf16.msra.mxu0 %v1410_v11  ;;  %v1440_v31 = vld [vmem:[%s1624_s28 + $0x70] ss:$8 sps:$4 sm:$0xff]   ;;  %v1442_v33 = vld [vmem:[%s1624_s28 + $0x84] ss:$8 sps:$4 sm:$0xff]   ;;  %v1446_v35 = vld [vmem:[%s1624_s28 + $0x80] ss:$8 sps:$4 sm:$0xff]  }
  0x23   : > { %994 = vmatpush1.bf16.msra.mxu1 %v1411_v12  ;;  %954 = vmatprep.subr.bf16.mxu0 %v1412_v13  ;;  %v1441_v32 = vld [vmem:[%s1624_s28 + $0x170] ss:$8 sps:$4 sm:$0xff]   ;;  %v1444_v34 = vld [vmem:[%s1624_s28 + $0x184] ss:$8 sps:$4 sm:$0xff]   ;;  %v1447_v36 = vld [vmem:[%s1624_s28 + $0x180] ss:$8 sps:$4 sm:$0xff]  }
  0x24   : > { %995 = vmatprep.subr.bf16.mxu1 %v1414_v14  ;;  %v1448_v37 = vld [vmem:[%s1624_s28 + $0x94] ss:$8 sps:$4 sm:$0xff]   ;;  %v1452_v39 = vld [vmem:[%s1624_s28 + $0x90] ss:$8 sps:$4 sm:$0xff]   ;;  %v1454_v41 = vld [vmem:[%s1624_s28 + $0xa4] ss:$8 sps:$4 sm:$0xff]  }
  0x25   : > { %v1450_v38 = vld [vmem:[%s1624_s28 + $0x194] ss:$8 sps:$4 sm:$0xff]   ;;  %v1453_v40 = vld [vmem:[%s1624_s28 + $0x190] ss:$8 sps:$4 sm:$0xff]   ;;  %v1456_v42 = vld [vmem:[%s1624_s28 + $0x1a4] ss:$8 sps:$4 sm:$0xff]  }
  0x26   : > { %955 = vmatpush1.bf16.msra.mxu0 %v1416_v15  ;;  %v1458_v43 = vld [vmem:[%s1624_s28 + $0xa0] ss:$8 sps:$4 sm:$0xff]   ;;  %v1460_v45 = vld [vmem:[%s1624_s28 + $0xb4] ss:$8 sps:$4 sm:$0xff]   ;;  %v1464_v50 = vld [vmem:[%s1624_s28 + $0xb0] ss:$8 sps:$4 sm:$0xff]  }
  0x27   : > { %996 = vmatpush1.bf16.msra.mxu1 %v1417_v16  ;;  %956 = vmatprep.subr.bf16.mxu0 %v1418_v17  ;;  %v1459_v44 = vld [vmem:[%s1624_s28 + $0x1a0] ss:$8 sps:$4 sm:$0xff]   ;;  %v1462_v46 = vld [vmem:[%s1624_s28 + $0x1b4] ss:$8 sps:$4 sm:$0xff]   ;;  %v1465_v51 = vld [vmem:[%s1624_s28 + $0x1b0] ss:$8 sps:$4 sm:$0xff]  }
  0x28   : > { %997 = vmatprep.subr.bf16.mxu1 %v1420_v18  ;;  %v348_v47 = vld [vmem:[%s1619_s24] sm:$0xff]  ;;  %v349_v49 = vld [vmem:[%s1619_s24 + $0x8] sm:$0xff]  ;;  %v1472_v57 = vld [vmem:[%s1624_s28 + $0xd4] ss:$8 sps:$4 sm:$0xff]   ;;  %p1361_p7 = scmp.ne.s32.totalorder %s1558_s15, 2 }
  0x29   : > { %v1260_v48 = vcombine.high %v348_v47, %v348_v47  ;;  %v1262_v52 = vcombine.high %v349_v49, %v349_v49  ;;  %v1466_v53 = vld [vmem:[%s1624_s28 + $0xc4] ss:$8 sps:$4 sm:$0xff]   ;;  %v1470_v55 = vld [vmem:[%s1624_s28 + $0xc0] ss:$8 sps:$4 sm:$0xff]   ;;  %v1474_v58 = vld [vmem:[%s1624_s28 + $0x1d4] ss:$8 sps:$4 sm:$0xff]   ;;  %v1259_v6 = vcombine.low %v348_v47, %v348_v47  ;;  %v1261_v7 = vcombine.low %v349_v49, %v349_v49 }
  0x2a   : > { %957 = vmatpush1.bf16.msra.mxu0 %v1422_v19  ;;  %v1468_v54 = vld [vmem:[%s1624_s28 + $0x1c4] ss:$8 sps:$4 sm:$0xff]   ;;  %v1471_v56 = vld [vmem:[%s1624_s28 + $0x1c0] ss:$8 sps:$4 sm:$0xff]   ;;  %v1476_v59 = vld [vmem:[%s1624_s28 + $0xd0] ss:$8 sps:$4 sm:$0xff]  }
  0x2b   : > { %998 = vmatpush1.bf16.msra.mxu1 %v1423_v20  ;;  %958 = vmatprep.subr.bf16.mxu0 %v1424_v21  ;;  %v1477_v60 = vld [vmem:[%s1624_s28 + $0x1d0] ss:$8 sps:$4 sm:$0xff]   ;;  %v1478_v61 = vld [vmem:[%s1624_s28 + $0xe4] ss:$8 sps:$4 sm:$0xff]   ;;  %v1482_v63 = vld [vmem:[%s1624_s28 + $0xe0] ss:$8 sps:$4 sm:$0xff]  }
  0x2c   : > { %999 = vmatprep.subr.bf16.mxu1 %v1426_v22  ;;  %980 = vmatprep.mubr.bf16.mxu0 %v1260_v48  ;;  %v1480_v62 = vld [vmem:[%s1624_s28 + $0x1e4] ss:$8 sps:$4 sm:$0xff]   ;;  %v1483_v0 = vld [vmem:[%s1624_s28 + $0x1e0] ss:$8 sps:$4 sm:$0xff]   ;;  %v1484_v1 = vld [vmem:[%s1624_s28 + $0xf4] ss:$8 sps:$4 sm:$0xff]  }
  0x2d   : > { %1021 = vmatprep.mubr.bf16.mxu1 %v1262_v52  ;;  %v1486_v2 = vld [vmem:[%s1624_s28 + $0x1f4] ss:$8 sps:$4 sm:$0xff]   ;;  %v1488_v3 = vld [vmem:[%s1624_s28 + $0xf0] ss:$8 sps:$4 sm:$0xff]   ;;  %v1496_v5 = vld [vmem:[%s1624_s28 + $0x204] ss:$8 sps:$4 sm:$0xff]  }
  0x2e   : > { %959 = vmatpush1.bf16.msra.mxu0 %v1428_v23  ;;  %v1489_v4 = vld [vmem:[%s1624_s28 + $0x1f0] ss:$8 sps:$4 sm:$0xff]   ;;  %v1494_v8 = vld [vmem:[%s1624_s28 + $0x200] ss:$8 sps:$4 sm:$0xff]   ;;  %v1499_v10 = vld [vmem:[%s1624_s28 + $0x214] ss:$8 sps:$4 sm:$0xff]  }
  0x2f   : > { %1000 = vmatpush1.bf16.msra.mxu1 %v1429_v24  ;;  %960 = vmatprep.subr.bf16.mxu0 %v1430_v25  ;;  %v1696_v9 = vld [vmem:[%s1619_s24 + $0x10] sm:$0xff]  ;;  %v1502_v13 = vld [vmem:[%s1624_s28 + $0x224] ss:$8 sps:$4 sm:$0xff]   ;;  %v1500_v14 = vld [vmem:[%s1624_s28 + $0x220] ss:$8 sps:$4 sm:$0xff]  }
  0x30   : > { %1001 = vmatprep.subr.bf16.mxu1 %v1432_v26  ;;  %v1264_v11 = vcombine.high %v1696_v9, %v1696_v9  ;;  %v1497_v12 = vld [vmem:[%s1624_s28 + $0x210] ss:$8 sps:$4 sm:$0xff]   ;;  %v1505_v15 = vld [vmem:[%s1624_s28 + $0x234] ss:$8 sps:$4 sm:$0xff]   ;;  %v1508_v17 = vld [vmem:[%s1624_s28 + $0x244] ss:$8 sps:$4 sm:$0xff]  }
  0x31   : > { %v1503_v16 = vld [vmem:[%s1624_s28 + $0x230] ss:$8 sps:$4 sm:$0xff]   ;;  %v1506_v18 = vld [vmem:[%s1624_s28 + $0x240] ss:$8 sps:$4 sm:$0xff]   ;;  %v1511_v19 = vld [vmem:[%s1624_s28 + $0x254] ss:$8 sps:$4 sm:$0xff]  }
  0x32   : > { %961 = vmatpush1.bf16.msra.mxu0 %v1434_v27  ;;  %v1509_v20 = vld [vmem:[%s1624_s28 + $0x250] ss:$8 sps:$4 sm:$0xff]   ;;  %v1514_v21 = vld [vmem:[%s1624_s28 + $0x264] ss:$8 sps:$4 sm:$0xff]   ;;  %v1512_v22 = vld [vmem:[%s1624_s28 + $0x260] ss:$8 sps:$4 sm:$0xff]  }
  0x33   : > { %1002 = vmatpush1.bf16.msra.mxu1 %v1435_v28  ;;  %962 = vmatprep.subr.bf16.mxu0 %v1436_v29  ;;  %v1517_v23 = vld [vmem:[%s1624_s28 + $0x274] ss:$8 sps:$4 sm:$0xff]   ;;  %v1515_v24 = vld [vmem:[%s1624_s28 + $0x270] ss:$8 sps:$4 sm:$0xff]   ;;  %v1520_v25 = vld [vmem:[%s1624_s28 + $0x284] ss:$8 sps:$4 sm:$0xff]  }
  0x34   : > { %1003 = vmatprep.subr.bf16.mxu1 %v1438_v30  ;;  %v1518_v26 = vld [vmem:[%s1624_s28 + $0x280] ss:$8 sps:$4 sm:$0xff]   ;;  %v1523_v27 = vld [vmem:[%s1624_s28 + $0x294] ss:$8 sps:$4 sm:$0xff]   ;;  %v1521_v28 = vld [vmem:[%s1624_s28 + $0x290] ss:$8 sps:$4 sm:$0xff]  }
  0x35   : > { %v1526_v29 = vld [vmem:[%s1624_s28 + $0x2a4] ss:$8 sps:$4 sm:$0xff]   ;;  %v1524_v30 = vld [vmem:[%s1624_s28 + $0x2a0] ss:$8 sps:$4 sm:$0xff]  }
  0x36   : > { %963 = vmatpush1.bf16.msra.mxu0 %v1440_v31  ;;  %v1529_v31 = vld [vmem:[%s1624_s28 + $0x2b4] ss:$8 sps:$4 sm:$0xff]   ;;  %v346_v52 = vld [vmem:[#allocation2] sm:$0xff] }
  0x37   : > { %1004 = vmatpush1.bf16.msra.mxu1 %v1441_v32  ;;  %964 = vmatprep.subr.bf16.mxu0 %v1442_v33  ;;  %v1527_v32 = vld [vmem:[%s1624_s28 + $0x2b0] ss:$8 sps:$4 sm:$0xff]   ;;  %v1532_v33 = vld [vmem:[%s1624_s28 + $0x2c4] ss:$8 sps:$4 sm:$0xff]  }
  0x38   : > { %1005 = vmatprep.subr.bf16.mxu1 %v1444_v34  ;;  %v1530_v34 = vld [vmem:[%s1624_s28 + $0x2c0] ss:$8 sps:$4 sm:$0xff]  }
  0x3a   : > { %965 = vmatpush1.bf16.msra.mxu0 %v1446_v35  ;;  %v1535_v35 = vld [vmem:[%s1624_s28 + $0x2d4] ss:$8 sps:$4 sm:$0xff]  }
  0x3b   : > { %1006 = vmatpush1.bf16.msra.mxu1 %v1447_v36  ;;  %966 = vmatprep.subr.bf16.mxu0 %v1448_v37  ;;  %v1533_v36 = vld [vmem:[%s1624_s28 + $0x2d0] ss:$8 sps:$4 sm:$0xff]   ;;  %v1538_v37 = vld [vmem:[%s1624_s28 + $0x2e4] ss:$8 sps:$4 sm:$0xff]  }
  0x3c   : > { %1007 = vmatprep.subr.bf16.mxu1 %v1450_v38  ;;  %v1536_v38 = vld [vmem:[%s1624_s28 + $0x2e0] ss:$8 sps:$4 sm:$0xff]  }
  0x3e   : > { %967 = vmatpush1.bf16.msra.mxu0 %v1452_v39  ;;  %v1541_v39 = vld [vmem:[%s1624_s28 + $0x2f4] ss:$8 sps:$4 sm:$0xff]  }
  0x3f   : > { %1008 = vmatpush1.bf16.msra.mxu1 %v1453_v40  ;;  %968 = vmatprep.subr.bf16.mxu0 %v1454_v41  ;;  %v1539_v40 = vld [vmem:[%s1624_s28 + $0x2f0] ss:$8 sps:$4 sm:$0xff]   ;;  %v1263_v41 = vcombine.low %v1696_v9, %v1696_v9 }
  0x40   : > { %1009 = vmatprep.subr.bf16.mxu1 %v1456_v42 }
  0x42   : > { %969 = vmatpush1.bf16.msra.mxu0 %v1458_v43 }
  0x43   : > { %1010 = vmatpush1.bf16.msra.mxu1 %v1459_v44  ;;  %970 = vmatprep.subr.bf16.mxu0 %v1460_v45 }
  0x44   : > { %1011 = vmatprep.subr.bf16.mxu1 %v1462_v46 }
  0x46   : > { %971 = vmatpush1.bf16.msra.mxu0 %v1464_v50 }
  0x47   : > { %1012 = vmatpush1.bf16.msra.mxu1 %v1465_v51  ;;  %972 = vmatprep.subr.bf16.mxu0 %v1466_v53 }
  0x48   : > { %1013 = vmatprep.subr.bf16.mxu1 %v1468_v54 }
  0x4a   : > { %973 = vmatpush1.bf16.msra.mxu0 %v1470_v55  ;;  %v347_v55 = vld [vmem:[#allocation2 + $0x8] sm:$0xff] }
  0x4b   : > { %1014 = vmatpush1.bf16.msra.mxu1 %v1471_v56  ;;  %974 = vmatprep.subr.bf16.mxu0 %v1472_v57 }
  0x4c   : > { %1015 = vmatprep.subr.bf16.mxu1 %v1474_v58 }
  0x4e   : > { %975 = vmatpush1.bf16.msra.mxu0 %v1476_v59 }
  0x4f   : > { %1016 = vmatpush1.bf16.msra.mxu1 %v1477_v60  ;;  %976 = vmatprep.subr.bf16.mxu0 %v1478_v61 }
  0x50   : > { %1017 = vmatprep.subr.bf16.mxu1 %v1480_v62  ;;  %v1083_v62 = vlaneseq (!%p1361_p7) }
  0x52   : > { %977 = vmatpush1.bf16.msra.mxu0 %v1482_v63  ;;  %v1084_v63 = vshrl.u32 (!%p1361_p7), %v1083_v62, 7 }
  0x53   : > { %1018 = vmatpush1.bf16.msra.mxu1 %v1483_v0  ;;  %978 = vmatprep.subr.bf16.mxu0 %v1484_v1  ;;  %v1081_v0 = vld [vmem:[%s1753_s2] sm:$0x3] (!%p1361_p7) }
  0x54   : > { %1019 = vmatprep.subr.bf16.mxu1 %v1486_v2  ;;  %v1095_v1 = vld [vmem:[%s1754_s3] sm:$0xff] (!%p1361_p7)  ;;  %v1085_v2 = vsub.s32 (!%p1361_p7), 0, %v1084_v63 }
  0x55   : > { %v1097_v9 = vunpack.c.h.bf16 (!%p1361_p7), %v1095_v1 }
  0x56   : > { %979 = vmatpush1.bf16.msra.mxu0 %v1488_v3  ;;  %v1089_v3 = vsub.s32 (!%p1361_p7), 1, %v1084_v63 }
  0x57   : > { %1020 = vmatpush1.bf16.msra.mxu1 %v1489_v4  ;;  %1030 = vmatprep.subr.bf16.mxu0 %v1496_v5 }
  0x59   : > { %981 = vmatmul.mubr.bf16.vlgmr.msra.gmra.mrb[0].mxu0 %v1259_v6  ;;  %v1086_v6 = vrot.slane (!%p1361_p7), %v1081_v0, %v1085_v2 }
  0x5a   : > { %1022 = vmatmul.mubr.bf16.vlgmr.msra.gmra.mrb[0].mxu1 %v1261_v7  ;;  %1031 = vmatpush1.bf16.msra.mxu0 %v1494_v8  ;;  %v1090_v7 = vrot.slane (!%p1361_p7), %v1081_v0, %v1089_v3  ;;  %v1096_v8 = vunpack.c.l.bf16 (!%p1361_p7), %v1095_v1 }
  0x5b   : > { %1062 = vmatprep.mubr.bf16.mxu0 %v1264_v11  ;;  %1032 = vmatprep.subr.bf16.mxu0 %v1499_v10 }
  0x5e   : > { %1033 = vmatpush1.bf16.msra.mxu0 %v1497_v12 }
  0x5f   : > { %1034 = vmatprep.subr.bf16.mxu0 %v1502_v13 }
  0x62   : > { %1035 = vmatpush1.bf16.msra.mxu0 %v1500_v14 }
  0x63   : > { %1036 = vmatprep.subr.bf16.mxu0 %v1505_v15 }
  0x66   : > { %1037 = vmatpush1.bf16.msra.mxu0 %v1503_v16 }
  0x67   : > { %1038 = vmatprep.subr.bf16.mxu0 %v1508_v17 }
  0x6a   : > { %1039 = vmatpush1.bf16.msra.mxu0 %v1506_v18 }
  0x6b   : > { %1040 = vmatprep.subr.bf16.mxu0 %v1511_v19 }
  0x6e   : > { %1041 = vmatpush1.bf16.msra.mxu0 %v1509_v20 }
  0x6f   : > { %1042 = vmatprep.subr.bf16.mxu0 %v1514_v21 }
  0x72   : > { %1043 = vmatpush1.bf16.msra.mxu0 %v1512_v22 }
  0x73   : > { %1044 = vmatprep.subr.bf16.mxu0 %v1517_v23 }
  0x76   : > { %1045 = vmatpush1.bf16.msra.mxu0 %v1515_v24 }
  0x77   : > { %1046 = vmatprep.subr.bf16.mxu0 %v1520_v25 }
  0x7a   : > { %1047 = vmatpush1.bf16.msra.mxu0 %v1518_v26 }
  0x7b   : > { %1048 = vmatprep.subr.bf16.mxu0 %v1523_v27 }
  0x7e   : > { %1049 = vmatpush1.bf16.msra.mxu0 %v1521_v28 }
  0x7f   : > { %1050 = vmatprep.subr.bf16.mxu0 %v1526_v29 }
  0x82   : > { %1051 = vmatpush1.bf16.msra.mxu0 %v1524_v30 }
  0x83   : > { %1052 = vmatprep.subr.bf16.mxu0 %v1529_v31 }
  0x86   : > { %1053 = vmatpush1.bf16.msra.mxu0 %v1527_v32 }
  0x87   : > { %1054 = vmatprep.subr.bf16.mxu0 %v1532_v33 }
  0x8a   : > { %1055 = vmatpush1.bf16.msra.mxu0 %v1530_v34 }
  0x8b   : > { %1056 = vmatprep.subr.bf16.mxu0 %v1535_v35 }
  0x8e   : > { %1057 = vmatpush1.bf16.msra.mxu0 %v1533_v36 }
  0x8f   : > { %1058 = vmatprep.subr.bf16.mxu0 %v1538_v37 }
  0x92   : > { %1059 = vmatpush1.bf16.msra.mxu0 %v1536_v38 }
  0x93   : > { %1060 = vmatprep.subr.bf16.mxu0 %v1541_v39 }
  0x96   : > { %1061 = vmatpush1.bf16.msra.mxu0 %v1539_v40 }
  0x99   : > { %1063 = vmatmul.mubr.bf16.vlgmr.msra.gmra.mrb[4].mxu0 %v1263_v41 }
 0x12c   : > { %v982_v42 = vpop.f32.mrb[0].mxu0 }
 0x12d   : > { %v1023_v43 = vpop.f32.mrb[0].mxu1  ;;  %v984_v45 = vpop.f32.mrb[1].mxu0 }
 0x12e   : > { %v1024_v44 = vadd.f32 %v1023_v43, %v982_v42  ;;  %v1025_v46 = vpop.f32.mrb[1].mxu1  ;;  %v986_v48 = vpop.f32.mrb[2].mxu0 }
 0x12f   : > { %v1026_v47 = vadd.f32 %v1025_v46, %v984_v45  ;;  %v1027_v49 = vpop.f32.mrb[2].mxu1  ;;  %v987_v50 = vpop.f32.mrb[3].mxu0 }
 0x130   : > { %v1028_v51 = vpop.f32.mrb[3].mxu1 }
 0x16c   : > { %v1064_v53 = vpop.f32.mrb[4].mxu0  ;;  %1078 = sbr.rel (%p1361_p7) target bundleno = 387 (0x183), region = 44 }
 0x16d   : > { %v1065_v54 = vadd.f32 %v1064_v53, %v1024_v44  ;;  %v1066_v56 = vpop.f32.mrb[5].mxu0 }
 0x16e   : > { %v1067_v57 = vadd.f32 %v1066_v56, %v1026_v47  ;;  %v1068_v58 = vpop.f32.mrb[6].mxu0 }
 0x16f   : > { %v1071_v59 = vadd.f32 %v1065_v54, %v346_v52  ;;  %v1069_v60 = vpop.f32.mrb[7].mxu0 }
 0x170   : > { %v1072_v61 = vadd.f32 %v1067_v57, %v347_v55 }
 0x171   : > { %1073 = vst [vmem:[#allocation2] sm:$0xff] %v1071_v59 }
 0x172   : > { %1074 = vst [vmem:[#allocation2 + $0x8] sm:$0xff] %v1072_v61 }
 0x178   : > { %v1079_v4 = vld [vmem:[#allocation2] sm:$0xff] }
 0x179   : > { %v1080_v5 = vld [vmem:[#allocation2 + $0x8] sm:$0xff]  ;;  %v1093_v10 = vadd.f32 %v1086_v6, %v1079_v4 }
 0x17a   : > { %v1094_v11 = vadd.f32 %v1090_v7, %v1080_v5 }
 0x17b   : > { %v1098_v12 = vadd.f32 %v1096_v8, %v1093_v10 }
 0x17c   : > { %v1099_v13 = vadd.f32 %v1097_v9, %v1094_v11 }
 0x17d   : > { %v1100_v14 = vmax.f32 %v1098_v12, 0.0 }
 0x17e   : > { %v1101_v15 = vmax.f32 %v1099_v13, 0.0 }
 0x180   : > { %v1368_v16 = vpack.c.bf16 %v1101_v15, %v1100_v14 }
 0x182   : > { %1110 = vst [vmem:[%s1755_s4] sm:$0xff] %v1368_v16 }
 0x183 PF: > { %s14_s17 = sadd.s32 1, %s1566_s17   ;;  %s1756_s15 = smov %s1562_s16 }
 0x184   : > { %p11_p8 = scmp.ge.s32.totalorder %s14_s17, 5   ;;  %s1757_s16 = smov %s1759_s18 }
 0x186   :  { %13 = sbr.rel (!%p11_p8) target bundleno = 2 (0x2), region = 83 }

// kernel: gender_classifier_resnet18_forward.34
= control target key start
LH: loop header
LB: loop body
LE: loop exit
PB: predicated region body
PF: predicated region fallthrough
CT: control target
= control target key end

     0   :  { %s1499_s12 = smov 0   ;;  %s1501_s13 = smov 0   ;;  %s1653_s0 = inlined_call_operand.vmem [shape: bf16[8,2304], index: 0, kind: input, shape index: {}]   ;;  %s1654_s1 = inlined_call_operand.vmem [shape: bf16[2304,256], index: 1, kind: input, shape index: {}]   ;;  %s1655_s2 = inlined_call_operand.vmem [shape: f32[1,256], index: 2, kind: input, shape index: {}]   ;;  %s1656_s3 = inlined_call_operand.vmem [shape: bf16[8,256], index: 3, kind: output, shape index: {}]  }
   0x1   :  { %s1503_s14 = smov 0  }
   0x2 LB: > { %s25_s15 = sadd.s32 1, %s1472_s13  ;;  %p1164_p0 = scmp.ge.s32.totalorder %s1476_s14, 1  ;;  %s1476_s14 = sphi %s1503_s14, %s13_s14   ;;  %s1472_s13 = sphi %s1501_s13, %s1658_s13   ;;  %s1468_s12 = sphi %s1499_s12, %s1657_s12  }
   0x3   : > { %p26_p1 = scmp.ge.s32.totalorder %s25_s15, 3  ;;  %p194_p2 = scmp.lt.s32.totalorder %s1476_s14, 4 }
   0x5   : > { %s1660_s15 = smov (%p26_p1, %s25_s15), 0  ;;  %p195_p3 = pnand %p1164_p0, %p194_p2 }
   0x6   : > { %s240_s16 = smul.u32 (!%p195_p3), 6, %s1468_s12  ;;  %p1168_p6 = scmp.ne.s32.totalorder (!%p195_p3), %s1468_s12, 0 }
   0x7   : > { %198 = sbr.rel (%p195_p3) target bundleno = 385 (0x181), region = 32 }
   0x8   : > { %s250_s17 = smul.u32 (!%p195_p3), 96, %s1468_s12  ;;  %p243_p4 = scmp.lt.s32.totalorder (!%p195_p3), %s240_s16, 17 }
   0xa   : > { %p252_p5 = scmp.lt.s32.totalorder (!%p195_p3), %s250_s17, 287 }
   0xe   : > { %s1662_s16 = smov (!%p243_p4, %s240_s16), 17  ;;  %s1664_s17 = smov (!%p252_p5, %s250_s17), 287 }
   0xf   : > { %s1165_s18 = sshll.u32 %s1662_s16, 2  ;;  %s1277_s22 = sshll.u32 %s1664_s17, 3  ;;  %v1478_v0 = vmov (!%p1168_p6), 0.0  }
  0x10   : > { %s1524_s21 = scalar_lea.vmem %s1653_s0, %s1165_s18  ;;  %s1529_s25 = scalar_lea.vmem %s1654_s1, %s1277_s22  ;;  %281 = vst [vmem:[#allocation2] sm:$0xff] (!%p1168_p6), %v1478_v0  ;;  %282 = vst [vmem:[#allocation2 + $0x8] sm:$0xff] (!%p1168_p6), %v1478_v0 }
  0x11   : > { %280 = sbr.rel (%p1168_p6) target bundleno = 24 (0x18), region = 36 }
  0x18 PF: > { %v1304_v1 = vld [vmem:[%s1529_s25 + $0x4] ss:$8 sps:$4 sm:$0xff]   ;;  %v1308_v3 = vld [vmem:[%s1529_s25] ss:$8 sps:$4 sm:$0xff]   ;;  %v1310_v5 = vld [vmem:[%s1529_s25 + $0x14] ss:$8 sps:$4 sm:$0xff]  }
  0x19   : > { %v1306_v2 = vld [vmem:[%s1529_s25 + $0x104] ss:$8 sps:$4 sm:$0xff]   ;;  %885 = vmatprep.subr.bf16.mxu0 %v1304_v1  ;;  %v1309_v4 = vld [vmem:[%s1529_s25 + $0x100] ss:$8 sps:$4 sm:$0xff]   ;;  %v1312_v6 = vld [vmem:[%s1529_s25 + $0x114] ss:$8 sps:$4 sm:$0xff]  }
  0x1a   : > { %926 = vmatprep.subr.bf16.mxu1 %v1306_v2  ;;  %886 = vmatpush1.bf16.msra.mxu0 %v1308_v3  ;;  %v1314_v7 = vld [vmem:[%s1529_s25 + $0x10] ss:$8 sps:$4 sm:$0xff]   ;;  %v1316_v9 = vld [vmem:[%s1529_s25 + $0x24] ss:$8 sps:$4 sm:$0xff]   ;;  %v1320_v11 = vld [vmem:[%s1529_s25 + $0x20] ss:$8 sps:$4 sm:$0xff]  }
  0x1b   : > { %927 = vmatpush1.bf16.msra.mxu1 %v1309_v4  ;;  %887 = vmatprep.subr.bf16.mxu0 %v1310_v5  ;;  %v1315_v8 = vld [vmem:[%s1529_s25 + $0x110] ss:$8 sps:$4 sm:$0xff]   ;;  %v1318_v10 = vld [vmem:[%s1529_s25 + $0x124] ss:$8 sps:$4 sm:$0xff]   ;;  %v1321_v12 = vld [vmem:[%s1529_s25 + $0x120] ss:$8 sps:$4 sm:$0xff]  }
  0x1c   : > { %928 = vmatprep.subr.bf16.mxu1 %v1312_v6  ;;  %v1322_v13 = vld [vmem:[%s1529_s25 + $0x34] ss:$8 sps:$4 sm:$0xff]   ;;  %v1326_v15 = vld [vmem:[%s1529_s25 + $0x30] ss:$8 sps:$4 sm:$0xff]   ;;  %v1328_v17 = vld [vmem:[%s1529_s25 + $0x44] ss:$8 sps:$4 sm:$0xff]  }
  0x1d   : > { %v1324_v14 = vld [vmem:[%s1529_s25 + $0x134] ss:$8 sps:$4 sm:$0xff]   ;;  %v1327_v16 = vld [vmem:[%s1529_s25 + $0x130] ss:$8 sps:$4 sm:$0xff]   ;;  %v1330_v18 = vld [vmem:[%s1529_s25 + $0x144] ss:$8 sps:$4 sm:$0xff]  }
  0x1e   : > { %888 = vmatpush1.bf16.msra.mxu0 %v1314_v7  ;;  %v1332_v19 = vld [vmem:[%s1529_s25 + $0x40] ss:$8 sps:$4 sm:$0xff]   ;;  %v1334_v21 = vld [vmem:[%s1529_s25 + $0x54] ss:$8 sps:$4 sm:$0xff]   ;;  %v1338_v23 = vld [vmem:[%s1529_s25 + $0x50] ss:$8 sps:$4 sm:$0xff]  }
  0x1f   : > { %929 = vmatpush1.bf16.msra.mxu1 %v1315_v8  ;;  %889 = vmatprep.subr.bf16.mxu0 %v1316_v9  ;;  %v1333_v20 = vld [vmem:[%s1529_s25 + $0x140] ss:$8 sps:$4 sm:$0xff]   ;;  %v1336_v22 = vld [vmem:[%s1529_s25 + $0x154] ss:$8 sps:$4 sm:$0xff]   ;;  %v1339_v24 = vld [vmem:[%s1529_s25 + $0x150] ss:$8 sps:$4 sm:$0xff]  }
  0x20   : > { %930 = vmatprep.subr.bf16.mxu1 %v1318_v10  ;;  %v1340_v25 = vld [vmem:[%s1529_s25 + $0x64] ss:$8 sps:$4 sm:$0xff]   ;;  %v1344_v27 = vld [vmem:[%s1529_s25 + $0x60] ss:$8 sps:$4 sm:$0xff]   ;;  %v1346_v29 = vld [vmem:[%s1529_s25 + $0x74] ss:$8 sps:$4 sm:$0xff]  }
  0x21   : > { %v1342_v26 = vld [vmem:[%s1529_s25 + $0x164] ss:$8 sps:$4 sm:$0xff]   ;;  %v1345_v28 = vld [vmem:[%s1529_s25 + $0x160] ss:$8 sps:$4 sm:$0xff]   ;;  %v1348_v30 = vld [vmem:[%s1529_s25 + $0x174] ss:$8 sps:$4 sm:$0xff]  }
  0x22   : > { %890 = vmatpush1.bf16.msra.mxu0 %v1320_v11  ;;  %v1350_v31 = vld [vmem:[%s1529_s25 + $0x70] ss:$8 sps:$4 sm:$0xff]   ;;  %v1352_v33 = vld [vmem:[%s1529_s25 + $0x84] ss:$8 sps:$4 sm:$0xff]   ;;  %v1356_v35 = vld [vmem:[%s1529_s25 + $0x80] ss:$8 sps:$4 sm:$0xff]  }
  0x23   : > { %931 = vmatpush1.bf16.msra.mxu1 %v1321_v12  ;;  %891 = vmatprep.subr.bf16.mxu0 %v1322_v13  ;;  %v1351_v32 = vld [vmem:[%s1529_s25 + $0x170] ss:$8 sps:$4 sm:$0xff]   ;;  %v1354_v34 = vld [vmem:[%s1529_s25 + $0x184] ss:$8 sps:$4 sm:$0xff]   ;;  %v1357_v36 = vld [vmem:[%s1529_s25 + $0x180] ss:$8 sps:$4 sm:$0xff]  }
  0x24   : > { %932 = vmatprep.subr.bf16.mxu1 %v1324_v14  ;;  %v1358_v37 = vld [vmem:[%s1529_s25 + $0x94] ss:$8 sps:$4 sm:$0xff]   ;;  %v1362_v39 = vld [vmem:[%s1529_s25 + $0x90] ss:$8 sps:$4 sm:$0xff]   ;;  %v1364_v41 = vld [vmem:[%s1529_s25 + $0xa4] ss:$8 sps:$4 sm:$0xff]  }
  0x25   : > { %v1360_v38 = vld [vmem:[%s1529_s25 + $0x194] ss:$8 sps:$4 sm:$0xff]   ;;  %v1363_v40 = vld [vmem:[%s1529_s25 + $0x190] ss:$8 sps:$4 sm:$0xff]   ;;  %v1366_v42 = vld [vmem:[%s1529_s25 + $0x1a4] ss:$8 sps:$4 sm:$0xff]  }
  0x26   : > { %892 = vmatpush1.bf16.msra.mxu0 %v1326_v15  ;;  %v1368_v43 = vld [vmem:[%s1529_s25 + $0xa0] ss:$8 sps:$4 sm:$0xff]   ;;  %v1370_v45 = vld [vmem:[%s1529_s25 + $0xb4] ss:$8 sps:$4 sm:$0xff]   ;;  %v1374_v50 = vld [vmem:[%s1529_s25 + $0xb0] ss:$8 sps:$4 sm:$0xff]  }
  0x27   : > { %933 = vmatpush1.bf16.msra.mxu1 %v1327_v16  ;;  %893 = vmatprep.subr.bf16.mxu0 %v1328_v17  ;;  %v1369_v44 = vld [vmem:[%s1529_s25 + $0x1a0] ss:$8 sps:$4 sm:$0xff]   ;;  %v1372_v46 = vld [vmem:[%s1529_s25 + $0x1b4] ss:$8 sps:$4 sm:$0xff]   ;;  %v1375_v51 = vld [vmem:[%s1529_s25 + $0x1b0] ss:$8 sps:$4 sm:$0xff]  }
  0x28   : > { %934 = vmatprep.subr.bf16.mxu1 %v1330_v18  ;;  %v285_v47 = vld [vmem:[%s1524_s21] sm:$0xff]  ;;  %v286_v49 = vld [vmem:[%s1524_s21 + $0x8] sm:$0xff]  ;;  %v1382_v57 = vld [vmem:[%s1529_s25 + $0xd4] ss:$8 sps:$4 sm:$0xff]   ;;  %p1271_p7 = scmp.ne.s32.totalorder %s1468_s12, 2 }
  0x29   : > { %v1170_v48 = vcombine.high %v285_v47, %v285_v47  ;;  %v1172_v52 = vcombine.high %v286_v49, %v286_v49  ;;  %v1376_v53 = vld [vmem:[%s1529_s25 + $0xc4] ss:$8 sps:$4 sm:$0xff]   ;;  %v1380_v55 = vld [vmem:[%s1529_s25 + $0xc0] ss:$8 sps:$4 sm:$0xff]   ;;  %v1384_v58 = vld [vmem:[%s1529_s25 + $0x1d4] ss:$8 sps:$4 sm:$0xff]   ;;  %v1169_v6 = vcombine.low %v285_v47, %v285_v47  ;;  %v1171_v7 = vcombine.low %v286_v49, %v286_v49 }
  0x2a   : > { %894 = vmatpush1.bf16.msra.mxu0 %v1332_v19  ;;  %v1378_v54 = vld [vmem:[%s1529_s25 + $0x1c4] ss:$8 sps:$4 sm:$0xff]   ;;  %v1381_v56 = vld [vmem:[%s1529_s25 + $0x1c0] ss:$8 sps:$4 sm:$0xff]   ;;  %v1386_v59 = vld [vmem:[%s1529_s25 + $0xd0] ss:$8 sps:$4 sm:$0xff]  }
  0x2b   : > { %935 = vmatpush1.bf16.msra.mxu1 %v1333_v20  ;;  %895 = vmatprep.subr.bf16.mxu0 %v1334_v21  ;;  %v1387_v60 = vld [vmem:[%s1529_s25 + $0x1d0] ss:$8 sps:$4 sm:$0xff]   ;;  %v1388_v61 = vld [vmem:[%s1529_s25 + $0xe4] ss:$8 sps:$4 sm:$0xff]   ;;  %v1392_v63 = vld [vmem:[%s1529_s25 + $0xe0] ss:$8 sps:$4 sm:$0xff]  }
  0x2c   : > { %936 = vmatprep.subr.bf16.mxu1 %v1336_v22  ;;  %917 = vmatprep.mubr.bf16.mxu0 %v1170_v48  ;;  %v1390_v62 = vld [vmem:[%s1529_s25 + $0x1e4] ss:$8 sps:$4 sm:$0xff]   ;;  %v1393_v0 = vld [vmem:[%s1529_s25 + $0x1e0] ss:$8 sps:$4 sm:$0xff]   ;;  %v1394_v1 = vld [vmem:[%s1529_s25 + $0xf4] ss:$8 sps:$4 sm:$0xff]  }
  0x2d   : > { %958 = vmatprep.mubr.bf16.mxu1 %v1172_v52  ;;  %v1396_v2 = vld [vmem:[%s1529_s25 + $0x1f4] ss:$8 sps:$4 sm:$0xff]   ;;  %v1398_v3 = vld [vmem:[%s1529_s25 + $0xf0] ss:$8 sps:$4 sm:$0xff]   ;;  %v1406_v5 = vld [vmem:[%s1529_s25 + $0x204] ss:$8 sps:$4 sm:$0xff]  }
  0x2e   : > { %896 = vmatpush1.bf16.msra.mxu0 %v1338_v23  ;;  %v1399_v4 = vld [vmem:[%s1529_s25 + $0x1f0] ss:$8 sps:$4 sm:$0xff]   ;;  %v1404_v8 = vld [vmem:[%s1529_s25 + $0x200] ss:$8 sps:$4 sm:$0xff]   ;;  %v1409_v10 = vld [vmem:[%s1529_s25 + $0x214] ss:$8 sps:$4 sm:$0xff]  }
  0x2f   : > { %937 = vmatpush1.bf16.msra.mxu1 %v1339_v24  ;;  %897 = vmatprep.subr.bf16.mxu0 %v1340_v25  ;;  %v1601_v9 = vld [vmem:[%s1524_s21 + $0x10] sm:$0xff]  ;;  %v1412_v13 = vld [vmem:[%s1529_s25 + $0x224] ss:$8 sps:$4 sm:$0xff]   ;;  %v1410_v14 = vld [vmem:[%s1529_s25 + $0x220] ss:$8 sps:$4 sm:$0xff]  }
  0x30   : > { %938 = vmatprep.subr.bf16.mxu1 %v1342_v26  ;;  %v1174_v11 = vcombine.high %v1601_v9, %v1601_v9  ;;  %v1407_v12 = vld [vmem:[%s1529_s25 + $0x210] ss:$8 sps:$4 sm:$0xff]   ;;  %v1415_v15 = vld [vmem:[%s1529_s25 + $0x234] ss:$8 sps:$4 sm:$0xff]   ;;  %v1418_v17 = vld [vmem:[%s1529_s25 + $0x244] ss:$8 sps:$4 sm:$0xff]  }
  0x31   : > { %v1413_v16 = vld [vmem:[%s1529_s25 + $0x230] ss:$8 sps:$4 sm:$0xff]   ;;  %v1416_v18 = vld [vmem:[%s1529_s25 + $0x240] ss:$8 sps:$4 sm:$0xff]   ;;  %v1421_v19 = vld [vmem:[%s1529_s25 + $0x254] ss:$8 sps:$4 sm:$0xff]  }
  0x32   : > { %898 = vmatpush1.bf16.msra.mxu0 %v1344_v27  ;;  %v1419_v20 = vld [vmem:[%s1529_s25 + $0x250] ss:$8 sps:$4 sm:$0xff]   ;;  %v1424_v21 = vld [vmem:[%s1529_s25 + $0x264] ss:$8 sps:$4 sm:$0xff]   ;;  %v1422_v22 = vld [vmem:[%s1529_s25 + $0x260] ss:$8 sps:$4 sm:$0xff]  }
  0x33   : > { %939 = vmatpush1.bf16.msra.mxu1 %v1345_v28  ;;  %899 = vmatprep.subr.bf16.mxu0 %v1346_v29  ;;  %v1427_v23 = vld [vmem:[%s1529_s25 + $0x274] ss:$8 sps:$4 sm:$0xff]   ;;  %v1425_v24 = vld [vmem:[%s1529_s25 + $0x270] ss:$8 sps:$4 sm:$0xff]   ;;  %v1430_v25 = vld [vmem:[%s1529_s25 + $0x284] ss:$8 sps:$4 sm:$0xff]  }
  0x34   : > { %940 = vmatprep.subr.bf16.mxu1 %v1348_v30  ;;  %v1428_v26 = vld [vmem:[%s1529_s25 + $0x280] ss:$8 sps:$4 sm:$0xff]   ;;  %v1433_v27 = vld [vmem:[%s1529_s25 + $0x294] ss:$8 sps:$4 sm:$0xff]   ;;  %v1431_v28 = vld [vmem:[%s1529_s25 + $0x290] ss:$8 sps:$4 sm:$0xff]  }
  0x35   : > { %v1436_v29 = vld [vmem:[%s1529_s25 + $0x2a4] ss:$8 sps:$4 sm:$0xff]   ;;  %v1434_v30 = vld [vmem:[%s1529_s25 + $0x2a0] ss:$8 sps:$4 sm:$0xff]  }
  0x36   : > { %900 = vmatpush1.bf16.msra.mxu0 %v1350_v31  ;;  %v1439_v31 = vld [vmem:[%s1529_s25 + $0x2b4] ss:$8 sps:$4 sm:$0xff]   ;;  %v283_v52 = vld [vmem:[#allocation2] sm:$0xff] }
  0x37   : > { %941 = vmatpush1.bf16.msra.mxu1 %v1351_v32  ;;  %901 = vmatprep.subr.bf16.mxu0 %v1352_v33  ;;  %v1437_v32 = vld [vmem:[%s1529_s25 + $0x2b0] ss:$8 sps:$4 sm:$0xff]   ;;  %v1442_v33 = vld [vmem:[%s1529_s25 + $0x2c4] ss:$8 sps:$4 sm:$0xff]  }
  0x38   : > { %942 = vmatprep.subr.bf16.mxu1 %v1354_v34  ;;  %v1440_v34 = vld [vmem:[%s1529_s25 + $0x2c0] ss:$8 sps:$4 sm:$0xff]  }
  0x3a   : > { %902 = vmatpush1.bf16.msra.mxu0 %v1356_v35  ;;  %v1445_v35 = vld [vmem:[%s1529_s25 + $0x2d4] ss:$8 sps:$4 sm:$0xff]  }
  0x3b   : > { %943 = vmatpush1.bf16.msra.mxu1 %v1357_v36  ;;  %903 = vmatprep.subr.bf16.mxu0 %v1358_v37  ;;  %v1443_v36 = vld [vmem:[%s1529_s25 + $0x2d0] ss:$8 sps:$4 sm:$0xff]   ;;  %v1448_v37 = vld [vmem:[%s1529_s25 + $0x2e4] ss:$8 sps:$4 sm:$0xff]  }
  0x3c   : > { %944 = vmatprep.subr.bf16.mxu1 %v1360_v38  ;;  %v1446_v38 = vld [vmem:[%s1529_s25 + $0x2e0] ss:$8 sps:$4 sm:$0xff]  }
  0x3e   : > { %904 = vmatpush1.bf16.msra.mxu0 %v1362_v39  ;;  %v1451_v39 = vld [vmem:[%s1529_s25 + $0x2f4] ss:$8 sps:$4 sm:$0xff]  }
  0x3f   : > { %945 = vmatpush1.bf16.msra.mxu1 %v1363_v40  ;;  %905 = vmatprep.subr.bf16.mxu0 %v1364_v41  ;;  %v1449_v40 = vld [vmem:[%s1529_s25 + $0x2f0] ss:$8 sps:$4 sm:$0xff]   ;;  %v1173_v41 = vcombine.low %v1601_v9, %v1601_v9 }
  0x40   : > { %946 = vmatprep.subr.bf16.mxu1 %v1366_v42 }
  0x42   : > { %906 = vmatpush1.bf16.msra.mxu0 %v1368_v43 }
  0x43   : > { %947 = vmatpush1.bf16.msra.mxu1 %v1369_v44  ;;  %907 = vmatprep.subr.bf16.mxu0 %v1370_v45 }
  0x44   : > { %948 = vmatprep.subr.bf16.mxu1 %v1372_v46 }
  0x46   : > { %908 = vmatpush1.bf16.msra.mxu0 %v1374_v50 }
  0x47   : > { %949 = vmatpush1.bf16.msra.mxu1 %v1375_v51  ;;  %909 = vmatprep.subr.bf16.mxu0 %v1376_v53 }
  0x48   : > { %950 = vmatprep.subr.bf16.mxu1 %v1378_v54 }
  0x4a   : > { %910 = vmatpush1.bf16.msra.mxu0 %v1380_v55  ;;  %v284_v55 = vld [vmem:[#allocation2 + $0x8] sm:$0xff] }
  0x4b   : > { %951 = vmatpush1.bf16.msra.mxu1 %v1381_v56  ;;  %911 = vmatprep.subr.bf16.mxu0 %v1382_v57 }
  0x4c   : > { %952 = vmatprep.subr.bf16.mxu1 %v1384_v58 }
  0x4e   : > { %912 = vmatpush1.bf16.msra.mxu0 %v1386_v59 }
  0x4f   : > { %953 = vmatpush1.bf16.msra.mxu1 %v1387_v60  ;;  %913 = vmatprep.subr.bf16.mxu0 %v1388_v61 }
  0x50   : > { %954 = vmatprep.subr.bf16.mxu1 %v1390_v62  ;;  %v1020_v62 = vlaneseq (!%p1271_p7) }
  0x52   : > { %914 = vmatpush1.bf16.msra.mxu0 %v1392_v63  ;;  %v1021_v63 = vshrl.u32 (!%p1271_p7), %v1020_v62, 7 }
  0x53   : > { %955 = vmatpush1.bf16.msra.mxu1 %v1393_v0  ;;  %915 = vmatprep.subr.bf16.mxu0 %v1394_v1  ;;  %v1018_v0 = vld [vmem:[%s1655_s2] sm:$0x3] (!%p1271_p7) }
  0x54   : > { %956 = vmatprep.subr.bf16.mxu1 %v1396_v2  ;;  %v1022_v1 = vsub.s32 (!%p1271_p7), 0, %v1021_v63  ;;  %v1026_v2 = vsub.s32 (!%p1271_p7), 1, %v1021_v63 }
  0x56   : > { %916 = vmatpush1.bf16.msra.mxu0 %v1398_v3 }
  0x57   : > { %957 = vmatpush1.bf16.msra.mxu1 %v1399_v4  ;;  %967 = vmatprep.subr.bf16.mxu0 %v1406_v5  ;;  %v1023_v5 = vrot.slane (!%p1271_p7), %v1018_v0, %v1022_v1 }
  0x59   : > { %918 = vmatmul.mubr.bf16.vlgmr.msra.gmra.mrb[0].mxu0 %v1169_v6  ;;  %v1027_v6 = vrot.slane (!%p1271_p7), %v1018_v0, %v1026_v2 }
  0x5a   : > { %959 = vmatmul.mubr.bf16.vlgmr.msra.gmra.mrb[0].mxu1 %v1171_v7  ;;  %968 = vmatpush1.bf16.msra.mxu0 %v1404_v8 }
  0x5b   : > { %999 = vmatprep.mubr.bf16.mxu0 %v1174_v11  ;;  %969 = vmatprep.subr.bf16.mxu0 %v1409_v10 }
  0x5e   : > { %970 = vmatpush1.bf16.msra.mxu0 %v1407_v12 }
  0x5f   : > { %971 = vmatprep.subr.bf16.mxu0 %v1412_v13 }
  0x62   : > { %972 = vmatpush1.bf16.msra.mxu0 %v1410_v14 }
  0x63   : > { %973 = vmatprep.subr.bf16.mxu0 %v1415_v15 }
  0x66   : > { %974 = vmatpush1.bf16.msra.mxu0 %v1413_v16 }
  0x67   : > { %975 = vmatprep.subr.bf16.mxu0 %v1418_v17 }
  0x6a   : > { %976 = vmatpush1.bf16.msra.mxu0 %v1416_v18 }
  0x6b   : > { %977 = vmatprep.subr.bf16.mxu0 %v1421_v19 }
  0x6e   : > { %978 = vmatpush1.bf16.msra.mxu0 %v1419_v20 }
  0x6f   : > { %979 = vmatprep.subr.bf16.mxu0 %v1424_v21 }
  0x72   : > { %980 = vmatpush1.bf16.msra.mxu0 %v1422_v22 }
  0x73   : > { %981 = vmatprep.subr.bf16.mxu0 %v1427_v23 }
  0x76   : > { %982 = vmatpush1.bf16.msra.mxu0 %v1425_v24 }
  0x77   : > { %983 = vmatprep.subr.bf16.mxu0 %v1430_v25 }
  0x7a   : > { %984 = vmatpush1.bf16.msra.mxu0 %v1428_v26 }
  0x7b   : > { %985 = vmatprep.subr.bf16.mxu0 %v1433_v27 }
  0x7e   : > { %986 = vmatpush1.bf16.msra.mxu0 %v1431_v28 }
  0x7f   : > { %987 = vmatprep.subr.bf16.mxu0 %v1436_v29 }
  0x82   : > { %988 = vmatpush1.bf16.msra.mxu0 %v1434_v30 }
  0x83   : > { %989 = vmatprep.subr.bf16.mxu0 %v1439_v31 }
  0x86   : > { %990 = vmatpush1.bf16.msra.mxu0 %v1437_v32 }
  0x87   : > { %991 = vmatprep.subr.bf16.mxu0 %v1442_v33 }
  0x8a   : > { %992 = vmatpush1.bf16.msra.mxu0 %v1440_v34 }
  0x8b   : > { %993 = vmatprep.subr.bf16.mxu0 %v1445_v35 }
  0x8e   : > { %994 = vmatpush1.bf16.msra.mxu0 %v1443_v36 }
  0x8f   : > { %995 = vmatprep.subr.bf16.mxu0 %v1448_v37 }
  0x92   : > { %996 = vmatpush1.bf16.msra.mxu0 %v1446_v38 }
  0x93   : > { %997 = vmatprep.subr.bf16.mxu0 %v1451_v39 }
  0x96   : > { %998 = vmatpush1.bf16.msra.mxu0 %v1449_v40 }
  0x99   : > { %1000 = vmatmul.mubr.bf16.vlgmr.msra.gmra.mrb[4].mxu0 %v1173_v41 }
 0x12c   : > { %v919_v42 = vpop.f32.mrb[0].mxu0 }
 0x12d   : > { %v960_v43 = vpop.f32.mrb[0].mxu1  ;;  %v921_v45 = vpop.f32.mrb[1].mxu0 }
 0x12e   : > { %v961_v44 = vadd.f32 %v960_v43, %v919_v42  ;;  %v962_v46 = vpop.f32.mrb[1].mxu1  ;;  %v923_v48 = vpop.f32.mrb[2].mxu0 }
 0x12f   : > { %v963_v47 = vadd.f32 %v962_v46, %v921_v45  ;;  %v964_v49 = vpop.f32.mrb[2].mxu1  ;;  %v924_v50 = vpop.f32.mrb[3].mxu0 }
 0x130   : > { %v965_v51 = vpop.f32.mrb[3].mxu1 }
 0x16c   : > { %v1001_v53 = vpop.f32.mrb[4].mxu0  ;;  %1015 = sbr.rel (%p1271_p7) target bundleno = 385 (0x181), region = 40 }
 0x16d   : > { %v1002_v54 = vadd.f32 %v1001_v53, %v961_v44  ;;  %v1003_v56 = vpop.f32.mrb[5].mxu0 }
 0x16e   : > { %v1004_v57 = vadd.f32 %v1003_v56, %v963_v47  ;;  %v1005_v58 = vpop.f32.mrb[6].mxu0 }
 0x16f   : > { %v1008_v59 = vadd.f32 %v1002_v54, %v283_v52  ;;  %v1006_v60 = vpop.f32.mrb[7].mxu0 }
 0x170   : > { %v1009_v61 = vadd.f32 %v1004_v57, %v284_v55 }
 0x171   : > { %1010 = vst [vmem:[#allocation2] sm:$0xff] %v1008_v59 }
 0x172   : > { %1011 = vst [vmem:[#allocation2 + $0x8] sm:$0xff] %v1009_v61 }
 0x178   : > { %v1016_v3 = vld [vmem:[#allocation2] sm:$0xff] }
 0x179   : > { %v1017_v4 = vld [vmem:[#allocation2 + $0x8] sm:$0xff]  ;;  %v1030_v7 = vadd.f32 %v1023_v5, %v1016_v3 }
 0x17a   : > { %v1031_v8 = vadd.f32 %v1027_v6, %v1017_v4 }
 0x17b   : > { %v1032_v9 = vmax.f32 %v1030_v7, 0.0 }
 0x17c   : > { %v1033_v10 = vmax.f32 %v1031_v8, 0.0 }
 0x17e   : > { %v1278_v11 = vpack.c.bf16 %v1033_v10, %v1032_v9 }
 0x180   : > { %1042 = vst [vmem:[%s1656_s3] sm:$0xff] %v1278_v11 }
 0x181 PF: > { %s13_s14 = sadd.s32 1, %s1476_s14   ;;  %s1657_s12 = smov %s1472_s13 }
 0x182   : > { %p10_p8 = scmp.ge.s32.totalorder %s13_s14, 5   ;;  %s1658_s13 = smov %s1660_s15 }
 0x184   :  { %12 = sbr.rel (!%p10_p8) target bundleno = 2 (0x2), region = 76 }

// kernel: gender_classifier_resnet18_forward.36
= control target key start
LH: loop header
LB: loop body
LE: loop exit
PB: predicated region body
PF: predicated region fallthrough
CT: control target
= control target key end

     0   :  { %s2022_s12 = smov 0   ;;  %s2024_s13 = smov 0   ;;  %s2463_s0 = inlined_call_operand.vmem [shape: bf16[2,2304], index: 0, kind: input, shape index: {}]   ;;  %s2464_s1 = inlined_call_operand.vmem [shape: bf16[2304,512], index: 1, kind: input, shape index: {}]   ;;  %s2465_s2 = inlined_call_operand.vmem [shape: f32[1,512], index: 2, kind: input, shape index: {}]   ;;  %s2466_s3 = inlined_call_operand.vmem [shape: bf16[2,512], index: 3, kind: output, shape index: {}]  }
   0x1   :  { %s2026_s14 = smov 0   ;;  %s2028_s15 = smov 0  }
   0x2   :  { %s2030_s16 = smov 0   ;;  %s2032_s17 = smov 0  }
   0x3   :  { %s2034_s18 = smov 0  }
   0x4 LB: > { %s25_s19 = sadd.s32 1, %s1989_s16  ;;  %s28_s20 = sadd.s32 1, %s1993_s17  ;;  %s1997_s18 = sphi %s2034_s18, %s13_s18   ;;  %s1993_s17 = sphi %s2032_s17, %s2472_s17   ;;  %s1989_s16 = sphi %s2030_s16, %s2471_s16   ;;  %s1985_s15 = sphi %s2028_s15, %s2470_s15   ;;  %s1981_s14 = sphi %s2026_s14, %s2469_s14   ;;  %s1977_s13 = sphi %s2024_s13, %s2468_s13   ;;  %s1973_s12 = sphi %s2022_s12, %s2467_s12  }
   0x5   : > { %p26_p0 = scmp.ge.s32.totalorder %s25_s19, 3  ;;  %p76_p1 = scmp.ne.s32.totalorder %s1977_s13, %s1973_s12 }
   0x6   : > { %p77_p2 = scmp.eq.s32.totalorder %s1997_s18, 0  ;;  %s69_s24 = sadd.s32 1, %s1977_s13 }
   0x7   : > { %s2474_s19 = smov (%p26_p0, %s25_s19), 0  ;;  %s2476_s20 = smov (!%p26_p0, %s28_s20), %s1993_s17 }
   0x8   : > { %p78_p3 = por %p77_p2, %p76_p1  ;;  %p30_p4 = scmp.ge.s32.totalorder %s2476_s20, 2 }
   0x9   : > { %s64_s21 = ssub.s32 %s1989_s16, %s2474_s19  ;;  %p1621_p6 = scmp.ge.s32.totalorder %s1997_s18, 6 }
   0xa   : > { %s2478_s20 = smov (%p30_p4, %s2476_s20), 0 }
   0xb   : > { %s65_s22 = ssub.s32 %s1993_s17, %s2478_s20  ;;  %156 = sbr.rel (%p1621_p6) target bundleno = 74 (0x4a), region = 16 }
   0xc   : > { %s66_s23 = sor.u32 %s65_s22, %s64_s21 }
   0xd   : > { %p67_p5 = scmp.eq.s32.totalorder %s66_s23, 0 }
   0xf   : > { %s2073_s25 = scalar_select %p67_p5, %s1977_s13, %s69_s24  }
  0x12   : > { %171 = sbr.rel (!%p78_p3) target bundleno = 74 (0x4a), region = 24  ;;  %s173_s26 = sand.u32 (%p78_p3), 1, %s1977_s13  }
  0x13   : > { %s1737_s27 = smul.u32 (%p78_p3), 768, %s173_s26  ;;  %s1622_s28 = sshll.u32 (%p78_p3), %s1993_s17, 1 }
  0x14   : > { %s1730_s29 = smul.u32 (%p78_p3), 384, %s1989_s16 }
  0x15   : > { %s2087_s8 = scalar_lea.vmem (%p78_p3), [#allocation3], %s1737_s27 }
  0x16   : > { %s179_s30 = sadd.s32 (%p78_p3), %s1730_s29, %s1622_s28 }
  0x17   : > { %s1624_s4 = sshll.u32 (%p78_p3), %s179_s30, 2 }
  0x18   : > { %s2082_s7 = scalar_lea.vmem (%p78_p3), %s2464_s1, %s1624_s4 }
  0x19   : > { %v399_v0 = vld [vmem:[%s2082_s7] sm:$0xff]  ;;  %v401_v1 = vld [vmem:[%s2082_s7 + $0x10] sm:$0xff] }
  0x1a   : > { %v403_v2 = vld [vmem:[%s2082_s7 + $0x20] sm:$0xff]  ;;  %400 = vst [vmem:[%s2087_s8] sm:$0xff] %v399_v0  ;;  %402 = vst [vmem:[%s2087_s8 + $0x8] sm:$0xff] %v401_v1  ;;  %v405_v3 = vld [vmem:[%s2082_s7 + $0x30] sm:$0xff] }
  0x1b   : > { %404 = vst [vmem:[%s2087_s8 + $0x10] sm:$0xff] %v403_v2  ;;  %v407_v4 = vld [vmem:[%s2082_s7 + $0x40] sm:$0xff]  ;;  %v409_v5 = vld [vmem:[%s2082_s7 + $0x50] sm:$0xff]  ;;  %406 = vst [vmem:[%s2087_s8 + $0x18] sm:$0xff] %v405_v3 }
  0x1c   : > { %408 = vst [vmem:[%s2087_s8 + $0x20] sm:$0xff] %v407_v4  ;;  %410 = vst [vmem:[%s2087_s8 + $0x28] sm:$0xff] %v409_v5  ;;  %v411_v6 = vld [vmem:[%s2082_s7 + $0x60] sm:$0xff]  ;;  %v413_v7 = vld [vmem:[%s2082_s7 + $0x70] sm:$0xff] }
  0x1d   : > { %v415_v8 = vld [vmem:[%s2082_s7 + $0x80] sm:$0xff]  ;;  %412 = vst [vmem:[%s2087_s8 + $0x30] sm:$0xff] %v411_v6  ;;  %414 = vst [vmem:[%s2087_s8 + $0x38] sm:$0xff] %v413_v7  ;;  %v417_v9 = vld [vmem:[%s2082_s7 + $0x90] sm:$0xff] }
  0x1e   : > { %416 = vst [vmem:[%s2087_s8 + $0x40] sm:$0xff] %v415_v8  ;;  %v419_v10 = vld [vmem:[%s2082_s7 + $0xa0] sm:$0xff]  ;;  %v421_v11 = vld [vmem:[%s2082_s7 + $0xb0] sm:$0xff]  ;;  %418 = vst [vmem:[%s2087_s8 + $0x48] sm:$0xff] %v417_v9 }
  0x1f   : > { %420 = vst [vmem:[%s2087_s8 + $0x50] sm:$0xff] %v419_v10  ;;  %422 = vst [vmem:[%s2087_s8 + $0x58] sm:$0xff] %v421_v11  ;;  %v423_v12 = vld [vmem:[%s2082_s7 + $0xc0] sm:$0xff]  ;;  %v425_v13 = vld [vmem:[%s2082_s7 + $0xd0] sm:$0xff] }
  0x20   : > { %v427_v14 = vld [vmem:[%s2082_s7 + $0xe0] sm:$0xff]  ;;  %424 = vst [vmem:[%s2087_s8 + $0x60] sm:$0xff] %v423_v12  ;;  %426 = vst [vmem:[%s2087_s8 + $0x68] sm:$0xff] %v425_v13  ;;  %v429_v15 = vld [vmem:[%s2082_s7 + $0xf0] sm:$0xff] }
  0x21   : > { %428 = vst [vmem:[%s2087_s8 + $0x70] sm:$0xff] %v427_v14  ;;  %v431_v16 = vld [vmem:[%s2082_s7 + $0x100] sm:$0xff]  ;;  %v433_v17 = vld [vmem:[%s2082_s7 + $0x110] sm:$0xff]  ;;  %430 = vst [vmem:[%s2087_s8 + $0x78] sm:$0xff] %v429_v15 }
  0x22   : > { %432 = vst [vmem:[%s2087_s8 + $0x80] sm:$0xff] %v431_v16  ;;  %434 = vst [vmem:[%s2087_s8 + $0x88] sm:$0xff] %v433_v17  ;;  %v435_v18 = vld [vmem:[%s2082_s7 + $0x120] sm:$0xff]  ;;  %v437_v19 = vld [vmem:[%s2082_s7 + $0x130] sm:$0xff] }
  0x23   : > { %v439_v20 = vld [vmem:[%s2082_s7 + $0x140] sm:$0xff]  ;;  %436 = vst [vmem:[%s2087_s8 + $0x90] sm:$0xff] %v435_v18  ;;  %438 = vst [vmem:[%s2087_s8 + $0x98] sm:$0xff] %v437_v19  ;;  %v441_v21 = vld [vmem:[%s2082_s7 + $0x150] sm:$0xff] }
  0x24   : > { %440 = vst [vmem:[%s2087_s8 + $0xa0] sm:$0xff] %v439_v20  ;;  %v443_v22 = vld [vmem:[%s2082_s7 + $0x160] sm:$0xff]  ;;  %v445_v23 = vld [vmem:[%s2082_s7 + $0x170] sm:$0xff]  ;;  %442 = vst [vmem:[%s2087_s8 + $0xa8] sm:$0xff] %v441_v21 }
  0x25   : > { %444 = vst [vmem:[%s2087_s8 + $0xb0] sm:$0xff] %v443_v22  ;;  %446 = vst [vmem:[%s2087_s8 + $0xb8] sm:$0xff] %v445_v23  ;;  %v447_v24 = vld [vmem:[%s2082_s7 + $0x180] sm:$0xff]  ;;  %v449_v25 = vld [vmem:[%s2082_s7 + $0x190] sm:$0xff] }
  0x26   : > { %v451_v26 = vld [vmem:[%s2082_s7 + $0x1a0] sm:$0xff]  ;;  %448 = vst [vmem:[%s2087_s8 + $0xc0] sm:$0xff] %v447_v24  ;;  %450 = vst [vmem:[%s2087_s8 + $0xc8] sm:$0xff] %v449_v25  ;;  %v453_v27 = vld [vmem:[%s2082_s7 + $0x1b0] sm:$0xff] }
  0x27   : > { %452 = vst [vmem:[%s2087_s8 + $0xd0] sm:$0xff] %v451_v26  ;;  %v455_v28 = vld [vmem:[%s2082_s7 + $0x1c0] sm:$0xff]  ;;  %v457_v29 = vld [vmem:[%s2082_s7 + $0x1d0] sm:$0xff]  ;;  %454 = vst [vmem:[%s2087_s8 + $0xd8] sm:$0xff] %v453_v27 }
  0x28   : > { %456 = vst [vmem:[%s2087_s8 + $0xe0] sm:$0xff] %v455_v28  ;;  %458 = vst [vmem:[%s2087_s8 + $0xe8] sm:$0xff] %v457_v29  ;;  %v459_v30 = vld [vmem:[%s2082_s7 + $0x1e0] sm:$0xff]  ;;  %v461_v31 = vld [vmem:[%s2082_s7 + $0x1f0] sm:$0xff] }
  0x29   : > { %v463_v32 = vld [vmem:[%s2082_s7 + $0x200] sm:$0xff]  ;;  %460 = vst [vmem:[%s2087_s8 + $0xf0] sm:$0xff] %v459_v30  ;;  %462 = vst [vmem:[%s2087_s8 + $0xf8] sm:$0xff] %v461_v31  ;;  %v465_v33 = vld [vmem:[%s2082_s7 + $0x210] sm:$0xff] }
  0x2a   : > { %464 = vst [vmem:[%s2087_s8 + $0x100] sm:$0xff] %v463_v32  ;;  %v467_v34 = vld [vmem:[%s2082_s7 + $0x220] sm:$0xff]  ;;  %v469_v35 = vld [vmem:[%s2082_s7 + $0x230] sm:$0xff]  ;;  %466 = vst [vmem:[%s2087_s8 + $0x108] sm:$0xff] %v465_v33 }
  0x2b   : > { %468 = vst [vmem:[%s2087_s8 + $0x110] sm:$0xff] %v467_v34  ;;  %470 = vst [vmem:[%s2087_s8 + $0x118] sm:$0xff] %v469_v35  ;;  %v471_v36 = vld [vmem:[%s2082_s7 + $0x240] sm:$0xff]  ;;  %v473_v37 = vld [vmem:[%s2082_s7 + $0x250] sm:$0xff] }
  0x2c   : > { %v475_v38 = vld [vmem:[%s2082_s7 + $0x260] sm:$0xff]  ;;  %472 = vst [vmem:[%s2087_s8 + $0x120] sm:$0xff] %v471_v36  ;;  %474 = vst [vmem:[%s2087_s8 + $0x128] sm:$0xff] %v473_v37  ;;  %v477_v39 = vld [vmem:[%s2082_s7 + $0x270] sm:$0xff] }
  0x2d   : > { %476 = vst [vmem:[%s2087_s8 + $0x130] sm:$0xff] %v475_v38  ;;  %v479_v40 = vld [vmem:[%s2082_s7 + $0x280] sm:$0xff]  ;;  %v481_v41 = vld [vmem:[%s2082_s7 + $0x290] sm:$0xff]  ;;  %478 = vst [vmem:[%s2087_s8 + $0x138] sm:$0xff] %v477_v39 }
  0x2e   : > { %480 = vst [vmem:[%s2087_s8 + $0x140] sm:$0xff] %v479_v40  ;;  %482 = vst [vmem:[%s2087_s8 + $0x148] sm:$0xff] %v481_v41  ;;  %v483_v42 = vld [vmem:[%s2082_s7 + $0x2a0] sm:$0xff]  ;;  %v485_v43 = vld [vmem:[%s2082_s7 + $0x2b0] sm:$0xff] }
  0x2f   : > { %v487_v44 = vld [vmem:[%s2082_s7 + $0x2c0] sm:$0xff]  ;;  %484 = vst [vmem:[%s2087_s8 + $0x150] sm:$0xff] %v483_v42  ;;  %486 = vst [vmem:[%s2087_s8 + $0x158] sm:$0xff] %v485_v43  ;;  %v489_v45 = vld [vmem:[%s2082_s7 + $0x2d0] sm:$0xff] }
  0x30   : > { %488 = vst [vmem:[%s2087_s8 + $0x160] sm:$0xff] %v487_v44  ;;  %v491_v46 = vld [vmem:[%s2082_s7 + $0x2e0] sm:$0xff]  ;;  %v493_v47 = vld [vmem:[%s2082_s7 + $0x2f0] sm:$0xff]  ;;  %490 = vst [vmem:[%s2087_s8 + $0x168] sm:$0xff] %v489_v45 }
  0x31   : > { %492 = vst [vmem:[%s2087_s8 + $0x170] sm:$0xff] %v491_v46  ;;  %494 = vst [vmem:[%s2087_s8 + $0x178] sm:$0xff] %v493_v47  ;;  %v495_v48 = vld [vmem:[%s2082_s7 + $0x300] sm:$0xff]  ;;  %v497_v49 = vld [vmem:[%s2082_s7 + $0x310] sm:$0xff] }
  0x32   : > { %v499_v50 = vld [vmem:[%s2082_s7 + $0x320] sm:$0xff]  ;;  %496 = vst [vmem:[%s2087_s8 + $0x180] sm:$0xff] %v495_v48  ;;  %498 = vst [vmem:[%s2087_s8 + $0x188] sm:$0xff] %v497_v49  ;;  %v501_v51 = vld [vmem:[%s2082_s7 + $0x330] sm:$0xff] }
  0x33   : > { %500 = vst [vmem:[%s2087_s8 + $0x190] sm:$0xff] %v499_v50  ;;  %v503_v52 = vld [vmem:[%s2082_s7 + $0x340] sm:$0xff]  ;;  %v505_v53 = vld [vmem:[%s2082_s7 + $0x350] sm:$0xff]  ;;  %502 = vst [vmem:[%s2087_s8 + $0x198] sm:$0xff] %v501_v51 }
  0x34   : > { %504 = vst [vmem:[%s2087_s8 + $0x1a0] sm:$0xff] %v503_v52  ;;  %506 = vst [vmem:[%s2087_s8 + $0x1a8] sm:$0xff] %v505_v53  ;;  %v507_v54 = vld [vmem:[%s2082_s7 + $0x360] sm:$0xff]  ;;  %v509_v55 = vld [vmem:[%s2082_s7 + $0x370] sm:$0xff] }
  0x35   : > { %v511_v56 = vld [vmem:[%s2082_s7 + $0x380] sm:$0xff]  ;;  %508 = vst [vmem:[%s2087_s8 + $0x1b0] sm:$0xff] %v507_v54  ;;  %510 = vst [vmem:[%s2087_s8 + $0x1b8] sm:$0xff] %v509_v55  ;;  %v513_v57 = vld [vmem:[%s2082_s7 + $0x390] sm:$0xff] }
  0x36   : > { %512 = vst [vmem:[%s2087_s8 + $0x1c0] sm:$0xff] %v511_v56  ;;  %v515_v58 = vld [vmem:[%s2082_s7 + $0x3a0] sm:$0xff]  ;;  %v517_v59 = vld [vmem:[%s2082_s7 + $0x3b0] sm:$0xff]  ;;  %514 = vst [vmem:[%s2087_s8 + $0x1c8] sm:$0xff] %v513_v57 }
  0x37   : > { %516 = vst [vmem:[%s2087_s8 + $0x1d0] sm:$0xff] %v515_v58  ;;  %518 = vst [vmem:[%s2087_s8 + $0x1d8] sm:$0xff] %v517_v59  ;;  %v519_v60 = vld [vmem:[%s2082_s7 + $0x3c0] sm:$0xff]  ;;  %v521_v61 = vld [vmem:[%s2082_s7 + $0x3d0] sm:$0xff] }
  0x38   : > { %v523_v62 = vld [vmem:[%s2082_s7 + $0x3e0] sm:$0xff]  ;;  %520 = vst [vmem:[%s2087_s8 + $0x1e0] sm:$0xff] %v519_v60  ;;  %522 = vst [vmem:[%s2087_s8 + $0x1e8] sm:$0xff] %v521_v61  ;;  %v525_v63 = vld [vmem:[%s2082_s7 + $0x3f0] sm:$0xff] }
  0x39   : > { %524 = vst [vmem:[%s2087_s8 + $0x1f0] sm:$0xff] %v523_v62  ;;  %v527_v0 = vld [vmem:[%s2082_s7 + $0x400] sm:$0xff]  ;;  %v529_v1 = vld [vmem:[%s2082_s7 + $0x410] sm:$0xff]  ;;  %526 = vst [vmem:[%s2087_s8 + $0x1f8] sm:$0xff] %v525_v63 }
  0x3a   : > { %528 = vst [vmem:[%s2087_s8 + $0x200] sm:$0xff] %v527_v0  ;;  %530 = vst [vmem:[%s2087_s8 + $0x208] sm:$0xff] %v529_v1  ;;  %v531_v2 = vld [vmem:[%s2082_s7 + $0x420] sm:$0xff]  ;;  %v533_v3 = vld [vmem:[%s2082_s7 + $0x430] sm:$0xff] }
  0x3b   : > { %v535_v4 = vld [vmem:[%s2082_s7 + $0x440] sm:$0xff]  ;;  %532 = vst [vmem:[%s2087_s8 + $0x210] sm:$0xff] %v531_v2  ;;  %534 = vst [vmem:[%s2087_s8 + $0x218] sm:$0xff] %v533_v3  ;;  %v537_v5 = vld [vmem:[%s2082_s7 + $0x450] sm:$0xff] }
  0x3c   : > { %536 = vst [vmem:[%s2087_s8 + $0x220] sm:$0xff] %v535_v4  ;;  %v539_v6 = vld [vmem:[%s2082_s7 + $0x460] sm:$0xff]  ;;  %v541_v7 = vld [vmem:[%s2082_s7 + $0x470] sm:$0xff]  ;;  %538 = vst [vmem:[%s2087_s8 + $0x228] sm:$0xff] %v537_v5 }
  0x3d   : > { %540 = vst [vmem:[%s2087_s8 + $0x230] sm:$0xff] %v539_v6  ;;  %542 = vst [vmem:[%s2087_s8 + $0x238] sm:$0xff] %v541_v7  ;;  %v543_v8 = vld [vmem:[%s2082_s7 + $0x480] sm:$0xff]  ;;  %v545_v9 = vld [vmem:[%s2082_s7 + $0x490] sm:$0xff] }
  0x3e   : > { %v547_v10 = vld [vmem:[%s2082_s7 + $0x4a0] sm:$0xff]  ;;  %544 = vst [vmem:[%s2087_s8 + $0x240] sm:$0xff] %v543_v8  ;;  %546 = vst [vmem:[%s2087_s8 + $0x248] sm:$0xff] %v545_v9  ;;  %v549_v11 = vld [vmem:[%s2082_s7 + $0x4b0] sm:$0xff] }
  0x3f   : > { %548 = vst [vmem:[%s2087_s8 + $0x250] sm:$0xff] %v547_v10  ;;  %v551_v12 = vld [vmem:[%s2082_s7 + $0x4c0] sm:$0xff]  ;;  %v553_v13 = vld [vmem:[%s2082_s7 + $0x4d0] sm:$0xff]  ;;  %550 = vst [vmem:[%s2087_s8 + $0x258] sm:$0xff] %v549_v11 }
  0x40   : > { %552 = vst [vmem:[%s2087_s8 + $0x260] sm:$0xff] %v551_v12  ;;  %554 = vst [vmem:[%s2087_s8 + $0x268] sm:$0xff] %v553_v13  ;;  %v555_v14 = vld [vmem:[%s2082_s7 + $0x4e0] sm:$0xff]  ;;  %v557_v15 = vld [vmem:[%s2082_s7 + $0x4f0] sm:$0xff] }
  0x41   : > { %v559_v16 = vld [vmem:[%s2082_s7 + $0x500] sm:$0xff]  ;;  %556 = vst [vmem:[%s2087_s8 + $0x270] sm:$0xff] %v555_v14  ;;  %558 = vst [vmem:[%s2087_s8 + $0x278] sm:$0xff] %v557_v15  ;;  %v561_v17 = vld [vmem:[%s2082_s7 + $0x510] sm:$0xff] }
  0x42   : > { %560 = vst [vmem:[%s2087_s8 + $0x280] sm:$0xff] %v559_v16  ;;  %v563_v18 = vld [vmem:[%s2082_s7 + $0x520] sm:$0xff]  ;;  %v565_v19 = vld [vmem:[%s2082_s7 + $0x530] sm:$0xff]  ;;  %562 = vst [vmem:[%s2087_s8 + $0x288] sm:$0xff] %v561_v17 }
  0x43   : > { %564 = vst [vmem:[%s2087_s8 + $0x290] sm:$0xff] %v563_v18  ;;  %566 = vst [vmem:[%s2087_s8 + $0x298] sm:$0xff] %v565_v19  ;;  %v567_v20 = vld [vmem:[%s2082_s7 + $0x540] sm:$0xff]  ;;  %v569_v21 = vld [vmem:[%s2082_s7 + $0x550] sm:$0xff] }
  0x44   : > { %v571_v22 = vld [vmem:[%s2082_s7 + $0x560] sm:$0xff]  ;;  %568 = vst [vmem:[%s2087_s8 + $0x2a0] sm:$0xff] %v567_v20  ;;  %570 = vst [vmem:[%s2087_s8 + $0x2a8] sm:$0xff] %v569_v21  ;;  %v573_v23 = vld [vmem:[%s2082_s7 + $0x570] sm:$0xff] }
  0x45   : > { %572 = vst [vmem:[%s2087_s8 + $0x2b0] sm:$0xff] %v571_v22  ;;  %v575_v24 = vld [vmem:[%s2082_s7 + $0x580] sm:$0xff]  ;;  %v577_v25 = vld [vmem:[%s2082_s7 + $0x590] sm:$0xff]  ;;  %574 = vst [vmem:[%s2087_s8 + $0x2b8] sm:$0xff] %v573_v23 }
  0x46   : > { %576 = vst [vmem:[%s2087_s8 + $0x2c0] sm:$0xff] %v575_v24  ;;  %578 = vst [vmem:[%s2087_s8 + $0x2c8] sm:$0xff] %v577_v25  ;;  %v579_v26 = vld [vmem:[%s2082_s7 + $0x5a0] sm:$0xff]  ;;  %v581_v27 = vld [vmem:[%s2082_s7 + $0x5b0] sm:$0xff] }
  0x47   : > { %v583_v28 = vld [vmem:[%s2082_s7 + $0x5c0] sm:$0xff]  ;;  %580 = vst [vmem:[%s2087_s8 + $0x2d0] sm:$0xff] %v579_v26  ;;  %582 = vst [vmem:[%s2087_s8 + $0x2d8] sm:$0xff] %v581_v27  ;;  %v585_v29 = vld [vmem:[%s2082_s7 + $0x5d0] sm:$0xff] }
  0x48   : > { %584 = vst [vmem:[%s2087_s8 + $0x2e0] sm:$0xff] %v583_v28  ;;  %v587_v30 = vld [vmem:[%s2082_s7 + $0x5e0] sm:$0xff]  ;;  %v589_v31 = vld [vmem:[%s2082_s7 + $0x5f0] sm:$0xff]  ;;  %586 = vst [vmem:[%s2087_s8 + $0x2e8] sm:$0xff] %v585_v29 }
  0x49   : > { %588 = vst [vmem:[%s2087_s8 + $0x2f0] sm:$0xff] %v587_v30  ;;  %590 = vst [vmem:[%s2087_s8 + $0x2f8] sm:$0xff] %v589_v31 }
  0x4a PF: > { %p1625_p7 = scmp.ge.s32.totalorder %s1997_s18, 1  ;;  %p603_p8 = scmp.lt.s32.totalorder %s1997_s18, 7 }
  0x4c   : > { %p604_p9 = pnand %p1625_p7, %p603_p8 }
  0x4d   : > { %s610_s9 = sand.u32 (!%p604_p9), 1, %s1973_s12   ;;  %s648_s10 = smul.u32 (!%p604_p9), 6, %s1981_s14 }
  0x4e   : > { %607 = sbr.rel (%p604_p9) target bundleno = 465 (0x1d1), region = 66  ;;  %s1626_s21 = sshll.u32 (!%p604_p9), %s1985_s15, 1 }
  0x4f   : > { %s1738_s11 = smul.u32 (!%p604_p9), 768, %s610_s9  ;;  %p651_p10 = scmp.lt.s32.totalorder (!%p604_p9), %s648_s10, 17 }
  0x50   : > { %p660_p11 = scmp.lt.s32.totalorder (!%p604_p9), %s1626_s21, 3  ;;  %p1628_p12 = scmp.ne.s32.totalorder (!%p604_p9), %s1981_s14, 0 }
  0x51   : > { %s2299_s30 = scalar_lea.vmem (!%p604_p9), [#allocation3], %s1738_s11 }
  0x55   : > { %s2480_s10 = smov (!%p651_p10, %s648_s10), 17  ;;  %s2482_s21 = smov (!%p660_p11, %s1626_s21), 3 }
  0x56   : > { %s655_s24 = scalar_lea.vmem %s2463_s0, %s2480_s10  ;;  %s662_s12 = scalar_lea.vmem %s2465_s2, %s2482_s21  ;;  %v1999_v32 = vmov (!%p1628_p12), 0.0  }
  0x57   : > { %s671_s15 = scalar_lea.vmem %s2466_s3, %s2482_s21  ;;  %676 = sbr.rel (%p1628_p12) target bundleno = 94 (0x5e), region = 74  ;;  %677 = vst [vmem:[#allocation2] sm:$0xf] (!%p1628_p12), %v1999_v32 }
  0x5e PF: > { %v1798_v33 = vld [vmem:[%s2299_s30 + $0x104] ss:$8 sps:$4 sm:$0xff]   ;;  %v1800_v34 = vld [vmem:[%s2299_s30 + $0x100] ss:$8 sps:$4 sm:$0xff]   ;;  %v1801_v35 = vld [vmem:[%s2299_s30 + $0x114] ss:$8 sps:$4 sm:$0xff]   ;;  %v781_v43 = vlaneseq }
  0x5f   : > { %1351 = vmatprep.subr.bf16.mxu0 %v1798_v33  ;;  %v1803_v36 = vld [vmem:[%s2299_s30 + $0x110] ss:$8 sps:$4 sm:$0xff]   ;;  %v1804_v37 = vld [vmem:[%s2299_s30 + $0x124] ss:$8 sps:$4 sm:$0xff]   ;;  %v1806_v38 = vld [vmem:[%s2299_s30 + $0x120] ss:$8 sps:$4 sm:$0xff]  }
  0x60   : > { %1352 = vmatpush1.bf16.msra.mxu0 %v1800_v34  ;;  %v1807_v39 = vld [vmem:[%s2299_s30 + $0x134] ss:$8 sps:$4 sm:$0xff]   ;;  %v1809_v40 = vld [vmem:[%s2299_s30 + $0x130] ss:$8 sps:$4 sm:$0xff]   ;;  %v2000_v41 = vmov 1966171168  }
  0x61   : > { %1353 = vmatprep.subr.bf16.mxu0 %v1801_v35  ;;  %v779_v42 = vunpack.c.l.s4 %v2000_v41  ;;  %v1810_v44 = vld [vmem:[%s2299_s30 + $0x144] ss:$8 sps:$4 sm:$0xff]   ;;  %v1812_v45 = vld [vmem:[%s2299_s30 + $0x140] ss:$8 sps:$4 sm:$0xff]   ;;  %v2312_v47 = vshrl.u32 %v781_v43, 7  ;;  %p1725_p13 = scmp.ne.s32.totalorder %s1981_s14, 2 }
  0x62   : > { %v1813_v48 = vld [vmem:[%s2299_s30 + $0x154] ss:$8 sps:$4 sm:$0xff]   ;;  %v1815_v49 = vld [vmem:[%s2299_s30 + $0x150] ss:$8 sps:$4 sm:$0xff]   ;;  %v1816_v51 = vld [vmem:[%s2299_s30 + $0x164] ss:$8 sps:$4 sm:$0xff]  }
  0x63   : > { %v780_v46 = vunpack.c.0.s8 %v779_v42  ;;  %v1845_v52 = vld [vmem:[%s2299_s30 + $0x4] ss:$8 sps:$4 sm:$0xff]   ;;  %v1848_v53 = vld [vmem:[%s2299_s30] ss:$8 sps:$4 sm:$0xff]   ;;  %v1819_v58 = vld [vmem:[%s2299_s30 + $0x174] ss:$8 sps:$4 sm:$0xff]  }
  0x64   : > { %1354 = vmatpush1.bf16.msra.mxu0 %v1803_v36  ;;  %v679_v54 = vld [vmem:[%s655_s24] sm:$0x3f]  ;;  %1310 = vmatprep.subr.bf16.mxu1 %v1845_v52  ;;  %v1855_v61 = vld [vmem:[%s2299_s30 + $0x10] ss:$8 sps:$4 sm:$0xff]   ;;  %v1822_v63 = vld [vmem:[%s2299_s30 + $0x184] ss:$8 sps:$4 sm:$0xff]  }
  0x65   : > { %1355 = vmatprep.subr.bf16.mxu0 %v1804_v37  ;;  %v2317_v50 = vsub.s32 %v780_v46, %v2312_v47  ;;  %v1818_v55 = vld [vmem:[%s2299_s30 + $0x160] ss:$8 sps:$4 sm:$0xff]   ;;  %v777_v56 = vcombine.high %v679_v54, %v679_v54  ;;  %1311 = vmatpush1.bf16.msra.mxu1 %v1848_v53  ;;  %v1853_v60 = vld [vmem:[%s2299_s30 + $0x14] ss:$8 sps:$4 sm:$0xff]   ;;  %v1821_v62 = vld [vmem:[%s2299_s30 + $0x170] ss:$8 sps:$4 sm:$0xff]  }
  0x66   : > { %1312 = vmatprep.subr.bf16.mxu1 %v1853_v60  ;;  %v1859_v2 = vld [vmem:[%s2299_s30 + $0x24] ss:$8 sps:$4 sm:$0xff]   ;;  %v1861_v3 = vld [vmem:[%s2299_s30 + $0x20] ss:$8 sps:$4 sm:$0xff]   ;;  %v1865_v7 = vld [vmem:[%s2299_s30 + $0x34] ss:$8 sps:$4 sm:$0xff]  }
  0x67   : > { %v2329_v57 = vrot.slane %v679_v54, %v2317_v50  ;;  %v2339_v0 = vrot.slane %v777_v56, %v2317_v50  ;;  %v1824_v6 = vld [vmem:[%s2299_s30 + $0x180] ss:$8 sps:$4 sm:$0xff]   ;;  %v1825_v8 = vld [vmem:[%s2299_s30 + $0x194] ss:$8 sps:$4 sm:$0xff]   ;;  %v1867_v9 = vld [vmem:[%s2299_s30 + $0x30] ss:$8 sps:$4 sm:$0xff]  }
  0x68   : > { %1356 = vmatpush1.bf16.msra.mxu0 %v1806_v38  ;;  %v1871_v10 = vld [vmem:[%s2299_s30 + $0x44] ss:$8 sps:$4 sm:$0xff]   ;;  %v1827_v11 = vld [vmem:[%s2299_s30 + $0x190] ss:$8 sps:$4 sm:$0xff]   ;;  %v1873_v13 = vld [vmem:[%s2299_s30 + $0x40] ss:$8 sps:$4 sm:$0xff]  }
  0x69   : > { %1357 = vmatprep.subr.bf16.mxu0 %v1807_v39  ;;  %v792_v59 = vcombine.high %v2329_v57, %v2329_v57  ;;  %1313 = vmatpush1.bf16.msra.mxu1 %v1855_v61  ;;  %v807_v4 = vrot.slane %v2339_v0, %v2317_v50  ;;  %v1828_v12 = vld [vmem:[%s2299_s30 + $0x1a4] ss:$8 sps:$4 sm:$0xff]   ;;  %v1877_v14 = vld [vmem:[%s2299_s30 + $0x54] ss:$8 sps:$4 sm:$0xff]   ;;  %v1830_v15 = vld [vmem:[%s2299_s30 + $0x1a0] ss:$8 sps:$4 sm:$0xff]   ;;  %v800_v36 = vrot.slane %v2329_v57, %v2317_v50 }
  0x6a   : > { %1314 = vmatprep.subr.bf16.mxu1 %v1859_v2  ;;  %v1831_v16 = vld [vmem:[%s2299_s30 + $0x1b4] ss:$8 sps:$4 sm:$0xff]   ;;  %v1879_v17 = vld [vmem:[%s2299_s30 + $0x50] ss:$8 sps:$4 sm:$0xff]   ;;  %v1883_v18 = vld [vmem:[%s2299_s30 + $0x64] ss:$8 sps:$4 sm:$0xff]   ;;  %v793_v38 = vcombine.high %v2339_v0, %v2339_v0 }
  0x6b   : > { %v814_v1 = vrot.slane %v792_v59, %v2317_v50  ;;  %v1833_v19 = vld [vmem:[%s2299_s30 + $0x1b0] ss:$8 sps:$4 sm:$0xff]   ;;  %v1834_v20 = vld [vmem:[%s2299_s30 + $0x1c4] ss:$8 sps:$4 sm:$0xff]   ;;  %v1885_v21 = vld [vmem:[%s2299_s30 + $0x60] ss:$8 sps:$4 sm:$0xff]   ;;  %v822_v41 = vcombine.high %v800_v36, %v800_v36 }
  0x6c   : > { %1358 = vmatpush1.bf16.msra.mxu0 %v1809_v40  ;;  %v1889_v22 = vld [vmem:[%s2299_s30 + $0x74] ss:$8 sps:$4 sm:$0xff]   ;;  %v1836_v23 = vld [vmem:[%s2299_s30 + $0x1c0] ss:$8 sps:$4 sm:$0xff]   ;;  %v1891_v25 = vld [vmem:[%s2299_s30 + $0x70] ss:$8 sps:$4 sm:$0xff]   ;;  %v821_v43 = vrot.slane %v793_v38, %v2317_v50 }
  0x6d   : > { %1359 = vmatprep.subr.bf16.mxu0 %v1810_v44  ;;  %v823_v5 = vcombine.high %v814_v1, %v814_v1  ;;  %1342 = vmatprep.mubr.bf16.mxu1 %v814_v1  ;;  %v1837_v24 = vld [vmem:[%s2299_s30 + $0x1d4] ss:$8 sps:$4 sm:$0xff]   ;;  %v1895_v26 = vld [vmem:[%s2299_s30 + $0x84] ss:$8 sps:$4 sm:$0xff]   ;;  %v1839_v27 = vld [vmem:[%s2299_s30 + $0x1d0] ss:$8 sps:$4 sm:$0xff]  }
  0x6e   : > { %1315 = vmatpush1.bf16.msra.mxu1 %v1861_v3  ;;  %v1840_v28 = vld [vmem:[%s2299_s30 + $0x1e4] ss:$8 sps:$4 sm:$0xff]   ;;  %v1897_v29 = vld [vmem:[%s2299_s30 + $0x80] ss:$8 sps:$4 sm:$0xff]   ;;  %v1901_v30 = vld [vmem:[%s2299_s30 + $0x94] ss:$8 sps:$4 sm:$0xff]  }
  0x6f   : > { %1383 = vmatprep.mubr.bf16.mxu0 %v823_v5  ;;  %1316 = vmatprep.subr.bf16.mxu1 %v1865_v7  ;;  %v1842_v31 = vld [vmem:[%s2299_s30 + $0x1e0] ss:$8 sps:$4 sm:$0xff]   ;;  %v1843_v32 = vld [vmem:[%s2299_s30 + $0x1f4] ss:$8 sps:$4 sm:$0xff]   ;;  %v1903_v33 = vld [vmem:[%s2299_s30 + $0x90] ss:$8 sps:$4 sm:$0xff]  }
  0x70   : > { %1360 = vmatpush1.bf16.msra.mxu0 %v1812_v45  ;;  %v1907_v34 = vld [vmem:[%s2299_s30 + $0xa4] ss:$8 sps:$4 sm:$0xff]   ;;  %v1847_v35 = vld [vmem:[%s2299_s30 + $0x1f0] ss:$8 sps:$4 sm:$0xff]   ;;  %v1909_v39 = vld [vmem:[%s2299_s30 + $0xa0] ss:$8 sps:$4 sm:$0xff]  }
  0x71   : > { %1361 = vmatprep.subr.bf16.mxu0 %v1813_v48  ;;  %v1852_v37 = vld [vmem:[%s2299_s30 + $0x204] ss:$8 sps:$4 sm:$0xff]   ;;  %v1913_v40 = vld [vmem:[%s2299_s30 + $0xb4] ss:$8 sps:$4 sm:$0xff]   ;;  %v1850_v42 = vld [vmem:[%s2299_s30 + $0x200] ss:$8 sps:$4 sm:$0xff]  }
  0x72   : > { %1317 = vmatpush1.bf16.msra.mxu1 %v1867_v9  ;;  %v1858_v44 = vld [vmem:[%s2299_s30 + $0x214] ss:$8 sps:$4 sm:$0xff]   ;;  %v1915_v45 = vld [vmem:[%s2299_s30 + $0xb0] ss:$8 sps:$4 sm:$0xff]   ;;  %v1919_v46 = vld [vmem:[%s2299_s30 + $0xc4] ss:$8 sps:$4 sm:$0xff]  }
  0x73   : > { %1318 = vmatprep.subr.bf16.mxu1 %v1871_v10  ;;  %v1856_v48 = vld [vmem:[%s2299_s30 + $0x210] ss:$8 sps:$4 sm:$0xff]   ;;  %v1925_v52 = vld [vmem:[%s2299_s30 + $0xd4] ss:$8 sps:$4 sm:$0xff]   ;;  %v1862_v53 = vld [vmem:[%s2299_s30 + $0x220] ss:$8 sps:$4 sm:$0xff]  }
  0x74   : > { %1362 = vmatpush1.bf16.msra.mxu0 %v1815_v49  ;;  %v1864_v49 = vld [vmem:[%s2299_s30 + $0x224] ss:$8 sps:$4 sm:$0xff]   ;;  %v1870_v54 = vld [vmem:[%s2299_s30 + $0x234] ss:$8 sps:$4 sm:$0xff]   ;;  %v1868_v57 = vld [vmem:[%s2299_s30 + $0x230] ss:$8 sps:$4 sm:$0xff]  }
  0x75   : > { %1363 = vmatprep.subr.bf16.mxu0 %v1816_v51  ;;  %v1921_v51 = vld [vmem:[%s2299_s30 + $0xc0] ss:$8 sps:$4 sm:$0xff]   ;;  %v1931_v56 = vld [vmem:[%s2299_s30 + $0xe4] ss:$8 sps:$4 sm:$0xff]   ;;  %v1937_v60 = vld [vmem:[%s2299_s30 + $0xf4] ss:$8 sps:$4 sm:$0xff]  }
  0x76   : > { %1319 = vmatpush1.bf16.msra.mxu1 %v1873_v13  ;;  %v1933_v59 = vld [vmem:[%s2299_s30 + $0xe0] ss:$8 sps:$4 sm:$0xff]   ;;  %v1880_v1 = vld [vmem:[%s2299_s30 + $0x250] ss:$8 sps:$4 sm:$0xff]   ;;  %v1888_v2 = vld [vmem:[%s2299_s30 + $0x264] ss:$8 sps:$4 sm:$0xff]  }
  0x77   : > { %1320 = vmatprep.subr.bf16.mxu1 %v1877_v14  ;;  %v1874_v61 = vld [vmem:[%s2299_s30 + $0x240] ss:$8 sps:$4 sm:$0xff]   ;;  %v1894_v5 = vld [vmem:[%s2299_s30 + $0x274] ss:$8 sps:$4 sm:$0xff]   ;;  %v1900_v7 = vld [vmem:[%s2299_s30 + $0x284] ss:$8 sps:$4 sm:$0xff]  }
  0x78   : > { %1364 = vmatpush1.bf16.msra.mxu0 %v1818_v55  ;;  %v1927_v55 = vld [vmem:[%s2299_s30 + $0xd0] ss:$8 sps:$4 sm:$0xff]   ;;  %v1886_v3 = vld [vmem:[%s2299_s30 + $0x260] ss:$8 sps:$4 sm:$0xff]   ;;  %v1906_v9 = vld [vmem:[%s2299_s30 + $0x294] ss:$8 sps:$4 sm:$0xff]  }
  0x79   : > { %1365 = vmatprep.subr.bf16.mxu0 %v1819_v58  ;;  %v1876_v58 = vld [vmem:[%s2299_s30 + $0x244] ss:$8 sps:$4 sm:$0xff]   ;;  %v1904_v10 = vld [vmem:[%s2299_s30 + $0x290] ss:$8 sps:$4 sm:$0xff]   ;;  %v1918_v13 = vld [vmem:[%s2299_s30 + $0x2b4] ss:$8 sps:$4 sm:$0xff]  }
  0x7a   : > { %1321 = vmatpush1.bf16.msra.mxu1 %v1879_v17  ;;  %v1916_v14 = vld [vmem:[%s2299_s30 + $0x2b0] ss:$8 sps:$4 sm:$0xff]   ;;  %v1930_v17 = vld [vmem:[%s2299_s30 + $0x2d4] ss:$8 sps:$4 sm:$0xff]  }
  0x7b   : > { %1322 = vmatprep.subr.bf16.mxu1 %v1883_v18  ;;  %v1928_v18 = vld [vmem:[%s2299_s30 + $0x2d0] ss:$8 sps:$4 sm:$0xff]   ;;  %v678_v38 = vld [vmem:[#allocation2] sm:$0xf] }
  0x7c   : > { %1366 = vmatpush1.bf16.msra.mxu0 %v1821_v62  ;;  %v1882_v62 = vld [vmem:[%s2299_s30 + $0x254] ss:$8 sps:$4 sm:$0xff]  }
  0x7d   : > { %1367 = vmatprep.subr.bf16.mxu0 %v1822_v63  ;;  %v1939_v63 = vld [vmem:[%s2299_s30 + $0xf0] ss:$8 sps:$4 sm:$0xff]  }
  0x7e   : > { %1323 = vmatpush1.bf16.msra.mxu1 %v1885_v21  ;;  %v1942_v21 = vld [vmem:[%s2299_s30 + $0x2f4] ss:$8 sps:$4 sm:$0xff]  }
  0x7f   : > { %1324 = vmatprep.subr.bf16.mxu1 %v1889_v22  ;;  %v1940_v22 = vld [vmem:[%s2299_s30 + $0x2f0] ss:$8 sps:$4 sm:$0xff]  }
  0x80   : > { %1368 = vmatpush1.bf16.msra.mxu0 %v1824_v6  ;;  %v1892_v6 = vld [vmem:[%s2299_s30 + $0x270] ss:$8 sps:$4 sm:$0xff]  }
  0x81   : > { %1369 = vmatprep.subr.bf16.mxu0 %v1825_v8  ;;  %v1898_v8 = vld [vmem:[%s2299_s30 + $0x280] ss:$8 sps:$4 sm:$0xff]  }
  0x82   : > { %1325 = vmatpush1.bf16.msra.mxu1 %v1891_v25 }
  0x83   : > { %1326 = vmatprep.subr.bf16.mxu1 %v1895_v26 }
  0x84   : > { %1370 = vmatpush1.bf16.msra.mxu0 %v1827_v11  ;;  %v1912_v11 = vld [vmem:[%s2299_s30 + $0x2a4] ss:$8 sps:$4 sm:$0xff]  }
  0x85   : > { %1371 = vmatprep.subr.bf16.mxu0 %v1828_v12  ;;  %v1910_v12 = vld [vmem:[%s2299_s30 + $0x2a0] ss:$8 sps:$4 sm:$0xff]  }
  0x86   : > { %1327 = vmatpush1.bf16.msra.mxu1 %v1897_v29 }
  0x87   : > { %1328 = vmatprep.subr.bf16.mxu1 %v1901_v30 }
  0x88   : > { %1372 = vmatpush1.bf16.msra.mxu0 %v1830_v15  ;;  %v1924_v15 = vld [vmem:[%s2299_s30 + $0x2c4] ss:$8 sps:$4 sm:$0xff]  }
  0x89   : > { %1373 = vmatprep.subr.bf16.mxu0 %v1831_v16  ;;  %v1922_v16 = vld [vmem:[%s2299_s30 + $0x2c0] ss:$8 sps:$4 sm:$0xff]  }
  0x8a   : > { %1329 = vmatpush1.bf16.msra.mxu1 %v1903_v33 }
  0x8b   : > { %1330 = vmatprep.subr.bf16.mxu1 %v1907_v34 }
  0x8c   : > { %1374 = vmatpush1.bf16.msra.mxu0 %v1833_v19  ;;  %v1936_v19 = vld [vmem:[%s2299_s30 + $0x2e4] ss:$8 sps:$4 sm:$0xff]  }
  0x8d   : > { %1375 = vmatprep.subr.bf16.mxu0 %v1834_v20  ;;  %v1934_v20 = vld [vmem:[%s2299_s30 + $0x2e0] ss:$8 sps:$4 sm:$0xff]  }
  0x8e   : > { %1331 = vmatpush1.bf16.msra.mxu1 %v1909_v39 }
  0x8f   : > { %1332 = vmatprep.subr.bf16.mxu1 %v1913_v40  ;;  %v1455_v40 = vsub.s32 (!%p1725_p13), 0, %v2312_v47 }
  0x90   : > { %1376 = vmatpush1.bf16.msra.mxu0 %v1836_v23 }
  0x91   : > { %1377 = vmatprep.subr.bf16.mxu0 %v1837_v24 }
  0x92   : > { %1333 = vmatpush1.bf16.msra.mxu1 %v1915_v45 }
  0x93   : > { %1334 = vmatprep.subr.bf16.mxu1 %v1919_v46 }
  0x94   : > { %1378 = vmatpush1.bf16.msra.mxu0 %v1839_v27  ;;  %v2001_v27 = vmov 1983009808  }
  0x95   : > { %1379 = vmatprep.subr.bf16.mxu0 %v1840_v28  ;;  %v1437_v28 = vunpack.c.l.s4 %v2001_v27 }
  0x96   : > { %1335 = vmatpush1.bf16.msra.mxu1 %v1921_v51 }
  0x97   : > { %1336 = vmatprep.subr.bf16.mxu1 %v1925_v52  ;;  %v1438_v29 = vunpack.c.0.s8 %v1437_v28 }
  0x98   : > { %1380 = vmatpush1.bf16.msra.mxu0 %v1842_v31 }
  0x99   : > { %1381 = vmatprep.subr.bf16.mxu0 %v1843_v32  ;;  %v1441_v34 = vsub.s32 %v1438_v29, %v2312_v47 }
  0x9a   : > { %1337 = vmatpush1.bf16.msra.mxu1 %v1927_v55 }
  0x9b   : > { %1338 = vmatprep.subr.bf16.mxu1 %v1931_v56 }
  0x9c   : > { %1382 = vmatpush1.bf16.msra.mxu0 %v1847_v35 }
  0x9d   : > { %1392 = vmatprep.subr.bf16.mxu0 %v1852_v37 }
  0x9e   : > { %1339 = vmatpush1.bf16.msra.mxu1 %v1933_v59 }
  0x9f   : > { %1384 = vmatmul.mubr.bf16.vlgmr.msra.gmra.mrb[0].mxu0 %v822_v41  ;;  %1340 = vmatprep.subr.bf16.mxu1 %v1937_v60  ;;  %v1459_v41 = vsub.s32 (!%p1725_p13), 1, %v2312_v47 }
  0xa0   : > { %1393 = vmatpush1.bf16.msra.mxu0 %v1850_v42  ;;  %1424 = vmatprep.mubr.bf16.mxu0 %v821_v43 }
  0xa1   : > { %1394 = vmatprep.subr.bf16.mxu0 %v1858_v44 }
  0xa2   : > { %1341 = vmatpush1.bf16.msra.mxu1 %v1939_v63 }
  0xa4   : > { %1395 = vmatpush1.bf16.msra.mxu0 %v1856_v48 }
  0xa5   : > { %1396 = vmatprep.subr.bf16.mxu0 %v1864_v49  ;;  %1343 = vmatmul.mubr.bf16.vlgmr.msra.gmra.mrb[0].mxu1 %v800_v36 }
  0xa8   : > { %1397 = vmatpush1.bf16.msra.mxu0 %v1862_v53 }
  0xa9   : > { %1398 = vmatprep.subr.bf16.mxu0 %v1870_v54 }
  0xac   : > { %1399 = vmatpush1.bf16.msra.mxu0 %v1868_v57 }
  0xad   : > { %1400 = vmatprep.subr.bf16.mxu0 %v1876_v58 }
  0xb0   : > { %1401 = vmatpush1.bf16.msra.mxu0 %v1874_v61 }
  0xb1   : > { %1402 = vmatprep.subr.bf16.mxu0 %v1882_v62 }
  0xb4   : > { %1403 = vmatpush1.bf16.msra.mxu0 %v1880_v1 }
  0xb5   : > { %1404 = vmatprep.subr.bf16.mxu0 %v1888_v2 }
  0xb8   : > { %1405 = vmatpush1.bf16.msra.mxu0 %v1886_v3 }
  0xb9   : > { %1406 = vmatprep.subr.bf16.mxu0 %v1894_v5 }
  0xbc   : > { %1407 = vmatpush1.bf16.msra.mxu0 %v1892_v6 }
  0xbd   : > { %1408 = vmatprep.subr.bf16.mxu0 %v1900_v7 }
  0xc0   : > { %1409 = vmatpush1.bf16.msra.mxu0 %v1898_v8 }
  0xc1   : > { %1410 = vmatprep.subr.bf16.mxu0 %v1906_v9 }
  0xc4   : > { %1411 = vmatpush1.bf16.msra.mxu0 %v1904_v10 }
  0xc5   : > { %1412 = vmatprep.subr.bf16.mxu0 %v1912_v11 }
  0xc8   : > { %1413 = vmatpush1.bf16.msra.mxu0 %v1910_v12 }
  0xc9   : > { %1414 = vmatprep.subr.bf16.mxu0 %v1918_v13 }
  0xcc   : > { %1415 = vmatpush1.bf16.msra.mxu0 %v1916_v14 }
  0xcd   : > { %1416 = vmatprep.subr.bf16.mxu0 %v1924_v15 }
  0xd0   : > { %1417 = vmatpush1.bf16.msra.mxu0 %v1922_v16 }
  0xd1   : > { %1418 = vmatprep.subr.bf16.mxu0 %v1930_v17 }
  0xd4   : > { %1419 = vmatpush1.bf16.msra.mxu0 %v1928_v18 }
  0xd5   : > { %1420 = vmatprep.subr.bf16.mxu0 %v1936_v19 }
  0xd8   : > { %1421 = vmatpush1.bf16.msra.mxu0 %v1934_v20 }
  0xd9   : > { %1422 = vmatprep.subr.bf16.mxu0 %v1942_v21 }
  0xdc   : > { %1423 = vmatpush1.bf16.msra.mxu0 %v1940_v22 }
  0xdf   : > { %1425 = vmatmul.mubr.bf16.vlgmr.msra.gmra.mrb[0].mxu0 %v807_v4  ;;  %v1451_v4 = vld [vmem:[%s662_s12] sm:$0x3] (!%p1725_p13) }
  0xe0   : > { %v1456_v42 = vrot.slane (!%p1725_p13), %v1451_v4, %v1455_v40  ;;  %v1460_v43 = vrot.slane (!%p1725_p13), %v1451_v4, %v1459_v41 }
  0xe2   : > { %v1461_v44 = vcombine.low (!%p1725_p13), %v1456_v42, %v1460_v43 }
  0xe4   : > { %v1468_v46 = vrot.slane (!%p1725_p13), %v1461_v44, %v1441_v34 }
 0x178   : > { %v1344_v23 = vpop.f32.mrb[0].mxu1 }
 0x179   : > { %v1346_v24 = vpop.f32.mrb[1].mxu1 }
 0x17a   : > { %v1348_v25 = vpop.f32.mrb[2].mxu1 }
 0x17b   : > { %v1349_v26 = vpop.f32.mrb[3].mxu1 }
 0x1b2   : > { %v1426_v30 = vpop.f32.mrb[0].mxu0 }
 0x1b3   : > { %v1731_v31 = vadd.f32 %v1426_v30, %v1344_v23  ;;  %v1428_v32 = vpop.f32.mrb[1].mxu0 }
 0x1b4   : > { %v1732_v33 = vadd.f32 %v1428_v32, %v1346_v24  ;;  %v1430_v35 = vpop.f32.mrb[2].mxu0 }
 0x1b5   : > { %v1431_v36 = vpop.f32.mrb[3].mxu0 }
 0x1b6   : > { %v1435_v37 = vcombine.low %v1731_v31, %v1732_v33  ;;  %1449 = sbr.rel (%p1725_p13) target bundleno = 465 (0x1d1), region = 78 }
 0x1b8   : > { %v1442_v39 = vrot.slane %v1435_v37, %v1441_v34 }
 0x1ba   : > { %v1444_v0 = vadd.f32 %v1442_v39, %v678_v38 }
 0x1bc   : > { %1445 = vst [vmem:[#allocation2] sm:$0xf] %v1444_v0 }
 0x1c3   : > { %v1450_v45 = vld [vmem:[#allocation2] sm:$0xf] }
 0x1c4   : > { %v1470_v48 = vadd.f32 %v1468_v46, %v1450_v45 }
 0x1c6   : > { %v1471_v49 = vmax.f32 %v1470_v48, 0.0 }
 0x1c8   : > { %v1479_v51 = vrot.slane %v1471_v49, %v1441_v34 }
 0x1ca   : > { %v1480_v52 = vcombine.high %v1479_v51, %v1479_v51 }
 0x1cc   : > { %v1726_v53 = vpack.c.bf16 %v1480_v52, %v1479_v51 }
 0x1ce   : > { %v1494_v54 = vrot.slane %v1726_v53, %v2317_v50 }
 0x1d0   : > { %1727 = vst.sshfl [vmem:[%s671_s15] sm:$0x5 pattern:$0x73625140] %v1494_v54 }
 0x1d1 PF: > { %s13_s18 = sadd.s32 1, %s1997_s18   ;;  %s2467_s12 = smov %s1977_s13 }
 0x1d2   : > { %p10_p0 = scmp.ge.s32.totalorder %s13_s18, 8   ;;  %s2468_s13 = smov %s2073_s25 }
 0x1d3   : > { %s2469_s14 = smov %s1989_s16  ;;  %s2470_s15 = smov %s1993_s17 }
 0x1d4   : > { %s2471_s16 = smov %s2474_s19  ;;  %s2472_s17 = smov %s2478_s20 }
 0x1d5   :  { %12 = sbr.rel (!%p10_p0) target bundleno = 4 (0x4), region = 119 }

// kernel: gender_classifier_resnet18_forward.37
= control target key start
LH: loop header
LB: loop body
LE: loop exit
PB: predicated region body
PF: predicated region fallthrough
CT: control target
= control target key end

     0   :  { %s1069_s12 = smov 0   ;;  %s1071_s13 = smov 0   ;;  %s1258_s0 = inlined_call_operand.vmem [shape: bf16[2,256], index: 0, kind: input, shape index: {}]   ;;  %s1259_s1 = inlined_call_operand.vmem [shape: bf16[256,512], index: 1, kind: input, shape index: {}]   ;;  %s1260_s2 = inlined_call_operand.vmem [shape: f32[1,512], index: 2, kind: input, shape index: {}]   ;;  %s1261_s3 = inlined_call_operand.vmem [shape: bf16[2,512], index: 3, kind: output, shape index: {}]  }
   0x1   :  { %s1073_s14 = smov 0   ;;  %s1075_s15 = smov 0  }
   0x2   :  { %s1077_s16 = smov 0  }
   0x3 LB: > { %s28_s17 = sadd.s32 1, %s1040_s15  ;;  %p76_p1 = scmp.ne.s32.totalorder %s1032_s13, %s1028_s12  ;;  %s1044_s16 = sphi %s1077_s16, %s13_s16   ;;  %s1040_s15 = sphi %s1075_s15, %s1265_s15   ;;  %s1036_s14 = sphi %s1073_s14, %s1264_s14   ;;  %s1032_s13 = sphi %s1071_s13, %s1263_s13   ;;  %s1028_s12 = sphi %s1069_s12, %s1262_s12  }
   0x4   : > { %p30_p0 = scmp.ge.s32.totalorder %s28_s17, 2  ;;  %p77_p2 = scmp.eq.s32.totalorder %s1044_s16, 0 }
   0x5   : > { %s69_s19 = sadd.s32 1, %s1032_s13  ;;  %p869_p5 = scmp.ge.s32.totalorder %s1044_s16, 2 }
   0x6   : > { %s1267_s17 = smov (%p30_p0, %s28_s17), 0  ;;  %p78_p3 = por %p77_p2, %p76_p1 }
   0x7   : > { %s65_s18 = ssub.s32 %s1040_s15, %s1267_s17  ;;  %168 = sbr.rel (%p869_p5) target bundleno = 34 (0x22), region = 20 }
   0x8   : > { %p67_p4 = scmp.eq.s32.totalorder %s65_s18, 0 }
   0xa   : > { %s1104_s20 = scalar_select %p67_p4, %s1032_s13, %s69_s19  }
   0xe   : > { %171 = sbr.rel (!%p78_p3) target bundleno = 34 (0x22), region = 24  ;;  %s173_s21 = sand.u32 (%p78_p3), 1, %s1032_s13  }
   0xf   : > { %s914_s22 = sshll.u32 (%p78_p3), %s1040_s15, 3  ;;  %s870_s23 = sshll.u32 (%p78_p3), %s173_s21, 8 }
  0x10   : > { %s1112_s26 = scalar_lea.vmem (%p78_p3), %s1259_s1, %s914_s22  ;;  %s1117_s27 = scalar_lea.vmem (%p78_p3), [#allocation3], %s870_s23 }
  0x11   : > { %v271_v0 = vld [vmem:[%s1112_s26] sm:$0xff] (%p78_p3)  ;;  %v273_v1 = vld [vmem:[%s1112_s26 + $0x10] sm:$0xff] (%p78_p3) }
  0x12   : > { %v275_v2 = vld [vmem:[%s1112_s26 + $0x20] sm:$0xff] (%p78_p3)  ;;  %272 = vst [vmem:[%s1117_s27] sm:$0xff] (%p78_p3), %v271_v0  ;;  %274 = vst [vmem:[%s1117_s27 + $0x8] sm:$0xff] (%p78_p3), %v273_v1  ;;  %v277_v3 = vld [vmem:[%s1112_s26 + $0x30] sm:$0xff] (%p78_p3) }
  0x13   : > { %276 = vst [vmem:[%s1117_s27 + $0x10] sm:$0xff] (%p78_p3), %v275_v2  ;;  %v279_v4 = vld [vmem:[%s1112_s26 + $0x40] sm:$0xff] (%p78_p3)  ;;  %v281_v5 = vld [vmem:[%s1112_s26 + $0x50] sm:$0xff] (%p78_p3)  ;;  %278 = vst [vmem:[%s1117_s27 + $0x18] sm:$0xff] (%p78_p3), %v277_v3 }
  0x14   : > { %280 = vst [vmem:[%s1117_s27 + $0x20] sm:$0xff] (%p78_p3), %v279_v4  ;;  %282 = vst [vmem:[%s1117_s27 + $0x28] sm:$0xff] (%p78_p3), %v281_v5  ;;  %v283_v6 = vld [vmem:[%s1112_s26 + $0x60] sm:$0xff] (%p78_p3)  ;;  %v285_v7 = vld [vmem:[%s1112_s26 + $0x70] sm:$0xff] (%p78_p3) }
  0x15   : > { %v287_v8 = vld [vmem:[%s1112_s26 + $0x80] sm:$0xff]  ;;  %284 = vst [vmem:[%s1117_s27 + $0x30] sm:$0xff] %v283_v6  ;;  %286 = vst [vmem:[%s1117_s27 + $0x38] sm:$0xff] %v285_v7  ;;  %v289_v9 = vld [vmem:[%s1112_s26 + $0x90] sm:$0xff] }
  0x16   : > { %288 = vst [vmem:[%s1117_s27 + $0x40] sm:$0xff] %v287_v8  ;;  %v291_v10 = vld [vmem:[%s1112_s26 + $0xa0] sm:$0xff]  ;;  %v293_v11 = vld [vmem:[%s1112_s26 + $0xb0] sm:$0xff]  ;;  %290 = vst [vmem:[%s1117_s27 + $0x48] sm:$0xff] %v289_v9 }
  0x17   : > { %292 = vst [vmem:[%s1117_s27 + $0x50] sm:$0xff] %v291_v10  ;;  %294 = vst [vmem:[%s1117_s27 + $0x58] sm:$0xff] %v293_v11  ;;  %v295_v12 = vld [vmem:[%s1112_s26 + $0xc0] sm:$0xff]  ;;  %v297_v13 = vld [vmem:[%s1112_s26 + $0xd0] sm:$0xff] }
  0x18   : > { %v299_v14 = vld [vmem:[%s1112_s26 + $0xe0] sm:$0xff]  ;;  %296 = vst [vmem:[%s1117_s27 + $0x60] sm:$0xff] %v295_v12  ;;  %298 = vst [vmem:[%s1117_s27 + $0x68] sm:$0xff] %v297_v13  ;;  %v301_v15 = vld [vmem:[%s1112_s26 + $0xf0] sm:$0xff] }
  0x19   : > { %300 = vst [vmem:[%s1117_s27 + $0x70] sm:$0xff] %v299_v14  ;;  %v303_v16 = vld [vmem:[%s1112_s26 + $0x100] sm:$0xff]  ;;  %v305_v17 = vld [vmem:[%s1112_s26 + $0x110] sm:$0xff]  ;;  %302 = vst [vmem:[%s1117_s27 + $0x78] sm:$0xff] %v301_v15 }
  0x1a   : > { %304 = vst [vmem:[%s1117_s27 + $0x80] sm:$0xff] %v303_v16  ;;  %306 = vst [vmem:[%s1117_s27 + $0x88] sm:$0xff] %v305_v17  ;;  %v307_v18 = vld [vmem:[%s1112_s26 + $0x120] sm:$0xff]  ;;  %v309_v19 = vld [vmem:[%s1112_s26 + $0x130] sm:$0xff] }
  0x1b   : > { %v311_v20 = vld [vmem:[%s1112_s26 + $0x140] sm:$0xff]  ;;  %308 = vst [vmem:[%s1117_s27 + $0x90] sm:$0xff] %v307_v18  ;;  %310 = vst [vmem:[%s1117_s27 + $0x98] sm:$0xff] %v309_v19  ;;  %v313_v21 = vld [vmem:[%s1112_s26 + $0x150] sm:$0xff] }
  0x1c   : > { %312 = vst [vmem:[%s1117_s27 + $0xa0] sm:$0xff] %v311_v20  ;;  %v315_v22 = vld [vmem:[%s1112_s26 + $0x160] sm:$0xff]  ;;  %v317_v23 = vld [vmem:[%s1112_s26 + $0x170] sm:$0xff]  ;;  %314 = vst [vmem:[%s1117_s27 + $0xa8] sm:$0xff] %v313_v21 }
  0x1d   : > { %316 = vst [vmem:[%s1117_s27 + $0xb0] sm:$0xff] %v315_v22  ;;  %318 = vst [vmem:[%s1117_s27 + $0xb8] sm:$0xff] %v317_v23  ;;  %v319_v24 = vld [vmem:[%s1112_s26 + $0x180] sm:$0xff]  ;;  %v321_v25 = vld [vmem:[%s1112_s26 + $0x190] sm:$0xff] }
  0x1e   : > { %v323_v26 = vld [vmem:[%s1112_s26 + $0x1a0] sm:$0xff]  ;;  %320 = vst [vmem:[%s1117_s27 + $0xc0] sm:$0xff] %v319_v24  ;;  %322 = vst [vmem:[%s1117_s27 + $0xc8] sm:$0xff] %v321_v25  ;;  %v325_v27 = vld [vmem:[%s1112_s26 + $0x1b0] sm:$0xff] }
  0x1f   : > { %324 = vst [vmem:[%s1117_s27 + $0xd0] sm:$0xff] %v323_v26  ;;  %v327_v28 = vld [vmem:[%s1112_s26 + $0x1c0] sm:$0xff]  ;;  %v329_v29 = vld [vmem:[%s1112_s26 + $0x1d0] sm:$0xff]  ;;  %326 = vst [vmem:[%s1117_s27 + $0xd8] sm:$0xff] %v325_v27 }
  0x20   : > { %328 = vst [vmem:[%s1117_s27 + $0xe0] sm:$0xff] %v327_v28  ;;  %330 = vst [vmem:[%s1117_s27 + $0xe8] sm:$0xff] %v329_v29  ;;  %v331_v30 = vld [vmem:[%s1112_s26 + $0x1e0] sm:$0xff]  ;;  %v333_v31 = vld [vmem:[%s1112_s26 + $0x1f0] sm:$0xff] }
  0x21   : > { %332 = vst [vmem:[%s1117_s27 + $0xf0] sm:$0xff] %v331_v30  ;;  %334 = vst [vmem:[%s1117_s27 + $0xf8] sm:$0xff] %v333_v31 }
  0x22 PF: > { %p873_p6 = scmp.ge.s32.totalorder %s1044_s16, 1  ;;  %p347_p7 = scmp.lt.s32.totalorder %s1044_s16, 3 }
  0x24   : > { %p348_p8 = pnand %p873_p6, %p347_p7 }
  0x25   : > { %s354_s28 = sand.u32 (!%p348_p8), 1, %s1028_s12   ;;  %v1186_v32 = vld.sshfl [vmem:[%s1258_s0] sm:$0x11 pattern:$0x75316420] (!%p348_p8)  ;;  %v468_v33 = vlaneseq (!%p348_p8)  ;;  %v1047_v10 = vmov (!%p348_p8), 0.0  }
  0x26   : > { %351 = sbr.rel (%p348_p8) target bundleno = 343 (0x157), region = 66  ;;  %s874_s4 = sshll.u32 (!%p348_p8), %s354_s28, 8  ;;  %v1046_v34 = vmov (!%p348_p8), 1966171168   ;;  %v464_v39 = vcombine.high (!%p348_p8), %v1186_v32, %v1186_v32  ;;  %421 = vst [vmem:[#allocation2] sm:$0xf] (!%p348_p8), %v1047_v10 }
  0x27   : > { %v466_v35 = vunpack.c.l.s4 (!%p348_p8), %v1046_v34  ;;  %v1188_v36 = vshrl.u32 (!%p348_p8), %v468_v33, 7  ;;  %s1190_s5 = scalar_lea.vmem (!%p348_p8), [#allocation3], %s874_s4  ;;  %s875_s6 = sshll.u32 (!%p348_p8), %s1036_s14, 1  ;;  %v1048_v11 = vmov (!%p348_p8), 1983009808  }
  0x28   : > { %v958_v37 = vld [vmem:[%s1190_s5 + $0x4] ss:$8 sps:$4 sm:$0xff] (!%p348_p8)   ;;  %v960_v38 = vld [vmem:[%s1190_s5] ss:$8 sps:$4 sm:$0xff] (!%p348_p8)   ;;  %v961_v41 = vld [vmem:[%s1190_s5 + $0x14] ss:$8 sps:$4 sm:$0xff] (!%p348_p8)   ;;  %v686_v12 = vunpack.c.l.s4 (!%p348_p8), %v1048_v11 }
  0x29   : > { %v467_v40 = vunpack.c.0.s8 (!%p348_p8), %v466_v35  ;;  %641 = vmatprep.subr.bf16.mxu0 (!%p348_p8), %v958_v37  ;;  %v963_v42 = vld [vmem:[%s1190_s5 + $0x10] ss:$8 sps:$4 sm:$0xff] (!%p348_p8)   ;;  %v964_v44 = vld [vmem:[%s1190_s5 + $0x24] ss:$8 sps:$4 sm:$0xff] (!%p348_p8)   ;;  %v966_v46 = vld [vmem:[%s1190_s5 + $0x20] ss:$8 sps:$4 sm:$0xff] (!%p348_p8)  }
  0x2a   : > { %642 = vmatpush1.bf16.msra.mxu0 (!%p348_p8), %v960_v38  ;;  %v967_v47 = vld [vmem:[%s1190_s5 + $0x34] ss:$8 sps:$4 sm:$0xff] (!%p348_p8)   ;;  %v969_v48 = vld [vmem:[%s1190_s5 + $0x30] ss:$8 sps:$4 sm:$0xff] (!%p348_p8)   ;;  %v970_v49 = vld [vmem:[%s1190_s5 + $0x44] ss:$8 sps:$4 sm:$0xff] (!%p348_p8)   ;;  %v687_v13 = vunpack.c.0.s8 (!%p348_p8), %v686_v12 }
  0x2b   : > { %v1199_v43 = vsub.s32 (!%p348_p8), %v467_v40, %v1188_v36  ;;  %643 = vmatprep.subr.bf16.mxu0 (!%p348_p8), %v961_v41  ;;  %v972_v50 = vld [vmem:[%s1190_s5 + $0x40] ss:$8 sps:$4 sm:$0xff] (!%p348_p8)   ;;  %v973_v51 = vld [vmem:[%s1190_s5 + $0x54] ss:$8 sps:$4 sm:$0xff] (!%p348_p8)   ;;  %v975_v52 = vld [vmem:[%s1190_s5 + $0x50] ss:$8 sps:$4 sm:$0xff] (!%p348_p8)  }
  0x2c   : > { %v976_v53 = vld [vmem:[%s1190_s5 + $0x64] ss:$8 sps:$4 sm:$0xff] (!%p348_p8)   ;;  %v978_v54 = vld [vmem:[%s1190_s5 + $0x60] ss:$8 sps:$4 sm:$0xff] (!%p348_p8)   ;;  %v979_v55 = vld [vmem:[%s1190_s5 + $0x74] ss:$8 sps:$4 sm:$0xff] (!%p348_p8)   ;;  %v690_v15 = vsub.s32 (!%p348_p8), %v687_v13, %v1188_v36 }
  0x2d   : > { %v478_v45 = vrot.slane %v464_v39, %v1199_v43  ;;  %v981_v56 = vld [vmem:[%s1190_s5 + $0x70] ss:$8 sps:$4 sm:$0xff]   ;;  %v982_v57 = vld [vmem:[%s1190_s5 + $0x84] ss:$8 sps:$4 sm:$0xff]   ;;  %v984_v58 = vld [vmem:[%s1190_s5 + $0x80] ss:$8 sps:$4 sm:$0xff]   ;;  %v471_v9 = vrot.slane %v1186_v32, %v1199_v43 }
  0x2e   : > { %644 = vmatpush1.bf16.msra.mxu0 %v963_v42  ;;  %v985_v59 = vld [vmem:[%s1190_s5 + $0x94] ss:$8 sps:$4 sm:$0xff]   ;;  %v987_v60 = vld [vmem:[%s1190_s5 + $0x90] ss:$8 sps:$4 sm:$0xff]   ;;  %v988_v61 = vld [vmem:[%s1190_s5 + $0xa4] ss:$8 sps:$4 sm:$0xff]  }
  0x2f   : > { %673 = vmatprep.mubr.bf16.mxu0 %v478_v45  ;;  %645 = vmatprep.subr.bf16.mxu0 %v964_v44  ;;  %v990_v62 = vld [vmem:[%s1190_s5 + $0xa0] ss:$8 sps:$4 sm:$0xff]   ;;  %v991_v63 = vld [vmem:[%s1190_s5 + $0xb4] ss:$8 sps:$4 sm:$0xff]   ;;  %v993_v0 = vld [vmem:[%s1190_s5 + $0xb0] ss:$8 sps:$4 sm:$0xff]  }
  0x30   : > { %v994_v1 = vld [vmem:[%s1190_s5 + $0xc4] ss:$8 sps:$4 sm:$0xff]   ;;  %v996_v2 = vld [vmem:[%s1190_s5 + $0xc0] ss:$8 sps:$4 sm:$0xff]   ;;  %v997_v3 = vld [vmem:[%s1190_s5 + $0xd4] ss:$8 sps:$4 sm:$0xff]  }
  0x31   : > { %v999_v4 = vld [vmem:[%s1190_s5 + $0xd0] ss:$8 sps:$4 sm:$0xff]   ;;  %v1000_v5 = vld [vmem:[%s1190_s5 + $0xe4] ss:$8 sps:$4 sm:$0xff]   ;;  %v1002_v6 = vld [vmem:[%s1190_s5 + $0xe0] ss:$8 sps:$4 sm:$0xff]  }
  0x32   : > { %646 = vmatpush1.bf16.msra.mxu0 %v966_v46  ;;  %v1003_v7 = vld [vmem:[%s1190_s5 + $0xf4] ss:$8 sps:$4 sm:$0xff]   ;;  %v1005_v8 = vld [vmem:[%s1190_s5 + $0xf0] ss:$8 sps:$4 sm:$0xff]   ;;  %p404_p9 = scmp.lt.s32.totalorder %s875_s6, 3  ;;  %v703_v16 = vsub.s32 0, %v1188_v36 }
  0x33   : > { %647 = vmatprep.subr.bf16.mxu0 %v967_v47  ;;  %v707_v17 = vsub.s32 1, %v1188_v36  ;;  %v422_v22 = vld [vmem:[#allocation2] sm:$0xf] }
  0x34   : > { %s1269_s6 = smov (!%p404_p9, %s875_s6), 3 }
  0x35   : > { %s406_s9 = scalar_lea.vmem %s1260_s2, %s1269_s6  ;;  %s415_s12 = scalar_lea.vmem %s1261_s3, %s1269_s6 }
  0x36   : > { %648 = vmatpush1.bf16.msra.mxu0 %v969_v48  ;;  %v699_v19 = vld [vmem:[%s406_s9] sm:$0x3] }
  0x37   : > { %649 = vmatprep.subr.bf16.mxu0 %v970_v49  ;;  %v704_v25 = vrot.slane %v699_v19, %v703_v16  ;;  %v708_v26 = vrot.slane %v699_v19, %v707_v17 }
  0x39   : > { %v709_v28 = vcombine.low %v704_v25, %v708_v26 }
  0x3a   : > { %650 = vmatpush1.bf16.msra.mxu0 %v972_v50 }
  0x3b   : > { %651 = vmatprep.subr.bf16.mxu0 %v973_v51  ;;  %v716_v29 = vrot.slane %v709_v28, %v690_v15 }
  0x3e   : > { %652 = vmatpush1.bf16.msra.mxu0 %v975_v52 }
  0x3f   : > { %653 = vmatprep.subr.bf16.mxu0 %v976_v53 }
  0x42   : > { %654 = vmatpush1.bf16.msra.mxu0 %v978_v54 }
  0x43   : > { %655 = vmatprep.subr.bf16.mxu0 %v979_v55 }
  0x46   : > { %656 = vmatpush1.bf16.msra.mxu0 %v981_v56 }
  0x47   : > { %657 = vmatprep.subr.bf16.mxu0 %v982_v57 }
  0x4a   : > { %658 = vmatpush1.bf16.msra.mxu0 %v984_v58 }
  0x4b   : > { %659 = vmatprep.subr.bf16.mxu0 %v985_v59 }
  0x4e   : > { %660 = vmatpush1.bf16.msra.mxu0 %v987_v60 }
  0x4f   : > { %661 = vmatprep.subr.bf16.mxu0 %v988_v61 }
  0x52   : > { %662 = vmatpush1.bf16.msra.mxu0 %v990_v62 }
  0x53   : > { %663 = vmatprep.subr.bf16.mxu0 %v991_v63 }
  0x56   : > { %664 = vmatpush1.bf16.msra.mxu0 %v993_v0 }
  0x57   : > { %665 = vmatprep.subr.bf16.mxu0 %v994_v1 }
  0x5a   : > { %666 = vmatpush1.bf16.msra.mxu0 %v996_v2 }
  0x5b   : > { %667 = vmatprep.subr.bf16.mxu0 %v997_v3 }
  0x5e   : > { %668 = vmatpush1.bf16.msra.mxu0 %v999_v4 }
  0x5f   : > { %669 = vmatprep.subr.bf16.mxu0 %v1000_v5 }
  0x62   : > { %670 = vmatpush1.bf16.msra.mxu0 %v1002_v6 }
  0x63   : > { %671 = vmatprep.subr.bf16.mxu0 %v1003_v7 }
  0x66   : > { %672 = vmatpush1.bf16.msra.mxu0 %v1005_v8 }
  0x69   : > { %674 = vmatmul.mubr.bf16.vlgmr.msra.gmra.mrb[0].mxu0 %v471_v9 }
 0x13c   : > { %v675_v14 = vpop.f32.mrb[0].mxu0 }
 0x13d   : > { %v677_v18 = vpop.f32.mrb[1].mxu0 }
 0x13e   : > { %v684_v20 = vcombine.low %v675_v14, %v677_v18  ;;  %v679_v21 = vpop.f32.mrb[2].mxu0 }
 0x13f   : > { %v680_v23 = vpop.f32.mrb[3].mxu0 }
 0x140   : > { %v691_v24 = vrot.slane %v684_v20, %v690_v15 }
 0x142   : > { %v693_v27 = vadd.f32 %v691_v24, %v422_v22 }
 0x144   : > { %694 = vst [vmem:[#allocation2] sm:$0xf] %v693_v27 }
 0x14b   : > { %v698_v30 = vld [vmem:[#allocation2] sm:$0xf] }
 0x14c   : > { %v718_v31 = vadd.f32 %v716_v29, %v698_v30 }
 0x14e   : > { %v726_v32 = vrot.slane %v718_v31, %v690_v15 }
 0x150   : > { %v727_v33 = vcombine.high %v726_v32, %v726_v32 }
 0x152   : > { %v910_v34 = vpack.c.bf16 %v727_v33, %v726_v32 }
 0x154   : > { %v741_v35 = vrot.slane %v910_v34, %v1199_v43 }
 0x156   : > { %911 = vst.sshfl [vmem:[%s415_s12] sm:$0x5 pattern:$0x73625140] %v741_v35 }
 0x157 PF: > { %s13_s16 = sadd.s32 1, %s1044_s16   ;;  %s1262_s12 = smov %s1032_s13 }
 0x158   : > { %p10_p10 = scmp.ge.s32.totalorder %s13_s16, 4   ;;  %s1263_s13 = smov %s1104_s20 }
 0x159   : > { %s1264_s14 = smov %s1040_s15  ;;  %s1265_s15 = smov %s1267_s17 }
 0x15a   :  { %12 = sbr.rel (!%p10_p10) target bundleno = 3 (0x3), region = 119 }

// kernel: gender_classifier_resnet18_forward.39
= control target key start
LH: loop header
LB: loop body
LE: loop exit
PB: predicated region body
PF: predicated region fallthrough
CT: control target
= control target key end

     0   :  { %s2022_s12 = smov 0   ;;  %s2024_s13 = smov 0   ;;  %s2463_s0 = inlined_call_operand.vmem [shape: bf16[2,4608], index: 0, kind: input, shape index: {}]   ;;  %s2464_s1 = inlined_call_operand.vmem [shape: bf16[4608,512], index: 1, kind: input, shape index: {}]   ;;  %s2465_s2 = inlined_call_operand.vmem [shape: f32[1,512], index: 2, kind: input, shape index: {}]   ;;  %s2466_s3 = inlined_call_operand.vmem [shape: bf16[2,512], index: 3, kind: output, shape index: {}]  }
   0x1   :  { %s2026_s14 = smov 0   ;;  %s2028_s15 = smov 0  }
   0x2   :  { %s2030_s16 = smov 0   ;;  %s2032_s17 = smov 0  }
   0x3   :  { %s2034_s18 = smov 0  }
   0x4 LB: > { %s25_s19 = sadd.s32 1, %s1989_s16  ;;  %s28_s20 = sadd.s32 1, %s1993_s17  ;;  %s1997_s18 = sphi %s2034_s18, %s13_s18   ;;  %s1993_s17 = sphi %s2032_s17, %s2472_s17   ;;  %s1989_s16 = sphi %s2030_s16, %s2471_s16   ;;  %s1985_s15 = sphi %s2028_s15, %s2470_s15   ;;  %s1981_s14 = sphi %s2026_s14, %s2469_s14   ;;  %s1977_s13 = sphi %s2024_s13, %s2468_s13   ;;  %s1973_s12 = sphi %s2022_s12, %s2467_s12  }
   0x5   : > { %p26_p0 = scmp.ge.s32.totalorder %s25_s19, 6  ;;  %p76_p1 = scmp.ne.s32.totalorder %s1977_s13, %s1973_s12 }
   0x6   : > { %p77_p2 = scmp.eq.s32.totalorder %s1997_s18, 0  ;;  %s69_s24 = sadd.s32 1, %s1977_s13 }
   0x7   : > { %s2474_s19 = smov (%p26_p0, %s25_s19), 0  ;;  %s2476_s20 = smov (!%p26_p0, %s28_s20), %s1993_s17 }
   0x8   : > { %p78_p3 = por %p77_p2, %p76_p1  ;;  %p30_p4 = scmp.ge.s32.totalorder %s2476_s20, 2 }
   0x9   : > { %s64_s21 = ssub.s32 %s1989_s16, %s2474_s19  ;;  %p1621_p6 = scmp.ge.s32.totalorder %s1997_s18, 12 }
   0xa   : > { %s2478_s20 = smov (%p30_p4, %s2476_s20), 0 }
   0xb   : > { %s65_s22 = ssub.s32 %s1993_s17, %s2478_s20  ;;  %156 = sbr.rel (%p1621_p6) target bundleno = 74 (0x4a), region = 16 }
   0xc   : > { %s66_s23 = sor.u32 %s65_s22, %s64_s21 }
   0xd   : > { %p67_p5 = scmp.eq.s32.totalorder %s66_s23, 0 }
   0xf   : > { %s2073_s25 = scalar_select %p67_p5, %s1977_s13, %s69_s24  }
  0x12   : > { %171 = sbr.rel (!%p78_p3) target bundleno = 74 (0x4a), region = 24  ;;  %s173_s26 = sand.u32 (%p78_p3), 1, %s1977_s13  }
  0x13   : > { %s1737_s27 = smul.u32 (%p78_p3), 768, %s173_s26  ;;  %s1622_s28 = sshll.u32 (%p78_p3), %s1993_s17, 1 }
  0x14   : > { %s1730_s29 = smul.u32 (%p78_p3), 384, %s1989_s16 }
  0x15   : > { %s2087_s8 = scalar_lea.vmem (%p78_p3), [#allocation3], %s1737_s27 }
  0x16   : > { %s179_s30 = sadd.s32 (%p78_p3), %s1730_s29, %s1622_s28 }
  0x17   : > { %s1624_s4 = sshll.u32 (%p78_p3), %s179_s30, 2 }
  0x18   : > { %s2082_s7 = scalar_lea.vmem (%p78_p3), %s2464_s1, %s1624_s4 }
  0x19   : > { %v399_v0 = vld [vmem:[%s2082_s7] sm:$0xff]  ;;  %v401_v1 = vld [vmem:[%s2082_s7 + $0x10] sm:$0xff] }
  0x1a   : > { %v403_v2 = vld [vmem:[%s2082_s7 + $0x20] sm:$0xff]  ;;  %400 = vst [vmem:[%s2087_s8] sm:$0xff] %v399_v0  ;;  %402 = vst [vmem:[%s2087_s8 + $0x8] sm:$0xff] %v401_v1  ;;  %v405_v3 = vld [vmem:[%s2082_s7 + $0x30] sm:$0xff] }
  0x1b   : > { %404 = vst [vmem:[%s2087_s8 + $0x10] sm:$0xff] %v403_v2  ;;  %v407_v4 = vld [vmem:[%s2082_s7 + $0x40] sm:$0xff]  ;;  %v409_v5 = vld [vmem:[%s2082_s7 + $0x50] sm:$0xff]  ;;  %406 = vst [vmem:[%s2087_s8 + $0x18] sm:$0xff] %v405_v3 }
  0x1c   : > { %408 = vst [vmem:[%s2087_s8 + $0x20] sm:$0xff] %v407_v4  ;;  %410 = vst [vmem:[%s2087_s8 + $0x28] sm:$0xff] %v409_v5  ;;  %v411_v6 = vld [vmem:[%s2082_s7 + $0x60] sm:$0xff]  ;;  %v413_v7 = vld [vmem:[%s2082_s7 + $0x70] sm:$0xff] }
  0x1d   : > { %v415_v8 = vld [vmem:[%s2082_s7 + $0x80] sm:$0xff]  ;;  %412 = vst [vmem:[%s2087_s8 + $0x30] sm:$0xff] %v411_v6  ;;  %414 = vst [vmem:[%s2087_s8 + $0x38] sm:$0xff] %v413_v7  ;;  %v417_v9 = vld [vmem:[%s2082_s7 + $0x90] sm:$0xff] }
  0x1e   : > { %416 = vst [vmem:[%s2087_s8 + $0x40] sm:$0xff] %v415_v8  ;;  %v419_v10 = vld [vmem:[%s2082_s7 + $0xa0] sm:$0xff]  ;;  %v421_v11 = vld [vmem:[%s2082_s7 + $0xb0] sm:$0xff]  ;;  %418 = vst [vmem:[%s2087_s8 + $0x48] sm:$0xff] %v417_v9 }
  0x1f   : > { %420 = vst [vmem:[%s2087_s8 + $0x50] sm:$0xff] %v419_v10  ;;  %422 = vst [vmem:[%s2087_s8 + $0x58] sm:$0xff] %v421_v11  ;;  %v423_v12 = vld [vmem:[%s2082_s7 + $0xc0] sm:$0xff]  ;;  %v425_v13 = vld [vmem:[%s2082_s7 + $0xd0] sm:$0xff] }
  0x20   : > { %v427_v14 = vld [vmem:[%s2082_s7 + $0xe0] sm:$0xff]  ;;  %424 = vst [vmem:[%s2087_s8 + $0x60] sm:$0xff] %v423_v12  ;;  %426 = vst [vmem:[%s2087_s8 + $0x68] sm:$0xff] %v425_v13  ;;  %v429_v15 = vld [vmem:[%s2082_s7 + $0xf0] sm:$0xff] }
  0x21   : > { %428 = vst [vmem:[%s2087_s8 + $0x70] sm:$0xff] %v427_v14  ;;  %v431_v16 = vld [vmem:[%s2082_s7 + $0x100] sm:$0xff]  ;;  %v433_v17 = vld [vmem:[%s2082_s7 + $0x110] sm:$0xff]  ;;  %430 = vst [vmem:[%s2087_s8 + $0x78] sm:$0xff] %v429_v15 }
  0x22   : > { %432 = vst [vmem:[%s2087_s8 + $0x80] sm:$0xff] %v431_v16  ;;  %434 = vst [vmem:[%s2087_s8 + $0x88] sm:$0xff] %v433_v17  ;;  %v435_v18 = vld [vmem:[%s2082_s7 + $0x120] sm:$0xff]  ;;  %v437_v19 = vld [vmem:[%s2082_s7 + $0x130] sm:$0xff] }
  0x23   : > { %v439_v20 = vld [vmem:[%s2082_s7 + $0x140] sm:$0xff]  ;;  %436 = vst [vmem:[%s2087_s8 + $0x90] sm:$0xff] %v435_v18  ;;  %438 = vst [vmem:[%s2087_s8 + $0x98] sm:$0xff] %v437_v19  ;;  %v441_v21 = vld [vmem:[%s2082_s7 + $0x150] sm:$0xff] }
  0x24   : > { %440 = vst [vmem:[%s2087_s8 + $0xa0] sm:$0xff] %v439_v20  ;;  %v443_v22 = vld [vmem:[%s2082_s7 + $0x160] sm:$0xff]  ;;  %v445_v23 = vld [vmem:[%s2082_s7 + $0x170] sm:$0xff]  ;;  %442 = vst [vmem:[%s2087_s8 + $0xa8] sm:$0xff] %v441_v21 }
  0x25   : > { %444 = vst [vmem:[%s2087_s8 + $0xb0] sm:$0xff] %v443_v22  ;;  %446 = vst [vmem:[%s2087_s8 + $0xb8] sm:$0xff] %v445_v23  ;;  %v447_v24 = vld [vmem:[%s2082_s7 + $0x180] sm:$0xff]  ;;  %v449_v25 = vld [vmem:[%s2082_s7 + $0x190] sm:$0xff] }
  0x26   : > { %v451_v26 = vld [vmem:[%s2082_s7 + $0x1a0] sm:$0xff]  ;;  %448 = vst [vmem:[%s2087_s8 + $0xc0] sm:$0xff] %v447_v24  ;;  %450 = vst [vmem:[%s2087_s8 + $0xc8] sm:$0xff] %v449_v25  ;;  %v453_v27 = vld [vmem:[%s2082_s7 + $0x1b0] sm:$0xff] }
  0x27   : > { %452 = vst [vmem:[%s2087_s8 + $0xd0] sm:$0xff] %v451_v26  ;;  %v455_v28 = vld [vmem:[%s2082_s7 + $0x1c0] sm:$0xff]  ;;  %v457_v29 = vld [vmem:[%s2082_s7 + $0x1d0] sm:$0xff]  ;;  %454 = vst [vmem:[%s2087_s8 + $0xd8] sm:$0xff] %v453_v27 }
  0x28   : > { %456 = vst [vmem:[%s2087_s8 + $0xe0] sm:$0xff] %v455_v28  ;;  %458 = vst [vmem:[%s2087_s8 + $0xe8] sm:$0xff] %v457_v29  ;;  %v459_v30 = vld [vmem:[%s2082_s7 + $0x1e0] sm:$0xff]  ;;  %v461_v31 = vld [vmem:[%s2082_s7 + $0x1f0] sm:$0xff] }
  0x29   : > { %v463_v32 = vld [vmem:[%s2082_s7 + $0x200] sm:$0xff]  ;;  %460 = vst [vmem:[%s2087_s8 + $0xf0] sm:$0xff] %v459_v30  ;;  %462 = vst [vmem:[%s2087_s8 + $0xf8] sm:$0xff] %v461_v31  ;;  %v465_v33 = vld [vmem:[%s2082_s7 + $0x210] sm:$0xff] }
  0x2a   : > { %464 = vst [vmem:[%s2087_s8 + $0x100] sm:$0xff] %v463_v32  ;;  %v467_v34 = vld [vmem:[%s2082_s7 + $0x220] sm:$0xff]  ;;  %v469_v35 = vld [vmem:[%s2082_s7 + $0x230] sm:$0xff]  ;;  %466 = vst [vmem:[%s2087_s8 + $0x108] sm:$0xff] %v465_v33 }
  0x2b   : > { %468 = vst [vmem:[%s2087_s8 + $0x110] sm:$0xff] %v467_v34  ;;  %470 = vst [vmem:[%s2087_s8 + $0x118] sm:$0xff] %v469_v35  ;;  %v471_v36 = vld [vmem:[%s2082_s7 + $0x240] sm:$0xff]  ;;  %v473_v37 = vld [vmem:[%s2082_s7 + $0x250] sm:$0xff] }
  0x2c   : > { %v475_v38 = vld [vmem:[%s2082_s7 + $0x260] sm:$0xff]  ;;  %472 = vst [vmem:[%s2087_s8 + $0x120] sm:$0xff] %v471_v36  ;;  %474 = vst [vmem:[%s2087_s8 + $0x128] sm:$0xff] %v473_v37  ;;  %v477_v39 = vld [vmem:[%s2082_s7 + $0x270] sm:$0xff] }
  0x2d   : > { %476 = vst [vmem:[%s2087_s8 + $0x130] sm:$0xff] %v475_v38  ;;  %v479_v40 = vld [vmem:[%s2082_s7 + $0x280] sm:$0xff]  ;;  %v481_v41 = vld [vmem:[%s2082_s7 + $0x290] sm:$0xff]  ;;  %478 = vst [vmem:[%s2087_s8 + $0x138] sm:$0xff] %v477_v39 }
  0x2e   : > { %480 = vst [vmem:[%s2087_s8 + $0x140] sm:$0xff] %v479_v40  ;;  %482 = vst [vmem:[%s2087_s8 + $0x148] sm:$0xff] %v481_v41  ;;  %v483_v42 = vld [vmem:[%s2082_s7 + $0x2a0] sm:$0xff]  ;;  %v485_v43 = vld [vmem:[%s2082_s7 + $0x2b0] sm:$0xff] }
  0x2f   : > { %v487_v44 = vld [vmem:[%s2082_s7 + $0x2c0] sm:$0xff]  ;;  %484 = vst [vmem:[%s2087_s8 + $0x150] sm:$0xff] %v483_v42  ;;  %486 = vst [vmem:[%s2087_s8 + $0x158] sm:$0xff] %v485_v43  ;;  %v489_v45 = vld [vmem:[%s2082_s7 + $0x2d0] sm:$0xff] }
  0x30   : > { %488 = vst [vmem:[%s2087_s8 + $0x160] sm:$0xff] %v487_v44  ;;  %v491_v46 = vld [vmem:[%s2082_s7 + $0x2e0] sm:$0xff]  ;;  %v493_v47 = vld [vmem:[%s2082_s7 + $0x2f0] sm:$0xff]  ;;  %490 = vst [vmem:[%s2087_s8 + $0x168] sm:$0xff] %v489_v45 }
  0x31   : > { %492 = vst [vmem:[%s2087_s8 + $0x170] sm:$0xff] %v491_v46  ;;  %494 = vst [vmem:[%s2087_s8 + $0x178] sm:$0xff] %v493_v47  ;;  %v495_v48 = vld [vmem:[%s2082_s7 + $0x300] sm:$0xff]  ;;  %v497_v49 = vld [vmem:[%s2082_s7 + $0x310] sm:$0xff] }
  0x32   : > { %v499_v50 = vld [vmem:[%s2082_s7 + $0x320] sm:$0xff]  ;;  %496 = vst [vmem:[%s2087_s8 + $0x180] sm:$0xff] %v495_v48  ;;  %498 = vst [vmem:[%s2087_s8 + $0x188] sm:$0xff] %v497_v49  ;;  %v501_v51 = vld [vmem:[%s2082_s7 + $0x330] sm:$0xff] }
  0x33   : > { %500 = vst [vmem:[%s2087_s8 + $0x190] sm:$0xff] %v499_v50  ;;  %v503_v52 = vld [vmem:[%s2082_s7 + $0x340] sm:$0xff]  ;;  %v505_v53 = vld [vmem:[%s2082_s7 + $0x350] sm:$0xff]  ;;  %502 = vst [vmem:[%s2087_s8 + $0x198] sm:$0xff] %v501_v51 }
  0x34   : > { %504 = vst [vmem:[%s2087_s8 + $0x1a0] sm:$0xff] %v503_v52  ;;  %506 = vst [vmem:[%s2087_s8 + $0x1a8] sm:$0xff] %v505_v53  ;;  %v507_v54 = vld [vmem:[%s2082_s7 + $0x360] sm:$0xff]  ;;  %v509_v55 = vld [vmem:[%s2082_s7 + $0x370] sm:$0xff] }
  0x35   : > { %v511_v56 = vld [vmem:[%s2082_s7 + $0x380] sm:$0xff]  ;;  %508 = vst [vmem:[%s2087_s8 + $0x1b0] sm:$0xff] %v507_v54  ;;  %510 = vst [vmem:[%s2087_s8 + $0x1b8] sm:$0xff] %v509_v55  ;;  %v513_v57 = vld [vmem:[%s2082_s7 + $0x390] sm:$0xff] }
  0x36   : > { %512 = vst [vmem:[%s2087_s8 + $0x1c0] sm:$0xff] %v511_v56  ;;  %v515_v58 = vld [vmem:[%s2082_s7 + $0x3a0] sm:$0xff]  ;;  %v517_v59 = vld [vmem:[%s2082_s7 + $0x3b0] sm:$0xff]  ;;  %514 = vst [vmem:[%s2087_s8 + $0x1c8] sm:$0xff] %v513_v57 }
  0x37   : > { %516 = vst [vmem:[%s2087_s8 + $0x1d0] sm:$0xff] %v515_v58  ;;  %518 = vst [vmem:[%s2087_s8 + $0x1d8] sm:$0xff] %v517_v59  ;;  %v519_v60 = vld [vmem:[%s2082_s7 + $0x3c0] sm:$0xff]  ;;  %v521_v61 = vld [vmem:[%s2082_s7 + $0x3d0] sm:$0xff] }
  0x38   : > { %v523_v62 = vld [vmem:[%s2082_s7 + $0x3e0] sm:$0xff]  ;;  %520 = vst [vmem:[%s2087_s8 + $0x1e0] sm:$0xff] %v519_v60  ;;  %522 = vst [vmem:[%s2087_s8 + $0x1e8] sm:$0xff] %v521_v61  ;;  %v525_v63 = vld [vmem:[%s2082_s7 + $0x3f0] sm:$0xff] }
  0x39   : > { %524 = vst [vmem:[%s2087_s8 + $0x1f0] sm:$0xff] %v523_v62  ;;  %v527_v0 = vld [vmem:[%s2082_s7 + $0x400] sm:$0xff]  ;;  %v529_v1 = vld [vmem:[%s2082_s7 + $0x410] sm:$0xff]  ;;  %526 = vst [vmem:[%s2087_s8 + $0x1f8] sm:$0xff] %v525_v63 }
  0x3a   : > { %528 = vst [vmem:[%s2087_s8 + $0x200] sm:$0xff] %v527_v0  ;;  %530 = vst [vmem:[%s2087_s8 + $0x208] sm:$0xff] %v529_v1  ;;  %v531_v2 = vld [vmem:[%s2082_s7 + $0x420] sm:$0xff]  ;;  %v533_v3 = vld [vmem:[%s2082_s7 + $0x430] sm:$0xff] }
  0x3b   : > { %v535_v4 = vld [vmem:[%s2082_s7 + $0x440] sm:$0xff]  ;;  %532 = vst [vmem:[%s2087_s8 + $0x210] sm:$0xff] %v531_v2  ;;  %534 = vst [vmem:[%s2087_s8 + $0x218] sm:$0xff] %v533_v3  ;;  %v537_v5 = vld [vmem:[%s2082_s7 + $0x450] sm:$0xff] }
  0x3c   : > { %536 = vst [vmem:[%s2087_s8 + $0x220] sm:$0xff] %v535_v4  ;;  %v539_v6 = vld [vmem:[%s2082_s7 + $0x460] sm:$0xff]  ;;  %v541_v7 = vld [vmem:[%s2082_s7 + $0x470] sm:$0xff]  ;;  %538 = vst [vmem:[%s2087_s8 + $0x228] sm:$0xff] %v537_v5 }
  0x3d   : > { %540 = vst [vmem:[%s2087_s8 + $0x230] sm:$0xff] %v539_v6  ;;  %542 = vst [vmem:[%s2087_s8 + $0x238] sm:$0xff] %v541_v7  ;;  %v543_v8 = vld [vmem:[%s2082_s7 + $0x480] sm:$0xff]  ;;  %v545_v9 = vld [vmem:[%s2082_s7 + $0x490] sm:$0xff] }
  0x3e   : > { %v547_v10 = vld [vmem:[%s2082_s7 + $0x4a0] sm:$0xff]  ;;  %544 = vst [vmem:[%s2087_s8 + $0x240] sm:$0xff] %v543_v8  ;;  %546 = vst [vmem:[%s2087_s8 + $0x248] sm:$0xff] %v545_v9  ;;  %v549_v11 = vld [vmem:[%s2082_s7 + $0x4b0] sm:$0xff] }
  0x3f   : > { %548 = vst [vmem:[%s2087_s8 + $0x250] sm:$0xff] %v547_v10  ;;  %v551_v12 = vld [vmem:[%s2082_s7 + $0x4c0] sm:$0xff]  ;;  %v553_v13 = vld [vmem:[%s2082_s7 + $0x4d0] sm:$0xff]  ;;  %550 = vst [vmem:[%s2087_s8 + $0x258] sm:$0xff] %v549_v11 }
  0x40   : > { %552 = vst [vmem:[%s2087_s8 + $0x260] sm:$0xff] %v551_v12  ;;  %554 = vst [vmem:[%s2087_s8 + $0x268] sm:$0xff] %v553_v13  ;;  %v555_v14 = vld [vmem:[%s2082_s7 + $0x4e0] sm:$0xff]  ;;  %v557_v15 = vld [vmem:[%s2082_s7 + $0x4f0] sm:$0xff] }
  0x41   : > { %v559_v16 = vld [vmem:[%s2082_s7 + $0x500] sm:$0xff]  ;;  %556 = vst [vmem:[%s2087_s8 + $0x270] sm:$0xff] %v555_v14  ;;  %558 = vst [vmem:[%s2087_s8 + $0x278] sm:$0xff] %v557_v15  ;;  %v561_v17 = vld [vmem:[%s2082_s7 + $0x510] sm:$0xff] }
  0x42   : > { %560 = vst [vmem:[%s2087_s8 + $0x280] sm:$0xff] %v559_v16  ;;  %v563_v18 = vld [vmem:[%s2082_s7 + $0x520] sm:$0xff]  ;;  %v565_v19 = vld [vmem:[%s2082_s7 + $0x530] sm:$0xff]  ;;  %562 = vst [vmem:[%s2087_s8 + $0x288] sm:$0xff] %v561_v17 }
  0x43   : > { %564 = vst [vmem:[%s2087_s8 + $0x290] sm:$0xff] %v563_v18  ;;  %566 = vst [vmem:[%s2087_s8 + $0x298] sm:$0xff] %v565_v19  ;;  %v567_v20 = vld [vmem:[%s2082_s7 + $0x540] sm:$0xff]  ;;  %v569_v21 = vld [vmem:[%s2082_s7 + $0x550] sm:$0xff] }
  0x44   : > { %v571_v22 = vld [vmem:[%s2082_s7 + $0x560] sm:$0xff]  ;;  %568 = vst [vmem:[%s2087_s8 + $0x2a0] sm:$0xff] %v567_v20  ;;  %570 = vst [vmem:[%s2087_s8 + $0x2a8] sm:$0xff] %v569_v21  ;;  %v573_v23 = vld [vmem:[%s2082_s7 + $0x570] sm:$0xff] }
  0x45   : > { %572 = vst [vmem:[%s2087_s8 + $0x2b0] sm:$0xff] %v571_v22  ;;  %v575_v24 = vld [vmem:[%s2082_s7 + $0x580] sm:$0xff]  ;;  %v577_v25 = vld [vmem:[%s2082_s7 + $0x590] sm:$0xff]  ;;  %574 = vst [vmem:[%s2087_s8 + $0x2b8] sm:$0xff] %v573_v23 }
  0x46   : > { %576 = vst [vmem:[%s2087_s8 + $0x2c0] sm:$0xff] %v575_v24  ;;  %578 = vst [vmem:[%s2087_s8 + $0x2c8] sm:$0xff] %v577_v25  ;;  %v579_v26 = vld [vmem:[%s2082_s7 + $0x5a0] sm:$0xff]  ;;  %v581_v27 = vld [vmem:[%s2082_s7 + $0x5b0] sm:$0xff] }
  0x47   : > { %v583_v28 = vld [vmem:[%s2082_s7 + $0x5c0] sm:$0xff]  ;;  %580 = vst [vmem:[%s2087_s8 + $0x2d0] sm:$0xff] %v579_v26  ;;  %582 = vst [vmem:[%s2087_s8 + $0x2d8] sm:$0xff] %v581_v27  ;;  %v585_v29 = vld [vmem:[%s2082_s7 + $0x5d0] sm:$0xff] }
  0x48   : > { %584 = vst [vmem:[%s2087_s8 + $0x2e0] sm:$0xff] %v583_v28  ;;  %v587_v30 = vld [vmem:[%s2082_s7 + $0x5e0] sm:$0xff]  ;;  %v589_v31 = vld [vmem:[%s2082_s7 + $0x5f0] sm:$0xff]  ;;  %586 = vst [vmem:[%s2087_s8 + $0x2e8] sm:$0xff] %v585_v29 }
  0x49   : > { %588 = vst [vmem:[%s2087_s8 + $0x2f0] sm:$0xff] %v587_v30  ;;  %590 = vst [vmem:[%s2087_s8 + $0x2f8] sm:$0xff] %v589_v31 }
  0x4a PF: > { %p1625_p7 = scmp.ge.s32.totalorder %s1997_s18, 1  ;;  %p603_p8 = scmp.lt.s32.totalorder %s1997_s18, 13 }
  0x4c   : > { %p604_p9 = pnand %p1625_p7, %p603_p8 }
  0x4d   : > { %s610_s9 = sand.u32 (!%p604_p9), 1, %s1973_s12   ;;  %s648_s10 = smul.u32 (!%p604_p9), 6, %s1981_s14 }
  0x4e   : > { %607 = sbr.rel (%p604_p9) target bundleno = 465 (0x1d1), region = 66  ;;  %s1626_s21 = sshll.u32 (!%p604_p9), %s1985_s15, 1 }
  0x4f   : > { %s1738_s11 = smul.u32 (!%p604_p9), 768, %s610_s9  ;;  %p651_p10 = scmp.lt.s32.totalorder (!%p604_p9), %s648_s10, 35 }
  0x50   : > { %p660_p11 = scmp.lt.s32.totalorder (!%p604_p9), %s1626_s21, 3  ;;  %p1628_p12 = scmp.ne.s32.totalorder (!%p604_p9), %s1981_s14, 0 }
  0x51   : > { %s2299_s30 = scalar_lea.vmem (!%p604_p9), [#allocation3], %s1738_s11 }
  0x55   : > { %s2480_s10 = smov (!%p651_p10, %s648_s10), 35  ;;  %s2482_s21 = smov (!%p660_p11, %s1626_s21), 3 }
  0x56   : > { %s655_s24 = scalar_lea.vmem %s2463_s0, %s2480_s10  ;;  %s662_s12 = scalar_lea.vmem %s2465_s2, %s2482_s21  ;;  %v1999_v32 = vmov (!%p1628_p12), 0.0  }
  0x57   : > { %s671_s15 = scalar_lea.vmem %s2466_s3, %s2482_s21  ;;  %676 = sbr.rel (%p1628_p12) target bundleno = 94 (0x5e), region = 74  ;;  %677 = vst [vmem:[#allocation2] sm:$0xf] (!%p1628_p12), %v1999_v32 }
  0x5e PF: > { %v1798_v33 = vld [vmem:[%s2299_s30 + $0x104] ss:$8 sps:$4 sm:$0xff]   ;;  %v1800_v34 = vld [vmem:[%s2299_s30 + $0x100] ss:$8 sps:$4 sm:$0xff]   ;;  %v1801_v35 = vld [vmem:[%s2299_s30 + $0x114] ss:$8 sps:$4 sm:$0xff]   ;;  %v781_v43 = vlaneseq }
  0x5f   : > { %1351 = vmatprep.subr.bf16.mxu0 %v1798_v33  ;;  %v1803_v36 = vld [vmem:[%s2299_s30 + $0x110] ss:$8 sps:$4 sm:$0xff]   ;;  %v1804_v37 = vld [vmem:[%s2299_s30 + $0x124] ss:$8 sps:$4 sm:$0xff]   ;;  %v1806_v38 = vld [vmem:[%s2299_s30 + $0x120] ss:$8 sps:$4 sm:$0xff]  }
  0x60   : > { %1352 = vmatpush1.bf16.msra.mxu0 %v1800_v34  ;;  %v1807_v39 = vld [vmem:[%s2299_s30 + $0x134] ss:$8 sps:$4 sm:$0xff]   ;;  %v1809_v40 = vld [vmem:[%s2299_s30 + $0x130] ss:$8 sps:$4 sm:$0xff]   ;;  %v2000_v41 = vmov 1966171168  }
  0x61   : > { %1353 = vmatprep.subr.bf16.mxu0 %v1801_v35  ;;  %v779_v42 = vunpack.c.l.s4 %v2000_v41  ;;  %v1810_v44 = vld [vmem:[%s2299_s30 + $0x144] ss:$8 sps:$4 sm:$0xff]   ;;  %v1812_v45 = vld [vmem:[%s2299_s30 + $0x140] ss:$8 sps:$4 sm:$0xff]   ;;  %v2312_v47 = vshrl.u32 %v781_v43, 7  ;;  %p1725_p13 = scmp.ne.s32.totalorder %s1981_s14, 5 }
  0x62   : > { %v1813_v48 = vld [vmem:[%s2299_s30 + $0x154] ss:$8 sps:$4 sm:$0xff]   ;;  %v1815_v49 = vld [vmem:[%s2299_s30 + $0x150] ss:$8 sps:$4 sm:$0xff]   ;;  %v1816_v51 = vld [vmem:[%s2299_s30 + $0x164] ss:$8 sps:$4 sm:$0xff]  }
  0x63   : > { %v780_v46 = vunpack.c.0.s8 %v779_v42  ;;  %v1845_v52 = vld [vmem:[%s2299_s30 + $0x4] ss:$8 sps:$4 sm:$0xff]   ;;  %v1848_v53 = vld [vmem:[%s2299_s30] ss:$8 sps:$4 sm:$0xff]   ;;  %v1819_v58 = vld [vmem:[%s2299_s30 + $0x174] ss:$8 sps:$4 sm:$0xff]  }
  0x64   : > { %1354 = vmatpush1.bf16.msra.mxu0 %v1803_v36  ;;  %v679_v54 = vld [vmem:[%s655_s24] sm:$0x3f]  ;;  %1310 = vmatprep.subr.bf16.mxu1 %v1845_v52  ;;  %v1855_v61 = vld [vmem:[%s2299_s30 + $0x10] ss:$8 sps:$4 sm:$0xff]   ;;  %v1822_v63 = vld [vmem:[%s2299_s30 + $0x184] ss:$8 sps:$4 sm:$0xff]  }
  0x65   : > { %1355 = vmatprep.subr.bf16.mxu0 %v1804_v37  ;;  %v2317_v50 = vsub.s32 %v780_v46, %v2312_v47  ;;  %v1818_v55 = vld [vmem:[%s2299_s30 + $0x160] ss:$8 sps:$4 sm:$0xff]   ;;  %v777_v56 = vcombine.high %v679_v54, %v679_v54  ;;  %1311 = vmatpush1.bf16.msra.mxu1 %v1848_v53  ;;  %v1853_v60 = vld [vmem:[%s2299_s30 + $0x14] ss:$8 sps:$4 sm:$0xff]   ;;  %v1821_v62 = vld [vmem:[%s2299_s30 + $0x170] ss:$8 sps:$4 sm:$0xff]  }
  0x66   : > { %1312 = vmatprep.subr.bf16.mxu1 %v1853_v60  ;;  %v1859_v2 = vld [vmem:[%s2299_s30 + $0x24] ss:$8 sps:$4 sm:$0xff]   ;;  %v1861_v3 = vld [vmem:[%s2299_s30 + $0x20] ss:$8 sps:$4 sm:$0xff]   ;;  %v1865_v7 = vld [vmem:[%s2299_s30 + $0x34] ss:$8 sps:$4 sm:$0xff]  }
  0x67   : > { %v2329_v57 = vrot.slane %v679_v54, %v2317_v50  ;;  %v2339_v0 = vrot.slane %v777_v56, %v2317_v50  ;;  %v1824_v6 = vld [vmem:[%s2299_s30 + $0x180] ss:$8 sps:$4 sm:$0xff]   ;;  %v1825_v8 = vld [vmem:[%s2299_s30 + $0x194] ss:$8 sps:$4 sm:$0xff]   ;;  %v1867_v9 = vld [vmem:[%s2299_s30 + $0x30] ss:$8 sps:$4 sm:$0xff]  }
  0x68   : > { %1356 = vmatpush1.bf16.msra.mxu0 %v1806_v38  ;;  %v1871_v10 = vld [vmem:[%s2299_s30 + $0x44] ss:$8 sps:$4 sm:$0xff]   ;;  %v1827_v11 = vld [vmem:[%s2299_s30 + $0x190] ss:$8 sps:$4 sm:$0xff]   ;;  %v1873_v13 = vld [vmem:[%s2299_s30 + $0x40] ss:$8 sps:$4 sm:$0xff]  }
  0x69   : > { %1357 = vmatprep.subr.bf16.mxu0 %v1807_v39  ;;  %v792_v59 = vcombine.high %v2329_v57, %v2329_v57  ;;  %1313 = vmatpush1.bf16.msra.mxu1 %v1855_v61  ;;  %v807_v4 = vrot.slane %v2339_v0, %v2317_v50  ;;  %v1828_v12 = vld [vmem:[%s2299_s30 + $0x1a4] ss:$8 sps:$4 sm:$0xff]   ;;  %v1877_v14 = vld [vmem:[%s2299_s30 + $0x54] ss:$8 sps:$4 sm:$0xff]   ;;  %v1830_v15 = vld [vmem:[%s2299_s30 + $0x1a0] ss:$8 sps:$4 sm:$0xff]   ;;  %v800_v36 = vrot.slane %v2329_v57, %v2317_v50 }
  0x6a   : > { %1314 = vmatprep.subr.bf16.mxu1 %v1859_v2  ;;  %v1831_v16 = vld [vmem:[%s2299_s30 + $0x1b4] ss:$8 sps:$4 sm:$0xff]   ;;  %v1879_v17 = vld [vmem:[%s2299_s30 + $0x50] ss:$8 sps:$4 sm:$0xff]   ;;  %v1883_v18 = vld [vmem:[%s2299_s30 + $0x64] ss:$8 sps:$4 sm:$0xff]   ;;  %v793_v38 = vcombine.high %v2339_v0, %v2339_v0 }
  0x6b   : > { %v814_v1 = vrot.slane %v792_v59, %v2317_v50  ;;  %v1833_v19 = vld [vmem:[%s2299_s30 + $0x1b0] ss:$8 sps:$4 sm:$0xff]   ;;  %v1834_v20 = vld [vmem:[%s2299_s30 + $0x1c4] ss:$8 sps:$4 sm:$0xff]   ;;  %v1885_v21 = vld [vmem:[%s2299_s30 + $0x60] ss:$8 sps:$4 sm:$0xff]   ;;  %v822_v41 = vcombine.high %v800_v36, %v800_v36 }
  0x6c   : > { %1358 = vmatpush1.bf16.msra.mxu0 %v1809_v40  ;;  %v1889_v22 = vld [vmem:[%s2299_s30 + $0x74] ss:$8 sps:$4 sm:$0xff]   ;;  %v1836_v23 = vld [vmem:[%s2299_s30 + $0x1c0] ss:$8 sps:$4 sm:$0xff]   ;;  %v1891_v25 = vld [vmem:[%s2299_s30 + $0x70] ss:$8 sps:$4 sm:$0xff]   ;;  %v821_v43 = vrot.slane %v793_v38, %v2317_v50 }
  0x6d   : > { %1359 = vmatprep.subr.bf16.mxu0 %v1810_v44  ;;  %v823_v5 = vcombine.high %v814_v1, %v814_v1  ;;  %1342 = vmatprep.mubr.bf16.mxu1 %v814_v1  ;;  %v1837_v24 = vld [vmem:[%s2299_s30 + $0x1d4] ss:$8 sps:$4 sm:$0xff]   ;;  %v1895_v26 = vld [vmem:[%s2299_s30 + $0x84] ss:$8 sps:$4 sm:$0xff]   ;;  %v1839_v27 = vld [vmem:[%s2299_s30 + $0x1d0] ss:$8 sps:$4 sm:$0xff]  }
  0x6e   : > { %1315 = vmatpush1.bf16.msra.mxu1 %v1861_v3  ;;  %v1840_v28 = vld [vmem:[%s2299_s30 + $0x1e4] ss:$8 sps:$4 sm:$0xff]   ;;  %v1897_v29 = vld [vmem:[%s2299_s30 + $0x80] ss:$8 sps:$4 sm:$0xff]   ;;  %v1901_v30 = vld [vmem:[%s2299_s30 + $0x94] ss:$8 sps:$4 sm:$0xff]  }
  0x6f   : > { %1383 = vmatprep.mubr.bf16.mxu0 %v823_v5  ;;  %1316 = vmatprep.subr.bf16.mxu1 %v1865_v7  ;;  %v1842_v31 = vld [vmem:[%s2299_s30 + $0x1e0] ss:$8 sps:$4 sm:$0xff]   ;;  %v1843_v32 = vld [vmem:[%s2299_s30 + $0x1f4] ss:$8 sps:$4 sm:$0xff]   ;;  %v1903_v33 = vld [vmem:[%s2299_s30 + $0x90] ss:$8 sps:$4 sm:$0xff]  }
  0x70   : > { %1360 = vmatpush1.bf16.msra.mxu0 %v1812_v45  ;;  %v1907_v34 = vld [vmem:[%s2299_s30 + $0xa4] ss:$8 sps:$4 sm:$0xff]   ;;  %v1847_v35 = vld [vmem:[%s2299_s30 + $0x1f0] ss:$8 sps:$4 sm:$0xff]   ;;  %v1909_v39 = vld [vmem:[%s2299_s30 + $0xa0] ss:$8 sps:$4 sm:$0xff]  }
  0x71   : > { %1361 = vmatprep.subr.bf16.mxu0 %v1813_v48  ;;  %v1852_v37 = vld [vmem:[%s2299_s30 + $0x204] ss:$8 sps:$4 sm:$0xff]   ;;  %v1913_v40 = vld [vmem:[%s2299_s30 + $0xb4] ss:$8 sps:$4 sm:$0xff]   ;;  %v1850_v42 = vld [vmem:[%s2299_s30 + $0x200] ss:$8 sps:$4 sm:$0xff]  }
  0x72   : > { %1317 = vmatpush1.bf16.msra.mxu1 %v1867_v9  ;;  %v1858_v44 = vld [vmem:[%s2299_s30 + $0x214] ss:$8 sps:$4 sm:$0xff]   ;;  %v1915_v45 = vld [vmem:[%s2299_s30 + $0xb0] ss:$8 sps:$4 sm:$0xff]   ;;  %v1919_v46 = vld [vmem:[%s2299_s30 + $0xc4] ss:$8 sps:$4 sm:$0xff]  }
  0x73   : > { %1318 = vmatprep.subr.bf16.mxu1 %v1871_v10  ;;  %v1856_v48 = vld [vmem:[%s2299_s30 + $0x210] ss:$8 sps:$4 sm:$0xff]   ;;  %v1925_v52 = vld [vmem:[%s2299_s30 + $0xd4] ss:$8 sps:$4 sm:$0xff]   ;;  %v1862_v53 = vld [vmem:[%s2299_s30 + $0x220] ss:$8 sps:$4 sm:$0xff]  }
  0x74   : > { %1362 = vmatpush1.bf16.msra.mxu0 %v1815_v49  ;;  %v1864_v49 = vld [vmem:[%s2299_s30 + $0x224] ss:$8 sps:$4 sm:$0xff]   ;;  %v1870_v54 = vld [vmem:[%s2299_s30 + $0x234] ss:$8 sps:$4 sm:$0xff]   ;;  %v1868_v57 = vld [vmem:[%s2299_s30 + $0x230] ss:$8 sps:$4 sm:$0xff]  }
  0x75   : > { %1363 = vmatprep.subr.bf16.mxu0 %v1816_v51  ;;  %v1921_v51 = vld [vmem:[%s2299_s30 + $0xc0] ss:$8 sps:$4 sm:$0xff]   ;;  %v1931_v56 = vld [vmem:[%s2299_s30 + $0xe4] ss:$8 sps:$4 sm:$0xff]   ;;  %v1937_v60 = vld [vmem:[%s2299_s30 + $0xf4] ss:$8 sps:$4 sm:$0xff]  }
  0x76   : > { %1319 = vmatpush1.bf16.msra.mxu1 %v1873_v13  ;;  %v1933_v59 = vld [vmem:[%s2299_s30 + $0xe0] ss:$8 sps:$4 sm:$0xff]   ;;  %v1880_v1 = vld [vmem:[%s2299_s30 + $0x250] ss:$8 sps:$4 sm:$0xff]   ;;  %v1888_v2 = vld [vmem:[%s2299_s30 + $0x264] ss:$8 sps:$4 sm:$0xff]  }
  0x77   : > { %1320 = vmatprep.subr.bf16.mxu1 %v1877_v14  ;;  %v1874_v61 = vld [vmem:[%s2299_s30 + $0x240] ss:$8 sps:$4 sm:$0xff]   ;;  %v1894_v5 = vld [vmem:[%s2299_s30 + $0x274] ss:$8 sps:$4 sm:$0xff]   ;;  %v1900_v7 = vld [vmem:[%s2299_s30 + $0x284] ss:$8 sps:$4 sm:$0xff]  }
  0x78   : > { %1364 = vmatpush1.bf16.msra.mxu0 %v1818_v55  ;;  %v1927_v55 = vld [vmem:[%s2299_s30 + $0xd0] ss:$8 sps:$4 sm:$0xff]   ;;  %v1886_v3 = vld [vmem:[%s2299_s30 + $0x260] ss:$8 sps:$4 sm:$0xff]   ;;  %v1906_v9 = vld [vmem:[%s2299_s30 + $0x294] ss:$8 sps:$4 sm:$0xff]  }
  0x79   : > { %1365 = vmatprep.subr.bf16.mxu0 %v1819_v58  ;;  %v1876_v58 = vld [vmem:[%s2299_s30 + $0x244] ss:$8 sps:$4 sm:$0xff]   ;;  %v1904_v10 = vld [vmem:[%s2299_s30 + $0x290] ss:$8 sps:$4 sm:$0xff]   ;;  %v1918_v13 = vld [vmem:[%s2299_s30 + $0x2b4] ss:$8 sps:$4 sm:$0xff]  }
  0x7a   : > { %1321 = vmatpush1.bf16.msra.mxu1 %v1879_v17  ;;  %v1916_v14 = vld [vmem:[%s2299_s30 + $0x2b0] ss:$8 sps:$4 sm:$0xff]   ;;  %v1930_v17 = vld [vmem:[%s2299_s30 + $0x2d4] ss:$8 sps:$4 sm:$0xff]  }
  0x7b   : > { %1322 = vmatprep.subr.bf16.mxu1 %v1883_v18  ;;  %v1928_v18 = vld [vmem:[%s2299_s30 + $0x2d0] ss:$8 sps:$4 sm:$0xff]   ;;  %v678_v38 = vld [vmem:[#allocation2] sm:$0xf] }
  0x7c   : > { %1366 = vmatpush1.bf16.msra.mxu0 %v1821_v62  ;;  %v1882_v62 = vld [vmem:[%s2299_s30 + $0x254] ss:$8 sps:$4 sm:$0xff]  }
  0x7d   : > { %1367 = vmatprep.subr.bf16.mxu0 %v1822_v63  ;;  %v1939_v63 = vld [vmem:[%s2299_s30 + $0xf0] ss:$8 sps:$4 sm:$0xff]  }
  0x7e   : > { %1323 = vmatpush1.bf16.msra.mxu1 %v1885_v21  ;;  %v1942_v21 = vld [vmem:[%s2299_s30 + $0x2f4] ss:$8 sps:$4 sm:$0xff]  }
  0x7f   : > { %1324 = vmatprep.subr.bf16.mxu1 %v1889_v22  ;;  %v1940_v22 = vld [vmem:[%s2299_s30 + $0x2f0] ss:$8 sps:$4 sm:$0xff]  }
  0x80   : > { %1368 = vmatpush1.bf16.msra.mxu0 %v1824_v6  ;;  %v1892_v6 = vld [vmem:[%s2299_s30 + $0x270] ss:$8 sps:$4 sm:$0xff]  }
  0x81   : > { %1369 = vmatprep.subr.bf16.mxu0 %v1825_v8  ;;  %v1898_v8 = vld [vmem:[%s2299_s30 + $0x280] ss:$8 sps:$4 sm:$0xff]  }
  0x82   : > { %1325 = vmatpush1.bf16.msra.mxu1 %v1891_v25 }
  0x83   : > { %1326 = vmatprep.subr.bf16.mxu1 %v1895_v26 }
  0x84   : > { %1370 = vmatpush1.bf16.msra.mxu0 %v1827_v11  ;;  %v1912_v11 = vld [vmem:[%s2299_s30 + $0x2a4] ss:$8 sps:$4 sm:$0xff]  }
  0x85   : > { %1371 = vmatprep.subr.bf16.mxu0 %v1828_v12  ;;  %v1910_v12 = vld [vmem:[%s2299_s30 + $0x2a0] ss:$8 sps:$4 sm:$0xff]  }
  0x86   : > { %1327 = vmatpush1.bf16.msra.mxu1 %v1897_v29 }
  0x87   : > { %1328 = vmatprep.subr.bf16.mxu1 %v1901_v30 }
  0x88   : > { %1372 = vmatpush1.bf16.msra.mxu0 %v1830_v15  ;;  %v1924_v15 = vld [vmem:[%s2299_s30 + $0x2c4] ss:$8 sps:$4 sm:$0xff]  }
  0x89   : > { %1373 = vmatprep.subr.bf16.mxu0 %v1831_v16  ;;  %v1922_v16 = vld [vmem:[%s2299_s30 + $0x2c0] ss:$8 sps:$4 sm:$0xff]  }
  0x8a   : > { %1329 = vmatpush1.bf16.msra.mxu1 %v1903_v33 }
  0x8b   : > { %1330 = vmatprep.subr.bf16.mxu1 %v1907_v34 }
  0x8c   : > { %1374 = vmatpush1.bf16.msra.mxu0 %v1833_v19  ;;  %v1936_v19 = vld [vmem:[%s2299_s30 + $0x2e4] ss:$8 sps:$4 sm:$0xff]  }
  0x8d   : > { %1375 = vmatprep.subr.bf16.mxu0 %v1834_v20  ;;  %v1934_v20 = vld [vmem:[%s2299_s30 + $0x2e0] ss:$8 sps:$4 sm:$0xff]  }
  0x8e   : > { %1331 = vmatpush1.bf16.msra.mxu1 %v1909_v39 }
  0x8f   : > { %1332 = vmatprep.subr.bf16.mxu1 %v1913_v40  ;;  %v1455_v40 = vsub.s32 (!%p1725_p13), 0, %v2312_v47 }
  0x90   : > { %1376 = vmatpush1.bf16.msra.mxu0 %v1836_v23 }
  0x91   : > { %1377 = vmatprep.subr.bf16.mxu0 %v1837_v24 }
  0x92   : > { %1333 = vmatpush1.bf16.msra.mxu1 %v1915_v45 }
  0x93   : > { %1334 = vmatprep.subr.bf16.mxu1 %v1919_v46 }
  0x94   : > { %1378 = vmatpush1.bf16.msra.mxu0 %v1839_v27  ;;  %v2001_v27 = vmov 1983009808  }
  0x95   : > { %1379 = vmatprep.subr.bf16.mxu0 %v1840_v28  ;;  %v1437_v28 = vunpack.c.l.s4 %v2001_v27 }
  0x96   : > { %1335 = vmatpush1.bf16.msra.mxu1 %v1921_v51 }
  0x97   : > { %1336 = vmatprep.subr.bf16.mxu1 %v1925_v52  ;;  %v1438_v29 = vunpack.c.0.s8 %v1437_v28 }
  0x98   : > { %1380 = vmatpush1.bf16.msra.mxu0 %v1842_v31 }
  0x99   : > { %1381 = vmatprep.subr.bf16.mxu0 %v1843_v32  ;;  %v1441_v34 = vsub.s32 %v1438_v29, %v2312_v47 }
  0x9a   : > { %1337 = vmatpush1.bf16.msra.mxu1 %v1927_v55 }
  0x9b   : > { %1338 = vmatprep.subr.bf16.mxu1 %v1931_v56 }
  0x9c   : > { %1382 = vmatpush1.bf16.msra.mxu0 %v1847_v35 }
  0x9d   : > { %1392 = vmatprep.subr.bf16.mxu0 %v1852_v37 }
  0x9e   : > { %1339 = vmatpush1.bf16.msra.mxu1 %v1933_v59 }
  0x9f   : > { %1384 = vmatmul.mubr.bf16.vlgmr.msra.gmra.mrb[0].mxu0 %v822_v41  ;;  %1340 = vmatprep.subr.bf16.mxu1 %v1937_v60  ;;  %v1459_v41 = vsub.s32 (!%p1725_p13), 1, %v2312_v47 }
  0xa0   : > { %1393 = vmatpush1.bf16.msra.mxu0 %v1850_v42  ;;  %1424 = vmatprep.mubr.bf16.mxu0 %v821_v43 }
  0xa1   : > { %1394 = vmatprep.subr.bf16.mxu0 %v1858_v44 }
  0xa2   : > { %1341 = vmatpush1.bf16.msra.mxu1 %v1939_v63 }
  0xa4   : > { %1395 = vmatpush1.bf16.msra.mxu0 %v1856_v48 }
  0xa5   : > { %1396 = vmatprep.subr.bf16.mxu0 %v1864_v49  ;;  %1343 = vmatmul.mubr.bf16.vlgmr.msra.gmra.mrb[0].mxu1 %v800_v36 }
  0xa8   : > { %1397 = vmatpush1.bf16.msra.mxu0 %v1862_v53 }
  0xa9   : > { %1398 = vmatprep.subr.bf16.mxu0 %v1870_v54 }
  0xac   : > { %1399 = vmatpush1.bf16.msra.mxu0 %v1868_v57 }
  0xad   : > { %1400 = vmatprep.subr.bf16.mxu0 %v1876_v58 }
  0xb0   : > { %1401 = vmatpush1.bf16.msra.mxu0 %v1874_v61 }
  0xb1   : > { %1402 = vmatprep.subr.bf16.mxu0 %v1882_v62 }
  0xb4   : > { %1403 = vmatpush1.bf16.msra.mxu0 %v1880_v1 }
  0xb5   : > { %1404 = vmatprep.subr.bf16.mxu0 %v1888_v2 }
  0xb8   : > { %1405 = vmatpush1.bf16.msra.mxu0 %v1886_v3 }
  0xb9   : > { %1406 = vmatprep.subr.bf16.mxu0 %v1894_v5 }
  0xbc   : > { %1407 = vmatpush1.bf16.msra.mxu0 %v1892_v6 }
  0xbd   : > { %1408 = vmatprep.subr.bf16.mxu0 %v1900_v7 }
  0xc0   : > { %1409 = vmatpush1.bf16.msra.mxu0 %v1898_v8 }
  0xc1   : > { %1410 = vmatprep.subr.bf16.mxu0 %v1906_v9 }
  0xc4   : > { %1411 = vmatpush1.bf16.msra.mxu0 %v1904_v10 }
  0xc5   : > { %1412 = vmatprep.subr.bf16.mxu0 %v1912_v11 }
  0xc8   : > { %1413 = vmatpush1.bf16.msra.mxu0 %v1910_v12 }
  0xc9   : > { %1414 = vmatprep.subr.bf16.mxu0 %v1918_v13 }
  0xcc   : > { %1415 = vmatpush1.bf16.msra.mxu0 %v1916_v14 }
  0xcd   : > { %1416 = vmatprep.subr.bf16.mxu0 %v1924_v15 }
  0xd0   : > { %1417 = vmatpush1.bf16.msra.mxu0 %v1922_v16 }
  0xd1   : > { %1418 = vmatprep.subr.bf16.mxu0 %v1930_v17 }
  0xd4   : > { %1419 = vmatpush1.bf16.msra.mxu0 %v1928_v18 }
  0xd5   : > { %1420 = vmatprep.subr.bf16.mxu0 %v1936_v19 }
  0xd8   : > { %1421 = vmatpush1.bf16.msra.mxu0 %v1934_v20 }
  0xd9   : > { %1422 = vmatprep.subr.bf16.mxu0 %v1942_v21 }
  0xdc   : > { %1423 = vmatpush1.bf16.msra.mxu0 %v1940_v22 }
  0xdf   : > { %1425 = vmatmul.mubr.bf16.vlgmr.msra.gmra.mrb[0].mxu0 %v807_v4  ;;  %v1451_v4 = vld [vmem:[%s662_s12] sm:$0x3] (!%p1725_p13) }
  0xe0   : > { %v1456_v42 = vrot.slane (!%p1725_p13), %v1451_v4, %v1455_v40  ;;  %v1460_v43 = vrot.slane (!%p1725_p13), %v1451_v4, %v1459_v41 }
  0xe2   : > { %v1461_v44 = vcombine.low (!%p1725_p13), %v1456_v42, %v1460_v43 }
  0xe4   : > { %v1468_v46 = vrot.slane (!%p1725_p13), %v1461_v44, %v1441_v34 }
 0x178   : > { %v1344_v23 = vpop.f32.mrb[0].mxu1 }
 0x179   : > { %v1346_v24 = vpop.f32.mrb[1].mxu1 }
 0x17a   : > { %v1348_v25 = vpop.f32.mrb[2].mxu1 }
 0x17b   : > { %v1349_v26 = vpop.f32.mrb[3].mxu1 }
 0x1b2   : > { %v1426_v30 = vpop.f32.mrb[0].mxu0 }
 0x1b3   : > { %v1731_v31 = vadd.f32 %v1426_v30, %v1344_v23  ;;  %v1428_v32 = vpop.f32.mrb[1].mxu0 }
 0x1b4   : > { %v1732_v33 = vadd.f32 %v1428_v32, %v1346_v24  ;;  %v1430_v35 = vpop.f32.mrb[2].mxu0 }
 0x1b5   : > { %v1431_v36 = vpop.f32.mrb[3].mxu0 }
 0x1b6   : > { %v1435_v37 = vcombine.low %v1731_v31, %v1732_v33  ;;  %1449 = sbr.rel (%p1725_p13) target bundleno = 465 (0x1d1), region = 78 }
 0x1b8   : > { %v1442_v39 = vrot.slane %v1435_v37, %v1441_v34 }
 0x1ba   : > { %v1444_v0 = vadd.f32 %v1442_v39, %v678_v38 }
 0x1bc   : > { %1445 = vst [vmem:[#allocation2] sm:$0xf] %v1444_v0 }
 0x1c3   : > { %v1450_v45 = vld [vmem:[#allocation2] sm:$0xf] }
 0x1c4   : > { %v1470_v48 = vadd.f32 %v1468_v46, %v1450_v45 }
 0x1c6   : > { %v1471_v49 = vmax.f32 %v1470_v48, 0.0 }
 0x1c8   : > { %v1479_v51 = vrot.slane %v1471_v49, %v1441_v34 }
 0x1ca   : > { %v1480_v52 = vcombine.high %v1479_v51, %v1479_v51 }
 0x1cc   : > { %v1726_v53 = vpack.c.bf16 %v1480_v52, %v1479_v51 }
 0x1ce   : > { %v1494_v54 = vrot.slane %v1726_v53, %v2317_v50 }
 0x1d0   : > { %1727 = vst.sshfl [vmem:[%s671_s15] sm:$0x5 pattern:$0x73625140] %v1494_v54 }
 0x1d1 PF: > { %s13_s18 = sadd.s32 1, %s1997_s18   ;;  %s2467_s12 = smov %s1977_s13 }
 0x1d2   : > { %p10_p0 = scmp.ge.s32.totalorder %s13_s18, 14   ;;  %s2468_s13 = smov %s2073_s25 }
 0x1d3   : > { %s2469_s14 = smov %s1989_s16  ;;  %s2470_s15 = smov %s1993_s17 }
 0x1d4   : > { %s2471_s16 = smov %s2474_s19  ;;  %s2472_s17 = smov %s2478_s20 }
 0x1d5   :  { %12 = sbr.rel (!%p10_p0) target bundleno = 4 (0x4), region = 119 }

// kernel: gender_classifier_resnet18_forward.38
= control target key start
LH: loop header
LB: loop body
LE: loop exit
PB: predicated region body
PF: predicated region fallthrough
CT: control target
= control target key end

     0   :  { %s2106_s15 = smov 0   ;;  %s2108_s16 = smov 0   ;;  %s2556_s0 = inlined_call_operand.vmem [shape: bf16[2,4608], index: 0, kind: input, shape index: {}]   ;;  %s2557_s1 = inlined_call_operand.vmem [shape: bf16[4608,512], index: 1, kind: input, shape index: {}]   ;;  %s2558_s2 = inlined_call_operand.vmem [shape: f32[1,512], index: 2, kind: input, shape index: {}]   ;;  %s2559_s3 = inlined_call_operand.vmem [shape: bf16[2,512], index: 3, kind: input, shape index: {}]   ;;  %s2560_s4 = inlined_call_operand.vmem [shape: bf16[2,512], index: 4, kind: output, shape index: {}]  }
   0x1   :  { %s2110_s17 = smov 0   ;;  %s2112_s18 = smov 0  }
   0x2   :  { %s2114_s19 = smov 0   ;;  %s2116_s20 = smov 0  }
   0x3   :  { %s2118_s21 = smov 0  }
   0x4 LB: > { %s26_s22 = sadd.s32 1, %s2068_s19  ;;  %s29_s23 = sadd.s32 1, %s2072_s20  ;;  %s2076_s21 = sphi %s2118_s21, %s14_s21   ;;  %s2072_s20 = sphi %s2116_s20, %s2566_s20   ;;  %s2068_s19 = sphi %s2114_s19, %s2565_s19   ;;  %s2064_s18 = sphi %s2112_s18, %s2564_s18   ;;  %s2060_s17 = sphi %s2110_s17, %s2563_s17   ;;  %s2056_s16 = sphi %s2108_s16, %s2562_s16   ;;  %s2052_s15 = sphi %s2106_s15, %s2561_s15  }
   0x5   : > { %p27_p0 = scmp.ge.s32.totalorder %s26_s22, 6  ;;  %p77_p1 = scmp.ne.s32.totalorder %s2056_s16, %s2052_s15 }
   0x6   : > { %p78_p2 = scmp.eq.s32.totalorder %s2076_s21, 0  ;;  %s70_s27 = sadd.s32 1, %s2056_s16 }
   0x7   : > { %s2568_s22 = smov (%p27_p0, %s26_s22), 0  ;;  %s2570_s23 = smov (!%p27_p0, %s29_s23), %s2072_s20 }
   0x8   : > { %p79_p3 = por %p78_p2, %p77_p1  ;;  %p31_p4 = scmp.ge.s32.totalorder %s2570_s23, 2 }
   0x9   : > { %s65_s24 = ssub.s32 %s2068_s19, %s2568_s22  ;;  %p1699_p6 = scmp.ge.s32.totalorder %s2076_s21, 12 }
   0xa   : > { %s2572_s23 = smov (%p31_p4, %s2570_s23), 0 }
   0xb   : > { %s66_s25 = ssub.s32 %s2072_s20, %s2572_s23  ;;  %185 = sbr.rel (%p1699_p6) target bundleno = 74 (0x4a), region = 16 }
   0xc   : > { %s67_s26 = sor.u32 %s66_s25, %s65_s24 }
   0xd   : > { %p68_p5 = scmp.eq.s32.totalorder %s67_s26, 0 }
   0xf   : > { %s2157_s28 = scalar_select %p68_p5, %s2056_s16, %s70_s27  }
  0x12   : > { %200 = sbr.rel (!%p79_p3) target bundleno = 74 (0x4a), region = 24  ;;  %s202_s29 = sand.u32 (%p79_p3), 1, %s2056_s16  }
  0x13   : > { %s1816_s30 = smul.u32 (%p79_p3), 768, %s202_s29  ;;  %s1700_s5 = sshll.u32 (%p79_p3), %s2072_s20, 1 }
  0x14   : > { %s1809_s6 = smul.u32 (%p79_p3), 384, %s2068_s19 }
  0x15   : > { %s2171_s12 = scalar_lea.vmem (%p79_p3), [#allocation3], %s1816_s30 }
  0x16   : > { %s208_s7 = sadd.s32 (%p79_p3), %s1809_s6, %s1700_s5 }
  0x17   : > { %s1702_s8 = sshll.u32 (%p79_p3), %s208_s7, 2 }
  0x18   : > { %s2166_s11 = scalar_lea.vmem (%p79_p3), %s2557_s1, %s1702_s8 }
  0x19   : > { %v428_v0 = vld [vmem:[%s2166_s11] sm:$0xff]  ;;  %v430_v1 = vld [vmem:[%s2166_s11 + $0x10] sm:$0xff] }
  0x1a   : > { %v432_v2 = vld [vmem:[%s2166_s11 + $0x20] sm:$0xff]  ;;  %429 = vst [vmem:[%s2171_s12] sm:$0xff] %v428_v0  ;;  %431 = vst [vmem:[%s2171_s12 + $0x8] sm:$0xff] %v430_v1  ;;  %v434_v3 = vld [vmem:[%s2166_s11 + $0x30] sm:$0xff] }
  0x1b   : > { %433 = vst [vmem:[%s2171_s12 + $0x10] sm:$0xff] %v432_v2  ;;  %v436_v4 = vld [vmem:[%s2166_s11 + $0x40] sm:$0xff]  ;;  %v438_v5 = vld [vmem:[%s2166_s11 + $0x50] sm:$0xff]  ;;  %435 = vst [vmem:[%s2171_s12 + $0x18] sm:$0xff] %v434_v3 }
  0x1c   : > { %437 = vst [vmem:[%s2171_s12 + $0x20] sm:$0xff] %v436_v4  ;;  %439 = vst [vmem:[%s2171_s12 + $0x28] sm:$0xff] %v438_v5  ;;  %v440_v6 = vld [vmem:[%s2166_s11 + $0x60] sm:$0xff]  ;;  %v442_v7 = vld [vmem:[%s2166_s11 + $0x70] sm:$0xff] }
  0x1d   : > { %v444_v8 = vld [vmem:[%s2166_s11 + $0x80] sm:$0xff]  ;;  %441 = vst [vmem:[%s2171_s12 + $0x30] sm:$0xff] %v440_v6  ;;  %443 = vst [vmem:[%s2171_s12 + $0x38] sm:$0xff] %v442_v7  ;;  %v446_v9 = vld [vmem:[%s2166_s11 + $0x90] sm:$0xff] }
  0x1e   : > { %445 = vst [vmem:[%s2171_s12 + $0x40] sm:$0xff] %v444_v8  ;;  %v448_v10 = vld [vmem:[%s2166_s11 + $0xa0] sm:$0xff]  ;;  %v450_v11 = vld [vmem:[%s2166_s11 + $0xb0] sm:$0xff]  ;;  %447 = vst [vmem:[%s2171_s12 + $0x48] sm:$0xff] %v446_v9 }
  0x1f   : > { %449 = vst [vmem:[%s2171_s12 + $0x50] sm:$0xff] %v448_v10  ;;  %451 = vst [vmem:[%s2171_s12 + $0x58] sm:$0xff] %v450_v11  ;;  %v452_v12 = vld [vmem:[%s2166_s11 + $0xc0] sm:$0xff]  ;;  %v454_v13 = vld [vmem:[%s2166_s11 + $0xd0] sm:$0xff] }
  0x20   : > { %v456_v14 = vld [vmem:[%s2166_s11 + $0xe0] sm:$0xff]  ;;  %453 = vst [vmem:[%s2171_s12 + $0x60] sm:$0xff] %v452_v12  ;;  %455 = vst [vmem:[%s2171_s12 + $0x68] sm:$0xff] %v454_v13  ;;  %v458_v15 = vld [vmem:[%s2166_s11 + $0xf0] sm:$0xff] }
  0x21   : > { %457 = vst [vmem:[%s2171_s12 + $0x70] sm:$0xff] %v456_v14  ;;  %v460_v16 = vld [vmem:[%s2166_s11 + $0x100] sm:$0xff]  ;;  %v462_v17 = vld [vmem:[%s2166_s11 + $0x110] sm:$0xff]  ;;  %459 = vst [vmem:[%s2171_s12 + $0x78] sm:$0xff] %v458_v15 }
  0x22   : > { %461 = vst [vmem:[%s2171_s12 + $0x80] sm:$0xff] %v460_v16  ;;  %463 = vst [vmem:[%s2171_s12 + $0x88] sm:$0xff] %v462_v17  ;;  %v464_v18 = vld [vmem:[%s2166_s11 + $0x120] sm:$0xff]  ;;  %v466_v19 = vld [vmem:[%s2166_s11 + $0x130] sm:$0xff] }
  0x23   : > { %v468_v20 = vld [vmem:[%s2166_s11 + $0x140] sm:$0xff]  ;;  %465 = vst [vmem:[%s2171_s12 + $0x90] sm:$0xff] %v464_v18  ;;  %467 = vst [vmem:[%s2171_s12 + $0x98] sm:$0xff] %v466_v19  ;;  %v470_v21 = vld [vmem:[%s2166_s11 + $0x150] sm:$0xff] }
  0x24   : > { %469 = vst [vmem:[%s2171_s12 + $0xa0] sm:$0xff] %v468_v20  ;;  %v472_v22 = vld [vmem:[%s2166_s11 + $0x160] sm:$0xff]  ;;  %v474_v23 = vld [vmem:[%s2166_s11 + $0x170] sm:$0xff]  ;;  %471 = vst [vmem:[%s2171_s12 + $0xa8] sm:$0xff] %v470_v21 }
  0x25   : > { %473 = vst [vmem:[%s2171_s12 + $0xb0] sm:$0xff] %v472_v22  ;;  %475 = vst [vmem:[%s2171_s12 + $0xb8] sm:$0xff] %v474_v23  ;;  %v476_v24 = vld [vmem:[%s2166_s11 + $0x180] sm:$0xff]  ;;  %v478_v25 = vld [vmem:[%s2166_s11 + $0x190] sm:$0xff] }
  0x26   : > { %v480_v26 = vld [vmem:[%s2166_s11 + $0x1a0] sm:$0xff]  ;;  %477 = vst [vmem:[%s2171_s12 + $0xc0] sm:$0xff] %v476_v24  ;;  %479 = vst [vmem:[%s2171_s12 + $0xc8] sm:$0xff] %v478_v25  ;;  %v482_v27 = vld [vmem:[%s2166_s11 + $0x1b0] sm:$0xff] }
  0x27   : > { %481 = vst [vmem:[%s2171_s12 + $0xd0] sm:$0xff] %v480_v26  ;;  %v484_v28 = vld [vmem:[%s2166_s11 + $0x1c0] sm:$0xff]  ;;  %v486_v29 = vld [vmem:[%s2166_s11 + $0x1d0] sm:$0xff]  ;;  %483 = vst [vmem:[%s2171_s12 + $0xd8] sm:$0xff] %v482_v27 }
  0x28   : > { %485 = vst [vmem:[%s2171_s12 + $0xe0] sm:$0xff] %v484_v28  ;;  %487 = vst [vmem:[%s2171_s12 + $0xe8] sm:$0xff] %v486_v29  ;;  %v488_v30 = vld [vmem:[%s2166_s11 + $0x1e0] sm:$0xff]  ;;  %v490_v31 = vld [vmem:[%s2166_s11 + $0x1f0] sm:$0xff] }
  0x29   : > { %v492_v32 = vld [vmem:[%s2166_s11 + $0x200] sm:$0xff]  ;;  %489 = vst [vmem:[%s2171_s12 + $0xf0] sm:$0xff] %v488_v30  ;;  %491 = vst [vmem:[%s2171_s12 + $0xf8] sm:$0xff] %v490_v31  ;;  %v494_v33 = vld [vmem:[%s2166_s11 + $0x210] sm:$0xff] }
  0x2a   : > { %493 = vst [vmem:[%s2171_s12 + $0x100] sm:$0xff] %v492_v32  ;;  %v496_v34 = vld [vmem:[%s2166_s11 + $0x220] sm:$0xff]  ;;  %v498_v35 = vld [vmem:[%s2166_s11 + $0x230] sm:$0xff]  ;;  %495 = vst [vmem:[%s2171_s12 + $0x108] sm:$0xff] %v494_v33 }
  0x2b   : > { %497 = vst [vmem:[%s2171_s12 + $0x110] sm:$0xff] %v496_v34  ;;  %499 = vst [vmem:[%s2171_s12 + $0x118] sm:$0xff] %v498_v35  ;;  %v500_v36 = vld [vmem:[%s2166_s11 + $0x240] sm:$0xff]  ;;  %v502_v37 = vld [vmem:[%s2166_s11 + $0x250] sm:$0xff] }
  0x2c   : > { %v504_v38 = vld [vmem:[%s2166_s11 + $0x260] sm:$0xff]  ;;  %501 = vst [vmem:[%s2171_s12 + $0x120] sm:$0xff] %v500_v36  ;;  %503 = vst [vmem:[%s2171_s12 + $0x128] sm:$0xff] %v502_v37  ;;  %v506_v39 = vld [vmem:[%s2166_s11 + $0x270] sm:$0xff] }
  0x2d   : > { %505 = vst [vmem:[%s2171_s12 + $0x130] sm:$0xff] %v504_v38  ;;  %v508_v40 = vld [vmem:[%s2166_s11 + $0x280] sm:$0xff]  ;;  %v510_v41 = vld [vmem:[%s2166_s11 + $0x290] sm:$0xff]  ;;  %507 = vst [vmem:[%s2171_s12 + $0x138] sm:$0xff] %v506_v39 }
  0x2e   : > { %509 = vst [vmem:[%s2171_s12 + $0x140] sm:$0xff] %v508_v40  ;;  %511 = vst [vmem:[%s2171_s12 + $0x148] sm:$0xff] %v510_v41  ;;  %v512_v42 = vld [vmem:[%s2166_s11 + $0x2a0] sm:$0xff]  ;;  %v514_v43 = vld [vmem:[%s2166_s11 + $0x2b0] sm:$0xff] }
  0x2f   : > { %v516_v44 = vld [vmem:[%s2166_s11 + $0x2c0] sm:$0xff]  ;;  %513 = vst [vmem:[%s2171_s12 + $0x150] sm:$0xff] %v512_v42  ;;  %515 = vst [vmem:[%s2171_s12 + $0x158] sm:$0xff] %v514_v43  ;;  %v518_v45 = vld [vmem:[%s2166_s11 + $0x2d0] sm:$0xff] }
  0x30   : > { %517 = vst [vmem:[%s2171_s12 + $0x160] sm:$0xff] %v516_v44  ;;  %v520_v46 = vld [vmem:[%s2166_s11 + $0x2e0] sm:$0xff]  ;;  %v522_v47 = vld [vmem:[%s2166_s11 + $0x2f0] sm:$0xff]  ;;  %519 = vst [vmem:[%s2171_s12 + $0x168] sm:$0xff] %v518_v45 }
  0x31   : > { %521 = vst [vmem:[%s2171_s12 + $0x170] sm:$0xff] %v520_v46  ;;  %523 = vst [vmem:[%s2171_s12 + $0x178] sm:$0xff] %v522_v47  ;;  %v524_v48 = vld [vmem:[%s2166_s11 + $0x300] sm:$0xff]  ;;  %v526_v49 = vld [vmem:[%s2166_s11 + $0x310] sm:$0xff] }
  0x32   : > { %v528_v50 = vld [vmem:[%s2166_s11 + $0x320] sm:$0xff]  ;;  %525 = vst [vmem:[%s2171_s12 + $0x180] sm:$0xff] %v524_v48  ;;  %527 = vst [vmem:[%s2171_s12 + $0x188] sm:$0xff] %v526_v49  ;;  %v530_v51 = vld [vmem:[%s2166_s11 + $0x330] sm:$0xff] }
  0x33   : > { %529 = vst [vmem:[%s2171_s12 + $0x190] sm:$0xff] %v528_v50  ;;  %v532_v52 = vld [vmem:[%s2166_s11 + $0x340] sm:$0xff]  ;;  %v534_v53 = vld [vmem:[%s2166_s11 + $0x350] sm:$0xff]  ;;  %531 = vst [vmem:[%s2171_s12 + $0x198] sm:$0xff] %v530_v51 }
  0x34   : > { %533 = vst [vmem:[%s2171_s12 + $0x1a0] sm:$0xff] %v532_v52  ;;  %535 = vst [vmem:[%s2171_s12 + $0x1a8] sm:$0xff] %v534_v53  ;;  %v536_v54 = vld [vmem:[%s2166_s11 + $0x360] sm:$0xff]  ;;  %v538_v55 = vld [vmem:[%s2166_s11 + $0x370] sm:$0xff] }
  0x35   : > { %v540_v56 = vld [vmem:[%s2166_s11 + $0x380] sm:$0xff]  ;;  %537 = vst [vmem:[%s2171_s12 + $0x1b0] sm:$0xff] %v536_v54  ;;  %539 = vst [vmem:[%s2171_s12 + $0x1b8] sm:$0xff] %v538_v55  ;;  %v542_v57 = vld [vmem:[%s2166_s11 + $0x390] sm:$0xff] }
  0x36   : > { %541 = vst [vmem:[%s2171_s12 + $0x1c0] sm:$0xff] %v540_v56  ;;  %v544_v58 = vld [vmem:[%s2166_s11 + $0x3a0] sm:$0xff]  ;;  %v546_v59 = vld [vmem:[%s2166_s11 + $0x3b0] sm:$0xff]  ;;  %543 = vst [vmem:[%s2171_s12 + $0x1c8] sm:$0xff] %v542_v57 }
  0x37   : > { %545 = vst [vmem:[%s2171_s12 + $0x1d0] sm:$0xff] %v544_v58  ;;  %547 = vst [vmem:[%s2171_s12 + $0x1d8] sm:$0xff] %v546_v59  ;;  %v548_v60 = vld [vmem:[%s2166_s11 + $0x3c0] sm:$0xff]  ;;  %v550_v61 = vld [vmem:[%s2166_s11 + $0x3d0] sm:$0xff] }
  0x38   : > { %v552_v62 = vld [vmem:[%s2166_s11 + $0x3e0] sm:$0xff]  ;;  %549 = vst [vmem:[%s2171_s12 + $0x1e0] sm:$0xff] %v548_v60  ;;  %551 = vst [vmem:[%s2171_s12 + $0x1e8] sm:$0xff] %v550_v61  ;;  %v554_v63 = vld [vmem:[%s2166_s11 + $0x3f0] sm:$0xff] }
  0x39   : > { %553 = vst [vmem:[%s2171_s12 + $0x1f0] sm:$0xff] %v552_v62  ;;  %v556_v0 = vld [vmem:[%s2166_s11 + $0x400] sm:$0xff]  ;;  %v558_v1 = vld [vmem:[%s2166_s11 + $0x410] sm:$0xff]  ;;  %555 = vst [vmem:[%s2171_s12 + $0x1f8] sm:$0xff] %v554_v63 }
  0x3a   : > { %557 = vst [vmem:[%s2171_s12 + $0x200] sm:$0xff] %v556_v0  ;;  %559 = vst [vmem:[%s2171_s12 + $0x208] sm:$0xff] %v558_v1  ;;  %v560_v2 = vld [vmem:[%s2166_s11 + $0x420] sm:$0xff]  ;;  %v562_v3 = vld [vmem:[%s2166_s11 + $0x430] sm:$0xff] }
  0x3b   : > { %v564_v4 = vld [vmem:[%s2166_s11 + $0x440] sm:$0xff]  ;;  %561 = vst [vmem:[%s2171_s12 + $0x210] sm:$0xff] %v560_v2  ;;  %563 = vst [vmem:[%s2171_s12 + $0x218] sm:$0xff] %v562_v3  ;;  %v566_v5 = vld [vmem:[%s2166_s11 + $0x450] sm:$0xff] }
  0x3c   : > { %565 = vst [vmem:[%s2171_s12 + $0x220] sm:$0xff] %v564_v4  ;;  %v568_v6 = vld [vmem:[%s2166_s11 + $0x460] sm:$0xff]  ;;  %v570_v7 = vld [vmem:[%s2166_s11 + $0x470] sm:$0xff]  ;;  %567 = vst [vmem:[%s2171_s12 + $0x228] sm:$0xff] %v566_v5 }
  0x3d   : > { %569 = vst [vmem:[%s2171_s12 + $0x230] sm:$0xff] %v568_v6  ;;  %571 = vst [vmem:[%s2171_s12 + $0x238] sm:$0xff] %v570_v7  ;;  %v572_v8 = vld [vmem:[%s2166_s11 + $0x480] sm:$0xff]  ;;  %v574_v9 = vld [vmem:[%s2166_s11 + $0x490] sm:$0xff] }
  0x3e   : > { %v576_v10 = vld [vmem:[%s2166_s11 + $0x4a0] sm:$0xff]  ;;  %573 = vst [vmem:[%s2171_s12 + $0x240] sm:$0xff] %v572_v8  ;;  %575 = vst [vmem:[%s2171_s12 + $0x248] sm:$0xff] %v574_v9  ;;  %v578_v11 = vld [vmem:[%s2166_s11 + $0x4b0] sm:$0xff] }
  0x3f   : > { %577 = vst [vmem:[%s2171_s12 + $0x250] sm:$0xff] %v576_v10  ;;  %v580_v12 = vld [vmem:[%s2166_s11 + $0x4c0] sm:$0xff]  ;;  %v582_v13 = vld [vmem:[%s2166_s11 + $0x4d0] sm:$0xff]  ;;  %579 = vst [vmem:[%s2171_s12 + $0x258] sm:$0xff] %v578_v11 }
  0x40   : > { %581 = vst [vmem:[%s2171_s12 + $0x260] sm:$0xff] %v580_v12  ;;  %583 = vst [vmem:[%s2171_s12 + $0x268] sm:$0xff] %v582_v13  ;;  %v584_v14 = vld [vmem:[%s2166_s11 + $0x4e0] sm:$0xff]  ;;  %v586_v15 = vld [vmem:[%s2166_s11 + $0x4f0] sm:$0xff] }
  0x41   : > { %v588_v16 = vld [vmem:[%s2166_s11 + $0x500] sm:$0xff]  ;;  %585 = vst [vmem:[%s2171_s12 + $0x270] sm:$0xff] %v584_v14  ;;  %587 = vst [vmem:[%s2171_s12 + $0x278] sm:$0xff] %v586_v15  ;;  %v590_v17 = vld [vmem:[%s2166_s11 + $0x510] sm:$0xff] }
  0x42   : > { %589 = vst [vmem:[%s2171_s12 + $0x280] sm:$0xff] %v588_v16  ;;  %v592_v18 = vld [vmem:[%s2166_s11 + $0x520] sm:$0xff]  ;;  %v594_v19 = vld [vmem:[%s2166_s11 + $0x530] sm:$0xff]  ;;  %591 = vst [vmem:[%s2171_s12 + $0x288] sm:$0xff] %v590_v17 }
  0x43   : > { %593 = vst [vmem:[%s2171_s12 + $0x290] sm:$0xff] %v592_v18  ;;  %595 = vst [vmem:[%s2171_s12 + $0x298] sm:$0xff] %v594_v19  ;;  %v596_v20 = vld [vmem:[%s2166_s11 + $0x540] sm:$0xff]  ;;  %v598_v21 = vld [vmem:[%s2166_s11 + $0x550] sm:$0xff] }
  0x44   : > { %v600_v22 = vld [vmem:[%s2166_s11 + $0x560] sm:$0xff]  ;;  %597 = vst [vmem:[%s2171_s12 + $0x2a0] sm:$0xff] %v596_v20  ;;  %599 = vst [vmem:[%s2171_s12 + $0x2a8] sm:$0xff] %v598_v21  ;;  %v602_v23 = vld [vmem:[%s2166_s11 + $0x570] sm:$0xff] }
  0x45   : > { %601 = vst [vmem:[%s2171_s12 + $0x2b0] sm:$0xff] %v600_v22  ;;  %v604_v24 = vld [vmem:[%s2166_s11 + $0x580] sm:$0xff]  ;;  %v606_v25 = vld [vmem:[%s2166_s11 + $0x590] sm:$0xff]  ;;  %603 = vst [vmem:[%s2171_s12 + $0x2b8] sm:$0xff] %v602_v23 }
  0x46   : > { %605 = vst [vmem:[%s2171_s12 + $0x2c0] sm:$0xff] %v604_v24  ;;  %607 = vst [vmem:[%s2171_s12 + $0x2c8] sm:$0xff] %v606_v25  ;;  %v608_v26 = vld [vmem:[%s2166_s11 + $0x5a0] sm:$0xff]  ;;  %v610_v27 = vld [vmem:[%s2166_s11 + $0x5b0] sm:$0xff] }
  0x47   : > { %v612_v28 = vld [vmem:[%s2166_s11 + $0x5c0] sm:$0xff]  ;;  %609 = vst [vmem:[%s2171_s12 + $0x2d0] sm:$0xff] %v608_v26  ;;  %611 = vst [vmem:[%s2171_s12 + $0x2d8] sm:$0xff] %v610_v27  ;;  %v614_v29 = vld [vmem:[%s2166_s11 + $0x5d0] sm:$0xff] }
  0x48   : > { %613 = vst [vmem:[%s2171_s12 + $0x2e0] sm:$0xff] %v612_v28  ;;  %v616_v30 = vld [vmem:[%s2166_s11 + $0x5e0] sm:$0xff]  ;;  %v618_v31 = vld [vmem:[%s2166_s11 + $0x5f0] sm:$0xff]  ;;  %615 = vst [vmem:[%s2171_s12 + $0x2e8] sm:$0xff] %v614_v29 }
  0x49   : > { %617 = vst [vmem:[%s2171_s12 + $0x2f0] sm:$0xff] %v616_v30  ;;  %619 = vst [vmem:[%s2171_s12 + $0x2f8] sm:$0xff] %v618_v31 }
  0x4a PF: > { %p1703_p7 = scmp.ge.s32.totalorder %s2076_s21, 1  ;;  %p644_p8 = scmp.lt.s32.totalorder %s2076_s21, 13 }
  0x4c   : > { %p645_p9 = pnand %p1703_p7, %p644_p8 }
  0x4d   : > { %s651_s13 = sand.u32 (!%p645_p9), 1, %s2052_s15   ;;  %s699_s14 = smul.u32 (!%p645_p9), 6, %s2060_s17 }
  0x4e   : > { %648 = sbr.rel (%p645_p9) target bundleno = 468 (0x1d4), region = 70  ;;  %s1704_s25 = sshll.u32 (!%p645_p9), %s2064_s18, 1 }
  0x4f   : > { %s1817_s24 = smul.u32 (!%p645_p9), 768, %s651_s13  ;;  %p702_p10 = scmp.lt.s32.totalorder (!%p645_p9), %s699_s14, 35 }
  0x50   : > { %p711_p11 = scmp.lt.s32.totalorder (!%p645_p9), %s1704_s25, 3  ;;  %p1707_p12 = scmp.ne.s32.totalorder (!%p645_p9), %s2060_s17, 0 }
  0x51   : > { %s2387_s11 = scalar_lea.vmem (!%p645_p9), [#allocation3], %s1817_s24 }
  0x55   : > { %s2574_s14 = smov (!%p702_p10, %s699_s14), 35  ;;  %s2576_s25 = smov (!%p711_p11, %s1704_s25), 3 }
  0x56   : > { %s706_s29 = scalar_lea.vmem %s2556_s0, %s2574_s14  ;;  %s713_s15 = scalar_lea.vmem %s2558_s2, %s2576_s25  ;;  %v2078_v32 = vmov (!%p1707_p12), 0.0  }
  0x57   : > { %s722_s7 = scalar_lea.vmem %s2559_s3, %s2576_s25  ;;  %s731_s10 = scalar_lea.vmem %s2560_s4, %s2576_s25  ;;  %737 = vst [vmem:[#allocation2] sm:$0xf] (!%p1707_p12), %v2078_v32 }
  0x58   : > { %736 = sbr.rel (%p1707_p12) target bundleno = 95 (0x5f), region = 78 }
  0x5f PF: > { %v1877_v33 = vld [vmem:[%s2387_s11 + $0x104] ss:$8 sps:$4 sm:$0xff]   ;;  %v1879_v34 = vld [vmem:[%s2387_s11 + $0x100] ss:$8 sps:$4 sm:$0xff]   ;;  %v1880_v35 = vld [vmem:[%s2387_s11 + $0x114] ss:$8 sps:$4 sm:$0xff]   ;;  %v841_v43 = vlaneseq }
  0x60   : > { %1411 = vmatprep.subr.bf16.mxu0 %v1877_v33  ;;  %v1882_v36 = vld [vmem:[%s2387_s11 + $0x110] ss:$8 sps:$4 sm:$0xff]   ;;  %v1883_v37 = vld [vmem:[%s2387_s11 + $0x124] ss:$8 sps:$4 sm:$0xff]   ;;  %v1885_v38 = vld [vmem:[%s2387_s11 + $0x120] ss:$8 sps:$4 sm:$0xff]  }
  0x61   : > { %1412 = vmatpush1.bf16.msra.mxu0 %v1879_v34  ;;  %v1886_v39 = vld [vmem:[%s2387_s11 + $0x134] ss:$8 sps:$4 sm:$0xff]   ;;  %v1888_v40 = vld [vmem:[%s2387_s11 + $0x130] ss:$8 sps:$4 sm:$0xff]   ;;  %v2079_v41 = vmov 1966171168  }
  0x62   : > { %1413 = vmatprep.subr.bf16.mxu0 %v1880_v35  ;;  %v839_v42 = vunpack.c.l.s4 %v2079_v41  ;;  %v1889_v44 = vld [vmem:[%s2387_s11 + $0x144] ss:$8 sps:$4 sm:$0xff]   ;;  %v1891_v45 = vld [vmem:[%s2387_s11 + $0x140] ss:$8 sps:$4 sm:$0xff]   ;;  %v2400_v47 = vshrl.u32 %v841_v43, 7  ;;  %p1804_p13 = scmp.ne.s32.totalorder %s2060_s17, 5 }
  0x63   : > { %v1892_v48 = vld [vmem:[%s2387_s11 + $0x154] ss:$8 sps:$4 sm:$0xff]   ;;  %v1894_v49 = vld [vmem:[%s2387_s11 + $0x150] ss:$8 sps:$4 sm:$0xff]   ;;  %v1895_v51 = vld [vmem:[%s2387_s11 + $0x164] ss:$8 sps:$4 sm:$0xff]  }
  0x64   : > { %v840_v46 = vunpack.c.0.s8 %v839_v42  ;;  %v1924_v52 = vld [vmem:[%s2387_s11 + $0x4] ss:$8 sps:$4 sm:$0xff]   ;;  %v1927_v53 = vld [vmem:[%s2387_s11] ss:$8 sps:$4 sm:$0xff]   ;;  %v1898_v58 = vld [vmem:[%s2387_s11 + $0x174] ss:$8 sps:$4 sm:$0xff]  }
  0x65   : > { %1414 = vmatpush1.bf16.msra.mxu0 %v1882_v36  ;;  %v739_v54 = vld [vmem:[%s706_s29] sm:$0x3f]  ;;  %1370 = vmatprep.subr.bf16.mxu1 %v1924_v52  ;;  %v1934_v61 = vld [vmem:[%s2387_s11 + $0x10] ss:$8 sps:$4 sm:$0xff]   ;;  %v1901_v63 = vld [vmem:[%s2387_s11 + $0x184] ss:$8 sps:$4 sm:$0xff]  }
  0x66   : > { %1415 = vmatprep.subr.bf16.mxu0 %v1883_v37  ;;  %v2405_v50 = vsub.s32 %v840_v46, %v2400_v47  ;;  %v1897_v55 = vld [vmem:[%s2387_s11 + $0x160] ss:$8 sps:$4 sm:$0xff]   ;;  %v837_v56 = vcombine.high %v739_v54, %v739_v54  ;;  %1371 = vmatpush1.bf16.msra.mxu1 %v1927_v53  ;;  %v1932_v60 = vld [vmem:[%s2387_s11 + $0x14] ss:$8 sps:$4 sm:$0xff]   ;;  %v1900_v62 = vld [vmem:[%s2387_s11 + $0x170] ss:$8 sps:$4 sm:$0xff]  }
  0x67   : > { %1372 = vmatprep.subr.bf16.mxu1 %v1932_v60  ;;  %v1938_v2 = vld [vmem:[%s2387_s11 + $0x24] ss:$8 sps:$4 sm:$0xff]   ;;  %v1940_v3 = vld [vmem:[%s2387_s11 + $0x20] ss:$8 sps:$4 sm:$0xff]   ;;  %v1944_v7 = vld [vmem:[%s2387_s11 + $0x34] ss:$8 sps:$4 sm:$0xff]  }
  0x68   : > { %v2417_v57 = vrot.slane %v739_v54, %v2405_v50  ;;  %v2427_v0 = vrot.slane %v837_v56, %v2405_v50  ;;  %v1903_v6 = vld [vmem:[%s2387_s11 + $0x180] ss:$8 sps:$4 sm:$0xff]   ;;  %v1904_v8 = vld [vmem:[%s2387_s11 + $0x194] ss:$8 sps:$4 sm:$0xff]   ;;  %v1946_v9 = vld [vmem:[%s2387_s11 + $0x30] ss:$8 sps:$4 sm:$0xff]  }
  0x69   : > { %1416 = vmatpush1.bf16.msra.mxu0 %v1885_v38  ;;  %v1950_v10 = vld [vmem:[%s2387_s11 + $0x44] ss:$8 sps:$4 sm:$0xff]   ;;  %v1906_v11 = vld [vmem:[%s2387_s11 + $0x190] ss:$8 sps:$4 sm:$0xff]   ;;  %v1952_v13 = vld [vmem:[%s2387_s11 + $0x40] ss:$8 sps:$4 sm:$0xff]  }
  0x6a   : > { %1417 = vmatprep.subr.bf16.mxu0 %v1886_v39  ;;  %v852_v59 = vcombine.high %v2417_v57, %v2417_v57  ;;  %1373 = vmatpush1.bf16.msra.mxu1 %v1934_v61  ;;  %v867_v4 = vrot.slane %v2427_v0, %v2405_v50  ;;  %v1907_v12 = vld [vmem:[%s2387_s11 + $0x1a4] ss:$8 sps:$4 sm:$0xff]   ;;  %v1956_v14 = vld [vmem:[%s2387_s11 + $0x54] ss:$8 sps:$4 sm:$0xff]   ;;  %v1909_v15 = vld [vmem:[%s2387_s11 + $0x1a0] ss:$8 sps:$4 sm:$0xff]   ;;  %v860_v36 = vrot.slane %v2417_v57, %v2405_v50 }
  0x6b   : > { %1374 = vmatprep.subr.bf16.mxu1 %v1938_v2  ;;  %v1910_v16 = vld [vmem:[%s2387_s11 + $0x1b4] ss:$8 sps:$4 sm:$0xff]   ;;  %v1958_v17 = vld [vmem:[%s2387_s11 + $0x50] ss:$8 sps:$4 sm:$0xff]   ;;  %v1962_v18 = vld [vmem:[%s2387_s11 + $0x64] ss:$8 sps:$4 sm:$0xff]   ;;  %v853_v38 = vcombine.high %v2427_v0, %v2427_v0 }
  0x6c   : > { %v874_v1 = vrot.slane %v852_v59, %v2405_v50  ;;  %v1912_v19 = vld [vmem:[%s2387_s11 + $0x1b0] ss:$8 sps:$4 sm:$0xff]   ;;  %v1913_v20 = vld [vmem:[%s2387_s11 + $0x1c4] ss:$8 sps:$4 sm:$0xff]   ;;  %v1964_v21 = vld [vmem:[%s2387_s11 + $0x60] ss:$8 sps:$4 sm:$0xff]   ;;  %v882_v41 = vcombine.high %v860_v36, %v860_v36 }
  0x6d   : > { %1418 = vmatpush1.bf16.msra.mxu0 %v1888_v40  ;;  %v1968_v22 = vld [vmem:[%s2387_s11 + $0x74] ss:$8 sps:$4 sm:$0xff]   ;;  %v1915_v23 = vld [vmem:[%s2387_s11 + $0x1c0] ss:$8 sps:$4 sm:$0xff]   ;;  %v1970_v25 = vld [vmem:[%s2387_s11 + $0x70] ss:$8 sps:$4 sm:$0xff]   ;;  %v881_v43 = vrot.slane %v853_v38, %v2405_v50 }
  0x6e   : > { %1419 = vmatprep.subr.bf16.mxu0 %v1889_v44  ;;  %v883_v5 = vcombine.high %v874_v1, %v874_v1  ;;  %1402 = vmatprep.mubr.bf16.mxu1 %v874_v1  ;;  %v1916_v24 = vld [vmem:[%s2387_s11 + $0x1d4] ss:$8 sps:$4 sm:$0xff]   ;;  %v1974_v26 = vld [vmem:[%s2387_s11 + $0x84] ss:$8 sps:$4 sm:$0xff]   ;;  %v1918_v27 = vld [vmem:[%s2387_s11 + $0x1d0] ss:$8 sps:$4 sm:$0xff]  }
  0x6f   : > { %1375 = vmatpush1.bf16.msra.mxu1 %v1940_v3  ;;  %v1919_v28 = vld [vmem:[%s2387_s11 + $0x1e4] ss:$8 sps:$4 sm:$0xff]   ;;  %v1976_v29 = vld [vmem:[%s2387_s11 + $0x80] ss:$8 sps:$4 sm:$0xff]   ;;  %v1980_v30 = vld [vmem:[%s2387_s11 + $0x94] ss:$8 sps:$4 sm:$0xff]  }
  0x70   : > { %1443 = vmatprep.mubr.bf16.mxu0 %v883_v5  ;;  %1376 = vmatprep.subr.bf16.mxu1 %v1944_v7  ;;  %v1921_v31 = vld [vmem:[%s2387_s11 + $0x1e0] ss:$8 sps:$4 sm:$0xff]   ;;  %v1922_v32 = vld [vmem:[%s2387_s11 + $0x1f4] ss:$8 sps:$4 sm:$0xff]   ;;  %v1982_v33 = vld [vmem:[%s2387_s11 + $0x90] ss:$8 sps:$4 sm:$0xff]  }
  0x71   : > { %1420 = vmatpush1.bf16.msra.mxu0 %v1891_v45  ;;  %v1986_v34 = vld [vmem:[%s2387_s11 + $0xa4] ss:$8 sps:$4 sm:$0xff]   ;;  %v1926_v35 = vld [vmem:[%s2387_s11 + $0x1f0] ss:$8 sps:$4 sm:$0xff]   ;;  %v1988_v39 = vld [vmem:[%s2387_s11 + $0xa0] ss:$8 sps:$4 sm:$0xff]  }
  0x72   : > { %1421 = vmatprep.subr.bf16.mxu0 %v1892_v48  ;;  %v1931_v37 = vld [vmem:[%s2387_s11 + $0x204] ss:$8 sps:$4 sm:$0xff]   ;;  %v1992_v40 = vld [vmem:[%s2387_s11 + $0xb4] ss:$8 sps:$4 sm:$0xff]   ;;  %v1929_v42 = vld [vmem:[%s2387_s11 + $0x200] ss:$8 sps:$4 sm:$0xff]  }
  0x73   : > { %1377 = vmatpush1.bf16.msra.mxu1 %v1946_v9  ;;  %v1937_v44 = vld [vmem:[%s2387_s11 + $0x214] ss:$8 sps:$4 sm:$0xff]   ;;  %v1994_v45 = vld [vmem:[%s2387_s11 + $0xb0] ss:$8 sps:$4 sm:$0xff]   ;;  %v1998_v46 = vld [vmem:[%s2387_s11 + $0xc4] ss:$8 sps:$4 sm:$0xff]  }
  0x74   : > { %1378 = vmatprep.subr.bf16.mxu1 %v1950_v10  ;;  %v1935_v48 = vld [vmem:[%s2387_s11 + $0x210] ss:$8 sps:$4 sm:$0xff]   ;;  %v2004_v52 = vld [vmem:[%s2387_s11 + $0xd4] ss:$8 sps:$4 sm:$0xff]   ;;  %v1941_v53 = vld [vmem:[%s2387_s11 + $0x220] ss:$8 sps:$4 sm:$0xff]  }
  0x75   : > { %1422 = vmatpush1.bf16.msra.mxu0 %v1894_v49  ;;  %v1943_v49 = vld [vmem:[%s2387_s11 + $0x224] ss:$8 sps:$4 sm:$0xff]   ;;  %v1949_v54 = vld [vmem:[%s2387_s11 + $0x234] ss:$8 sps:$4 sm:$0xff]   ;;  %v1947_v57 = vld [vmem:[%s2387_s11 + $0x230] ss:$8 sps:$4 sm:$0xff]  }
  0x76   : > { %1423 = vmatprep.subr.bf16.mxu0 %v1895_v51  ;;  %v2000_v51 = vld [vmem:[%s2387_s11 + $0xc0] ss:$8 sps:$4 sm:$0xff]   ;;  %v2010_v56 = vld [vmem:[%s2387_s11 + $0xe4] ss:$8 sps:$4 sm:$0xff]   ;;  %v2016_v60 = vld [vmem:[%s2387_s11 + $0xf4] ss:$8 sps:$4 sm:$0xff]  }
  0x77   : > { %1379 = vmatpush1.bf16.msra.mxu1 %v1952_v13  ;;  %v2012_v59 = vld [vmem:[%s2387_s11 + $0xe0] ss:$8 sps:$4 sm:$0xff]   ;;  %v1959_v1 = vld [vmem:[%s2387_s11 + $0x250] ss:$8 sps:$4 sm:$0xff]   ;;  %v1967_v2 = vld [vmem:[%s2387_s11 + $0x264] ss:$8 sps:$4 sm:$0xff]  }
  0x78   : > { %1380 = vmatprep.subr.bf16.mxu1 %v1956_v14  ;;  %v1953_v61 = vld [vmem:[%s2387_s11 + $0x240] ss:$8 sps:$4 sm:$0xff]   ;;  %v1973_v5 = vld [vmem:[%s2387_s11 + $0x274] ss:$8 sps:$4 sm:$0xff]   ;;  %v1979_v7 = vld [vmem:[%s2387_s11 + $0x284] ss:$8 sps:$4 sm:$0xff]  }
  0x79   : > { %1424 = vmatpush1.bf16.msra.mxu0 %v1897_v55  ;;  %v2006_v55 = vld [vmem:[%s2387_s11 + $0xd0] ss:$8 sps:$4 sm:$0xff]   ;;  %v1965_v3 = vld [vmem:[%s2387_s11 + $0x260] ss:$8 sps:$4 sm:$0xff]   ;;  %v1985_v9 = vld [vmem:[%s2387_s11 + $0x294] ss:$8 sps:$4 sm:$0xff]  }
  0x7a   : > { %1425 = vmatprep.subr.bf16.mxu0 %v1898_v58  ;;  %v1955_v58 = vld [vmem:[%s2387_s11 + $0x244] ss:$8 sps:$4 sm:$0xff]   ;;  %v1983_v10 = vld [vmem:[%s2387_s11 + $0x290] ss:$8 sps:$4 sm:$0xff]   ;;  %v1997_v13 = vld [vmem:[%s2387_s11 + $0x2b4] ss:$8 sps:$4 sm:$0xff]  }
  0x7b   : > { %1381 = vmatpush1.bf16.msra.mxu1 %v1958_v17  ;;  %v1995_v14 = vld [vmem:[%s2387_s11 + $0x2b0] ss:$8 sps:$4 sm:$0xff]   ;;  %v2009_v17 = vld [vmem:[%s2387_s11 + $0x2d4] ss:$8 sps:$4 sm:$0xff]  }
  0x7c   : > { %1382 = vmatprep.subr.bf16.mxu1 %v1962_v18  ;;  %v2007_v18 = vld [vmem:[%s2387_s11 + $0x2d0] ss:$8 sps:$4 sm:$0xff]   ;;  %v738_v38 = vld [vmem:[#allocation2] sm:$0xf] }
  0x7d   : > { %1426 = vmatpush1.bf16.msra.mxu0 %v1900_v62  ;;  %v1961_v62 = vld [vmem:[%s2387_s11 + $0x254] ss:$8 sps:$4 sm:$0xff]  }
  0x7e   : > { %1427 = vmatprep.subr.bf16.mxu0 %v1901_v63  ;;  %v2018_v63 = vld [vmem:[%s2387_s11 + $0xf0] ss:$8 sps:$4 sm:$0xff]  }
  0x7f   : > { %1383 = vmatpush1.bf16.msra.mxu1 %v1964_v21  ;;  %v2021_v21 = vld [vmem:[%s2387_s11 + $0x2f4] ss:$8 sps:$4 sm:$0xff]  }
  0x80   : > { %1384 = vmatprep.subr.bf16.mxu1 %v1968_v22  ;;  %v2019_v22 = vld [vmem:[%s2387_s11 + $0x2f0] ss:$8 sps:$4 sm:$0xff]  }
  0x81   : > { %1428 = vmatpush1.bf16.msra.mxu0 %v1903_v6  ;;  %v1971_v6 = vld [vmem:[%s2387_s11 + $0x270] ss:$8 sps:$4 sm:$0xff]  }
  0x82   : > { %1429 = vmatprep.subr.bf16.mxu0 %v1904_v8  ;;  %v1977_v8 = vld [vmem:[%s2387_s11 + $0x280] ss:$8 sps:$4 sm:$0xff]  }
  0x83   : > { %1385 = vmatpush1.bf16.msra.mxu1 %v1970_v25 }
  0x84   : > { %1386 = vmatprep.subr.bf16.mxu1 %v1974_v26 }
  0x85   : > { %1430 = vmatpush1.bf16.msra.mxu0 %v1906_v11  ;;  %v1991_v11 = vld [vmem:[%s2387_s11 + $0x2a4] ss:$8 sps:$4 sm:$0xff]  }
  0x86   : > { %1431 = vmatprep.subr.bf16.mxu0 %v1907_v12  ;;  %v1989_v12 = vld [vmem:[%s2387_s11 + $0x2a0] ss:$8 sps:$4 sm:$0xff]  }
  0x87   : > { %1387 = vmatpush1.bf16.msra.mxu1 %v1976_v29 }
  0x88   : > { %1388 = vmatprep.subr.bf16.mxu1 %v1980_v30 }
  0x89   : > { %1432 = vmatpush1.bf16.msra.mxu0 %v1909_v15  ;;  %v2003_v15 = vld [vmem:[%s2387_s11 + $0x2c4] ss:$8 sps:$4 sm:$0xff]  }
  0x8a   : > { %1433 = vmatprep.subr.bf16.mxu0 %v1910_v16  ;;  %v2001_v16 = vld [vmem:[%s2387_s11 + $0x2c0] ss:$8 sps:$4 sm:$0xff]  }
  0x8b   : > { %1389 = vmatpush1.bf16.msra.mxu1 %v1982_v33 }
  0x8c   : > { %1390 = vmatprep.subr.bf16.mxu1 %v1986_v34 }
  0x8d   : > { %1434 = vmatpush1.bf16.msra.mxu0 %v1912_v19  ;;  %v2015_v19 = vld [vmem:[%s2387_s11 + $0x2e4] ss:$8 sps:$4 sm:$0xff]  }
  0x8e   : > { %1435 = vmatprep.subr.bf16.mxu0 %v1913_v20  ;;  %v2013_v20 = vld [vmem:[%s2387_s11 + $0x2e0] ss:$8 sps:$4 sm:$0xff]  }
  0x8f   : > { %1391 = vmatpush1.bf16.msra.mxu1 %v1988_v39 }
  0x90   : > { %1392 = vmatprep.subr.bf16.mxu1 %v1992_v40  ;;  %v1515_v40 = vsub.s32 (!%p1804_p13), 0, %v2400_v47 }
  0x91   : > { %1436 = vmatpush1.bf16.msra.mxu0 %v1915_v23 }
  0x92   : > { %1437 = vmatprep.subr.bf16.mxu0 %v1916_v24 }
  0x93   : > { %1393 = vmatpush1.bf16.msra.mxu1 %v1994_v45 }
  0x94   : > { %1394 = vmatprep.subr.bf16.mxu1 %v1998_v46 }
  0x95   : > { %1438 = vmatpush1.bf16.msra.mxu0 %v1918_v27  ;;  %v2080_v27 = vmov 1983009808  }
  0x96   : > { %1439 = vmatprep.subr.bf16.mxu0 %v1919_v28  ;;  %v1497_v28 = vunpack.c.l.s4 %v2080_v27 }
  0x97   : > { %1395 = vmatpush1.bf16.msra.mxu1 %v2000_v51 }
  0x98   : > { %1396 = vmatprep.subr.bf16.mxu1 %v2004_v52  ;;  %v1498_v29 = vunpack.c.0.s8 %v1497_v28 }
  0x99   : > { %1440 = vmatpush1.bf16.msra.mxu0 %v1921_v31 }
  0x9a   : > { %1441 = vmatprep.subr.bf16.mxu0 %v1922_v32  ;;  %v1501_v34 = vsub.s32 %v1498_v29, %v2400_v47 }
  0x9b   : > { %1397 = vmatpush1.bf16.msra.mxu1 %v2006_v55 }
  0x9c   : > { %1398 = vmatprep.subr.bf16.mxu1 %v2010_v56 }
  0x9d   : > { %1442 = vmatpush1.bf16.msra.mxu0 %v1926_v35 }
  0x9e   : > { %1452 = vmatprep.subr.bf16.mxu0 %v1931_v37 }
  0x9f   : > { %1399 = vmatpush1.bf16.msra.mxu1 %v2012_v59 }
  0xa0   : > { %1444 = vmatmul.mubr.bf16.vlgmr.msra.gmra.mrb[0].mxu0 %v882_v41  ;;  %1400 = vmatprep.subr.bf16.mxu1 %v2016_v60  ;;  %v1519_v41 = vsub.s32 (!%p1804_p13), 1, %v2400_v47 }
  0xa1   : > { %1453 = vmatpush1.bf16.msra.mxu0 %v1929_v42  ;;  %1484 = vmatprep.mubr.bf16.mxu0 %v881_v43 }
  0xa2   : > { %1454 = vmatprep.subr.bf16.mxu0 %v1937_v44  ;;  %v1531_v44 = vld [vmem:[%s722_s7] sm:$0x3] (!%p1804_p13) }
  0xa3   : > { %1401 = vmatpush1.bf16.msra.mxu1 %v2018_v63 }
  0xa5   : > { %1455 = vmatpush1.bf16.msra.mxu0 %v1935_v48 }
  0xa6   : > { %1456 = vmatprep.subr.bf16.mxu0 %v1943_v49  ;;  %1403 = vmatmul.mubr.bf16.vlgmr.msra.gmra.mrb[0].mxu1 %v860_v36  ;;  %v1532_v49 = vunpack.c.l.bf16 (!%p1804_p13), %v1531_v44 }
  0xa9   : > { %1457 = vmatpush1.bf16.msra.mxu0 %v1941_v53 }
  0xaa   : > { %1458 = vmatprep.subr.bf16.mxu0 %v1949_v54 }
  0xad   : > { %1459 = vmatpush1.bf16.msra.mxu0 %v1947_v57 }
  0xae   : > { %1460 = vmatprep.subr.bf16.mxu0 %v1955_v58 }
  0xb1   : > { %1461 = vmatpush1.bf16.msra.mxu0 %v1953_v61 }
  0xb2   : > { %1462 = vmatprep.subr.bf16.mxu0 %v1961_v62 }
  0xb5   : > { %1463 = vmatpush1.bf16.msra.mxu0 %v1959_v1 }
  0xb6   : > { %1464 = vmatprep.subr.bf16.mxu0 %v1967_v2 }
  0xb9   : > { %1465 = vmatpush1.bf16.msra.mxu0 %v1965_v3 }
  0xba   : > { %1466 = vmatprep.subr.bf16.mxu0 %v1973_v5 }
  0xbd   : > { %1467 = vmatpush1.bf16.msra.mxu0 %v1971_v6 }
  0xbe   : > { %1468 = vmatprep.subr.bf16.mxu0 %v1979_v7 }
  0xc1   : > { %1469 = vmatpush1.bf16.msra.mxu0 %v1977_v8 }
  0xc2   : > { %1470 = vmatprep.subr.bf16.mxu0 %v1985_v9 }
  0xc5   : > { %1471 = vmatpush1.bf16.msra.mxu0 %v1983_v10 }
  0xc6   : > { %1472 = vmatprep.subr.bf16.mxu0 %v1991_v11 }
  0xc9   : > { %1473 = vmatpush1.bf16.msra.mxu0 %v1989_v12 }
  0xca   : > { %1474 = vmatprep.subr.bf16.mxu0 %v1997_v13 }
  0xcd   : > { %1475 = vmatpush1.bf16.msra.mxu0 %v1995_v14 }
  0xce   : > { %1476 = vmatprep.subr.bf16.mxu0 %v2003_v15 }
  0xd1   : > { %1477 = vmatpush1.bf16.msra.mxu0 %v2001_v16 }
  0xd2   : > { %1478 = vmatprep.subr.bf16.mxu0 %v2009_v17 }
  0xd5   : > { %1479 = vmatpush1.bf16.msra.mxu0 %v2007_v18 }
  0xd6   : > { %1480 = vmatprep.subr.bf16.mxu0 %v2015_v19 }
  0xd9   : > { %1481 = vmatpush1.bf16.msra.mxu0 %v2013_v20 }
  0xda   : > { %1482 = vmatprep.subr.bf16.mxu0 %v2021_v21 }
  0xdd   : > { %1483 = vmatpush1.bf16.msra.mxu0 %v2019_v22 }
  0xe0   : > { %1485 = vmatmul.mubr.bf16.vlgmr.msra.gmra.mrb[0].mxu0 %v867_v4  ;;  %v1511_v4 = vld [vmem:[%s713_s15] sm:$0x3] (!%p1804_p13) }
  0xe1   : > { %v1516_v42 = vrot.slane (!%p1804_p13), %v1511_v4, %v1515_v40  ;;  %v1520_v43 = vrot.slane (!%p1804_p13), %v1511_v4, %v1519_v41 }
  0xe3   : > { %v1521_v45 = vcombine.low (!%p1804_p13), %v1516_v42, %v1520_v43 }
  0xe5   : > { %v1528_v48 = vrot.slane (!%p1804_p13), %v1521_v45, %v1501_v34 }
 0x179   : > { %v1404_v23 = vpop.f32.mrb[0].mxu1 }
 0x17a   : > { %v1406_v24 = vpop.f32.mrb[1].mxu1 }
 0x17b   : > { %v1408_v25 = vpop.f32.mrb[2].mxu1 }
 0x17c   : > { %v1409_v26 = vpop.f32.mrb[3].mxu1 }
 0x1b3   : > { %v1486_v30 = vpop.f32.mrb[0].mxu0 }
 0x1b4   : > { %v1810_v31 = vadd.f32 %v1486_v30, %v1404_v23  ;;  %v1488_v32 = vpop.f32.mrb[1].mxu0 }
 0x1b5   : > { %v1811_v33 = vadd.f32 %v1488_v32, %v1406_v24  ;;  %v1490_v35 = vpop.f32.mrb[2].mxu0 }
 0x1b6   : > { %v1491_v36 = vpop.f32.mrb[3].mxu0 }
 0x1b7   : > { %v1495_v37 = vcombine.low %v1810_v31, %v1811_v33  ;;  %1509 = sbr.rel (%p1804_p13) target bundleno = 468 (0x1d4), region = 82 }
 0x1b9   : > { %v1502_v39 = vrot.slane %v1495_v37, %v1501_v34 }
 0x1bb   : > { %v1504_v0 = vadd.f32 %v1502_v39, %v738_v38 }
 0x1bd   : > { %1505 = vst [vmem:[#allocation2] sm:$0xf] %v1504_v0 }
 0x1c4   : > { %v1510_v46 = vld [vmem:[#allocation2] sm:$0xf] }
 0x1c5   : > { %v1530_v51 = vadd.f32 %v1528_v48, %v1510_v46 }
 0x1c7   : > { %v1533_v52 = vadd.f32 %v1532_v49, %v1530_v51 }
 0x1c9   : > { %v1534_v53 = vmax.f32 %v1533_v52, 0.0 }
 0x1cb   : > { %v1542_v54 = vrot.slane %v1534_v53, %v1501_v34 }
 0x1cd   : > { %v1543_v55 = vcombine.high %v1542_v54, %v1542_v54 }
 0x1cf   : > { %v1805_v56 = vpack.c.bf16 %v1543_v55, %v1542_v54 }
 0x1d1   : > { %v1557_v57 = vrot.slane %v1805_v56, %v2405_v50 }
 0x1d3   : > { %1806 = vst.sshfl [vmem:[%s731_s10] sm:$0x5 pattern:$0x73625140] %v1557_v57 }
 0x1d4 PF: > { %s14_s21 = sadd.s32 1, %s2076_s21   ;;  %s2561_s15 = smov %s2056_s16 }
 0x1d5   : > { %p11_p0 = scmp.ge.s32.totalorder %s14_s21, 14   ;;  %s2562_s16 = smov %s2157_s28 }
 0x1d6   : > { %s2563_s17 = smov %s2068_s19  ;;  %s2564_s18 = smov %s2072_s20 }
 0x1d7   : > { %s2565_s19 = smov %s2568_s22  ;;  %s2566_s20 = smov %s2572_s23 }
 0x1d8   :  { %13 = sbr.rel (!%p11_p0) target bundleno = 4 (0x4), region = 126 }

// kernel: gender_classifier_resnet18_forward.41
= control target key start
LH: loop header
LB: loop body
LE: loop exit
PB: predicated region body
PF: predicated region fallthrough
CT: control target
= control target key end

     0   :  { %v94_v51 = vlaneseq  ;;  %s696_s0 = inlined_call_operand.vmem [shape: bf16[2,1,512], index: 0, kind: input, shape index: {}]   ;;  %s697_s1 = inlined_call_operand.vmem [shape: f32[512,2], index: 1, kind: input, shape index: {}]   ;;  %s698_s2 = inlined_call_operand.vmem [shape: f32[1,2], index: 2, kind: input, shape index: {}]   ;;  %s699_s3 = inlined_call_operand.hbm [shape: f32[2,2], index: 3, kind: output, shape index: {}]  }
   0x1   :  { %v37_v0 = vld [vmem:[%s697_s1 + $0x80] sm:$0xff]  ;;  %v38_v1 = vld [vmem:[%s697_s1 + $0x88] sm:$0xff]  ;;  %v39_v11 = vld [vmem:[%s697_s1 + $0x90] sm:$0xff] }
   0x2   :  { %v21_v2 = vld [vmem:[%s697_s1] sm:$0xff]  ;;  %v366_v3 = vpack.c.bf16 %v38_v1, %v37_v0  ;;  %v22_v4 = vld [vmem:[%s697_s1 + $0x8] sm:$0xff]  ;;  %v40_v13 = vld [vmem:[%s697_s1 + $0x98] sm:$0xff]  ;;  %v608_v0 = vshrl.u32 %v94_v51, 7 }
   0x3   :  { %v69_v5 = vld [vmem:[%s697_s1 + $0x180] sm:$0xff]  ;;  %v70_v6 = vld [vmem:[%s697_s1 + $0x188] sm:$0xff]  ;;  %v368_v7 = vpack.c.bf16 %v22_v4, %v21_v2  ;;  %v23_v14 = vld [vmem:[%s697_s1 + $0x10] sm:$0xff]  ;;  %v370_v16 = vpack.c.bf16 %v40_v13, %v39_v11 }
   0x4   :  { %v398_v8 = vpack.c.bf16 %v70_v6, %v69_v5  ;;  %v53_v9 = vld [vmem:[%s697_s1 + $0x100] sm:$0xff]  ;;  %v54_v10 = vld [vmem:[%s697_s1 + $0x108] sm:$0xff]  ;;  %367 = vmatprep.subr.bf16.mxu0 %v366_v3  ;;  %v24_v15 = vld [vmem:[%s697_s1 + $0x18] sm:$0xff] }
   0x5   :  { %v400_v12 = vpack.c.bf16 %v54_v10, %v53_v9  ;;  %369 = vmatpush3.bf16.msra.mxu0 %v368_v7  ;;  %v372_v17 = vpack.c.bf16 %v24_v15, %v23_v14  ;;  %v71_v18 = vld [vmem:[%s697_s1 + $0x190] sm:$0xff]  ;;  %v72_v19 = vld [vmem:[%s697_s1 + $0x198] sm:$0xff]  ;;  %v41_v23 = vld [vmem:[%s697_s1 + $0xa0] sm:$0xff] }
   0x6   :  { %399 = vmatprep.subr.bf16.mxu1 %v398_v8  ;;  %v55_v20 = vld [vmem:[%s697_s1 + $0x110] sm:$0xff]  ;;  %v402_v21 = vpack.c.bf16 %v72_v19, %v71_v18  ;;  %v56_v22 = vld [vmem:[%s697_s1 + $0x118] sm:$0xff]  ;;  %v42_v24 = vld [vmem:[%s697_s1 + $0xa8] sm:$0xff]  ;;  %371 = vmatprep.subr.bf16.mxu0 %v370_v16  ;;  %v100_v16 = vsub.s32 2, %v608_v0 }
   0x7   :  { %401 = vmatpush3.bf16.msra.mxu1 %v400_v12  ;;  %v404_v25 = vpack.c.bf16 %v56_v22, %v55_v20  ;;  %v374_v26 = vpack.c.bf16 %v42_v24, %v41_v23  ;;  %v25_v27 = vld [vmem:[%s697_s1 + $0x20] sm:$0xff]  ;;  %v26_v28 = vld [vmem:[%s697_s1 + $0x28] sm:$0xff]  ;;  %v43_v35 = vld [vmem:[%s697_s1 + $0xb0] sm:$0xff] }
   0x8   :  { %v73_v29 = vld [vmem:[%s697_s1 + $0x1a0] sm:$0xff]  ;;  %403 = vmatprep.subr.bf16.mxu1 %v402_v21  ;;  %v74_v30 = vld [vmem:[%s697_s1 + $0x1a8] sm:$0xff]  ;;  %v376_v33 = vpack.c.bf16 %v26_v28, %v25_v27  ;;  %v44_v36 = vld [vmem:[%s697_s1 + $0xb8] sm:$0xff]  ;;  %v108_v21 = vsub.s32 6, %v608_v0 }
   0x9   :  { %v57_v31 = vld [vmem:[%s697_s1 + $0x120] sm:$0xff]  ;;  %v58_v32 = vld [vmem:[%s697_s1 + $0x128] sm:$0xff]  ;;  %373 = vmatpush3.bf16.msra.mxu0 %v372_v17  ;;  %v406_v34 = vpack.c.bf16 %v74_v30, %v73_v29  ;;  %v27_v37 = vld [vmem:[%s697_s1 + $0x30] sm:$0xff]  ;;  %v378_v39 = vpack.c.bf16 %v44_v36, %v43_v35 }
   0xa   :  { %375 = vmatprep.subr.bf16.mxu0 %v374_v26  ;;  %v408_v38 = vpack.c.bf16 %v58_v32, %v57_v31  ;;  %v28_v40 = vld [vmem:[%s697_s1 + $0x38] sm:$0xff]  ;;  %v75_v41 = vld [vmem:[%s697_s1 + $0x1b0] sm:$0xff]  ;;  %v45_v46 = vld [vmem:[%s697_s1 + $0xc0] sm:$0xff] }
   0xb   :  { %405 = vmatpush3.bf16.msra.mxu1 %v404_v25  ;;  %v76_v42 = vld [vmem:[%s697_s1 + $0x1b8] sm:$0xff]  ;;  %v59_v44 = vld [vmem:[%s697_s1 + $0x130] sm:$0xff]  ;;  %v46_v47 = vld [vmem:[%s697_s1 + $0xc8] sm:$0xff]  ;;  %v380_v48 = vpack.c.bf16 %v28_v40, %v27_v37 }
   0xc   :  { %407 = vmatprep.subr.bf16.mxu1 %v406_v34  ;;  %v410_v43 = vpack.c.bf16 %v76_v42, %v75_v41  ;;  %v60_v45 = vld [vmem:[%s697_s1 + $0x138] sm:$0xff]  ;;  %v77_v49 = vld [vmem:[%s697_s1 + $0x1c0] sm:$0xff]  ;;  %v78_v50 = vld [vmem:[%s697_s1 + $0x1c8] sm:$0xff]  ;;  %v382_v53 = vpack.c.bf16 %v46_v47, %v45_v46 }
   0xd   :  { %377 = vmatpush3.bf16.msra.mxu0 %v376_v33  ;;  %v412_v52 = vpack.c.bf16 %v60_v45, %v59_v44  ;;  %v29_v54 = vld [vmem:[%s697_s1 + $0x40] sm:$0xff]  ;;  %v30_v55 = vld [vmem:[%s697_s1 + $0x48] sm:$0xff]  ;;  %v414_v57 = vpack.c.bf16 %v78_v50, %v77_v49  ;;  %v47_v59 = vld [vmem:[%s697_s1 + $0xd0] sm:$0xff] }
   0xe   :  { %379 = vmatprep.subr.bf16.mxu0 %v378_v39  ;;  %v61_v56 = vld [vmem:[%s697_s1 + $0x140] sm:$0xff]  ;;  %v62_v58 = vld [vmem:[%s697_s1 + $0x148] sm:$0xff]  ;;  %v48_v60 = vld [vmem:[%s697_s1 + $0xd8] sm:$0xff]  ;;  %v384_v63 = vpack.c.bf16 %v30_v55, %v29_v54 }
   0xf   :  { %409 = vmatpush3.bf16.msra.mxu1 %v408_v38  ;;  %v79_v61 = vld [vmem:[%s697_s1 + $0x1d0] sm:$0xff]  ;;  %v80_v62 = vld [vmem:[%s697_s1 + $0x1d8] sm:$0xff]  ;;  %v416_v1 = vpack.c.bf16 %v62_v58, %v61_v56  ;;  %v386_v2 = vpack.c.bf16 %v48_v60, %v47_v59  ;;  %v49_v8 = vld [vmem:[%s697_s1 + $0xe0] sm:$0xff] }
  0x10   :  { %411 = vmatprep.subr.bf16.mxu1 %v410_v43  ;;  %v31_v3 = vld [vmem:[%s697_s1 + $0x50] sm:$0xff]  ;;  %v32_v4 = vld [vmem:[%s697_s1 + $0x58] sm:$0xff]  ;;  %v418_v6 = vpack.c.bf16 %v80_v62, %v79_v61  ;;  %v50_v9 = vld [vmem:[%s697_s1 + $0xe8] sm:$0xff] }
  0x11   :  { %381 = vmatpush3.bf16.msra.mxu0 %v380_v48  ;;  %v63_v5 = vld [vmem:[%s697_s1 + $0x150] sm:$0xff]  ;;  %v64_v7 = vld [vmem:[%s697_s1 + $0x158] sm:$0xff]  ;;  %v81_v10 = vld [vmem:[%s697_s1 + $0x1e0] sm:$0xff]  ;;  %v388_v12 = vpack.c.bf16 %v32_v4, %v31_v3  ;;  %v390_v18 = vpack.c.bf16 %v50_v9, %v49_v8 }
  0x12   :  { %383 = vmatprep.subr.bf16.mxu0 %v382_v53  ;;  %v82_v11 = vld [vmem:[%s697_s1 + $0x1e8] sm:$0xff]  ;;  %v33_v13 = vld [vmem:[%s697_s1 + $0x60] sm:$0xff]  ;;  %v420_v17 = vpack.c.bf16 %v64_v7, %v63_v5 }
  0x13   :  { %413 = vmatpush3.bf16.msra.mxu1 %v412_v52  ;;  %v34_v14 = vld [vmem:[%s697_s1 + $0x68] sm:$0xff]  ;;  %v65_v15 = vld [vmem:[%s697_s1 + $0x160] sm:$0xff] }
  0x14   :  { %415 = vmatprep.subr.bf16.mxu1 %v414_v57  ;;  %v66_v19 = vld [vmem:[%s697_s1 + $0x168] sm:$0xff]  ;;  %v293_v20 = vld [vmem:[%s696_s0] sm:$0xff]  }
  0x15   :  { %385 = vmatpush3.bf16.msra.mxu0 %v384_v63 }
  0x16   :  { %387 = vmatprep.subr.bf16.mxu0 %v386_v2 }
  0x17   :  { %417 = vmatpush3.bf16.msra.mxu1 %v416_v1 }
  0x18   :  { %8 = vsyncpa [#allocation3], 0  ;;  %419 = vmatprep.subr.bf16.mxu1 %v418_v6  ;;  %v422_v22 = vpack.c.bf16 %v82_v11, %v81_v10  ;;  %v51_v23 = vld [vmem:[%s697_s1 + $0xf0] sm:$0xff]  ;;  %v52_v24 = vld [vmem:[%s697_s1 + $0xf8] sm:$0xff]  ;;  %v294_v25 = vunpack.c.l.bf16 %v293_v20  ;;  %v295_v26 = vunpack.c.h.bf16 %v293_v20  ;;  %vm126_vm0 = vcmask 1041409   ;;  %s455_s7 = smov [#allocation2]  }
  0x19   :  { %v83_v27 = vld [vmem:[%s697_s1 + $0x1f0] sm:$0xff]  ;;  %v84_v28 = vld [vmem:[%s697_s1 + $0x1f8] sm:$0xff]  ;;  %v96_v29 = vsub.s32 0, %v608_v0  ;;  %389 = vmatpush3.bf16.msra.mxu0 %v388_v12  ;;  %v392_v30 = vpack.c.bf16 %v34_v14, %v33_v13  ;;  %v424_v31 = vpack.c.bf16 %v66_v19, %v65_v15  ;;  %v394_v34 = vpack.c.bf16 %v52_v24, %v51_v23  ;;  %v291_v54 = vld [vmem:[%s698_s2] ss:$0 sm:$0xff]  ;;  %s283_s8 = sshll.u32 %s455_s7, 4  ;;  %s284_s8 = int_to_ptr.vmem [resolvable:$true] %s283_s8 }
  0x1a   :  { %v101_v32 = vrot.slane %v294_v25, %v100_v16  ;;  %v117_v33 = vrot.slane %v295_v26, %v100_v16  ;;  %391 = vmatprep.subr.bf16.mxu0 %v390_v18  ;;  %v35_v35 = vld [vmem:[%s697_s1 + $0x70] sm:$0xff]  ;;  %v36_v36 = vld [vmem:[%s697_s1 + $0x78] sm:$0xff]  ;;  %v109_v37 = vrot.slane %v294_v25, %v108_v21  ;;  %v125_v38 = vrot.slane %v295_v26, %v108_v21  ;;  %s431_s9 = scalar_lea.vmem %s284_s8, 32  ;;  %p436_p1 = scmp.lt.s32.totalorder %s284_s8, %s284_s8 }
  0x1b   :  { %421 = vmatpush3.bf16.msra.mxu1 %v420_v17  ;;  %v104_v39 = vsub.s32 4, %v608_v0  ;;  %v426_v40 = vpack.c.bf16 %v84_v28, %v83_v27  ;;  %v67_v41 = vld [vmem:[%s697_s1 + $0x170] sm:$0xff]  ;;  %v68_v42 = vld [vmem:[%s697_s1 + $0x178] sm:$0xff]  ;;  %v396_v45 = vpack.c.bf16 %v36_v36, %v35_v35  ;;  %v97_v46 = vrot.slane %v294_v25, %v96_v29  ;;  %p432_p0 = scmp.ne.s32.totalorder %s284_s8, %s431_s9  ;;  %p437_p2 = scmp.lt.s32.totalorder %s431_s9, %s431_s9 }
  0x1c   :  { %423 = vmatprep.subr.bf16.mxu1 %v422_v22  ;;  %v128_v43 = vsel %vm126_vm0, %v117_v33, %v101_v32  ;;  %v130_v44 = vsel %vm126_vm0, %v125_v38, %v109_v37  ;;  %v113_v47 = vrot.slane %v295_v26, %v96_v29  ;;  %v428_v48 = vpack.c.bf16 %v68_v42, %v67_v41 }
  0x1d   :  { %199 = vmatprep.mubr.f32.mxu0 %v128_v43  ;;  %393 = vmatpush3.bf16.msra.mxu0 %v392_v30  ;;  %v105_v49 = vrot.slane %v294_v25, %v104_v39  ;;  %v121_v50 = vrot.slane %v295_v26, %v104_v39  ;;  %vm275_vm1 = vcmask 9216   ;;  %p438_p3 = por %p437_p2, %p436_p1 }
  0x1e   :  { %269 = vmatprep.mubr.f32.mxu1 %v130_v44  ;;  %395 = vmatprep.subr.bf16.mxu0 %v394_v34  ;;  %v127_v51 = vsel %vm126_vm0, %v113_v47, %v97_v46 }
  0x1f   :  { %425 = vmatpush3.bf16.msra.mxu1 %v424_v31  ;;  %v129_v52 = vsel %vm126_vm0, %v121_v50, %v105_v49  ;;  %p439_p4 = pnand %p438_p3, %p432_p0 }
  0x20   :  { %427 = vmatprep.subr.bf16.mxu1 %v426_v40 }
  0x21   :  { %397 = vmatpush3.bf16.msra.mxu0 %v396_v45 }
  0x23   :  { %429 = vmatpush3.bf16.msra.mxu1 %v428_v48 }
  0x24   :  { %200 = vmatmul.mubr.f32.vlgmr.msra.gmra.mrb[0].mxu0 %v127_v51 }
  0x26   :  { %270 = vmatmul.mubr.f32.vlgmr.msra.gmra.mrb[0].mxu1 %v129_v52 }
  0xf7   :  { %v328_v53 = vpop.f32.mrb[0].mxu0 }
  0xf8   :  { %v329_v55 = vpop.f32.mrb[1].mxu0 }
  0xf9   :  { %v363_v56 = vpop.f32.mrb[0].mxu1  ;;  %v330_v57 = vadd.f32 %v329_v55, %v328_v53 }
  0xfa   :  { %v364_v58 = vpop.f32.mrb[1].mxu1 }
  0xfb   :  { %v365_v59 = vadd.f32 %v364_v58, %v363_v56  ;;  %v202_v60 = vadd.f32 %v330_v57, %v291_v54 }
  0xfd   :  { %v272_v61 = vadd.f32 %v365_v59, %v202_v60 }
  0xff   :  { %276 = vst.msk [vmem:[#allocation2] sm:$0x3] %vm275_vm1, %v272_v61 }
 0x100   :  { %442 = shalt.err (!%p439_p4)
}
 0x101   :  { %s443_s11 = scalar_lea.hbm %s699_s3, 32 }
 0x102   :  { %p444_p5 = scmp.ne.s32.totalorder %s699_s3, %s443_s11  ;;  %p447_p6 = scmp.lt.u32.totalorder %s443_s11, %s699_s3 }
 0x104   :  { %p449_p7 = pnand %p447_p6, %p444_p5 }
 0x106   :  { %452 = shalt.err (!%p449_p7)
}
 0x107   :  { %286 = dma.vmem_to_hbm [thread:$0]  %s284_s8, 32, %s699_s3, [#allocation3]  }
 0x108   :  { %453 = dma.done.wait [#allocation3], 32  }
 0x109   :  { %454 = vsyncadd [#allocation3], 4294967264 }
 0x10a   :  { %290 = vsyncpa [#allocation3], 1 }

</bundles_post_ra>
